<compile_context>
chip_gen: v6e
topology: v6e:2x2x1
jax: 0.10.0
libtpu: 0.0.40
codegen_flags: <defaults>
</compile_context>

<pallas_src>
import numpy as np

import jax
import jax.numpy as jnp
from jax.experimental import pallas as pl
from jax.experimental.pallas import tpu as pltpu


def _round_up(n, m):
    return ((n + m - 1) // m) * m


# ----------------------------------------------------------------------------
# Banded ("Toeplitz over W") conv weights: fold the 3 kw taps + W zero padding
# of a 3x3 'same' conv into a (W*Cin, W*Cout) matmul weight, one per kh.
# ----------------------------------------------------------------------------
def _conv_band(w_oihw, w_spatial, interleave_pool):
    """w_oihw: (Cout, Cin, 3, 3) float32 numpy (PyTorch layout).

    Returns m of shape (3, W*Cin, W*Cout) such that for an input row whose
    lanes are ordered (w_in*Cin + ci), `row @ m[kh]` gives the kh-tap
    contribution for every output position, with output lanes ordered
       natural:     w_out*Cout + co
       interleaved: (w_out % 2)*(W//2)*Cout + (w_out // 2)*Cout + co
    (interleaved order turns MaxPool2d over W into a max of the 2 lane halves).
    """
    cout, cin, _, _ = w_oihw.shape
    W = w_spatial
    m = np.zeros((3, W * cin, W * cout), np.float32)
    for kh in range(3):
        for kw in range(3):
            tap = w_oihw[:, :, kh, kw].T                     # (Cin, Cout)
            for wo in range(W):
                wi = wo + kw - 1
                if not 0 <= wi < W:                          # 'same' W padding
                    continue
                if interleave_pool:
                    col = (wo % 2) * (W // 2) * cout + (wo // 2) * cout
                else:
                    col = wo * cout
                m[kh, wi * cin:(wi + 1) * cin, col:col + cout] = tap
    return m


# ----------------------------------------------------------------------------
# Fused kernel: conv1+pool -> conv2+pool -> conv3(+identity adaptive pool)
#               -> fc_shared+ReLU -> fused heads.   bt samples per grid step.
# ----------------------------------------------------------------------------
def _make_fused_kernel(bt, cdt):
    f32 = jnp.float32

    def kernel(x_ref, w1_ref, b1_ref, w2_ref, b2_ref, w3_ref, b3_ref,
               ws_ref, bs_ref, wh_ref, bh_ref, o_ref, xp2, xp3, xfc):
        # ------- conv1 (1->32) + ReLU + MaxPool2d(2,2): ONE K=48 matmul ------
        # x_ref is host-im2col'd: rows (b, h_out), lanes (kh*16 + w_in).
        lhs1 = x_ref[...].reshape(bt * 16, 48)
        acc = jnp.dot(lhs1, w1_ref[...], preferred_element_type=f32)
        acc = jnp.maximum(acc + b1_ref[...], 0.0)            # bias + ReLU (f32)
        acc = jnp.maximum(acc[:, :256], acc[:, 256:])        # pool W (even|odd halves)
        acc = acc.reshape(bt * 8, 2, 256).max(axis=1)        # pool H -> (bt*8, 8*32)

        # -------------- conv2 (32->64) + ReLU + MaxPool2d(2,2) ---------------
        zr = jnp.zeros((bt, 1, 256), cdt)
        xp2[:, 0:1, :] = zr                                  # only the H-pad rows
        xp2[:, 9:10, :] = zr
        xp2[:, 1:9, :] = acc.reshape(bt, 8, 256).astype(cdt)
        acc = jnp.dot(xp2[:, 0:8, :].reshape(bt * 8, 256), w2_ref[0],
                      preferred_element_type=f32)            # bias-free init from dot
        acc = acc + jnp.dot(xp2[:, 1:9, :].reshape(bt * 8, 256), w2_ref[1],
                            preferred_element_type=f32)
        acc = acc + jnp.dot(xp2[:, 2:10, :].reshape(bt * 8, 256), w2_ref[2],
                            preferred_element_type=f32)
        acc = jnp.maximum(acc + b2_ref[...], 0.0)
        acc = jnp.maximum(acc[:, :256], acc[:, 256:])        # pool W
        acc = acc.reshape(bt * 4, 2, 256).max(axis=1)        # pool H -> (bt*4, 4*64)

        # ------- conv3 (64->128) + ReLU + AdaptiveAvgPool2d((4,4)) -----------
        # Post-conv3 spatial is already 4x4 for 16x16 inputs -> pool = identity.
        xp3[:, 0:1, :] = zr
        xp3[:, 5:6, :] = zr
        xp3[:, 1:5, :] = acc.reshape(bt, 4, 256).astype(cdt)
        acc = jnp.dot(xp3[:, 0:4, :].reshape(bt * 4, 256), w3_ref[0],
                      preferred_element_type=f32)
        acc = acc + jnp.dot(xp3[:, 1:5, :].reshape(bt * 4, 256), w3_ref[1],
                            preferred_element_type=f32)
        acc = acc + jnp.dot(xp3[:, 2:6, :].reshape(bt * 4, 256), w3_ref[2],
                            preferred_element_type=f32)
        acc = jnp.maximum(acc + b3_ref[...], 0.0)            # rows (b,h), lanes (w,c)

        # -------- fc_shared + ReLU (+ Dropout=identity at eval) --------------
        # feats(b)[h*512 + w*128 + c] == acc[b*4+h, w*128+c]; ws rows ordered (h,w,c).
        # Stage the activation through a scratch ref so per-h LHS slices are plain
        # VMEM loads (no strided vreg gathers of a live vector value).
        # TODO(synk): a single K=2048 matmul would need a sublane->lane reshape of
        # the activation vector; kept as 4 K=512 matmuls for lowering safety.
        xfc[...] = acc.reshape(bt, 4, 512).astype(cdt)
        shared = jnp.dot(xfc[:, 0, :], ws_ref[0:512, :], preferred_element_type=f32)
        for h in range(1, 4):
            shared = shared + jnp.dot(xfc[:, h, :],
                                      ws_ref[h * 512:(h + 1) * 512, :],
                                      preferred_element_type=f32)
        shared = jnp.maximum(shared + bs_ref[...], 0.0)
        # TODO(synk): training-mode Dropout(0.2) would need pltpu.prng_*; this
        # follows eval semantics (identity), matching the PyTorch module in eval().

        # -------- 3 heads fused into one lane-dense (bt, 128) matmul ---------
        o_ref[...] = jnp.dot(shared.astype(cdt), wh_ref[...],
                             preferred_element_type=f32) + bh_ref[...]

    return kernel


# ----------------------------------------------------------------------------
# Wrapper: batch blocking, host-side im2col of conv1 input, BlockSpecs, scratch.
# ----------------------------------------------------------------------------
def diacritic_cnn_forward(x_nchw, kp, *, batch_tile=None):
    """Fused Pallas forward.  x_nchw: (B, 1, 16, 16) float32 (PyTorch layout)."""
    B = x_nchw.shape[0]
    # TODO(synk): kernel is specialized to 16x16 glyph patches (where
    # AdaptiveAvgPool2d((4,4)) is the identity); other sizes need new bands.
    assert tuple(x_nchw.shape[1:]) == (1, 16, 16), "expected (B, 1, 16, 16) input"

    cdt = kp["w1f"].dtype
    if batch_tile is None:
        # Single grid step for B <= 128 (the grid is a serial loop per TC);
        # 128-sample tiles otherwise (>=2 "parallel" steps feed both v7x TCs
        # while keeping the per-step working set inside v7x's 64 MiB VMEM).
        # TODO(synk): on v7x with small B, callers can pass
        # batch_tile=_round_up(pl.cdiv(B, 2), 8) to get exactly 2 steps.
        batch_tile = min(_round_up(B, 8), 128)
    bt = max(8, _round_up(int(batch_tile), 8))       # bt % 8 == 0: clean (8,128) blocks
    nb = pl.cdiv(B, bt)
    bp = nb * bt

    # Host-side prep (one-time fused XLA ops): batch pad, 'same' H zero-pad,
    # and im2col over kh so conv1 is a single K=48 matmul inside the kernel.
    x = x_nchw.reshape(B, 16, 16).astype(cdt)
    if bp != B:
        x = jnp.pad(x, ((0, bp - B), (0, 0), (0, 0)))
    xpad = jnp.pad(x, ((0, 0), (1, 1), (0, 0)))                    # H zero-pad
    x_im2col = jnp.concatenate(
        [xpad[:, 0:16, :], xpad[:, 1:17, :], xpad[:, 2:18, :]], axis=2)  # (bp,16,48)

    flops = 2 * bp * (16 * 48 * 512 + 3 * 8 * 256 * 512 + 3 * 4 * 256 * 512
                      + 4 * 512 * 256 + 256 * 128)
    bytes_accessed = (int(x_im2col.size) * x_im2col.dtype.itemsize + bp * 128 * 4
                      + sum(int(v.size) * v.dtype.itemsize for v in kp.values()))

    # TODO(synk): the constant-index weight blocks could be single-buffered via
    # pipeline_mode=pl.Buffered(1) to save a few MiB of VMEM; left at the default
    # double-buffering for lowering safety (footprint fits comfortably at bt<=128).
    out = pl.pallas_call(
        _make_fused_kernel(bt, cdt),
        out_shape=jax.ShapeDtypeStruct((bp, 128), jnp.float32),
        grid=(nb,),
        in_specs=[
            pl.BlockSpec((bt, 16, 48), lambda i: (i, 0, 0)),      # im2col'd input
            pl.BlockSpec((48, 512), lambda i: (0, 0)),            # conv1 fused band
            pl.BlockSpec((1, 512), lambda i: (0, 0)),             # b1 (tiled over W)
            pl.BlockSpec((3, 256, 512), lambda i: (0, 0, 0)),     # conv2 bands (per kh)
            pl.BlockSpec((1, 512), lambda i: (0, 0)),             # b2 (tiled)
            pl.BlockSpec((3, 256, 512), lambda i: (0, 0, 0)),     # conv3 bands
            pl.BlockSpec((1, 512), lambda i: (0, 0)),             # b3 (tiled)
            pl.BlockSpec((2048, 256), lambda i: (0, 0)),          # fc_shared (h,w,c rows)
            pl.BlockSpec((1, 256), lambda i: (0, 0)),             # bs
            pl.BlockSpec((256, 128), lambda i: (0, 0)),           # fused heads (padded)
            pl.BlockSpec((1, 128), lambda i: (0, 0)),             # fused head bias
        ],
        out_specs=pl.BlockSpec((bt, 128), lambda i: (i, 0)),
        scratch_shapes=[
            pltpu.VMEM((bt, 10, 256), cdt),    # conv2 input (H zero-pad rows 0,9)
            pltpu.VMEM((bt, 6, 256), cdt),     # conv3 input (H zero-pad rows 0,5)
            pltpu.VMEM((bt, 4, 512), cdt),     # fc_shared LHS staging
        ],
        compiler_params=pltpu.CompilerParams(
            dimension_semantics=("parallel",),
            vmem_limit_bytes=48 * 1024 * 1024),
        cost_estimate=pl.CostEstimate(flops=flops, transcendentals=0,
                                      bytes_accessed=bytes_accessed),
    )(x_im2col, kp["w1f"], kp["b1r"], kp["w2b"], kp["b2r"], kp["w3b"], kp["b3r"],
      kp["ws"], kp["bs"], kp["wh"], kp["bh"])

    logits = out[:B, :8]
    return {"above": logits[:, 0:3], "below": logits[:, 3:5],
            "accent": logits[:, 5:8]}


# ----------------------------------------------------------------------------
# Deterministic PyTorch-layout params + conversion to fused-kernel layout.
# ----------------------------------------------------------------------------
def init_torch_params(key):
    ks = jax.random.split(key, 14)

    def n(k, shape, s=0.05):
        return (s * jax.random.normal(k, shape)).astype(jnp.float32)

    return {
        "w1": n(ks[0], (32, 1, 3, 3)),   "b1": n(ks[1], (32,)),
        "w2": n(ks[2], (64, 32, 3, 3)),  "b2": n(ks[3], (64,)),
        "w3": n(ks[4], (128, 64, 3, 3)), "b3": n(ks[5], (128,)),
        "ws": n(ks[6], (256, 128 * 4 * 4), 0.02), "bs": n(ks[7], (256,)),
        "wa": n(ks[8],  (3, 256)), "ba": n(ks[9],  (3,)),
        "wb": n(ks[10], (2, 256)), "bb": n(ks[11], (2,)),
        "wc": n(ks[12], (3, 256)), "bc": n(ks[13], (3,)),
    }


def convert_params(pt, matmul_dtype=jnp.bfloat16):
    """PyTorch-layout params -> fused-kernel params (bands, tiled biases)."""
    # conv1: 3 kh bands stacked on rows -> one (48, 512) weight (rows kh*16 + w_in).
    w1f = _conv_band(np.asarray(pt["w1"], np.float32), 16,
                     interleave_pool=True).reshape(48, 512)
    w2b = _conv_band(np.asarray(pt["w2"], np.float32), 8, interleave_pool=True)
    w3b = _conv_band(np.asarray(pt["w3"], np.float32), 4, interleave_pool=False)
    b1r = np.tile(np.asarray(pt["b1"], np.float32), 16).reshape(1, 512)
    b2r = np.tile(np.asarray(pt["b2"], np.float32), 8).reshape(1, 512)
    b3r = np.tile(np.asarray(pt["b3"], np.float32), 4).reshape(1, 512)

    # fc_shared weight reordered from torch (c,h,w) flatten to kernel (h,w,c).
    ws = (np.asarray(pt["ws"], np.float32).reshape(256, 128, 4, 4)
          .transpose(0, 2, 3, 1).reshape(256, 2048).T).copy()           # (2048, 256)

    # Three heads fused into one matmul; zero-pad to a lane-dense 128-wide output.
    wh = np.concatenate([np.asarray(pt["wa"]), np.asarray(pt["wb"]),
                         np.asarray(pt["wc"])], axis=0).astype(np.float32).T  # (256, 8)
    wh = np.pad(wh, ((0, 0), (0, 128 - wh.shape[1])))
    bh = np.concatenate([np.asarray(pt["ba"]), np.asarray(pt["bb"]),
                         np.asarray(pt["bc"])]).astype(np.float32)
    bh = np.pad(bh, (0, 128 - bh.shape[0])).reshape(1, 128)

    md = matmul_dtype
    return {
        "w1f": jnp.asarray(w1f, md), "b1r": jnp.asarray(b1r, jnp.float32),
        "w2b": jnp.asarray(w2b, md), "b2r": jnp.asarray(b2r, jnp.float32),
        "w3b": jnp.asarray(w3b, md), "b3r": jnp.asarray(b3r, jnp.float32),
        "ws": jnp.asarray(ws, md),
        "bs": jnp.asarray(np.asarray(pt["bs"], np.float32).reshape(1, 256)),
        "wh": jnp.asarray(wh, md),
        "bh": jnp.asarray(bh, jnp.float32),
    }


# ----------------------------------------------------------------------------
# Pure-JAX NCHW reference (mirrors the PyTorch module in eval()).
# `matmul_dtype` mirrors the kernel's operand-cast points (f32 accumulation),
# so the bf16 kernel can be verified tightly; f32 gives exact eval semantics.
# ----------------------------------------------------------------------------
def reference_forward(x_nchw, pt, matmul_dtype=jnp.float32):
    md = matmul_dtype

    def conv(x, w, b):
        y = jax.lax.conv_general_dilated(
            x.astype(md), w.astype(md), (1, 1), "SAME",
            dimension_numbers=("NCHW", "OIHW", "NCHW"),
            preferred_element_type=jnp.float32)
        return jax.nn.relu(y + b[None, :, None, None])

    def maxpool2(x):
        B, C, H, W = x.shape
        return x.reshape(B, C, H // 2, 2, W // 2, 2).max(axis=(3, 5))

    x = maxpool2(conv(x_nchw, pt["w1"], pt["b1"]))
    x = maxpool2(conv(x, pt["w2"], pt["b2"]))
    x = conv(x, pt["w3"], pt["b3"])
    B, C, H, W = x.shape
    x = x.reshape(B, C, 4, H // 4, 4, W // 4).mean(axis=(3, 5))   # adaptive avg pool
    f = x.reshape(B, -1)
    shared = jax.nn.relu(
        jnp.dot(f.astype(md), pt["ws"].T.astype(md),
                preferred_element_type=jnp.float32) + pt["bs"])   # dropout=identity

    def head(w, b):
        return jnp.dot(shared.astype(md), w.T.astype(md),
                       preferred_element_type=jnp.float32) + b

    return {"above": head(pt["wa"], pt["ba"]),
            "below": head(pt["wb"], pt["bb"]),
            "accent": head(pt["wc"], pt["bc"])}


if __name__ == "__main__":
    key = jax.random.PRNGKey(0)
    k_param, k_x = jax.random.split(key)
    pt = init_torch_params(k_param)

    # Grayscale glyph patches, PyTorch NCHW interface.
    x = jax.random.normal(k_x, (2, 1, 16, 16), dtype=jnp.float32)

    # --- default perf path: bf16 matmul operands, f32 accumulation ----------
    kp_bf16 = convert_params(pt, jnp.bfloat16)
    out = diacritic_cnn_forward(x, kp_bf16)
    out = jax.tree_util.tree_map(jax.block_until_ready, out)
    ref_bf16 = reference_forward(x, pt, matmul_dtype=jnp.bfloat16)
    for name in ("above", "below", "accent"):
        assert out[name].shape == ref_bf16[name].shape
        if not jnp.allclose(out[name], ref_bf16[name], atol=1e-2, rtol=1e-2):
            raise AssertionError(f"bf16 path mismatch in head '{name}'")

    # --- exact PyTorch-eval numerics: f32 operands everywhere ---------------
    kp_f32 = convert_params(pt, jnp.float32)
    out32 = diacritic_cnn_forward(x, kp_f32)
    out32 = jax.tree_util.tree_map(jax.block_until_ready, out32)
    ref_f32 = reference_forward(x, pt, matmul_dtype=jnp.float32)
    for name in ("above", "below", "accent"):
        if not jnp.allclose(out32[name], ref_f32[name], atol=2e-3, rtol=2e-3):
            raise AssertionError(f"f32 path mismatch in head '{name}'")

    print("KERNEL_OK")
</pallas_src>

<mosaic_0001>
module attributes {stable_mosaic.version = 11 : i64} {
  func.func @kernel(%arg0: i32, %arg1: memref<8x16x48xbf16, #tpu.memory_space<vmem>>, %arg2: memref<48x512xbf16, #tpu.memory_space<vmem>>, %arg3: memref<1x512xf32, #tpu.memory_space<vmem>>, %arg4: memref<3x256x512xbf16, #tpu.memory_space<vmem>>, %arg5: memref<1x512xf32, #tpu.memory_space<vmem>>, %arg6: memref<3x256x512xbf16, #tpu.memory_space<vmem>>, %arg7: memref<1x512xf32, #tpu.memory_space<vmem>>, %arg8: memref<2048x256xbf16, #tpu.memory_space<vmem>>, %arg9: memref<1x256xf32, #tpu.memory_space<vmem>>, %arg10: memref<256x128xbf16, #tpu.memory_space<vmem>>, %arg11: memref<1x128xf32, #tpu.memory_space<vmem>>, %arg12: memref<8x128xf32, #tpu.memory_space<vmem>>, %arg13: memref<8x10x256xbf16, #tpu.memory_space<vmem>>, %arg14: memref<8x6x256xbf16, #tpu.memory_space<vmem>>, %arg15: memref<8x4x512xbf16, #tpu.memory_space<vmem>>) attributes {dimension_semantics = [#tpu.dimension_semantics<parallel>], iteration_bounds = array<i64: 1>, scalar_prefetch = 0 : i64, scratch_operands = 3 : i64, tpu.core_type = #tpu.core_type<tc>, window_params = [{transform_indices = @transform_0, window_bounds = array<i64: 8, 16, 48>}, {pipeline_mode = #tpu.pipeline_mode<synchronous>, transform_indices = @transform_1, window_bounds = array<i64: 48, 512>}, {pipeline_mode = #tpu.pipeline_mode<synchronous>, transform_indices = @transform_2, window_bounds = array<i64: 1, 512>}, {pipeline_mode = #tpu.pipeline_mode<synchronous>, transform_indices = @transform_3, window_bounds = array<i64: 3, 256, 512>}, {pipeline_mode = #tpu.pipeline_mode<synchronous>, transform_indices = @transform_4, window_bounds = array<i64: 1, 512>}, {pipeline_mode = #tpu.pipeline_mode<synchronous>, transform_indices = @transform_5, window_bounds = array<i64: 3, 256, 512>}, {pipeline_mode = #tpu.pipeline_mode<synchronous>, transform_indices = @transform_6, window_bounds = array<i64: 1, 512>}, {pipeline_mode = #tpu.pipeline_mode<synchronous>, transform_indices = @transform_7, window_bounds = array<i64: 2048, 256>}, {pipeline_mode = #tpu.pipeline_mode<synchronous>, transform_indices = @transform_8, window_bounds = array<i64: 1, 256>}, {pipeline_mode = #tpu.pipeline_mode<synchronous>, transform_indices = @transform_9, window_bounds = array<i64: 256, 128>}, {pipeline_mode = #tpu.pipeline_mode<synchronous>, transform_indices = @transform_10, window_bounds = array<i64: 1, 128>}, {transform_indices = @transform_11, window_bounds = array<i64: 8, 128>}]} {
    %c0 = arith.constant 0 : index
    %c0_0 = arith.constant 0 : index
    %c0_1 = arith.constant 0 : index
    %0 = vector.load %arg1[%c0, %c0_0, %c0_1] : memref<8x16x48xbf16, #tpu.memory_space<vmem>>, vector<8x16x48xbf16>
    %1 = vector.shape_cast %0 : vector<8x16x48xbf16> to vector<128x48xbf16>
    %c0_2 = arith.constant 0 : index
    %c0_3 = arith.constant 0 : index
    %2 = vector.load %arg2[%c0_2, %c0_3] : memref<48x512xbf16, #tpu.memory_space<vmem>>, vector<48x512xbf16>
    %cst = arith.constant dense<0.000000e+00> : vector<128x512xf32>
    %3 = tpu.matmul %1, %2, %cst {dimension_numbers = #tpu.dot_dimension_numbers<[1], [0], [0], [1], [0, 0, 1, 1], [], []>} : vector<128x48xbf16>, vector<48x512xbf16>, vector<128x512xf32> -> vector<128x512xf32>
    %c0_4 = arith.constant 0 : index
    %c0_5 = arith.constant 0 : index
    %4 = vector.load %arg3[%c0_4, %c0_5] : memref<1x512xf32, #tpu.memory_space<vmem>>, vector<1x512xf32>
    %5 = vector.broadcast %4 : vector<1x512xf32> to vector<128x512xf32>
    %6 = arith.addf %3, %5 : vector<128x512xf32>
    %cst_6 = arith.constant 0.000000e+00 : f32
    %7 = vector.broadcast %cst_6 : f32 to vector<128x512xf32>
    %8 = arith.maximumf %6, %7 : vector<128x512xf32>
    %9 = vector.extract_strided_slice %8 {offsets = [0, 0], sizes = [128, 256], strides = [1, 1]} : vector<128x512xf32> to vector<128x256xf32>
    %10 = vector.extract_strided_slice %8 {offsets = [0, 256], sizes = [128, 256], strides = [1, 1]} : vector<128x512xf32> to vector<128x256xf32>
    %11 = arith.maximumf %9, %10 : vector<128x256xf32>
    %12 = vector.shape_cast %11 : vector<128x256xf32> to vector<64x2x256xf32>
    %cst_7 = arith.constant dense<0xFF800000> : vector<64x256xf32>
    %13 = vector.multi_reduction <maximumf>, %12, %cst_7 [1] : vector<64x2x256xf32> to vector<64x256xf32>
    %cst_8 = arith.constant 0.000000e+00 : bf16
    %14 = vector.broadcast %cst_8 : bf16 to vector<8x1x256xbf16>
    %c0_9 = arith.constant 0 : index
    %c0_10 = arith.constant 0 : index
    %c0_11 = arith.constant 0 : index
    %15 = vector.load %arg13[%c0_9, %c0_10, %c0_11] : memref<8x10x256xbf16, #tpu.memory_space<vmem>>, vector<8x1x256xbf16>
    tpu.vector_store %arg13[%c0_9, %c0_10, %c0_11], %14 {strides = array<i32>} : memref<8x10x256xbf16, #tpu.memory_space<vmem>>, vector<8x1x256xbf16>,
    %c0_12 = arith.constant 0 : index
    %c9 = arith.constant 9 : index
    %c0_13 = arith.constant 0 : index
    %16 = vector.load %arg13[%c0_12, %c9, %c0_13] : memref<8x10x256xbf16, #tpu.memory_space<vmem>>, vector<8x1x256xbf16>
    tpu.vector_store %arg13[%c0_12, %c9, %c0_13], %14 {strides = array<i32>} : memref<8x10x256xbf16, #tpu.memory_space<vmem>>, vector<8x1x256xbf16>,
    %17 = vector.shape_cast %13 : vector<64x256xf32> to vector<8x8x256xf32>
    %18 = arith.truncf %17 : vector<8x8x256xf32> to vector<8x8x256xbf16>
    %c0_14 = arith.constant 0 : index
    %c1 = arith.constant 1 : index
    %c0_15 = arith.constant 0 : index
    %19 = vector.load %arg13[%c0_14, %c1, %c0_15] : memref<8x10x256xbf16, #tpu.memory_space<vmem>>, vector<8x8x256xbf16>
    tpu.vector_store %arg13[%c0_14, %c1, %c0_15], %18 {strides = array<i32>} : memref<8x10x256xbf16, #tpu.memory_space<vmem>>, vector<8x8x256xbf16>,
    %c0_16 = arith.constant 0 : index
    %c0_17 = arith.constant 0 : index
    %c0_18 = arith.constant 0 : index
    %20 = vector.load %arg13[%c0_16, %c0_17, %c0_18] : memref<8x10x256xbf16, #tpu.memory_space<vmem>>, vector<8x8x256xbf16>
    %21 = vector.shape_cast %20 : vector<8x8x256xbf16> to vector<64x256xbf16>
    %c0_19 = arith.constant 0 : index
    %c0_20 = arith.constant 0 : index
    %c0_21 = arith.constant 0 : index
    %22 = vector.load %arg4[%c0_19, %c0_20, %c0_21] : memref<3x256x512xbf16, #tpu.memory_space<vmem>>, vector<1x256x512xbf16>
    %23 = vector.shape_cast %22 : vector<1x256x512xbf16> to vector<256x512xbf16>
    %cst_22 = arith.constant dense<0.000000e+00> : vector<64x512xf32>
    %24 = tpu.matmul %21, %23, %cst_22 {dimension_numbers = #tpu.dot_dimension_numbers<[1], [0], [0], [1], [0, 0, 1, 1], [], []>} : vector<64x256xbf16>, vector<256x512xbf16>, vector<64x512xf32> -> vector<64x512xf32>
    %c0_23 = arith.constant 0 : index
    %c1_24 = arith.constant 1 : index
    %c0_25 = arith.constant 0 : index
    %25 = vector.load %arg13[%c0_23, %c1_24, %c0_25] : memref<8x10x256xbf16, #tpu.memory_space<vmem>>, vector<8x8x256xbf16>
    %26 = vector.shape_cast %25 : vector<8x8x256xbf16> to vector<64x256xbf16>
    %c1_26 = arith.constant 1 : index
    %c0_27 = arith.constant 0 : index
    %c0_28 = arith.constant 0 : index
    %27 = vector.load %arg4[%c1_26, %c0_27, %c0_28] : memref<3x256x512xbf16, #tpu.memory_space<vmem>>, vector<1x256x512xbf16>
    %28 = vector.shape_cast %27 : vector<1x256x512xbf16> to vector<256x512xbf16>
    %cst_29 = arith.constant dense<0.000000e+00> : vector<64x512xf32>
    %29 = tpu.matmul %26, %28, %cst_29 {dimension_numbers = #tpu.dot_dimension_numbers<[1], [0], [0], [1], [0, 0, 1, 1], [], []>} : vector<64x256xbf16>, vector<256x512xbf16>, vector<64x512xf32> -> vector<64x512xf32>
    %30 = arith.addf %24, %29 : vector<64x512xf32>
    %c0_30 = arith.constant 0 : index
    %c2 = arith.constant 2 : index
    %c0_31 = arith.constant 0 : index
    %31 = vector.load %arg13[%c0_30, %c2, %c0_31] : memref<8x10x256xbf16, #tpu.memory_space<vmem>>, vector<8x8x256xbf16>
    %32 = vector.shape_cast %31 : vector<8x8x256xbf16> to vector<64x256xbf16>
    %c2_32 = arith.constant 2 : index
    %c0_33 = arith.constant 0 : index
    %c0_34 = arith.constant 0 : index
    %33 = vector.load %arg4[%c2_32, %c0_33, %c0_34] : memref<3x256x512xbf16, #tpu.memory_space<vmem>>, vector<1x256x512xbf16>
    %34 = vector.shape_cast %33 : vector<1x256x512xbf16> to vector<256x512xbf16>
    %cst_35 = arith.constant dense<0.000000e+00> : vector<64x512xf32>
    %35 = tpu.matmul %32, %34, %cst_35 {dimension_numbers = #tpu.dot_dimension_numbers<[1], [0], [0], [1], [0, 0, 1, 1], [], []>} : vector<64x256xbf16>, vector<256x512xbf16>, vector<64x512xf32> -> vector<64x512xf32>
    %36 = arith.addf %30, %35 : vector<64x512xf32>
    %c0_36 = arith.constant 0 : index
    %c0_37 = arith.constant 0 : index
    %37 = vector.load %arg5[%c0_36, %c0_37] : memref<1x512xf32, #tpu.memory_space<vmem>>, vector<1x512xf32>
    %38 = vector.broadcast %37 : vector<1x512xf32> to vector<64x512xf32>
    %39 = arith.addf %36, %38 : vector<64x512xf32>
    %cst_38 = arith.constant 0.000000e+00 : f32
    %40 = vector.broadcast %cst_38 : f32 to vector<64x512xf32>
    %41 = arith.maximumf %39, %40 : vector<64x512xf32>
    %42 = vector.extract_strided_slice %41 {offsets = [0, 0], sizes = [64, 256], strides = [1, 1]} : vector<64x512xf32> to vector<64x256xf32>
    %43 = vector.extract_strided_slice %41 {offsets = [0, 256], sizes = [64, 256], strides = [1, 1]} : vector<64x512xf32> to vector<64x256xf32>
    %44 = arith.maximumf %42, %43 : vector<64x256xf32>
    %45 = vector.shape_cast %44 : vector<64x256xf32> to vector<32x2x256xf32>
    %cst_39 = arith.constant dense<0xFF800000> : vector<32x256xf32>
    %46 = vector.multi_reduction <maximumf>, %45, %cst_39 [1] : vector<32x2x256xf32> to vector<32x256xf32>
    %c0_40 = arith.constant 0 : index
    %c0_41 = arith.constant 0 : index
    %c0_42 = arith.constant 0 : index
    %47 = vector.load %arg14[%c0_40, %c0_41, %c0_42] : memref<8x6x256xbf16, #tpu.memory_space<vmem>>, vector<8x1x256xbf16>
    tpu.vector_store %arg14[%c0_40, %c0_41, %c0_42], %14 {strides = array<i32>} : memref<8x6x256xbf16, #tpu.memory_space<vmem>>, vector<8x1x256xbf16>,
    %c0_43 = arith.constant 0 : index
    %c5 = arith.constant 5 : index
    %c0_44 = arith.constant 0 : index
    %48 = vector.load %arg14[%c0_43, %c5, %c0_44] : memref<8x6x256xbf16, #tpu.memory_space<vmem>>, vector<8x1x256xbf16>
    tpu.vector_store %arg14[%c0_43, %c5, %c0_44], %14 {strides = array<i32>} : memref<8x6x256xbf16, #tpu.memory_space<vmem>>, vector<8x1x256xbf16>,
    %49 = vector.shape_cast %46 : vector<32x256xf32> to vector<8x4x256xf32>
    %50 = arith.truncf %49 : vector<8x4x256xf32> to vector<8x4x256xbf16>
    %c0_45 = arith.constant 0 : index
    %c1_46 = arith.constant 1 : index
    %c0_47 = arith.constant 0 : index
    %51 = vector.load %arg14[%c0_45, %c1_46, %c0_47] : memref<8x6x256xbf16, #tpu.memory_space<vmem>>, vector<8x4x256xbf16>
    tpu.vector_store %arg14[%c0_45, %c1_46, %c0_47], %50 {strides = array<i32>} : memref<8x6x256xbf16, #tpu.memory_space<vmem>>, vector<8x4x256xbf16>,
    %c0_48 = arith.constant 0 : index
    %c0_49 = arith.constant 0 : index
    %c0_50 = arith.constant 0 : index
    %52 = vector.load %arg14[%c0_48, %c0_49, %c0_50] : memref<8x6x256xbf16, #tpu.memory_space<vmem>>, vector<8x4x256xbf16>
    %53 = vector.shape_cast %52 : vector<8x4x256xbf16> to vector<32x256xbf16>
    %c0_51 = arith.constant 0 : index
    %c0_52 = arith.constant 0 : index
    %c0_53 = arith.constant 0 : index
    %54 = vector.load %arg6[%c0_51, %c0_52, %c0_53] : memref<3x256x512xbf16, #tpu.memory_space<vmem>>, vector<1x256x512xbf16>
    %55 = vector.shape_cast %54 : vector<1x256x512xbf16> to vector<256x512xbf16>
    %cst_54 = arith.constant dense<0.000000e+00> : vector<32x512xf32>
    %56 = tpu.matmul %53, %55, %cst_54 {dimension_numbers = #tpu.dot_dimension_numbers<[1], [0], [0], [1], [0, 0, 1, 1], [], []>} : vector<32x256xbf16>, vector<256x512xbf16>, vector<32x512xf32> -> vector<32x512xf32>
    %c0_55 = arith.constant 0 : index
    %c1_56 = arith.constant 1 : index
    %c0_57 = arith.constant 0 : index
    %57 = vector.load %arg14[%c0_55, %c1_56, %c0_57] : memref<8x6x256xbf16, #tpu.memory_space<vmem>>, vector<8x4x256xbf16>
    %58 = vector.shape_cast %57 : vector<8x4x256xbf16> to vector<32x256xbf16>
    %c1_58 = arith.constant 1 : index
    %c0_59 = arith.constant 0 : index
    %c0_60 = arith.constant 0 : index
    %59 = vector.load %arg6[%c1_58, %c0_59, %c0_60] : memref<3x256x512xbf16, #tpu.memory_space<vmem>>, vector<1x256x512xbf16>
    %60 = vector.shape_cast %59 : vector<1x256x512xbf16> to vector<256x512xbf16>
    %cst_61 = arith.constant dense<0.000000e+00> : vector<32x512xf32>
    %61 = tpu.matmul %58, %60, %cst_61 {dimension_numbers = #tpu.dot_dimension_numbers<[1], [0], [0], [1], [0, 0, 1, 1], [], []>} : vector<32x256xbf16>, vector<256x512xbf16>, vector<32x512xf32> -> vector<32x512xf32>
    %62 = arith.addf %56, %61 : vector<32x512xf32>
    %c0_62 = arith.constant 0 : index
    %c2_63 = arith.constant 2 : index
    %c0_64 = arith.constant 0 : index
    %63 = vector.load %arg14[%c0_62, %c2_63, %c0_64] : memref<8x6x256xbf16, #tpu.memory_space<vmem>>, vector<8x4x256xbf16>
    %64 = vector.shape_cast %63 : vector<8x4x256xbf16> to vector<32x256xbf16>
    %c2_65 = arith.constant 2 : index
    %c0_66 = arith.constant 0 : index
    %c0_67 = arith.constant 0 : index
    %65 = vector.load %arg6[%c2_65, %c0_66, %c0_67] : memref<3x256x512xbf16, #tpu.memory_space<vmem>>, vector<1x256x512xbf16>
    %66 = vector.shape_cast %65 : vector<1x256x512xbf16> to vector<256x512xbf16>
    %cst_68 = arith.constant dense<0.000000e+00> : vector<32x512xf32>
    %67 = tpu.matmul %64, %66, %cst_68 {dimension_numbers = #tpu.dot_dimension_numbers<[1], [0], [0], [1], [0, 0, 1, 1], [], []>} : vector<32x256xbf16>, vector<256x512xbf16>, vector<32x512xf32> -> vector<32x512xf32>
    %68 = arith.addf %62, %67 : vector<32x512xf32>
    %c0_69 = arith.constant 0 : index
    %c0_70 = arith.constant 0 : index
    %69 = vector.load %arg7[%c0_69, %c0_70] : memref<1x512xf32, #tpu.memory_space<vmem>>, vector<1x512xf32>
    %70 = vector.broadcast %69 : vector<1x512xf32> to vector<32x512xf32>
    %71 = arith.addf %68, %70 : vector<32x512xf32>
    %cst_71 = arith.constant 0.000000e+00 : f32
    %72 = vector.broadcast %cst_71 : f32 to vector<32x512xf32>
    %73 = arith.maximumf %71, %72 : vector<32x512xf32>
    %74 = vector.shape_cast %73 : vector<32x512xf32> to vector<8x4x512xf32>
    %75 = arith.truncf %74 : vector<8x4x512xf32> to vector<8x4x512xbf16>
    %c0_72 = arith.constant 0 : index
    %c0_73 = arith.constant 0 : index
    %c0_74 = arith.constant 0 : index
    %76 = vector.load %arg15[%c0_72, %c0_73, %c0_74] : memref<8x4x512xbf16, #tpu.memory_space<vmem>>, vector<8x4x512xbf16>
    tpu.vector_store %arg15[%c0_72, %c0_73, %c0_74], %75 {strides = array<i32>} : memref<8x4x512xbf16, #tpu.memory_space<vmem>>, vector<8x4x512xbf16>,
    %c0_75 = arith.constant 0 : index
    %c0_76 = arith.constant 0 : index
    %c0_77 = arith.constant 0 : index
    %77 = vector.load %arg15[%c0_75, %c0_76, %c0_77] : memref<8x4x512xbf16, #tpu.memory_space<vmem>>, vector<8x1x512xbf16>
    %78 = vector.shape_cast %77 : vector<8x1x512xbf16> to vector<8x512xbf16>
    %c0_78 = arith.constant 0 : index
    %c0_79 = arith.constant 0 : index
    %79 = vector.load %arg8[%c0_78, %c0_79] : memref<2048x256xbf16, #tpu.memory_space<vmem>>, vector<512x256xbf16>
    %cst_80 = arith.constant dense<0.000000e+00> : vector<8x256xf32>
    %80 = tpu.matmul %78, %79, %cst_80 {dimension_numbers = #tpu.dot_dimension_numbers<[1], [0], [0], [1], [0, 0, 1, 1], [], []>} : vector<8x512xbf16>, vector<512x256xbf16>, vector<8x256xf32> -> vector<8x256xf32>
    %c0_81 = arith.constant 0 : index
    %c1_82 = arith.constant 1 : index
    %c0_83 = arith.constant 0 : index
    %81 = vector.load %arg15[%c0_81, %c1_82, %c0_83] : memref<8x4x512xbf16, #tpu.memory_space<vmem>>, vector<8x1x512xbf16>
    %82 = vector.shape_cast %81 : vector<8x1x512xbf16> to vector<8x512xbf16>
    %c512 = arith.constant 512 : index
    %c0_84 = arith.constant 0 : index
    %83 = vector.load %arg8[%c512, %c0_84] : memref<2048x256xbf16, #tpu.memory_space<vmem>>, vector<512x256xbf16>
    %cst_85 = arith.constant dense<0.000000e+00> : vector<8x256xf32>
    %84 = tpu.matmul %82, %83, %cst_85 {dimension_numbers = #tpu.dot_dimension_numbers<[1], [0], [0], [1], [0, 0, 1, 1], [], []>} : vector<8x512xbf16>, vector<512x256xbf16>, vector<8x256xf32> -> vector<8x256xf32>
    %85 = arith.addf %80, %84 : vector<8x256xf32>
    %c0_86 = arith.constant 0 : index
    %c2_87 = arith.constant 2 : index
    %c0_88 = arith.constant 0 : index
    %86 = vector.load %arg15[%c0_86, %c2_87, %c0_88] : memref<8x4x512xbf16, #tpu.memory_space<vmem>>, vector<8x1x512xbf16>
    %87 = vector.shape_cast %86 : vector<8x1x512xbf16> to vector<8x512xbf16>
    %c1024 = arith.constant 1024 : index
    %c0_89 = arith.constant 0 : index
    %88 = vector.load %arg8[%c1024, %c0_89] : memref<2048x256xbf16, #tpu.memory_space<vmem>>, vector<512x256xbf16>
    %cst_90 = arith.constant dense<0.000000e+00> : vector<8x256xf32>
    %89 = tpu.matmul %87, %88, %cst_90 {dimension_numbers = #tpu.dot_dimension_numbers<[1], [0], [0], [1], [0, 0, 1, 1], [], []>} : vector<8x512xbf16>, vector<512x256xbf16>, vector<8x256xf32> -> vector<8x256xf32>
    %90 = arith.addf %85, %89 : vector<8x256xf32>
    %c0_91 = arith.constant 0 : index
    %c3 = arith.constant 3 : index
    %c0_92 = arith.constant 0 : index
    %91 = vector.load %arg15[%c0_91, %c3, %c0_92] : memref<8x4x512xbf16, #tpu.memory_space<vmem>>, vector<8x1x512xbf16>
    %92 = vector.shape_cast %91 : vector<8x1x512xbf16> to vector<8x512xbf16>
    %c1536 = arith.constant 1536 : index
    %c0_93 = arith.constant 0 : index
    %93 = vector.load %arg8[%c1536, %c0_93] : memref<2048x256xbf16, #tpu.memory_space<vmem>>, vector<512x256xbf16>
    %cst_94 = arith.constant dense<0.000000e+00> : vector<8x256xf32>
    %94 = tpu.matmul %92, %93, %cst_94 {dimension_numbers = #tpu.dot_dimension_numbers<[1], [0], [0], [1], [0, 0, 1, 1], [], []>} : vector<8x512xbf16>, vector<512x256xbf16>, vector<8x256xf32> -> vector<8x256xf32>
    %95 = arith.addf %90, %94 : vector<8x256xf32>
    %c0_95 = arith.constant 0 : index
    %c0_96 = arith.constant 0 : index
    %96 = vector.load %arg9[%c0_95, %c0_96] : memref<1x256xf32, #tpu.memory_space<vmem>>, vector<1x256xf32>
    %97 = vector.broadcast %96 : vector<1x256xf32> to vector<8x256xf32>
    %98 = arith.addf %95, %97 : vector<8x256xf32>
    %cst_97 = arith.constant 0.000000e+00 : f32
    %99 = vector.broadcast %cst_97 : f32 to vector<8x256xf32>
    %100 = arith.maximumf %98, %99 : vector<8x256xf32>
    %101 = arith.truncf %100 : vector<8x256xf32> to vector<8x256xbf16>
    %c0_98 = arith.constant 0 : index
    %c0_99 = arith.constant 0 : index
    %102 = vector.load %arg10[%c0_98, %c0_99] : memref<256x128xbf16, #tpu.memory_space<vmem>>, vector<256x128xbf16>
    %cst_100 = arith.constant dense<0.000000e+00> : vector<8x128xf32>
    %103 = tpu.matmul %101, %102, %cst_100 {dimension_numbers = #tpu.dot_dimension_numbers<[1], [0], [0], [1], [0, 0, 1, 1], [], []>} : vector<8x256xbf16>, vector<256x128xbf16>, vector<8x128xf32> -> vector<8x128xf32>
    %c0_101 = arith.constant 0 : index
    %c0_102 = arith.constant 0 : index
    %104 = vector.load %arg11[%c0_101, %c0_102] : memref<1x128xf32, #tpu.memory_space<vmem>>, vector<1x128xf32>
    %105 = vector.broadcast %104 : vector<1x128xf32> to vector<8x128xf32>
    %106 = arith.addf %103, %105 : vector<8x128xf32>
    %c0_103 = arith.constant 0 : index
    %c0_104 = arith.constant 0 : index
    %107 = vector.load %arg12[%c0_103, %c0_104] : memref<8x128xf32, #tpu.memory_space<vmem>>, vector<8x128xf32>
    tpu.vector_store %arg12[%c0_103, %c0_104], %106 {strides = array<i32>} : memref<8x128xf32, #tpu.memory_space<vmem>>, vector<8x128xf32>,
    return
  }
  func.func @transform_0(%arg0: i32) -> (i32, i32, i32) {
    %c0_i32 = arith.constant 0 : i32
    %c0_i32_0 = arith.constant 0 : i32
    %c0_i32_1 = arith.constant 0 : i32
    return %arg0, %c0_i32, %c0_i32_0 : i32, i32, i32
  }
  func.func @transform_1(%arg0: i32) -> (i32, i32) {
    %c0_i32 = arith.constant 0 : i32
    %c0_i32_0 = arith.constant 0 : i32
    %c0_i32_1 = arith.constant 0 : i32
    return %c0_i32, %c0_i32_0 : i32, i32
  }
  func.func @transform_2(%arg0: i32) -> (i32, i32) {
    %c0_i32 = arith.constant 0 : i32
    %c0_i32_0 = arith.constant 0 : i32
    %c0_i32_1 = arith.constant 0 : i32
    return %c0_i32, %c0_i32_0 : i32, i32
  }
  func.func @transform_3(%arg0: i32) -> (i32, i32, i32) {
    %c0_i32 = arith.constant 0 : i32
    %c0_i32_0 = arith.constant 0 : i32
    %c0_i32_1 = arith.constant 0 : i32
    %c0_i32_2 = arith.constant 0 : i32
    return %c0_i32, %c0_i32_0, %c0_i32_1 : i32, i32, i32
  }
  func.func @transform_4(%arg0: i32) -> (i32, i32) {
    %c0_i32 = arith.constant 0 : i32
    %c0_i32_0 = arith.constant 0 : i32
    %c0_i32_1 = arith.constant 0 : i32
    return %c0_i32, %c0_i32_0 : i32, i32
  }
  func.func @transform_5(%arg0: i32) -> (i32, i32, i32) {
    %c0_i32 = arith.constant 0 : i32
    %c0_i32_0 = arith.constant 0 : i32
    %c0_i32_1 = arith.constant 0 : i32
    %c0_i32_2 = arith.constant 0 : i32
    return %c0_i32, %c0_i32_0, %c0_i32_1 : i32, i32, i32
  }
  func.func @transform_6(%arg0: i32) -> (i32, i32) {
    %c0_i32 = arith.constant 0 : i32
    %c0_i32_0 = arith.constant 0 : i32
    %c0_i32_1 = arith.constant 0 : i32
    return %c0_i32, %c0_i32_0 : i32, i32
  }
  func.func @transform_7(%arg0: i32) -> (i32, i32) {
    %c0_i32 = arith.constant 0 : i32
    %c0_i32_0 = arith.constant 0 : i32
    %c0_i32_1 = arith.constant 0 : i32
    return %c0_i32, %c0_i32_0 : i32, i32
  }
  func.func @transform_8(%arg0: i32) -> (i32, i32) {
    %c0_i32 = arith.constant 0 : i32
    %c0_i32_0 = arith.constant 0 : i32
    %c0_i32_1 = arith.constant 0 : i32
    return %c0_i32, %c0_i32_0 : i32, i32
  }
  func.func @transform_9(%arg0: i32) -> (i32, i32) {
    %c0_i32 = arith.constant 0 : i32
    %c0_i32_0 = arith.constant 0 : i32
    %c0_i32_1 = arith.constant 0 : i32
    return %c0_i32, %c0_i32_0 : i32, i32
  }
  func.func @transform_10(%arg0: i32) -> (i32, i32) {
    %c0_i32 = arith.constant 0 : i32
    %c0_i32_0 = arith.constant 0 : i32
    %c0_i32_1 = arith.constant 0 : i32
    return %c0_i32, %c0_i32_0 : i32, i32
  }
  func.func @transform_11(%arg0: i32) -> (i32, i32) {
    %c0_i32 = arith.constant 0 : i32
    %c0_i32_0 = arith.constant 0 : i32
    return %arg0, %c0_i32 : i32, i32
  }
}

</mosaic_0001>

<bundles_post_ra>
// kernel: tpu_custom_call.1
= control target key start
LH: loop header
LB: loop body
LE: loop exit
PB: predicated region body
PF: predicated region fallthrough
CT: control target
= control target key end

     0   :  { %16 = vsyncpa [#allocation6], 0  ;;  %s16495_s0 = inlined_call_operand.hbm [shape: bf16[8,16,48], index: 0, kind: input, shape index: {}]   ;;  %s16496_s1 = inlined_call_operand.hbm [shape: bf16[48,512], index: 1, kind: input, shape index: {}]   ;;  %s16497_s2 = inlined_call_operand.hbm [shape: f32[1,512], index: 2, kind: input, shape index: {}]   ;;  %s16498_s3 = inlined_call_operand.hbm [shape: bf16[3,256,512], index: 3, kind: input, shape index: {}]   ;;  %s16499_s4 = inlined_call_operand.vmem [shape: f32[1,512], index: 4, kind: input, shape index: {}]   ;;  %s16500_s5 = inlined_call_operand.hbm [shape: bf16[3,256,512], index: 5, kind: input, shape index: {}]   ;;  %s16501_s6 = inlined_call_operand.vmem [shape: f32[1,512], index: 6, kind: input, shape index: {}]   ;;  %s16502_s7 = inlined_call_operand.hbm [shape: bf16[2048,256], index: 7, kind: input, shape index: {}]   ;;  %s16503_s8 = inlined_call_operand.vmem [shape: f32[1,256], index: 8, kind: input, shape index: {}]   ;;  %s16504_s9 = inlined_call_operand.hbm [shape: bf16[256,128], index: 9, kind: input, shape index: {}]   ;;  %s16505_s10 = inlined_call_operand.vmem [shape: f32[1,128], index: 10, kind: input, shape index: {}]   ;;  %s16506_s11 = inlined_call_operand.hbm [shape: f32[8,128], index: 11, kind: output, shape index: {}]  }
   0x1   :  { %17 = vsyncpa [#allocation9], 0 }
   0x2   :  { %18 = vsyncpa [#allocation12], 0 }
   0x3   :  { %19 = vsyncpa [#allocation15], 0 }
   0x4   :  { %20 = vsyncpa [#allocation7], 0  ;;  %s14146_s17 = smov [#allocation8]  }
   0x5   :  { %s38_s18 = sshll.u32 %s14146_s17, 4  ;;  %s39_s18 = int_to_ptr.vmem [resolvable:$true] %s38_s18 }
   0x6   :  { %s13984_s19 = scalar_lea.vmem %s39_s18, 1536  ;;  %p13989_p1 = scmp.lt.s32.totalorder %s39_s18, %s39_s18 }
   0x7   :  { %p13985_p0 = scmp.ne.s32.totalorder %s39_s18, %s13984_s19  ;;  %p13990_p2 = scmp.lt.s32.totalorder %s13984_s19, %s13984_s19 }
   0x9   :  { %p13991_p3 = por %p13990_p2, %p13989_p1 }
   0xb   :  { %p13992_p4 = pnand %p13991_p3, %p13985_p0 }
   0xd   :  { %13995 = shalt.err (!%p13992_p4)
}
   0xe   :  { %s14147_s20 = smov 256   ;;  %s14148_s21 = smov 16  }
   0xf   :  { %44 = dma.hbm_to_vmem [thread:$0]  %s16496_s1, 1536, %s39_s18, [#allocation9], %s14147_s20, %s14147_s20, %s14148_s21  }
  0x10   :  { %s14149_s24 = smov [#allocation11]   ;;  %s14150_s26 = smov [#allocation14]  }
  0x11   :  { %s60_s25 = sshll.u32 %s14149_s24, 4  ;;  %s88_s27 = sshll.u32 %s14150_s26, 4  ;;  %s61_s25 = int_to_ptr.vmem [resolvable:$true] %s60_s25  ;;  %s89_s27 = int_to_ptr.vmem [resolvable:$true] %s88_s27 }
  0x12   :  { %s14004_s28 = scalar_lea.vmem %s61_s25, 24576  ;;  %p14009_p6 = scmp.lt.s32.totalorder %s61_s25, %s61_s25 }
  0x13   :  { %p14005_p5 = scmp.ne.s32.totalorder %s61_s25, %s14004_s28  ;;  %p14010_p7 = scmp.lt.s32.totalorder %s14004_s28, %s14004_s28 }
  0x15   :  { %p14011_p8 = por %p14010_p7, %p14009_p6 }
  0x17   :  { %p14012_p9 = pnand %p14011_p8, %p14005_p5 }
  0x19   :  { %14015 = shalt.err (!%p14012_p9)
}
  0x1a   :  { %66 = dma.hbm_to_vmem [thread:$0]  %s16498_s3, 24576, %s61_s25, [#allocation12], %s14147_s20, %s14147_s20, %s14148_s21  }
  0x1b   :  { %s14024_s1 = scalar_lea.vmem %s89_s27, 32768  ;;  %p14029_p11 = scmp.lt.s32.totalorder %s89_s27, %s89_s27 }
  0x1c   :  { %p14025_p10 = scmp.ne.s32.totalorder %s89_s27, %s14024_s1  ;;  %p14030_p12 = scmp.lt.s32.totalorder %s14024_s1, %s14024_s1 }
  0x1e   :  { %p14031_p13 = por %p14030_p12, %p14029_p11 }
  0x20   :  { %p14032_p0 = pnand %p14031_p13, %p14025_p10 }
  0x22   :  { %14035 = shalt.err (!%p14032_p0)
}
  0x23   :  { %s14151_s12 = smov 128   ;;  %s14152_s13 = smov 8  }
  0x24   :  { %94 = dma.hbm_to_vmem [thread:$0]  %s16502_s7, 32768, %s89_s27, [#allocation15], %s14151_s12, %s14151_s12, %s14152_s13  }
  0x25   :  { %s14153_s16 = smov [#allocation5]  }
  0x26   :  { %s26_s17 = sshll.u32 %s14153_s16, 4  ;;  %s27_s17 = int_to_ptr.vmem [resolvable:$true] %s26_s17 }
  0x27   :  { %s14044_s18 = scalar_lea.vmem %s27_s17, 1024  ;;  %p14049_p2 = scmp.lt.s32.totalorder %s27_s17, %s27_s17 }
  0x28   :  { %p14045_p1 = scmp.ne.s32.totalorder %s27_s17, %s14044_s18  ;;  %p14050_p3 = scmp.lt.s32.totalorder %s14044_s18, %s14044_s18 }
  0x2a   :  { %p14051_p4 = por %p14050_p3, %p14049_p2 }
  0x2c   :  { %p14052_p5 = pnand %p14051_p4, %p14045_p1 }
  0x2e   :  { %14055 = shalt.err (!%p14052_p5)
}
  0x2f   :  { %s14154_s3 = smov 64   ;;  %s14155_s19 = smov 4  }
  0x30   :  { %32 = dma.hbm_to_vmem [thread:$0]  %s16495_s0, 1024, %s27_s17, [#allocation6], %s14154_s3, %s14154_s3, %s14155_s19  }
  0x31   :  { %s14156_s7 = smov [#allocation10]   ;;  %s14157_s25 = smov [#allocation13]  }
  0x32   :  { %s51_s24 = sshll.u32 %s14156_s7, 4  ;;  %s74_s26 = sshll.u32 %s14157_s25, 4  ;;  %s52_s24 = int_to_ptr.vmem [resolvable:$true] %s51_s24  ;;  %s75_s26 = int_to_ptr.vmem [resolvable:$true] %s74_s26 }
  0x33   :  { %s14064_s27 = scalar_lea.vmem %s52_s24, 64  ;;  %p14069_p7 = scmp.lt.s32.totalorder %s52_s24, %s52_s24 }
  0x34   :  { %p14065_p6 = scmp.ne.s32.totalorder %s52_s24, %s14064_s27  ;;  %p14070_p8 = scmp.lt.s32.totalorder %s14064_s27, %s14064_s27 }
  0x36   :  { %p14071_p9 = por %p14070_p8, %p14069_p7 }
  0x38   :  { %p14072_p10 = pnand %p14071_p9, %p14065_p6 }
  0x3a   :  { %14075 = shalt.err (!%p14072_p10)
}
  0x3b   :  { %54 = dma.hbm_to_vmem [thread:$0]  %s16497_s2, 64, %s52_s24, [#allocation9]  }
  0x3c   :  { %s14084_s30 = scalar_lea.vmem %s75_s26, 24576  ;;  %p14089_p12 = scmp.lt.s32.totalorder %s75_s26, %s75_s26 }
  0x3d   :  { %p14085_p11 = scmp.ne.s32.totalorder %s75_s26, %s14084_s30  ;;  %p14090_p13 = scmp.lt.s32.totalorder %s14084_s30, %s14084_s30 }
  0x3f   :  { %p14091_p0 = por %p14090_p13, %p14089_p12 }
  0x41   :  { %p14092_p1 = pnand %p14091_p0, %p14085_p11 }
  0x43   :  { %14095 = shalt.err (!%p14092_p1)
}
  0x44   :  { %80 = dma.hbm_to_vmem [thread:$0]  %s16500_s5, 24576, %s75_s26, [#allocation12], %s14147_s20, %s14147_s20, %s14148_s21  }
  0x45   :  { %s14158_s12 = smov [#allocation16]  }
  0x46   :  { %s102_s13 = sshll.u32 %s14158_s12, 4  ;;  %s103_s13 = int_to_ptr.vmem [resolvable:$true] %s102_s13 }
  0x47   :  { %s14104_s14 = scalar_lea.vmem %s103_s13, 2048  ;;  %p14109_p3 = scmp.lt.s32.totalorder %s103_s13, %s103_s13 }
  0x48   :  { %p14105_p2 = scmp.ne.s32.totalorder %s103_s13, %s14104_s14  ;;  %p14110_p4 = scmp.lt.s32.totalorder %s14104_s14, %s14104_s14 }
  0x4a   :  { %p14111_p5 = por %p14110_p4, %p14109_p3 }
  0x4c   :  { %p14112_p6 = pnand %p14111_p5, %p14105_p2 }
  0x4e   :  { %14115 = shalt.err (!%p14112_p6)
}
  0x4f   :  { %108 = dma.hbm_to_vmem [thread:$0]  %s16504_s9, 2048, %s103_s13, [#allocation15], %s14154_s3, %s14154_s3, %s14155_s19  }
  0x50   :  { %14136 = dma.done.wait [#allocation6], 1024  }
  0x51   :  { %14137 = vsyncadd [#allocation6], 4294966272 }
  0x52   :  { %14138 = dma.done.wait [#allocation9], 1600  }
  0x53   :  { %14139 = vsyncadd [#allocation9], 4294965696 }
  0x54   :  { %14140 = dma.done.wait [#allocation12], 49152  }
  0x55   :  { %14141 = vsyncadd [#allocation12], 4294918144 }
  0x56   :  { %14142 = dma.done.wait [#allocation15], 34816  }
  0x57   :  { %14143 = vsyncadd [#allocation15], 4294932480  ;;  %v14159_v0 = vmov 0   ;;  %v12946_v1 = vld [vmem:[#allocation8 + $0x44] ss:$16 sps:$4 sm:$0xff]   ;;  %vm283_vm0 = vcmask 392192   ;;  %v163_v48 = vlaneseq }
  0x58   :  { %340 = vmatprep.mubr.bf16.mxu0 %v14159_v0  ;;  %453 = vmatprep.mubr.bf16.mxu1 %v14159_v0  ;;  %v12948_v2 = vld [vmem:[#allocation8 + $0x4c] ss:$16 sps:$4 sm:$0xff]   ;;  %v12950_v3 = vld [vmem:[#allocation8 + $0x40] ss:$16 sps:$4 sm:$0xff]   ;;  %v12951_v4 = vld [vmem:[#allocation8 + $0x48] ss:$16 sps:$4 sm:$0xff]  }
  0x59   :  { %318 = vmatprep.subr.bf16.mxu0 %v12946_v1  ;;  %431 = vmatprep.subr.bf16.mxu1 %v12948_v2  ;;  %v12952_v5 = vld [vmem:[#allocation8 + $0x24] ss:$16 sps:$4 sm:$0xff]   ;;  %v12954_v6 = vld [vmem:[#allocation8 + $0x2c] ss:$16 sps:$4 sm:$0xff]   ;;  %v12956_v7 = vld [vmem:[#allocation8 + $0x20] ss:$16 sps:$4 sm:$0xff]  }
  0x5a   :  { %319 = vmatpush1.bf16.msra.mxu0 %v12950_v3  ;;  %432 = vmatpush1.bf16.msra.mxu1 %v12951_v4  ;;  %v12957_v8 = vld [vmem:[#allocation8 + $0x28] ss:$16 sps:$4 sm:$0xff]   ;;  %v12958_v9 = vld [vmem:[#allocation8 + $0x4] ss:$16 sps:$4 sm:$0xff]   ;;  %v12960_v10 = vld [vmem:[#allocation8 + $0xc] ss:$16 sps:$4 sm:$0xff]  }
  0x5b   :  { %320 = vmatprep.subr.bf16.mxu0 %v12952_v5  ;;  %433 = vmatprep.subr.bf16.mxu1 %v12954_v6  ;;  %v12962_v11 = vld [vmem:[#allocation8] ss:$16 sps:$4 sm:$0xff]   ;;  %v12963_v12 = vld [vmem:[#allocation8 + $0x8] ss:$16 sps:$4 sm:$0xff]   ;;  %v12972_v23 = vld [vmem:[#allocation11 + $0x2e0] ss:$16 sps:$4 sm:$0xff]  }
  0x5c   :  { %v12964_v13 = vld [vmem:[#allocation5] sm:$0xff]   ;;  %v12965_v14 = vld [vmem:[#allocation5 + $0x8] sm:$0xff]   ;;  %v12966_v15 = vld [vmem:[#allocation5 + $0x10] sm:$0xff]   ;;  %vm2490_vm1 = vcmask 1044484   ;;  %vm2487_vm2 = vcmask 1040384   ;;  %vm3257_vm13 = vcmask 1043456  }
  0x5d   :  { %v12967_v16 = vld [vmem:[#allocation5 + $0x18] sm:$0xff]   ;;  %v12968_v17 = vld [vmem:[#allocation5 + $0x20] sm:$0xff]   ;;  %v12969_v18 = vld [vmem:[#allocation5 + $0x28] sm:$0xff]   ;;  %vm2518_vm3 = vsmask.f32 7938  ;;  %vm3259_vm14 = vcmask 1047556  }
  0x5e   :  { %321 = vmatpush1.bf16.msra.mxu0 %v12956_v7  ;;  %434 = vmatpush1.bf16.msra.mxu1 %v12957_v8  ;;  %v12970_v19 = vld [vmem:[#allocation5 + $0x30] sm:$0xff]   ;;  %v12971_v20 = vld [vmem:[#allocation5 + $0x38] sm:$0xff]   ;;  %vm2520_vm4 = vsmask.f32 7954  ;;  %vm2519_vm5 = vmand %vm2487_vm2, %vm2518_vm3  ;;  %vm2488_vm8 = vsmask.f32 256 }
  0x5f   :  { %322 = vmatprep.subr.bf16.mxu0 %v12958_v9  ;;  %435 = vmatprep.subr.bf16.mxu1 %v12960_v10  ;;  %v12974_v21 = vld [vmem:[#allocation11 + $0x2e4] ss:$16 sps:$4 sm:$0xff]   ;;  %v12977_v22 = vld [vmem:[#allocation11 + $0x2ec] ss:$16 sps:$4 sm:$0xff]   ;;  %v12975_v24 = vld [vmem:[#allocation11 + $0x2e8] ss:$16 sps:$4 sm:$0xff]  }
  0x60   :  { %vm2521_vm6 = vmand %vm2490_vm1, %vm2520_vm4  ;;  %v2523_v25 = vld [vmem:[#allocation2 + $0x8] sm:$0x11]  ;;  %vm2491_vm9 = vsmask.f32 4352  ;;  %v2494_v28 = vld [vmem:[#allocation2 + $0x60] sm:$0x11] }
  0x61   :  { %vm14278_vm7 = vmor %vm2521_vm6, %vm2519_vm5  ;;  %v12980_v32 = vld [vmem:[#allocation11 + $0x2c4] ss:$16 sps:$4 sm:$0xff]   ;;  %v12983_v33 = vld [vmem:[#allocation11 + $0x2cc] ss:$16 sps:$4 sm:$0xff]   ;;  %v164_v49 = vshrl.u32 %v163_v48, 7  ;;  %vm3125_vm6 = vcmask 1043459  }
  0x62   :  { %323 = vmatpush1.bf16.msra.mxu0 %v12962_v11  ;;  %436 = vmatpush1.bf16.msra.mxu1 %v12963_v12  ;;  %v2524_v27 = vsel %vm14278_vm7, 0, %v2523_v25  ;;  %vm2489_vm10 = vmand %vm2487_vm2, %vm2488_vm8  ;;  %v12978_v34 = vld [vmem:[#allocation11 + $0x2c0] ss:$16 sps:$4 sm:$0xff]   ;;  %v12981_v35 = vld [vmem:[#allocation11 + $0x2c8] ss:$16 sps:$4 sm:$0xff]   ;;  %vm3129_vm8 = vcmask 1045509  }
  0x63   :  { %3922 = vmatprep.subr.bf16.mxu0 %v12974_v21  ;;  %3995 = vmatprep.subr.bf16.mxu1 %v12977_v22  ;;  %2525 = vst [vmem:[#allocation2 + $0x8] sm:$0x11] %v2524_v27  ;;  %vm2492_vm11 = vmand %vm2490_vm1, %vm2491_vm9  ;;  %v12986_v36 = vld [vmem:[#allocation11 + $0x2a4] ss:$16 sps:$4 sm:$0xff]   ;;  %v12989_v37 = vld [vmem:[#allocation11 + $0x2ac] ss:$16 sps:$4 sm:$0xff]  }
  0x64   :  { %vm14286_vm12 = vmor %vm2492_vm11, %vm2489_vm10  ;;  %v12984_v38 = vld [vmem:[#allocation11 + $0x2a0] ss:$16 sps:$4 sm:$0xff]   ;;  %v12987_v39 = vld [vmem:[#allocation11 + $0x2a8] ss:$16 sps:$4 sm:$0xff]   ;;  %v14302_v51 = vsub.s32 0, %v164_v49  ;;  %v14304_v52 = vsub.s32 2, %v164_v49 }
  0x65   :  { %11947 = vmatmul.mubr.msk.bf16.vlgmr.msra.gmra.mxu0 %vm283_vm0, %v12964_v13  ;;  %11955 = vmatmul.mubr.msk.bf16.vlgmr.msra.gmra.mxu1 %vm283_vm0, %v12964_v13  ;;  %v2495_v30 = vsel %vm14286_vm12, 0, %v2494_v28  ;;  %vm3258_vm15 = vmand %vm3257_vm13, %vm2518_vm3  ;;  %v12992_v40 = vld [vmem:[#allocation11 + $0x284] ss:$16 sps:$4 sm:$0xff]   ;;  %v12995_v41 = vld [vmem:[#allocation11 + $0x28c] ss:$16 sps:$4 sm:$0xff]   ;;  %v14306_v53 = vsub.s32 1, %v164_v49 }
  0x66   :  { %350 = vmatprep.mubr.bf16.mxu0 %v14159_v0  ;;  %463 = vmatprep.mubr.bf16.mxu1 %v14159_v0  ;;  %2496 = vst [vmem:[#allocation2 + $0x60] sm:$0x11] %v2495_v30  ;;  %v12990_v42 = vld [vmem:[#allocation11 + $0x280] ss:$16 sps:$4 sm:$0xff]   ;;  %v12993_v43 = vld [vmem:[#allocation11 + $0x288] ss:$16 sps:$4 sm:$0xff]  }
  0x67   :  { %3923 = vmatpush1.bf16.msra.mxu0 %v12972_v23  ;;  %3996 = vmatpush1.bf16.msra.mxu1 %v12975_v24  ;;  %v2526_v44 = vld [vmem:[#allocation2 + $0x40] sm:$0x11]  ;;  %16526 = vst [vmem:[#allocation23_spill] sm:$0xff] %v14302_v51  ;;  %16527 = vst [vmem:[#allocation24_spill] sm:$0xff] %v14304_v52  ;;  %v14308_v54 = vsub.s32 3, %v164_v49  ;;  %vm1590_vm3 = vcmask 1041408  }
  0x68   :  { %3924 = vmatprep.subr.bf16.mxu0 %v12980_v32  ;;  %3997 = vmatprep.subr.bf16.mxu1 %v12983_v33  ;;  %v2527_v45 = vsel %vm14278_vm7, 0, %v2526_v44  ;;  %v2497_v46 = vld [vmem:[#allocation2] sm:$0x11]  ;;  %16528 = vst [vmem:[#allocation25_spill] sm:$0xff] %v14306_v53  ;;  %v14160_v57 = vmov 1983009808  }
  0x69   :  { %2528 = vst [vmem:[#allocation2 + $0x40] sm:$0x11] %v2527_v45  ;;  %v2498_v47 = vsel %vm14286_vm12, 0, %v2497_v46  ;;  %v161_v50 = vld [vmem:[#allocation10] sm:$0xf]  ;;  %16529 = vst [vmem:[#allocation26_spill] sm:$0xff] %v14308_v54  ;;  %v665_v58 = vunpack.c.l.s4 %v14160_v57 }
  0x6a   :  { %2499 = vst [vmem:[#allocation2] sm:$0x11] %v2498_v47  ;;  %v14311_v55 = vrot.slane %v161_v50, %v14302_v51  ;;  %v14314_v56 = vrot.slane %v161_v50, %v14304_v52  ;;  %v14317_v59 = vrot.slane %v161_v50, %v14306_v53  ;;  %v14320_v60 = vrot.slane %v161_v50, %v14308_v54  ;;  %v12998_v61 = vld [vmem:[#allocation11 + $0x264] ss:$16 sps:$4 sm:$0xff]   ;;  %v13001_v62 = vld [vmem:[#allocation11 + $0x26c] ss:$16 sps:$4 sm:$0xff]  }
  0x6b   :  { %3925 = vmatpush1.bf16.msra.mxu0 %v12978_v34  ;;  %3998 = vmatpush1.bf16.msra.mxu1 %v12981_v35  ;;  %v12996_v1 = vld [vmem:[#allocation11 + $0x260] ss:$16 sps:$4 sm:$0xff]   ;;  %v12999_v2 = vld [vmem:[#allocation11 + $0x268] ss:$16 sps:$4 sm:$0xff]   ;;  %v666_v7 = vunpack.c.0.s8 %v665_v58  ;;  %vm3131_vm9 = vcmask 1046534   ;;  %vm16507_vm10 = vcmask 1047559  }
  0x6c   :  { %3926 = vmatprep.subr.bf16.mxu0 %v12986_v36  ;;  %3999 = vmatprep.subr.bf16.mxu1 %v12989_v37  ;;  %vm3391_vm11 = vsmask.f32 7440  ;;  %s14161_s17 = smov [#allocation17]  }
  0x6d   :  { %11948 = vmatmul.mubr.msk.bf16.gmra.mxu0 %vm283_vm0, %v12965_v14  ;;  %11956 = vmatmul.mubr.msk.bf16.gmra.mxu1 %vm283_vm0, %v12965_v14  ;;  %s11915_s18 = sshll.u32 %s14161_s17, 4  ;;  %s11916_s18 = int_to_ptr.vmem [resolvable:$true] %s11915_s18 }
  0x6e   :  { %360 = vmatprep.mubr.bf16.mxu0 %v14159_v0  ;;  %473 = vmatprep.mubr.bf16.mxu1 %v14159_v0  ;;  %s14116_s3 = scalar_lea.vmem %s11916_s18, 128  ;;  %p14121_p8 = scmp.lt.s32.totalorder %s11916_s18, %s11916_s18 }
  0x6f   :  { %3927 = vmatpush1.bf16.msra.mxu0 %v12984_v38  ;;  %4000 = vmatpush1.bf16.msra.mxu1 %v12987_v39  ;;  %p14117_p7 = scmp.ne.s32.totalorder %s11916_s18, %s14116_s3  ;;  %p14122_p9 = scmp.lt.s32.totalorder %s14116_s3, %s14116_s3 }
  0x70   :  { %3928 = vmatprep.subr.bf16.mxu0 %v12992_v40  ;;  %4001 = vmatprep.subr.bf16.mxu1 %v12995_v41 }
  0x71   :  { %p14123_p10 = por %p14122_p9, %p14121_p8 }
  0x73   :  { %3929 = vmatpush1.bf16.msra.mxu0 %v12990_v42  ;;  %4002 = vmatpush1.bf16.msra.mxu1 %v12993_v43  ;;  %p14124_p11 = pnand %p14123_p10, %p14117_p7 }
  0x74   :  { %3930 = vmatprep.subr.bf16.mxu0 %v12998_v61  ;;  %4003 = vmatprep.subr.bf16.mxu1 %v13001_v62 }
  0x75   :  { %11949 = vmatmul.mubr.msk.bf16.gmra.mxu0 %vm283_vm0, %v12966_v15  ;;  %11957 = vmatmul.mubr.msk.bf16.gmra.mxu1 %vm283_vm0, %v12966_v15 }
  0x76   :  { %370 = vmatprep.mubr.bf16.mxu0 %v14159_v0  ;;  %483 = vmatprep.mubr.bf16.mxu1 %v14159_v0 }
  0x77   :  { %3931 = vmatpush1.bf16.msra.mxu0 %v12996_v1  ;;  %4004 = vmatpush1.bf16.msra.mxu1 %v12999_v2 }
  0x7d   :  { %11950 = vmatmul.mubr.msk.bf16.gmra.mxu0 %vm283_vm0, %v12967_v16  ;;  %11958 = vmatmul.mubr.msk.bf16.gmra.mxu1 %vm283_vm0, %v12967_v16 }
  0x7e   :  { %380 = vmatprep.mubr.bf16.mxu0 %v14159_v0  ;;  %493 = vmatprep.mubr.bf16.mxu1 %v14159_v0 }
  0x85   :  { %11951 = vmatmul.mubr.msk.bf16.gmra.mxu0 %vm283_vm0, %v12968_v17  ;;  %11959 = vmatmul.mubr.msk.bf16.gmra.mxu1 %vm283_vm0, %v12968_v17  ;;  %v14327_v17 = vsub.s32 %v666_v7, %v164_v49 }
  0x86   :  { %390 = vmatprep.mubr.bf16.mxu0 %v14159_v0  ;;  %503 = vmatprep.mubr.bf16.mxu1 %v14159_v0 }
  0x8d   :  { %11952 = vmatmul.mubr.msk.bf16.gmra.mxu0 %vm283_vm0, %v12969_v18  ;;  %11960 = vmatmul.mubr.msk.bf16.gmra.mxu1 %vm283_vm0, %v12969_v18 }
  0x8e   :  { %400 = vmatprep.mubr.bf16.mxu0 %v14159_v0  ;;  %513 = vmatprep.mubr.bf16.mxu1 %v14159_v0 }
  0x95   :  { %11953 = vmatmul.mubr.msk.bf16.gmra.mxu0 %vm283_vm0, %v12970_v19  ;;  %11961 = vmatmul.mubr.msk.bf16.gmra.mxu1 %vm283_vm0, %v12970_v19 }
  0x96   :  { %410 = vmatprep.mubr.bf16.mxu0 %v14159_v0  ;;  %523 = vmatprep.mubr.bf16.mxu1 %v14159_v0 }
  0x9d   :  { %11954 = vmatmul.mubr.msk.bf16.gmra.mxu0 %vm283_vm0, %v12971_v20  ;;  %11962 = vmatmul.mubr.msk.bf16.gmra.mxu1 %vm283_vm0, %v12971_v20  ;;  %vm3260_vm0 = vmand %vm3259_vm14, %vm2520_vm4  ;;  %vm3123_vm4 = vcmask 1042434   ;;  %vm4598_vm14 = vcmask 1042432  }
  0x9e   :  { %vm14294_vm5 = vmor %vm3260_vm0, %vm3258_vm15  ;;  %vm4599_vm15 = vcmask 1046532  }
  0x9f   :  { %vm15105_vm0 = vmor %vm4598_vm14, %vm4599_vm15 }
 0x125   :  { %v342_v63 = vpop.f32.mrf.mxu0  ;;  %v455_v0 = vpop.f32.mrf.mxu1 }
 0x126   :  { %v343_v3 = vadd.f32 %v342_v63, %v14311_v55  ;;  %v456_v4 = vadd.f32 %v455_v0, %v14314_v56 }
 0x127   :  { %v344_v5 = vpop.f32.mrf.mxu0  ;;  %v457_v6 = vpop.f32.mrf.mxu1 }
 0x128   :  { %v534_v8 = vmax.f32 %v343_v3, 0.0  ;;  %v536_v9 = vmax.f32 %v456_v4, 0.0  ;;  %v345_v10 = vadd.f32 %v344_v5, %v14317_v59  ;;  %v458_v11 = vadd.f32 %v457_v6, %v14320_v60 }
 0x129   :  { %v346_v12 = vpop.f32.mrf.mxu0  ;;  %v459_v13 = vpop.f32.mrf.mxu1 }
 0x12a   :  { %v535_v14 = vmax.f32 %v345_v10, 0.0  ;;  %v537_v15 = vmax.f32 %v458_v11, 0.0  ;;  %v347_v16 = vadd.f32 %v346_v12, %v14311_v55  ;;  %v460_v18 = vadd.f32 %v459_v13, %v14314_v56 }
 0x12b   :  { %v348_v19 = vpop.f32.mrf.mxu0  ;;  %v461_v20 = vpop.f32.mrf.mxu1  ;;  %v598_v21 = vmax.f32 %v534_v8, %v536_v9 }
 0x12c   :  { %v599_v22 = vmax.f32 %v535_v14, %v537_v15  ;;  %v349_v23 = vadd.f32 %v348_v19, %v14317_v59  ;;  %v462_v24 = vadd.f32 %v461_v20, %v14320_v60  ;;  %v538_v25 = vmax.f32 %v347_v16, 0.0 }
 0x12d   :  { %v540_v27 = vmax.f32 %v460_v18, 0.0  ;;  %v352_v28 = vpop.f32.mrf.mxu0  ;;  %v465_v30 = vpop.f32.mrf.mxu1 }
 0x12e   :  { %v662_v32 = vcombine.low %v598_v21, %v599_v22  ;;  %v663_v33 = vcombine.high %v598_v21, %v599_v22  ;;  %v539_v34 = vmax.f32 %v349_v23, 0.0  ;;  %v541_v35 = vmax.f32 %v462_v24, 0.0 }
 0x12f   :  { %v353_v36 = vadd.f32 %v352_v28, %v14311_v55  ;;  %v466_v37 = vadd.f32 %v465_v30, %v14314_v56  ;;  %v354_v38 = vpop.f32.mrf.mxu0  ;;  %v467_v39 = vpop.f32.mrf.mxu1  ;;  %v600_v44 = vmax.f32 %v538_v25, %v540_v27 }
 0x130   :  { %v670_v40 = vrot.slane %v662_v32, %v14327_v17  ;;  %v677_v41 = vrot.slane %v663_v33, %v14327_v17  ;;  %v601_v42 = vmax.f32 %v539_v34, %v541_v35  ;;  %v14337_v43 = vadd.f32 %v354_v38, %v14317_v59 }
 0x131   :  { %v542_v45 = vmax.f32 %v353_v36, 0.0  ;;  %v544_v46 = vmax.f32 %v466_v37, 0.0  ;;  %v14340_v47 = vadd.f32 %v467_v39, %v14320_v60 }
 0x132   :  { %v678_v48 = vcombine.high %v670_v40, %v670_v40  ;;  %v679_v49 = vcombine.high %v677_v41, %v677_v41  ;;  %v956_v50 = vrot.slane %v670_v40, %v14327_v17  ;;  %v972_v57 = vrot.slane %v677_v41, %v14327_v17 }
 0x133   :  { %v680_v58 = vcombine.low %v600_v44, %v601_v42  ;;  %v681_v61 = vcombine.high %v600_v44, %v601_v42  ;;  %v14344_v62 = vmax.f32 %v542_v45, %v544_v46  ;;  %v543_v63 = vmax.f32 %v14337_v43, 0.0 }
 0x134   :  { %v957_v0 = vcombine.high %v956_v50, %v956_v50  ;;  %v964_v1 = vrot.slane %v678_v48, %v14327_v17  ;;  %v973_v2 = vcombine.high %v972_v57, %v972_v57  ;;  %v980_v3 = vrot.slane %v679_v49, %v14327_v17 }
 0x135   :  { %v1591_v4 = vsel %vm1590_vm3, %v956_v50, -inf  ;;  %v1619_v5 = vsel %vm1590_vm3, %v972_v57, -inf  ;;  %v14352_v6 = vrot.slane %v680_v58, %v14327_v17  ;;  %v14355_v7 = vrot.slane %v681_v61, %v14327_v17 }
 0x136   :  { %v965_v8 = vcombine.high %v964_v1, %v964_v1  ;;  %v981_v9 = vcombine.high %v980_v3, %v980_v3  ;;  %v1592_v10 = vrot.slane %v1591_v4, 4  ;;  %v1598_v11 = vsel %vm1590_vm3, %v957_v0, -inf }
 0x137   :  { %v1599_v12 = vrot.slane %v1598_v11, 4  ;;  %v1605_v13 = vsel %vm1590_vm3, %v964_v1, -inf  ;;  %v1620_v14 = vrot.slane %v1619_v5, 4  ;;  %v1626_v15 = vsel %vm1590_vm3, %v973_v2, -inf }
 0x138   :  { %v1593_v16 = vmax.f32 %v1591_v4, %v1592_v10  ;;  %v1606_v18 = vrot.slane %v1605_v13, 4  ;;  %v1612_v19 = vsel %vm1590_vm3, %v965_v8, -inf  ;;  %v1627_v20 = vrot.slane %v1626_v15, 4 }
 0x139   :  { %v1600_v21 = vmax.f32 %v1598_v11, %v1599_v12  ;;  %v1613_v22 = vrot.slane %v1612_v19, 4  ;;  %v1621_v23 = vmax.f32 %v1619_v5, %v1620_v14  ;;  %v1633_v24 = vsel %vm1590_vm3, %v980_v3, -inf }
 0x13a   :  { %v1594_v25 = vrot.slane %v1593_v16, 2  ;;  %v1607_v27 = vmax.f32 %v1605_v13, %v1606_v18  ;;  %v1628_v28 = vmax.f32 %v1626_v15, %v1627_v20  ;;  %v1634_v30 = vrot.slane %v1633_v24, 4 }
 0x13b   :  { %v1601_v32 = vrot.slane %v1600_v21, 2  ;;  %v1614_v33 = vmax.f32 %v1612_v19, %v1613_v22  ;;  %v1622_v34 = vrot.slane %v1621_v23, 2  ;;  %v1640_v35 = vsel %vm1590_vm3, %v981_v9, -inf }
 0x13c   :  { %v1595_v36 = vmax.f32 %v1593_v16, %v1594_v25  ;;  %v1608_v37 = vrot.slane %v1607_v27, 2  ;;  %v1629_v38 = vrot.slane %v1628_v28, 2  ;;  %v1635_v39 = vmax.f32 %v1633_v24, %v1634_v30 }
 0x13d   :  { %v1602_v40 = vmax.f32 %v1600_v21, %v1601_v32  ;;  %v1615_v41 = vrot.slane %v1614_v33, 2  ;;  %v1623_v42 = vmax.f32 %v1621_v23, %v1622_v34  ;;  %v1641_v44 = vrot.slane %v1640_v35, 4 }
 0x13e   :  { %v1596_v45 = vrot.slane %v1595_v36, 1  ;;  %v1609_v46 = vmax.f32 %v1607_v27, %v1608_v37  ;;  %v1630_v48 = vmax.f32 %v1628_v28, %v1629_v38  ;;  %v1636_v49 = vrot.slane %v1635_v39, 2 }
 0x13f   :  { %v1603_v50 = vrot.slane %v1602_v40, 1  ;;  %v1616_v57 = vmax.f32 %v1614_v33, %v1615_v41  ;;  %v1624_v58 = vrot.slane %v1623_v42, 1  ;;  %v1642_v61 = vmax.f32 %v1640_v35, %v1641_v44 }
 0x140   :  { %v1597_v0 = vmax.f32 %v1595_v36, %v1596_v45  ;;  %v1610_v1 = vrot.slane %v1609_v46, 1  ;;  %v1631_v2 = vrot.slane %v1630_v48, 1  ;;  %v1637_v3 = vmax.f32 %v1635_v39, %v1636_v49 }
 0x141   :  { %v1604_v4 = vmax.f32 %v1602_v40, %v1603_v50  ;;  %v1617_v5 = vrot.slane %v1616_v57, 1  ;;  %v1625_v8 = vmax.f32 %v1623_v42, %v1624_v58  ;;  %v1643_v9 = vrot.slane %v1642_v61, 2  ;;  %v13002_v58 = vld [vmem:[#allocation11 + $0x240] ss:$16 sps:$4 sm:$0xff]  }
 0x142   :  { %v1611_v10 = vmax.f32 %v1609_v46, %v1610_v1  ;;  %v1632_v11 = vmax.f32 %v1630_v48, %v1631_v2  ;;  %v1638_v12 = vrot.slane %v1637_v3, 1  ;;  %v696_v13 = vcombine.high %v14352_v6, %v14352_v6  ;;  %v13004_v46 = vld [vmem:[#allocation11 + $0x244] ss:$16 sps:$4 sm:$0xff]   ;;  %v13007_v48 = vld [vmem:[#allocation11 + $0x24c] ss:$16 sps:$4 sm:$0xff]  }
 0x143   :  { %v1618_v14 = vmax.f32 %v1616_v57, %v1617_v5  ;;  %v1644_v15 = vmax.f32 %v1642_v61, %v1643_v9  ;;  %v12812_v16 = vpack.c.bf16 %v1604_v4, %v1597_v0  ;;  %v697_v18 = vcombine.high %v14355_v7, %v14355_v7  ;;  %v13005_v61 = vld [vmem:[#allocation11 + $0x248] ss:$16 sps:$4 sm:$0xff]   ;;  %3932 = vmatprep.subr.bf16.mxu0 %v13004_v46  ;;  %v356_v46 = vpop.f32.mrf.mxu0 }
 0x144   :  { %v1639_v19 = vmax.f32 %v1637_v3, %v1638_v12  ;;  %v12814_v20 = vpack.c.bf16 %v1632_v11, %v1625_v8  ;;  %v988_v21 = vrot.slane %v14352_v6, %v14327_v17  ;;  %v996_v22 = vrot.slane %v696_v13, %v14327_v17  ;;  %4005 = vmatprep.subr.bf16.mxu1 %v13007_v48 }
 0x145   :  { %v1645_v23 = vrot.slane %v1644_v15, 1  ;;  %v12813_v24 = vpack.c.bf16 %v1618_v14, %v1611_v10  ;;  %v2995_v25 = vunpack.c.l.b16 %v12812_v16  ;;  %v2996_v27 = vunpack.c.h.b16 %v12812_v16  ;;  %3933 = vmatpush1.bf16.msra.mxu0 %v13002_v58  ;;  %4006 = vmatpush1.bf16.msra.mxu1 %v13005_v61 }
 0x146   :  { %v2999_v28 = vunpack.c.l.b16 %v12814_v20  ;;  %v3000_v30 = vunpack.c.h.b16 %v12814_v20  ;;  %v989_v32 = vcombine.high %v988_v21, %v988_v21  ;;  %v997_v33 = vcombine.high %v996_v22, %v996_v22 }
 0x147   :  { %v1646_v34 = vmax.f32 %v1644_v15, %v1645_v23  ;;  %v2997_v35 = vunpack.c.l.b16 %v12813_v24  ;;  %v2998_v36 = vunpack.c.h.b16 %v12813_v24  ;;  %v1004_v37 = vrot.slane %v14355_v7, %v14327_v17 }
 0x148   :  { %v1012_v38 = vrot.slane %v697_v18, %v14327_v17  ;;  %v1647_v6 = vsel %vm1590_vm3, %v988_v21, -inf  ;;  %v1654_v39 = vsel %vm1590_vm3, %v989_v32, -inf  ;;  %v1661_v40 = vsel %vm1590_vm3, %v996_v22, -inf }
 0x149   :  { %v12815_v41 = vpack.c.bf16 %v1646_v34, %v1639_v19  ;;  %v3124_v42 = vsel %vm3123_vm4, %v2997_v35, %v2995_v25  ;;  %v3135_v44 = vsel %vm3123_vm4, %v2998_v36, %v2996_v27  ;;  %v1005_v45 = vcombine.high %v1004_v37, %v1004_v37 }
 0x14a   :  { %v3126_v49 = vsel %vm3125_vm6, %v2999_v28, %v3124_v42  ;;  %v3136_v7 = vsel %vm3125_vm6, %v3000_v30, %v3135_v44  ;;  %v1013_v50 = vcombine.high %v1012_v38, %v1012_v38  ;;  %v1648_v57 = vrot.slane %v1647_v6, 4 }
 0x14b   :  { %v3001_v0 = vunpack.c.l.b16 %v12815_v41  ;;  %v3002_v1 = vunpack.c.h.b16 %v12815_v41  ;;  %v1655_v2 = vrot.slane %v1654_v39, 4  ;;  %v1662_v3 = vrot.slane %v1661_v40, 4 }
 0x14c   :  { %v1649_v4 = vmax.f32 %v1647_v6, %v1648_v57  ;;  %v1668_v5 = vsel %vm1590_vm3, %v997_v33, -inf  ;;  %v1675_v8 = vsel %vm1590_vm3, %v1004_v37, -inf  ;;  %v1682_v9 = vsel %vm1590_vm3, %v1005_v45, -inf }
 0x14d   :  { %v14384_v10 = vsel %vm2490_vm1, %v3001_v0, %v3126_v49  ;;  %v14387_v11 = vsel %vm2490_vm1, %v3002_v1, %v3136_v7  ;;  %v1656_v12 = vmax.f32 %v1654_v39, %v1655_v2  ;;  %v1663_v13 = vmax.f32 %v1661_v40, %v1662_v3 }
 0x14e   :  { %v1650_v14 = vrot.slane %v1649_v4, 2  ;;  %v1669_v15 = vrot.slane %v1668_v5, 4  ;;  %v1676_v16 = vrot.slane %v1675_v8, 4  ;;  %v1683_v18 = vrot.slane %v1682_v9, 4 }
 0x14f   :  { %v1657_v19 = vrot.slane %v1656_v12, 2  ;;  %v1664_v20 = vrot.slane %v1663_v13, 2  ;;  %v1689_v21 = vsel %vm1590_vm3, %v1012_v38, -inf  ;;  %v1696_v22 = vsel %vm1590_vm3, %v1013_v50, -inf }
 0x150   :  { %v1651_v23 = vmax.f32 %v1649_v4, %v1650_v14  ;;  %v1670_v24 = vmax.f32 %v1668_v5, %v1669_v15  ;;  %v1677_v25 = vmax.f32 %v1675_v8, %v1676_v16  ;;  %v1684_v27 = vmax.f32 %v1682_v9, %v1683_v18 }
 0x151   :  { %v1658_v28 = vmax.f32 %v1656_v12, %v1657_v19  ;;  %v1665_v30 = vmax.f32 %v1663_v13, %v1664_v20  ;;  %v1690_v32 = vrot.slane %v1689_v21, 4  ;;  %v1697_v33 = vrot.slane %v1696_v22, 4 }
 0x152   :  { %v1652_v34 = vrot.slane %v1651_v23, 1  ;;  %v1671_v35 = vrot.slane %v1670_v24, 2  ;;  %v1678_v36 = vrot.slane %v1677_v25, 2  ;;  %v1685_v37 = vrot.slane %v1684_v27, 2 }
 0x153   :  { %v1659_v6 = vrot.slane %v1658_v28, 1  ;;  %v1666_v39 = vrot.slane %v1665_v30, 1  ;;  %v1691_v40 = vmax.f32 %v1689_v21, %v1690_v32  ;;  %v1698_v41 = vmax.f32 %v1696_v22, %v1697_v33  ;;  %v469_v21 = vpop.f32.mrf.mxu1  ;;  %v3265_v32 = vld [vmem:[#allocation2 + $0x8] sm:$0x11] }
 0x154   :  { %v1653_v38 = vmax.f32 %v1651_v23, %v1652_v34  ;;  %v1672_v42 = vmax.f32 %v1670_v24, %v1671_v35  ;;  %v1679_v44 = vmax.f32 %v1677_v25, %v1678_v36  ;;  %v1686_v45 = vmax.f32 %v1684_v27, %v1685_v37 }
 0x155   :  { %v1660_v48 = vmax.f32 %v1658_v28, %v1659_v6  ;;  %v1667_v49 = vmax.f32 %v1665_v30, %v1666_v39  ;;  %v1692_v7 = vrot.slane %v1691_v40, 2  ;;  %v1699_v50 = vrot.slane %v1698_v41, 2  ;;  %v471_v6 = vpop.f32.mrf.mxu1 }
 0x156   :  { %v1673_v57 = vrot.slane %v1672_v42, 1  ;;  %v1680_v58 = vrot.slane %v1679_v44, 1  ;;  %v1687_v61 = vrot.slane %v1686_v45, 1  ;;  %v545_v0 = vmax.f32 %v14340_v47, 0.0 }
 0x157   :  { %v1693_v1 = vmax.f32 %v1691_v40, %v1692_v7  ;;  %v1700_v2 = vmax.f32 %v1698_v41, %v1699_v50  ;;  %v12816_v3 = vpack.c.bf16 %v1660_v48, %v1653_v38  ;;  %v14393_v4 = vadd.f32 %v356_v46, %v14311_v55  ;;  %v3262_v41 = vld [vmem:[#allocation2 + $0x60] sm:$0xff] }
 0x158   :  { %v1674_v5 = vmax.f32 %v1672_v42, %v1673_v57  ;;  %v1681_v8 = vmax.f32 %v1679_v44, %v1680_v58  ;;  %v1688_v9 = vmax.f32 %v1686_v45, %v1687_v61  ;;  %v603_v12 = vmax.f32 %v543_v63, %v545_v0  ;;  %v358_v63 = vpop.f32.mrf.mxu0 }
 0x159   :  { %v1694_v13 = vrot.slane %v1693_v1, 1  ;;  %v1701_v14 = vrot.slane %v1700_v2, 1  ;;  %v3003_v15 = vunpack.c.l.b16 %v12816_v3  ;;  %v3004_v16 = vunpack.c.h.b16 %v12816_v3 }
 0x15a   :  { %v12817_v18 = vpack.c.bf16 %v1674_v5, %v1667_v49  ;;  %v12818_v19 = vpack.c.bf16 %v1688_v9, %v1681_v8  ;;  %v698_v47 = vcombine.low %v14344_v62, %v603_v12  ;;  %v699_v20 = vcombine.high %v14344_v62, %v603_v12 }
 0x15b   :  { %v1695_v22 = vmax.f32 %v1693_v1, %v1694_v13  ;;  %v1702_v23 = vmax.f32 %v1700_v2, %v1701_v14  ;;  %v3130_v24 = vsel %vm3129_vm8, %v3003_v15, %v14384_v10  ;;  %v3138_v43 = vsel %vm3129_vm8, %v3004_v16, %v14387_v11 }
 0x15c   :  { %v3005_v25 = vunpack.c.l.b16 %v12817_v18  ;;  %v3006_v27 = vunpack.c.h.b16 %v12817_v18  ;;  %v3007_v28 = vunpack.c.l.b16 %v12818_v19  ;;  %v3008_v30 = vunpack.c.h.b16 %v12818_v19 }
 0x15d   :  { %v12819_v33 = vpack.c.bf16 %v1702_v23, %v1695_v22  ;;  %v706_v34 = vrot.slane %v698_v47, %v14327_v17  ;;  %v713_v62 = vrot.slane %v699_v20, %v14327_v17  ;;  %v546_v35 = vmax.f32 %v14393_v4, 0.0  ;;  %v13010_v47 = vld [vmem:[#allocation11 + $0x224] ss:$16 sps:$4 sm:$0xff]  }
 0x15e   :  { %v3132_v36 = vsel %vm3131_vm9, %v3005_v25, %v3130_v24  ;;  %v3139_v10 = vsel %vm3131_vm9, %v3006_v27, %v3138_v43  ;;  %v14409_v37 = vadd.f32 %v469_v21, %v14314_v56  ;;  %v14412_v11 = vadd.f32 %v358_v63, %v14317_v59  ;;  %v13008_v24 = vld [vmem:[#allocation11 + $0x220] ss:$16 sps:$4 sm:$0xff]   ;;  %v13011_v43 = vld [vmem:[#allocation11 + $0x228] ss:$16 sps:$4 sm:$0xff]   ;;  %3934 = vmatprep.subr.bf16.mxu0 %v13010_v47  ;;  %v13016_v47 = vld [vmem:[#allocation11 + $0x204] ss:$16 sps:$4 sm:$0xff]  }
 0x15f   :  { %v3134_v39 = vsel %vm16507_vm10, %v3007_v28, %v3132_v36  ;;  %v3140_v40 = vsel %vm16507_vm10, %v3008_v30, %v3139_v10  ;;  %v3266_v38 = vsel %vm14286_vm12, %v12819_v33, %v3265_v32  ;;  %v714_v42 = vcombine.high %v706_v34, %v706_v34  ;;  %v13013_v30 = vld [vmem:[#allocation11 + $0x22c] ss:$16 sps:$4 sm:$0xff]   ;;  %3935 = vmatpush1.bf16.msra.mxu0 %v13008_v24 }
 0x160   :  { %v3225_v44 = vpack.c.b16 %v3140_v40, %v3134_v39  ;;  %3267 = vst [vmem:[#allocation2 + $0x8] sm:$0x11] %v3266_v38  ;;  %v715_v45 = vcombine.high %v713_v62, %v713_v62  ;;  %v1020_v46 = vrot.slane %v706_v34, %v14327_v17  ;;  %v1036_v48 = vrot.slane %v713_v62, %v14327_v17 }
 0x161   :  { %v1028_v49 = vrot.slane %v714_v42, %v14327_v17  ;;  %v548_v7 = vmax.f32 %v14409_v37, 0.0  ;;  %v547_v50 = vmax.f32 %v14412_v11, 0.0  ;;  %v14424_v57 = vadd.f32 %v471_v6, %v14320_v60  ;;  %4007 = vmatprep.subr.bf16.mxu1 %v13013_v30  ;;  %3936 = vmatprep.subr.bf16.mxu0 %v13016_v47 }
 0x162   :  { %v3263_v58 = vsel %vm14294_vm5, %v3225_v44, %v3262_v41  ;;  %v1021_v61 = vcombine.high %v1020_v46, %v1020_v46  ;;  %v1037_v0 = vcombine.high %v1036_v48, %v1036_v48  ;;  %v1044_v1 = vrot.slane %v715_v45, %v14327_v17  ;;  %4008 = vmatpush1.bf16.msra.mxu1 %v13011_v43 }
 0x163   :  { %3264 = vst [vmem:[#allocation2 + $0x60] sm:$0xff] %v3263_v58  ;;  %v1029_v2 = vcombine.high %v1028_v49, %v1028_v49  ;;  %v1703_v3 = vsel %vm1590_vm3, %v1020_v46, -inf  ;;  %v1717_v5 = vsel %vm1590_vm3, %v1028_v49, -inf  ;;  %v1731_v8 = vsel %vm1590_vm3, %v1036_v48, -inf }
 0x164   :  { %v1045_v9 = vcombine.high %v1044_v1, %v1044_v1  ;;  %v1704_v12 = vrot.slane %v1703_v3, 4  ;;  %v1710_v13 = vsel %vm1590_vm3, %v1021_v61, -inf  ;;  %v1718_v14 = vrot.slane %v1717_v5, 4 }
 0x165   :  { %v1711_v15 = vrot.slane %v1710_v13, 4  ;;  %v1724_v16 = vsel %vm1590_vm3, %v1029_v2, -inf  ;;  %v1732_v18 = vrot.slane %v1731_v8, 4  ;;  %v1738_v19 = vsel %vm1590_vm3, %v1037_v0, -inf }
 0x166   :  { %v1705_v20 = vmax.f32 %v1703_v3, %v1704_v12  ;;  %v1719_v21 = vmax.f32 %v1717_v5, %v1718_v14  ;;  %v1725_v22 = vrot.slane %v1724_v16, 4  ;;  %v1739_v23 = vrot.slane %v1738_v19, 4 }
 0x167   :  { %v1712_v63 = vmax.f32 %v1710_v13, %v1711_v15  ;;  %v1733_v25 = vmax.f32 %v1731_v8, %v1732_v18  ;;  %v1745_v27 = vsel %vm1590_vm3, %v1044_v1, -inf  ;;  %v1752_v28 = vsel %vm1590_vm3, %v1045_v9, -inf  ;;  %v362_v1 = vpop.f32.mrf.mxu0 }
 0x168   :  { %v1706_v32 = vrot.slane %v1705_v20, 2  ;;  %v1720_v33 = vrot.slane %v1719_v21, 2  ;;  %v1726_v34 = vmax.f32 %v1724_v16, %v1725_v22  ;;  %v1740_v62 = vmax.f32 %v1738_v19, %v1739_v23 }
 0x169   :  { %v1713_v36 = vrot.slane %v1712_v63, 2  ;;  %v1734_v10 = vrot.slane %v1733_v25, 2  ;;  %v1746_v6 = vrot.slane %v1745_v27, 4  ;;  %v1753_v39 = vrot.slane %v1752_v28, 4  ;;  %v364_v43 = vpop.f32.mrf.mxu0 }
 0x16a   :  { %v1707_v40 = vmax.f32 %v1705_v20, %v1706_v32  ;;  %v1721_v41 = vmax.f32 %v1719_v21, %v1720_v33  ;;  %v1727_v38 = vrot.slane %v1726_v34, 2  ;;  %v1741_v42 = vrot.slane %v1740_v62, 2  ;;  %v13019_v20 = vld [vmem:[#allocation11 + $0x20c] ss:$16 sps:$4 sm:$0xff]   ;;  %v475_v33 = vpop.f32.mrf.mxu1 }
 0x16b   :  { %v1714_v44 = vmax.f32 %v1712_v63, %v1713_v36  ;;  %v1735_v45 = vmax.f32 %v1733_v25, %v1734_v10  ;;  %v1747_v46 = vmax.f32 %v1745_v27, %v1746_v6  ;;  %v1754_v48 = vmax.f32 %v1752_v28, %v1753_v39  ;;  %v13014_v63 = vld [vmem:[#allocation11 + $0x200] ss:$16 sps:$4 sm:$0xff]   ;;  %v13017_v25 = vld [vmem:[#allocation11 + $0x208] ss:$16 sps:$4 sm:$0xff]   ;;  %4009 = vmatprep.subr.bf16.mxu1 %v13019_v20 }
 0x16c   :  { %v1708_v49 = vrot.slane %v1707_v40, 1  ;;  %v1722_v58 = vrot.slane %v1721_v41, 1  ;;  %v1728_v61 = vmax.f32 %v1726_v34, %v1727_v38  ;;  %v1742_v0 = vmax.f32 %v1740_v62, %v1741_v42  ;;  %3937 = vmatpush1.bf16.msra.mxu0 %v13014_v63  ;;  %4010 = vmatpush1.bf16.msra.mxu1 %v13017_v25 }
 0x16d   :  { %v1715_v2 = vrot.slane %v1714_v44, 1  ;;  %v1736_v3 = vrot.slane %v1735_v45, 1  ;;  %v1748_v5 = vrot.slane %v1747_v46, 2  ;;  %v1755_v8 = vrot.slane %v1754_v48, 2 }
 0x16e   :  { %v1709_v9 = vmax.f32 %v1707_v40, %v1708_v49  ;;  %v1723_v12 = vmax.f32 %v1721_v41, %v1722_v58  ;;  %v1729_v13 = vrot.slane %v1728_v61, 1  ;;  %v1743_v14 = vrot.slane %v1742_v0, 1  ;;  %v366_v41 = vpop.f32.mrf.mxu0  ;;  %v477_v49 = vpop.f32.mrf.mxu1 }
 0x16f   :  { %v1716_v15 = vmax.f32 %v1714_v44, %v1715_v2  ;;  %v1737_v16 = vmax.f32 %v1735_v45, %v1736_v3  ;;  %v1749_v18 = vmax.f32 %v1747_v46, %v1748_v5  ;;  %v1756_v19 = vmax.f32 %v1754_v48, %v1755_v8 }
 0x170   :  { %v1730_v21 = vmax.f32 %v1728_v61, %v1729_v13  ;;  %v1744_v22 = vmax.f32 %v1742_v0, %v1743_v14  ;;  %v604_v23 = vmax.f32 %v546_v35, %v548_v7  ;;  %v549_v24 = vmax.f32 %v14424_v57, 0.0  ;;  %v479_v20 = vpop.f32.mrf.mxu1 }
 0x171   :  { %v1750_v27 = vrot.slane %v1749_v18, 1  ;;  %v1757_v28 = vrot.slane %v1756_v19, 1  ;;  %v12820_v30 = vpack.c.bf16 %v1716_v15, %v1709_v9  ;;  %v363_v32 = vadd.f32 %v362_v1, %v14311_v55  ;;  %v368_v9 = vpop.f32.mrf.mxu0 }
 0x172   :  { %v12821_v34 = vpack.c.bf16 %v1730_v21, %v1723_v12  ;;  %v12822_v62 = vpack.c.bf16 %v1744_v22, %v1737_v16  ;;  %v605_v37 = vmax.f32 %v547_v50, %v549_v24  ;;  %v476_v4 = vadd.f32 %v475_v33, %v14314_v56 }
 0x173   :  { %v1751_v35 = vmax.f32 %v1749_v18, %v1750_v27  ;;  %v1758_v7 = vmax.f32 %v1756_v19, %v1757_v28  ;;  %v3011_v57 = vunpack.c.l.b16 %v12820_v30  ;;  %v3012_v36 = vunpack.c.h.b16 %v12820_v30 }
 0x174   :  { %v3013_v10 = vunpack.c.l.b16 %v12821_v34  ;;  %v3014_v6 = vunpack.c.h.b16 %v12821_v34  ;;  %v3015_v39 = vunpack.c.l.b16 %v12822_v62  ;;  %v3016_v40 = vunpack.c.h.b16 %v12822_v62 }
 0x175   :  { %v12823_v38 = vpack.c.bf16 %v1758_v7, %v1751_v35  ;;  %v716_v42 = vcombine.low %v604_v23, %v605_v37  ;;  %v717_v44 = vcombine.high %v604_v23, %v605_v37  ;;  %v550_v45 = vmax.f32 %v363_v32, 0.0 }
 0x176   :  { %v3141_v11 = vsel %vm3123_vm4, %v3013_v10, %v3011_v57  ;;  %v3147_v50 = vsel %vm3123_vm4, %v3014_v6, %v3012_v36  ;;  %v552_v46 = vmax.f32 %v476_v4, 0.0  ;;  %v365_v48 = vadd.f32 %v364_v43, %v14317_v59 }
 0x177   :  { %v3017_v58 = vunpack.c.l.b16 %v12823_v38  ;;  %v3018_v61 = vunpack.c.h.b16 %v12823_v38  ;;  %v3142_v0 = vsel %vm3125_vm6, %v3015_v39, %v3141_v11  ;;  %v3148_v1 = vsel %vm3125_vm6, %v3016_v40, %v3147_v50 }
 0x178   :  { %v724_v2 = vrot.slane %v716_v42, %v14327_v17  ;;  %v731_v3 = vrot.slane %v717_v44, %v14327_v17  ;;  %v14453_v5 = vmax.f32 %v550_v45, %v552_v46  ;;  %v551_v8 = vmax.f32 %v365_v48, 0.0 }
 0x179   :  { %v14456_v12 = vsel %vm2490_vm1, %v3017_v58, %v3142_v0  ;;  %v14459_v13 = vsel %vm2490_vm1, %v3018_v61, %v3148_v1  ;;  %v478_v14 = vadd.f32 %v477_v49, %v14320_v60  ;;  %v14463_v15 = vadd.f32 %v366_v41, %v14311_v55 }
 0x17a   :  { %v732_v16 = vcombine.high %v724_v2, %v724_v2  ;;  %v733_v18 = vcombine.high %v731_v3, %v731_v3  ;;  %v1052_v19 = vrot.slane %v724_v2, %v14327_v17  ;;  %v1068_v47 = vrot.slane %v731_v3, %v14327_v17 }
 0x17b   :  { %v553_v21 = vmax.f32 %v478_v14, 0.0  ;;  %v554_v22 = vmax.f32 %v14463_v15, 0.0  ;;  %v14469_v23 = vadd.f32 %v479_v20, %v14314_v56  ;;  %v14472_v24 = vadd.f32 %v368_v9, %v14317_v59 }
 0x17c   :  { %v1053_v43 = vcombine.high %v1052_v19, %v1052_v19  ;;  %v1060_v63 = vrot.slane %v732_v16, %v14327_v17  ;;  %v1069_v25 = vcombine.high %v1068_v47, %v1068_v47  ;;  %v1076_v27 = vrot.slane %v733_v18, %v14327_v17 }
 0x17d   :  { %v1759_v28 = vsel %vm1590_vm3, %v1052_v19, -inf  ;;  %v1787_v30 = vsel %vm1590_vm3, %v1068_v47, -inf  ;;  %v14478_v32 = vmax.f32 %v551_v8, %v553_v21  ;;  %v556_v33 = vmax.f32 %v14469_v23, 0.0 }
 0x17e   :  { %v1061_v34 = vcombine.high %v1060_v63, %v1060_v63  ;;  %v1077_v62 = vcombine.high %v1076_v27, %v1076_v27  ;;  %v1760_v37 = vrot.slane %v1759_v28, 4  ;;  %v1766_v4 = vsel %vm1590_vm3, %v1053_v43, -inf }
 0x17f   :  { %v1767_v35 = vrot.slane %v1766_v4, 4  ;;  %v1773_v7 = vsel %vm1590_vm3, %v1060_v63, -inf  ;;  %v1788_v57 = vrot.slane %v1787_v30, 4  ;;  %v1794_v36 = vsel %vm1590_vm3, %v1069_v25, -inf }
 0x180   :  { %v1761_v10 = vmax.f32 %v1759_v28, %v1760_v37  ;;  %v1774_v6 = vrot.slane %v1773_v7, 4  ;;  %v1780_v39 = vsel %vm1590_vm3, %v1061_v34, -inf  ;;  %v1795_v40 = vrot.slane %v1794_v36, 4 }
 0x181   :  { %v1768_v41 = vmax.f32 %v1766_v4, %v1767_v35  ;;  %v1781_v38 = vrot.slane %v1780_v39, 4  ;;  %v1789_v42 = vmax.f32 %v1787_v30, %v1788_v57  ;;  %v1801_v44 = vsel %vm1590_vm3, %v1076_v27, -inf }
 0x182   :  { %v1762_v45 = vrot.slane %v1761_v10, 2  ;;  %v1775_v11 = vmax.f32 %v1773_v7, %v1774_v6  ;;  %v1796_v50 = vmax.f32 %v1794_v36, %v1795_v40  ;;  %v1802_v46 = vrot.slane %v1801_v44, 4 }
 0x183   :  { %v1769_v48 = vrot.slane %v1768_v41, 2  ;;  %v1782_v49 = vmax.f32 %v1780_v39, %v1781_v38  ;;  %v1790_v58 = vrot.slane %v1789_v42, 2  ;;  %v1808_v61 = vsel %vm1590_vm3, %v1077_v62, -inf }
 0x184   :  { %v1763_v0 = vmax.f32 %v1761_v10, %v1762_v45  ;;  %v1776_v1 = vrot.slane %v1775_v11, 2  ;;  %v1797_v2 = vrot.slane %v1796_v50, 2  ;;  %v1803_v3 = vmax.f32 %v1801_v44, %v1802_v46 }
 0x185   :  { %v1770_v8 = vmax.f32 %v1768_v41, %v1769_v48  ;;  %v1783_v9 = vrot.slane %v1782_v49, 2  ;;  %v1791_v14 = vmax.f32 %v1789_v42, %v1790_v58  ;;  %v1809_v16 = vrot.slane %v1808_v61, 4 }
 0x186   :  { %v1764_v18 = vrot.slane %v1763_v0, 1  ;;  %v1777_v19 = vmax.f32 %v1775_v11, %v1776_v1  ;;  %v1798_v47 = vmax.f32 %v1796_v50, %v1797_v2  ;;  %v1804_v20 = vrot.slane %v1803_v3, 2 }
 0x187   :  { %v1771_v21 = vrot.slane %v1770_v8, 1  ;;  %v1784_v23 = vmax.f32 %v1782_v49, %v1783_v9  ;;  %v1792_v43 = vrot.slane %v1791_v14, 1  ;;  %v1810_v63 = vmax.f32 %v1808_v61, %v1809_v16 }
 0x188   :  { %v1765_v25 = vmax.f32 %v1763_v0, %v1764_v18  ;;  %v1778_v27 = vrot.slane %v1777_v19, 1  ;;  %v1799_v28 = vrot.slane %v1798_v47, 1  ;;  %v1805_v30 = vmax.f32 %v1803_v3, %v1804_v20 }
 0x189   :  { %v1772_v34 = vmax.f32 %v1770_v8, %v1771_v21  ;;  %v1785_v62 = vrot.slane %v1784_v23, 1  ;;  %v1793_v37 = vmax.f32 %v1791_v14, %v1792_v43  ;;  %v1811_v4 = vrot.slane %v1810_v63, 2 }
 0x18a   :  { %v1779_v35 = vmax.f32 %v1777_v19, %v1778_v27  ;;  %v1800_v7 = vmax.f32 %v1798_v47, %v1799_v28  ;;  %v1806_v57 = vrot.slane %v1805_v30, 1  ;;  %v734_v36 = vcombine.low %v14453_v5, %v14478_v32  ;;  %v3268_v19 = vld [vmem:[#allocation2] sm:$0xff] }
 0x18b   :  { %v1786_v10 = vmax.f32 %v1784_v23, %v1785_v62  ;;  %v1812_v6 = vmax.f32 %v1810_v63, %v1811_v4  ;;  %v12824_v39 = vpack.c.bf16 %v1772_v34, %v1765_v25  ;;  %v735_v40 = vcombine.high %v14453_v5, %v14478_v32 }
 0x18c   :  { %v1807_v41 = vmax.f32 %v1805_v30, %v1806_v57  ;;  %v12826_v38 = vpack.c.bf16 %v1800_v7, %v1793_v37  ;;  %v742_v42 = vrot.slane %v734_v36, %v14327_v17  ;;  %v14494_v44 = vmax.f32 %v554_v22, %v556_v33  ;;  %v3271_v22 = vld [vmem:[#allocation2 + $0x40] sm:$0x11]  ;;  %v13022_v30 = vld [vmem:[#allocation11 + $0x3e4] ss:$16 sps:$4 sm:$0xff]   ;;  %v13023_v7 = vld [vmem:[#allocation11 + $0x3e8] ss:$16 sps:$4 sm:$0xff]  }
 0x18d   :  { %v1813_v45 = vrot.slane %v1812_v6, 1  ;;  %v12825_v11 = vpack.c.bf16 %v1786_v10, %v1779_v35  ;;  %v3019_v50 = vunpack.c.l.b16 %v12824_v39  ;;  %v3020_v46 = vunpack.c.h.b16 %v12824_v39  ;;  %v13020_v35 = vld [vmem:[#allocation11 + $0x3e0] ss:$16 sps:$4 sm:$0xff]   ;;  %3938 = vmatprep.subr.bf16.mxu0 %v13022_v30  ;;  %v13025_v39 = vld [vmem:[#allocation11 + $0x3ec] ss:$16 sps:$4 sm:$0xff]  }
 0x18e   :  { %v3023_v48 = vunpack.c.l.b16 %v12826_v38  ;;  %v3024_v49 = vunpack.c.h.b16 %v12826_v38  ;;  %v749_v58 = vrot.slane %v735_v40, %v14327_v17  ;;  %v750_v61 = vcombine.high %v742_v42, %v742_v42  ;;  %3939 = vmatpush2.bf16.msra.mxu0 %v13020_v35  ;;  %4011 = vmatprep.subr.bf16.mxu1 %v13025_v39 }
 0x18f   :  { %v1814_v0 = vmax.f32 %v1812_v6, %v1813_v45  ;;  %v3021_v1 = vunpack.c.l.b16 %v12825_v11  ;;  %v3022_v5 = vunpack.c.h.b16 %v12825_v11  ;;  %v3144_v32 = vsel %vm3129_vm8, %v3019_v50, %v14456_v12  ;;  %4012 = vmatpush2.bf16.msra.mxu1 %v13023_v7 }
 0x190   :  { %v3150_v15 = vsel %vm3129_vm8, %v3020_v46, %v14459_v13  ;;  %v751_v33 = vcombine.high %v749_v58, %v749_v58  ;;  %v1084_v2 = vrot.slane %v742_v42, %v14327_v17  ;;  %v1092_v3 = vrot.slane %v750_v61, %v14327_v17 }
 0x191   :  { %v12827_v8 = vpack.c.bf16 %v1814_v0, %v1807_v41  ;;  %v3145_v9 = vsel %vm3131_vm9, %v3021_v1, %v3144_v32  ;;  %v3151_v14 = vsel %vm3131_vm9, %v3022_v5, %v3150_v15  ;;  %v1100_v16 = vrot.slane %v749_v58, %v14327_v17  ;;  %v481_v0 = vpop.f32.mrf.mxu1 }
 0x192   :  { %v3146_v18 = vsel %vm16507_vm10, %v3023_v48, %v3145_v9  ;;  %v3152_v12 = vsel %vm16507_vm10, %v3024_v49, %v3151_v14  ;;  %v1085_v47 = vcombine.high %v1084_v2, %v1084_v2  ;;  %v1093_v13 = vcombine.high %v1092_v3, %v1092_v3 }
 0x193   :  { %v3227_v20 = vpack.c.b16 %v3152_v12, %v3146_v18  ;;  %v3272_v21 = vsel %vm14286_vm12, %v12827_v8, %v3271_v22  ;;  %v1101_v23 = vcombine.high %v1100_v16, %v1100_v16  ;;  %v1108_v43 = vrot.slane %v751_v33, %v14327_v17 }
 0x194   :  { %3273 = vst [vmem:[#allocation2 + $0x40] sm:$0x11] %v3272_v21  ;;  %v1815_v63 = vsel %vm1590_vm3, %v1084_v2, -inf  ;;  %v1822_v25 = vsel %vm1590_vm3, %v1085_v47, -inf  ;;  %v1829_v27 = vsel %vm1590_vm3, %v1092_v3, -inf  ;;  %v1836_v28 = vsel %vm1590_vm3, %v1093_v13, -inf  ;;  %v372_v13 = vpop.f32.mrf.mxu0 }
 0x195   :  { %v3269_v34 = vsel %vm14294_vm5, %v3227_v20, %v3268_v19  ;;  %v1109_v62 = vcombine.high %v1108_v43, %v1108_v43  ;;  %v1816_v37 = vrot.slane %v1815_v63, 4  ;;  %v1823_v4 = vrot.slane %v1822_v25, 4  ;;  %v485_v20 = vpop.f32.mrf.mxu1 }
 0x196   :  { %3270 = vst [vmem:[#allocation2] sm:$0xff] %v3269_v34  ;;  %v1830_v57 = vrot.slane %v1829_v27, 4  ;;  %v1837_v36 = vrot.slane %v1836_v28, 4  ;;  %v1843_v10 = vsel %vm1590_vm3, %v1100_v16, -inf  ;;  %v1850_v6 = vsel %vm1590_vm3, %v1101_v23, -inf }
 0x197   :  { %v1817_v40 = vmax.f32 %v1815_v63, %v1816_v37  ;;  %v1824_v41 = vmax.f32 %v1822_v25, %v1823_v4  ;;  %v1844_v38 = vrot.slane %v1843_v10, 4  ;;  %v1851_v42 = vrot.slane %v1850_v6, 4  ;;  %v2500_v34 = vld [vmem:[#allocation2 + $0x38] sm:$0x11] }
 0x198   :  { %v1831_v45 = vmax.f32 %v1829_v27, %v1830_v57  ;;  %v1838_v11 = vmax.f32 %v1836_v28, %v1837_v36  ;;  %v1857_v50 = vsel %vm1590_vm3, %v1108_v43, -inf  ;;  %v1864_v46 = vsel %vm1590_vm3, %v1109_v62, -inf  ;;  %v13028_v62 = vld [vmem:[#allocation11 + $0x3c4] ss:$16 sps:$4 sm:$0xff]   ;;  %v13026_v57 = vld [vmem:[#allocation11 + $0x3c0] ss:$16 sps:$4 sm:$0xff]  }
 0x199   :  { %v1818_v48 = vrot.slane %v1817_v40, 2  ;;  %v1825_v49 = vrot.slane %v1824_v41, 2  ;;  %v1845_v58 = vmax.f32 %v1843_v10, %v1844_v38  ;;  %v1852_v61 = vmax.f32 %v1850_v6, %v1851_v42  ;;  %v13029_v36 = vld [vmem:[#allocation11 + $0x3c8] ss:$16 sps:$4 sm:$0xff]   ;;  %v13031_v10 = vld [vmem:[#allocation11 + $0x3cc] ss:$16 sps:$4 sm:$0xff]   ;;  %v374_v38 = vpop.f32.mrf.mxu0  ;;  %v487_v42 = vpop.f32.mrf.mxu1  ;;  %3940 = vmatprep.subr.bf16.mxu0 %v13028_v62 }
 0x19a   :  { %v1832_v1 = vrot.slane %v1831_v45, 2  ;;  %v1839_v5 = vrot.slane %v1838_v11, 2  ;;  %v1858_v32 = vrot.slane %v1857_v50, 4  ;;  %v1865_v15 = vrot.slane %v1864_v46, 4  ;;  %4013 = vmatprep.subr.bf16.mxu1 %v13031_v10  ;;  %3941 = vmatpush2.bf16.msra.mxu0 %v13026_v57 }
 0x19b   :  { %v1819_v22 = vmax.f32 %v1817_v40, %v1818_v48  ;;  %v1826_v33 = vmax.f32 %v1824_v41, %v1825_v49  ;;  %v1846_v2 = vrot.slane %v1845_v58, 2  ;;  %v1853_v3 = vrot.slane %v1852_v61, 2  ;;  %v2529_v48 = vld [vmem:[#allocation2 + $0x20] sm:$0x11]  ;;  %4014 = vmatpush2.bf16.msra.mxu1 %v13029_v36 }
 0x19c   :  { %v1833_v8 = vmax.f32 %v1831_v45, %v1832_v1  ;;  %v1840_v9 = vmax.f32 %v1838_v11, %v1839_v5  ;;  %v1859_v14 = vmax.f32 %v1857_v50, %v1858_v32  ;;  %v1866_v16 = vmax.f32 %v1864_v46, %v1865_v15 }
 0x19d   :  { %v1820_v18 = vrot.slane %v1819_v22, 1  ;;  %v1827_v12 = vrot.slane %v1826_v33, 1  ;;  %v1847_v19 = vmax.f32 %v1845_v58, %v1846_v2  ;;  %v1854_v47 = vmax.f32 %v1852_v61, %v1853_v3  ;;  %v376_v3 = vpop.f32.mrf.mxu0 }
 0x19e   :  { %v1834_v21 = vrot.slane %v1833_v8, 1  ;;  %v1841_v23 = vrot.slane %v1840_v9, 1  ;;  %v1860_v43 = vrot.slane %v1859_v14, 2  ;;  %v1867_v63 = vrot.slane %v1866_v16, 2 }
 0x19f   :  { %v1821_v25 = vmax.f32 %v1819_v22, %v1820_v18  ;;  %v1828_v27 = vmax.f32 %v1826_v33, %v1827_v12  ;;  %v1848_v28 = vrot.slane %v1847_v19, 1  ;;  %v1855_v30 = vrot.slane %v1854_v47, 1 }
 0x1a0   :  { %v1835_v37 = vmax.f32 %v1833_v8, %v1834_v21  ;;  %v1842_v4 = vmax.f32 %v1840_v9, %v1841_v23  ;;  %v1861_v35 = vmax.f32 %v1859_v14, %v1860_v43  ;;  %v1868_v7 = vmax.f32 %v1866_v16, %v1867_v63  ;;  %v489_v8 = vpop.f32.mrf.mxu1 }
 0x1a1   :  { %v1849_v6 = vmax.f32 %v1847_v19, %v1848_v28  ;;  %v1856_v39 = vmax.f32 %v1854_v47, %v1855_v30  ;;  %v12828_v40 = vpack.c.bf16 %v1828_v27, %v1821_v25  ;;  %v555_v41 = vmax.f32 %v14472_v24, 0.0 }
 0x1a2   :  { %v1862_v45 = vrot.slane %v1861_v35, 1  ;;  %v1869_v11 = vrot.slane %v1868_v7, 1  ;;  %v12829_v50 = vpack.c.bf16 %v1842_v4, %v1835_v37  ;;  %v482_v46 = vadd.f32 %v481_v0, %v14320_v60  ;;  %v491_v62 = vpop.f32.mrf.mxu1 }
 0x1a3   :  { %v12830_v49 = vpack.c.bf16 %v1856_v39, %v1849_v6  ;;  %v3027_v58 = vunpack.c.l.b16 %v12828_v40  ;;  %v3028_v61 = vunpack.c.h.b16 %v12828_v40  ;;  %v2501_v1 = vsel %vm14286_vm12, 0, %v2500_v34 }
 0x1a4   :  { %v1863_v5 = vmax.f32 %v1861_v35, %v1862_v45  ;;  %v1870_v24 = vmax.f32 %v1868_v7, %v1869_v11  ;;  %v3029_v32 = vunpack.c.l.b16 %v12829_v50  ;;  %v3030_v15 = vunpack.c.h.b16 %v12829_v50  ;;  %2502 = vst [vmem:[#allocation2 + $0x38] sm:$0x11] %v2501_v1 }
 0x1a5   :  { %v3031_v22 = vunpack.c.l.b16 %v12830_v49  ;;  %v3032_v33 = vunpack.c.h.b16 %v12830_v49  ;;  %v557_v2 = vmax.f32 %v482_v46, 0.0  ;;  %v2530_v0 = vsel %vm14278_vm7, 0, %v2529_v48 }
 0x1a6   :  { %v12831_v9 = vpack.c.bf16 %v1870_v24, %v1863_v5  ;;  %v3153_v14 = vsel %vm3123_vm4, %v3029_v32, %v3027_v58  ;;  %v3159_v16 = vsel %vm3123_vm4, %v3030_v15, %v3028_v61  ;;  %2531 = vst [vmem:[#allocation2 + $0x20] sm:$0x11] %v2530_v0  ;;  %v373_v18 = vadd.f32 %v372_v13, %v14311_v55  ;;  %v378_v13 = vpop.f32.mrf.mxu0 }
 0x1a7   :  { %v3154_v12 = vsel %vm3125_vm6, %v3031_v22, %v3153_v14  ;;  %v3160_v19 = vsel %vm3125_vm6, %v3032_v33, %v3159_v16  ;;  %v609_v47 = vmax.f32 %v555_v41, %v557_v2  ;;  %v486_v21 = vadd.f32 %v485_v20, %v14314_v56 }
 0x1a8   :  { %v3033_v23 = vunpack.c.l.b16 %v12831_v9  ;;  %v3034_v43 = vunpack.c.h.b16 %v12831_v9  ;;  %v558_v63 = vmax.f32 %v373_v18, 0.0  ;;  %v375_v25 = vadd.f32 %v374_v38, %v14317_v59 }
 0x1a9   :  { %v752_v27 = vcombine.low %v14494_v44, %v609_v47  ;;  %v753_v28 = vcombine.high %v14494_v44, %v609_v47  ;;  %v560_v30 = vmax.f32 %v486_v21, 0.0  ;;  %v488_v34 = vadd.f32 %v487_v42, %v14320_v60 }
 0x1aa   :  { %v14538_v37 = vsel %vm2490_vm1, %v3033_v23, %v3154_v12  ;;  %v14541_v4 = vsel %vm2490_vm1, %v3034_v43, %v3160_v19  ;;  %v559_v20 = vmax.f32 %v375_v25, 0.0  ;;  %v14544_v35 = vadd.f32 %v376_v3, %v14311_v55  ;;  %v13037_v25 = vld [vmem:[#allocation11 + $0x3ac] ss:$16 sps:$4 sm:$0xff]  }
 0x1ab   :  { %v760_v7 = vrot.slane %v752_v27, %v14327_v17  ;;  %v767_v57 = vrot.slane %v753_v28, %v14327_v17  ;;  %v14548_v44 = vmax.f32 %v558_v63, %v560_v30  ;;  %v561_v36 = vmax.f32 %v488_v34, 0.0  ;;  %v13034_v63 = vld [vmem:[#allocation11 + $0x3a4] ss:$16 sps:$4 sm:$0xff]   ;;  %4015 = vmatprep.subr.bf16.mxu1 %v13037_v25 }
 0x1ac   :  { %v562_v10 = vmax.f32 %v14544_v35, 0.0  ;;  %v14552_v6 = vadd.f32 %v489_v8, %v14314_v56  ;;  %v14555_v39 = vadd.f32 %v378_v13, %v14317_v59  ;;  %v14558_v40 = vadd.f32 %v491_v62, %v14320_v60  ;;  %v13032_v13 = vld [vmem:[#allocation11 + $0x3a0] ss:$16 sps:$4 sm:$0xff]   ;;  %v13035_v62 = vld [vmem:[#allocation11 + $0x3a8] ss:$16 sps:$4 sm:$0xff]   ;;  %3942 = vmatprep.subr.bf16.mxu0 %v13034_v63 }
 0x1ad   :  { %v768_v41 = vcombine.high %v760_v7, %v760_v7  ;;  %v769_v38 = vcombine.high %v767_v57, %v767_v57  ;;  %v1116_v42 = vrot.slane %v760_v7, %v14327_v17  ;;  %v1132_v45 = vrot.slane %v767_v57, %v14327_v17  ;;  %3943 = vmatpush2.bf16.msra.mxu0 %v13032_v13 }
 0x1ae   :  { %v14562_v11 = vmax.f32 %v559_v20, %v561_v36  ;;  %v564_v50 = vmax.f32 %v14552_v6, 0.0  ;;  %v563_v46 = vmax.f32 %v14555_v39, 0.0  ;;  %v565_v48 = vmax.f32 %v14558_v40, 0.0  ;;  %4016 = vmatpush2.bf16.msra.mxu1 %v13035_v62 }
 0x1af   :  { %v1117_v49 = vcombine.high %v1116_v42, %v1116_v42  ;;  %v1124_v58 = vrot.slane %v768_v41, %v14327_v17  ;;  %v1133_v61 = vcombine.high %v1132_v45, %v1132_v45  ;;  %v1140_v1 = vrot.slane %v769_v38, %v14327_v17 }
 0x1b0   :  { %v1871_v5 = vsel %vm1590_vm3, %v1116_v42, -inf  ;;  %v1899_v24 = vsel %vm1590_vm3, %v1132_v45, -inf  ;;  %v770_v32 = vcombine.low %v14548_v44, %v14562_v11  ;;  %v771_v15 = vcombine.high %v14548_v44, %v14562_v11 }
 0x1b1   :  { %v1125_v22 = vcombine.high %v1124_v58, %v1124_v58  ;;  %v1141_v33 = vcombine.high %v1140_v1, %v1140_v1  ;;  %v1872_v2 = vrot.slane %v1871_v5, 4  ;;  %v1878_v0 = vsel %vm1590_vm3, %v1117_v49, -inf }
 0x1b2   :  { %v1879_v3 = vrot.slane %v1878_v0, 4  ;;  %v1885_v8 = vsel %vm1590_vm3, %v1124_v58, -inf  ;;  %v1900_v9 = vrot.slane %v1899_v24, 4  ;;  %v1906_v14 = vsel %vm1590_vm3, %v1133_v61, -inf }
 0x1b3   :  { %v1873_v16 = vmax.f32 %v1871_v5, %v1872_v2  ;;  %v1886_v18 = vrot.slane %v1885_v8, 4  ;;  %v1892_v12 = vsel %vm1590_vm3, %v1125_v22, -inf  ;;  %v1907_v19 = vrot.slane %v1906_v14, 4 }
 0x1b4   :  { %v1880_v47 = vmax.f32 %v1878_v0, %v1879_v3  ;;  %v1893_v21 = vrot.slane %v1892_v12, 4  ;;  %v1901_v23 = vmax.f32 %v1899_v24, %v1900_v9  ;;  %v1913_v43 = vsel %vm1590_vm3, %v1140_v1, -inf }
 0x1b5   :  { %v1874_v27 = vrot.slane %v1873_v16, 2  ;;  %v1887_v28 = vmax.f32 %v1885_v8, %v1886_v18  ;;  %v1908_v30 = vmax.f32 %v1906_v14, %v1907_v19  ;;  %v1914_v34 = vrot.slane %v1913_v43, 4 }
 0x1b6   :  { %v1881_v20 = vrot.slane %v1880_v47, 2  ;;  %v1894_v7 = vmax.f32 %v1892_v12, %v1893_v21  ;;  %v1902_v57 = vrot.slane %v1901_v23, 2  ;;  %v1920_v36 = vsel %vm1590_vm3, %v1141_v33, -inf }
 0x1b7   :  { %v1875_v41 = vmax.f32 %v1873_v16, %v1874_v27  ;;  %v1888_v38 = vrot.slane %v1887_v28, 2  ;;  %v1909_v42 = vrot.slane %v1908_v30, 2  ;;  %v1915_v45 = vmax.f32 %v1913_v43, %v1914_v34 }
 0x1b8   :  { %v1882_v49 = vmax.f32 %v1880_v47, %v1881_v20  ;;  %v1895_v58 = vrot.slane %v1894_v7, 2  ;;  %v1903_v61 = vmax.f32 %v1901_v23, %v1902_v57  ;;  %v1921_v1 = vrot.slane %v1920_v36, 4 }
 0x1b9   :  { %v1876_v5 = vrot.slane %v1875_v41, 1  ;;  %v1889_v24 = vmax.f32 %v1887_v28, %v1888_v38  ;;  %v1910_v22 = vmax.f32 %v1908_v30, %v1909_v42  ;;  %v1916_v2 = vrot.slane %v1915_v45, 2 }
 0x1ba   :  { %v1883_v0 = vrot.slane %v1882_v49, 1  ;;  %v1896_v3 = vmax.f32 %v1894_v7, %v1895_v58  ;;  %v1904_v8 = vrot.slane %v1903_v61, 1  ;;  %v1922_v33 = vmax.f32 %v1920_v36, %v1921_v1 }
 0x1bb   :  { %v1877_v9 = vmax.f32 %v1875_v41, %v1876_v5  ;;  %v1890_v14 = vrot.slane %v1889_v24, 1  ;;  %v1911_v16 = vrot.slane %v1910_v22, 1  ;;  %v1917_v18 = vmax.f32 %v1915_v45, %v1916_v2 }
 0x1bc   :  { %v1884_v12 = vmax.f32 %v1882_v49, %v1883_v0  ;;  %v1897_v19 = vrot.slane %v1896_v3, 1  ;;  %v1905_v21 = vmax.f32 %v1903_v61, %v1904_v8  ;;  %v1923_v43 = vrot.slane %v1922_v33, 2 }
 0x1bd   :  { %v1891_v47 = vmax.f32 %v1889_v24, %v1890_v14  ;;  %v1912_v63 = vmax.f32 %v1910_v22, %v1911_v16  ;;  %v1918_v23 = vrot.slane %v1917_v18, 1  ;;  %v778_v25 = vrot.slane %v770_v32, %v14327_v17 }
 0x1be   :  { %v1898_v27 = vmax.f32 %v1896_v3, %v1897_v19  ;;  %v1924_v28 = vmax.f32 %v1922_v33, %v1923_v43  ;;  %v12832_v30 = vpack.c.bf16 %v1884_v12, %v1877_v9  ;;  %v785_v34 = vrot.slane %v771_v15, %v14327_v17  ;;  %v3277_v15 = vld [vmem:[#allocation2 + $0x20] sm:$0x11]  ;;  %v3274_v9 = vld [vmem:[#allocation2 + $0x38] sm:$0xff] }
 0x1bf   :  { %v1919_v13 = vmax.f32 %v1917_v18, %v1918_v23  ;;  %v12834_v62 = vpack.c.bf16 %v1912_v63, %v1905_v21  ;;  %v786_v20 = vcombine.high %v778_v25, %v778_v25  ;;  %v1148_v7 = vrot.slane %v778_v25, %v14327_v17 }
 0x1c0   :  { %v1925_v57 = vrot.slane %v1924_v28, 1  ;;  %v12833_v36 = vpack.c.bf16 %v1898_v27, %v1891_v47  ;;  %v3035_v41 = vunpack.c.l.b16 %v12832_v30  ;;  %v3036_v38 = vunpack.c.h.b16 %v12832_v30 }
 0x1c1   :  { %v3039_v42 = vunpack.c.l.b16 %v12834_v62  ;;  %v3040_v45 = vunpack.c.h.b16 %v12834_v62  ;;  %v787_v32 = vcombine.high %v785_v34, %v785_v34  ;;  %v1149_v49 = vcombine.high %v1148_v7, %v1148_v7 }
 0x1c2   :  { %v1926_v58 = vmax.f32 %v1924_v28, %v1925_v57  ;;  %v3037_v61 = vunpack.c.l.b16 %v12833_v36  ;;  %v3038_v1 = vunpack.c.h.b16 %v12833_v36  ;;  %v3156_v44 = vsel %vm3129_vm8, %v3035_v41, %v14538_v37 }
 0x1c3   :  { %v3162_v11 = vsel %vm3129_vm8, %v3036_v38, %v14541_v4  ;;  %v1156_v5 = vrot.slane %v786_v20, %v14327_v17  ;;  %v1164_v24 = vrot.slane %v785_v34, %v14327_v17  ;;  %v1172_v22 = vrot.slane %v787_v32, %v14327_v17 }
 0x1c4   :  { %v12835_v2 = vpack.c.bf16 %v1926_v58, %v1919_v13  ;;  %v3157_v0 = vsel %vm3131_vm9, %v3037_v61, %v3156_v44  ;;  %v3163_v3 = vsel %vm3131_vm9, %v3038_v1, %v3162_v11  ;;  %v1927_v8 = vsel %vm1590_vm3, %v1148_v7, -inf }
 0x1c5   :  { %v3158_v33 = vsel %vm16507_vm10, %v3039_v42, %v3157_v0  ;;  %v3164_v37 = vsel %vm16507_vm10, %v3040_v45, %v3163_v3  ;;  %v1157_v4 = vcombine.high %v1156_v5, %v1156_v5  ;;  %v1165_v14 = vcombine.high %v1164_v24, %v1164_v24 }
 0x1c6   :  { %v3229_v16 = vpack.c.b16 %v3164_v37, %v3158_v33  ;;  %v3278_v18 = vsel %vm14286_vm12, %v12835_v2, %v3277_v15  ;;  %v1173_v12 = vcombine.high %v1172_v22, %v1172_v22  ;;  %v1928_v19 = vrot.slane %v1927_v8, 4 }
 0x1c7   :  { %3279 = vst [vmem:[#allocation2 + $0x20] sm:$0x11] %v3278_v18  ;;  %v1934_v21 = vsel %vm1590_vm3, %v1149_v49, -inf  ;;  %v1941_v43 = vsel %vm1590_vm3, %v1156_v5, -inf  ;;  %v1948_v47 = vsel %vm1590_vm3, %v1157_v4, -inf  ;;  %v1955_v63 = vsel %vm1590_vm3, %v1164_v24, -inf }
 0x1c8   :  { %v3275_v23 = vsel %vm14294_vm5, %v3229_v16, %v3274_v9  ;;  %v1929_v25 = vmax.f32 %v1927_v8, %v1928_v19  ;;  %v1935_v27 = vrot.slane %v1934_v21, 4  ;;  %v1942_v28 = vrot.slane %v1941_v43, 4  ;;  %v2503_v16 = vld [vmem:[#allocation2 + $0x30] sm:$0x11] }
 0x1c9   :  { %3276 = vst [vmem:[#allocation2 + $0x38] sm:$0xff] %v3275_v23  ;;  %v1949_v30 = vrot.slane %v1948_v47, 4  ;;  %v1956_v34 = vrot.slane %v1955_v63, 4  ;;  %v1962_v13 = vsel %vm1590_vm3, %v1165_v14, -inf  ;;  %v1969_v62 = vsel %vm1590_vm3, %v1172_v22, -inf }
 0x1ca   :  { %v1930_v20 = vrot.slane %v1929_v25, 2  ;;  %v1936_v7 = vmax.f32 %v1934_v21, %v1935_v27  ;;  %v1943_v57 = vmax.f32 %v1941_v43, %v1942_v28  ;;  %v1963_v36 = vrot.slane %v1962_v13, 4  ;;  %v2532_v18 = vld [vmem:[#allocation2 + $0x70] sm:$0x11] }
 0x1cb   :  { %v1950_v41 = vmax.f32 %v1948_v47, %v1949_v30  ;;  %v1957_v38 = vmax.f32 %v1955_v63, %v1956_v34  ;;  %v1970_v42 = vrot.slane %v1969_v62, 4  ;;  %v1976_v45 = vsel %vm1590_vm3, %v1173_v12, -inf  ;;  %v13040_v12 = vld [vmem:[#allocation11 + $0x384] ss:$16 sps:$4 sm:$0xff]   ;;  %v13038_v63 = vld [vmem:[#allocation11 + $0x380] ss:$16 sps:$4 sm:$0xff]  }
 0x1cc   :  { %v1931_v32 = vmax.f32 %v1929_v25, %v1930_v20  ;;  %v1937_v49 = vrot.slane %v1936_v7, 2  ;;  %v1944_v58 = vrot.slane %v1943_v57, 2  ;;  %v1964_v61 = vmax.f32 %v1962_v13, %v1963_v36  ;;  %3944 = vmatprep.subr.bf16.mxu0 %v13040_v12  ;;  %v13041_v30 = vld [vmem:[#allocation11 + $0x388] ss:$16 sps:$4 sm:$0xff]   ;;  %v13043_v34 = vld [vmem:[#allocation11 + $0x38c] ss:$16 sps:$4 sm:$0xff]  }
 0x1cd   :  { %v1951_v1 = vrot.slane %v1950_v41, 2  ;;  %v1958_v44 = vrot.slane %v1957_v38, 2  ;;  %v1971_v11 = vmax.f32 %v1969_v62, %v1970_v42  ;;  %v1977_v15 = vrot.slane %v1976_v45, 4  ;;  %3945 = vmatpush2.bf16.msra.mxu0 %v13038_v63  ;;  %4017 = vmatprep.subr.bf16.mxu1 %v13043_v34 }
 0x1ce   :  { %v1932_v5 = vrot.slane %v1931_v32, 1  ;;  %v1938_v24 = vmax.f32 %v1936_v7, %v1937_v49  ;;  %v1945_v22 = vmax.f32 %v1943_v57, %v1944_v58  ;;  %v1965_v2 = vrot.slane %v1964_v61, 2  ;;  %4018 = vmatpush2.bf16.msra.mxu1 %v13041_v30  ;;  %v382_v58 = vpop.f32.mrf.mxu0 }
 0x1cf   :  { %v1952_v0 = vmax.f32 %v1950_v41, %v1951_v1  ;;  %v1959_v3 = vmax.f32 %v1957_v38, %v1958_v44  ;;  %v1972_v8 = vrot.slane %v1971_v11, 2  ;;  %v1978_v33 = vmax.f32 %v1976_v45, %v1977_v15 }
 0x1d0   :  { %v1933_v37 = vmax.f32 %v1931_v32, %v1932_v5  ;;  %v1939_v9 = vrot.slane %v1938_v24, 1  ;;  %v1946_v4 = vrot.slane %v1945_v22, 1  ;;  %v1966_v14 = vmax.f32 %v1964_v61, %v1965_v2 }
 0x1d1   :  { %v1953_v19 = vrot.slane %v1952_v0, 1  ;;  %v1960_v21 = vrot.slane %v1959_v3, 1  ;;  %v1973_v43 = vmax.f32 %v1971_v11, %v1972_v8  ;;  %v1979_v47 = vrot.slane %v1978_v33, 2 }
 0x1d2   :  { %v1940_v23 = vmax.f32 %v1938_v24, %v1939_v9  ;;  %v1947_v25 = vmax.f32 %v1945_v22, %v1946_v4  ;;  %v1967_v27 = vrot.slane %v1966_v14, 1  ;;  %v612_v28 = vmax.f32 %v562_v10, %v564_v50 }
 0x1d3   :  { %v1954_v13 = vmax.f32 %v1952_v0, %v1953_v19  ;;  %v1961_v62 = vmax.f32 %v1959_v3, %v1960_v21  ;;  %v1974_v20 = vrot.slane %v1973_v43, 1  ;;  %v1980_v7 = vmax.f32 %v1978_v33, %v1979_v47 }
 0x1d4   :  { %v1968_v57 = vmax.f32 %v1966_v14, %v1967_v27  ;;  %v12836_v36 = vpack.c.bf16 %v1940_v23, %v1933_v37  ;;  %v613_v41 = vmax.f32 %v563_v46, %v565_v48  ;;  %v2504_v6 = vsel %vm14286_vm12, 0, %v2503_v16 }
 0x1d5   :  { %v1975_v35 = vmax.f32 %v1973_v43, %v1974_v20  ;;  %v1981_v10 = vrot.slane %v1980_v7, 1  ;;  %v12837_v50 = vpack.c.bf16 %v1954_v13, %v1947_v25  ;;  %2505 = vst [vmem:[#allocation2 + $0x30] sm:$0x11] %v2504_v6  ;;  %v2533_v38 = vsel %vm14278_vm7, 0, %v2532_v18 }
 0x1d6   :  { %v12838_v42 = vpack.c.bf16 %v1968_v57, %v1961_v62  ;;  %v3043_v45 = vunpack.c.l.b16 %v12836_v36  ;;  %v3044_v32 = vunpack.c.h.b16 %v12836_v36  ;;  %v788_v49 = vcombine.low %v612_v28, %v613_v41  ;;  %2534 = vst [vmem:[#allocation2 + $0x70] sm:$0x11] %v2533_v38  ;;  %v495_v36 = vpop.f32.mrf.mxu1 }
 0x1d7   :  { %v1982_v40 = vmax.f32 %v1980_v7, %v1981_v10  ;;  %v3045_v39 = vunpack.c.l.b16 %v12837_v50  ;;  %v3046_v46 = vunpack.c.h.b16 %v12837_v50  ;;  %v789_v48 = vcombine.high %v612_v28, %v613_v41 }
 0x1d8   :  { %v3047_v61 = vunpack.c.l.b16 %v12838_v42  ;;  %v3048_v1 = vunpack.c.h.b16 %v12838_v42  ;;  %v796_v44 = vrot.slane %v788_v49, %v14327_v17  ;;  %v14624_v11 = vadd.f32 %v382_v58, %v14311_v55 }
 0x1d9   :  { %v12839_v15 = vpack.c.bf16 %v1982_v40, %v1975_v35  ;;  %v3165_v5 = vsel %vm3123_vm4, %v3045_v39, %v3043_v45  ;;  %v3171_v24 = vsel %vm3123_vm4, %v3046_v46, %v3044_v32  ;;  %v803_v22 = vrot.slane %v789_v48, %v14327_v17  ;;  %v384_v32 = vpop.f32.mrf.mxu0 }
 0x1da   :  { %v3166_v2 = vsel %vm3125_vm6, %v3047_v61, %v3165_v5  ;;  %v3172_v0 = vsel %vm3125_vm6, %v3048_v1, %v3171_v24  ;;  %v804_v3 = vcombine.high %v796_v44, %v796_v44  ;;  %v1180_v8 = vrot.slane %v796_v44, %v14327_v17  ;;  %v497_v44 = vpop.f32.mrf.mxu1 }
 0x1db   :  { %v3049_v33 = vunpack.c.l.b16 %v12839_v15  ;;  %v3050_v37 = vunpack.c.h.b16 %v12839_v15  ;;  %v805_v9 = vcombine.high %v803_v22, %v803_v22  ;;  %v1196_v4 = vrot.slane %v803_v22, %v14327_v17 }
 0x1dc   :  { %v1181_v14 = vcombine.high %v1180_v8, %v1180_v8  ;;  %v1188_v16 = vrot.slane %v804_v3, %v14327_v17  ;;  %v1983_v18 = vsel %vm1590_vm3, %v1180_v8, -inf  ;;  %v566_v12 = vmax.f32 %v14624_v11, 0.0 }
 0x1dd   :  { %v14637_v19 = vsel %vm2490_vm1, %v3049_v33, %v3166_v2  ;;  %v14640_v21 = vsel %vm2490_vm1, %v3050_v37, %v3172_v0  ;;  %v1197_v43 = vcombine.high %v1196_v4, %v1196_v4  ;;  %v1204_v47 = vrot.slane %v805_v9, %v14327_v17  ;;  %v386_v33 = vpop.f32.mrf.mxu0 }
 0x1de   :  { %v1189_v63 = vcombine.high %v1188_v16, %v1188_v16  ;;  %v1984_v23 = vrot.slane %v1983_v18, 4  ;;  %v1990_v25 = vsel %vm1590_vm3, %v1181_v14, -inf  ;;  %v1997_v27 = vsel %vm1590_vm3, %v1188_v16, -inf }
 0x1df   :  { %v1205_v28 = vcombine.high %v1204_v47, %v1204_v47  ;;  %v1991_v30 = vrot.slane %v1990_v25, 4  ;;  %v1998_v34 = vrot.slane %v1997_v27, 4  ;;  %v2011_v13 = vsel %vm1590_vm3, %v1196_v4, -inf }
 0x1e0   :  { %v1985_v62 = vmax.f32 %v1983_v18, %v1984_v23  ;;  %v2004_v20 = vsel %vm1590_vm3, %v1189_v63, -inf  ;;  %v2012_v7 = vrot.slane %v2011_v13, 4  ;;  %v2018_v57 = vsel %vm1590_vm3, %v1197_v43, -inf  ;;  %v499_v63 = vpop.f32.mrf.mxu1 }
 0x1e1   :  { %v1992_v41 = vmax.f32 %v1990_v25, %v1991_v30  ;;  %v1999_v6 = vmax.f32 %v1997_v27, %v1998_v34  ;;  %v2005_v35 = vrot.slane %v2004_v20, 4  ;;  %v2019_v10 = vrot.slane %v2018_v57, 4 }
 0x1e2   :  { %v1986_v50 = vrot.slane %v1985_v62, 2  ;;  %v2013_v38 = vmax.f32 %v2011_v13, %v2012_v7  ;;  %v2025_v42 = vsel %vm1590_vm3, %v1204_v47, -inf  ;;  %v2032_v45 = vsel %vm1590_vm3, %v1205_v28, -inf }
 0x1e3   :  { %v1993_v49 = vrot.slane %v1992_v41, 2  ;;  %v2000_v40 = vrot.slane %v1999_v6, 2  ;;  %v2006_v39 = vmax.f32 %v2004_v20, %v2005_v35  ;;  %v2020_v46 = vmax.f32 %v2018_v57, %v2019_v10  ;;  %v388_v20 = vpop.f32.mrf.mxu0 }
 0x1e4   :  { %v1987_v48 = vmax.f32 %v1985_v62, %v1986_v50  ;;  %v2014_v58 = vrot.slane %v2013_v38, 2  ;;  %v2026_v61 = vrot.slane %v2025_v42, 4  ;;  %v2033_v1 = vrot.slane %v2032_v45, 4 }
 0x1e5   :  { %v1994_v15 = vmax.f32 %v1992_v41, %v1993_v49  ;;  %v2001_v5 = vmax.f32 %v1999_v6, %v2000_v40  ;;  %v2007_v24 = vrot.slane %v2006_v39, 2  ;;  %v2021_v22 = vrot.slane %v2020_v46, 2 }
 0x1e6   :  { %v1988_v2 = vrot.slane %v1987_v48, 1  ;;  %v2015_v0 = vmax.f32 %v2013_v38, %v2014_v58  ;;  %v2027_v3 = vmax.f32 %v2025_v42, %v2026_v61  ;;  %v2034_v8 = vmax.f32 %v2032_v45, %v2033_v1  ;;  %v501_v42 = vpop.f32.mrf.mxu1  ;;  %v392_v61 = vpop.f32.mrf.mxu0 }
 0x1e7   :  { %v1995_v37 = vrot.slane %v1994_v15, 1  ;;  %v2002_v9 = vrot.slane %v2001_v5, 1  ;;  %v2008_v4 = vmax.f32 %v2006_v39, %v2007_v24  ;;  %v2022_v14 = vmax.f32 %v2020_v46, %v2021_v22  ;;  %v3283_v24 = vld [vmem:[#allocation2 + $0x70] sm:$0x11] }
 0x1e8   :  { %v1989_v16 = vmax.f32 %v1987_v48, %v1988_v2  ;;  %v2016_v18 = vrot.slane %v2015_v0, 1  ;;  %v2028_v43 = vrot.slane %v2027_v3, 2  ;;  %v2035_v47 = vrot.slane %v2034_v8, 2 }
 0x1e9   :  { %v1996_v23 = vmax.f32 %v1994_v15, %v1995_v37  ;;  %v2003_v25 = vmax.f32 %v2001_v5, %v2002_v9  ;;  %v2009_v27 = vrot.slane %v2008_v4, 1  ;;  %v2023_v28 = vrot.slane %v2022_v14, 1  ;;  %v2506_v9 = vld [vmem:[#allocation2 + $0x28] sm:$0x11] }
 0x1ea   :  { %v2017_v30 = vmax.f32 %v2015_v0, %v2016_v18  ;;  %v2029_v34 = vmax.f32 %v2027_v3, %v2028_v43  ;;  %v2036_v13 = vmax.f32 %v2034_v8, %v2035_v47  ;;  %v496_v62 = vadd.f32 %v495_v36, %v14314_v56  ;;  %v505_v3 = vpop.f32.mrf.mxu1  ;;  %v2535_v18 = vld [vmem:[#allocation2 + $0x48] sm:$0x11]  ;;  %v394_v43 = vpop.f32.mrf.mxu0 }
 0x1eb   :  { %v2010_v7 = vmax.f32 %v2008_v4, %v2009_v27  ;;  %v2024_v57 = vmax.f32 %v2022_v14, %v2023_v28  ;;  %v12840_v41 = vpack.c.bf16 %v1996_v23, %v1989_v16  ;;  %v385_v6 = vadd.f32 %v384_v32, %v14317_v59  ;;  %v3280_v16 = vld [vmem:[#allocation2 + $0x30] sm:$0xff] }
 0x1ec   :  { %v2030_v35 = vrot.slane %v2029_v34, 1  ;;  %v2037_v10 = vrot.slane %v2036_v13, 1  ;;  %v568_v50 = vmax.f32 %v496_v62, 0.0  ;;  %v498_v38 = vadd.f32 %v497_v44, %v14320_v60 }
 0x1ed   :  { %v12841_v45 = vpack.c.bf16 %v2010_v7, %v2003_v25  ;;  %v12842_v49 = vpack.c.bf16 %v2024_v57, %v2017_v30  ;;  %v3051_v40 = vunpack.c.l.b16 %v12840_v41  ;;  %v3052_v39 = vunpack.c.h.b16 %v12840_v41 }
 0x1ee   :  { %v2031_v46 = vmax.f32 %v2029_v34, %v2030_v35  ;;  %v2038_v48 = vmax.f32 %v2036_v13, %v2037_v10  ;;  %v614_v36 = vmax.f32 %v566_v12, %v568_v50  ;;  %v567_v58 = vmax.f32 %v385_v6, 0.0  ;;  %v507_v34 = vpop.f32.mrf.mxu1  ;;  %v396_v10 = vpop.f32.mrf.mxu0 }
 0x1ef   :  { %v3053_v1 = vunpack.c.l.b16 %v12841_v45  ;;  %v3054_v15 = vunpack.c.h.b16 %v12841_v45  ;;  %v3055_v32 = vunpack.c.l.b16 %v12842_v49  ;;  %v3056_v5 = vunpack.c.h.b16 %v12842_v49 }
 0x1f0   :  { %v12843_v22 = vpack.c.bf16 %v2038_v48, %v2031_v46  ;;  %v3168_v44 = vsel %vm3129_vm8, %v3051_v40, %v14637_v19  ;;  %v3174_v2 = vsel %vm3129_vm8, %v3052_v39, %v14640_v21  ;;  %v569_v0 = vmax.f32 %v498_v38, 0.0 }
 0x1f1   :  { %v3169_v8 = vsel %vm3131_vm9, %v3053_v1, %v3168_v44  ;;  %v3175_v11 = vsel %vm3131_vm9, %v3054_v15, %v3174_v2  ;;  %v387_v12 = vadd.f32 %v386_v33, %v14311_v55  ;;  %v500_v37 = vadd.f32 %v499_v63, %v14314_v56  ;;  %v13046_v1 = vld [vmem:[#allocation11 + $0x364] ss:$16 sps:$4 sm:$0xff]   ;;  %v13047_v44 = vld [vmem:[#allocation11 + $0x368] ss:$16 sps:$4 sm:$0xff]   ;;  %v13049_v2 = vld [vmem:[#allocation11 + $0x36c] ss:$16 sps:$4 sm:$0xff]  }
 0x1f2   :  { %v3170_v4 = vsel %vm16507_vm10, %v3055_v32, %v3169_v8  ;;  %v3176_v14 = vsel %vm16507_vm10, %v3056_v5, %v3175_v11  ;;  %v3284_v19 = vsel %vm14286_vm12, %v12843_v22, %v3283_v24  ;;  %v615_v21 = vmax.f32 %v567_v58, %v569_v0  ;;  %v13044_v22 = vld [vmem:[#allocation11 + $0x360] ss:$16 sps:$4 sm:$0xff]   ;;  %3946 = vmatprep.subr.bf16.mxu0 %v13046_v1 }
 0x1f3   :  { %v3231_v47 = vpack.c.b16 %v3176_v14, %v3170_v4  ;;  %3285 = vst [vmem:[#allocation2 + $0x70] sm:$0x11] %v3284_v19  ;;  %v570_v23 = vmax.f32 %v387_v12, 0.0  ;;  %v572_v25 = vmax.f32 %v500_v37, 0.0  ;;  %v389_v33 = vadd.f32 %v388_v20, %v14317_v59  ;;  %4019 = vmatprep.subr.bf16.mxu1 %v13049_v2  ;;  %3947 = vmatpush2.bf16.msra.mxu0 %v13044_v22  ;;  %v13055_v2 = vld [vmem:[#allocation11 + $0x34c] ss:$16 sps:$4 sm:$0xff]  }
 0x1f4   :  { %v806_v27 = vcombine.low %v614_v36, %v615_v21  ;;  %v807_v63 = vcombine.high %v614_v36, %v615_v21  ;;  %v502_v28 = vadd.f32 %v501_v42, %v14320_v60  ;;  %v2507_v30 = vsel %vm14286_vm12, 0, %v2506_v9  ;;  %4020 = vmatpush2.bf16.msra.mxu1 %v13047_v44  ;;  %v13052_v44 = vld [vmem:[#allocation11 + $0x344] ss:$16 sps:$4 sm:$0xff]  }
 0x1f5   :  { %v3281_v13 = vsel %vm14294_vm5, %v3231_v47, %v3280_v16  ;;  %v14673_v62 = vmax.f32 %v570_v23, %v572_v25  ;;  %v571_v7 = vmax.f32 %v389_v33, 0.0  ;;  %2508 = vst [vmem:[#allocation2 + $0x28] sm:$0x11] %v2507_v30  ;;  %v2536_v57 = vsel %vm14278_vm7, 0, %v2535_v18  ;;  %3948 = vmatprep.subr.bf16.mxu0 %v13052_v44  ;;  %4021 = vmatprep.subr.bf16.mxu1 %v13055_v2 }
 0x1f6   :  { %3282 = vst [vmem:[#allocation2 + $0x30] sm:$0xff] %v3281_v13  ;;  %v814_v20 = vrot.slane %v806_v27, %v14327_v17  ;;  %v821_v41 = vrot.slane %v807_v63, %v14327_v17  ;;  %v573_v6 = vmax.f32 %v502_v28, 0.0  ;;  %2537 = vst [vmem:[#allocation2 + $0x48] sm:$0x11] %v2536_v57  ;;  %v14680_v35 = vadd.f32 %v392_v61, %v14311_v55 }
 0x1f7   :  { %v14683_v50 = vadd.f32 %v505_v3, %v14314_v56  ;;  %v14686_v38 = vadd.f32 %v394_v43, %v14317_v59  ;;  %v14689_v42 = vadd.f32 %v507_v34, %v14320_v60  ;;  %v14692_v45 = vadd.f32 %v396_v10, %v14311_v55 }
 0x1f8   :  { %v822_v49 = vcombine.high %v814_v20, %v814_v20  ;;  %v823_v40 = vcombine.high %v821_v41, %v821_v41  ;;  %v1212_v39 = vrot.slane %v814_v20, %v14327_v17  ;;  %v1228_v46 = vrot.slane %v821_v41, %v14327_v17 }
 0x1f9   :  { %v14696_v48 = vmax.f32 %v571_v7, %v573_v6  ;;  %v574_v36 = vmax.f32 %v14680_v35, 0.0  ;;  %v576_v58 = vmax.f32 %v14683_v50, 0.0  ;;  %v575_v61 = vmax.f32 %v14686_v38, 0.0 }
 0x1fa   :  { %v1213_v15 = vcombine.high %v1212_v39, %v1212_v39  ;;  %v1220_v32 = vrot.slane %v822_v49, %v14327_v17  ;;  %v1229_v5 = vcombine.high %v1228_v46, %v1228_v46  ;;  %v1236_v24 = vrot.slane %v823_v40, %v14327_v17 }
 0x1fb   :  { %v2039_v0 = vsel %vm1590_vm3, %v1212_v39, -inf  ;;  %v2067_v3 = vsel %vm1590_vm3, %v1228_v46, -inf  ;;  %v824_v8 = vcombine.low %v14673_v62, %v14696_v48  ;;  %v825_v11 = vcombine.high %v14673_v62, %v14696_v48 }
 0x1fc   :  { %v1221_v12 = vcombine.high %v1220_v32, %v1220_v32  ;;  %v1237_v37 = vcombine.high %v1236_v24, %v1236_v24  ;;  %v2040_v9 = vrot.slane %v2039_v0, 4  ;;  %v2046_v4 = vsel %vm1590_vm3, %v1213_v15, -inf }
 0x1fd   :  { %v2047_v14 = vrot.slane %v2046_v4, 4  ;;  %v2053_v16 = vsel %vm1590_vm3, %v1220_v32, -inf  ;;  %v2068_v19 = vrot.slane %v2067_v3, 4  ;;  %v2074_v21 = vsel %vm1590_vm3, %v1229_v5, -inf }
 0x1fe   :  { %v2041_v18 = vmax.f32 %v2039_v0, %v2040_v9  ;;  %v2054_v43 = vrot.slane %v2053_v16, 4  ;;  %v2060_v47 = vsel %vm1590_vm3, %v1221_v12, -inf  ;;  %v2075_v23 = vrot.slane %v2074_v21, 4 }
 0x1ff   :  { %v2048_v25 = vmax.f32 %v2046_v4, %v2047_v14  ;;  %v2061_v33 = vrot.slane %v2060_v47, 4  ;;  %v2069_v27 = vmax.f32 %v2067_v3, %v2068_v19  ;;  %v2081_v63 = vsel %vm1590_vm3, %v1236_v24, -inf  ;;  %v13050_v4 = vld [vmem:[#allocation11 + $0x340] ss:$16 sps:$4 sm:$0xff]  }
 0x200   :  { %v2042_v28 = vrot.slane %v2041_v18, 2  ;;  %v2055_v30 = vmax.f32 %v2053_v16, %v2054_v43  ;;  %v2076_v34 = vmax.f32 %v2074_v21, %v2075_v23  ;;  %v2082_v13 = vrot.slane %v2081_v63, 4  ;;  %3949 = vmatpush2.bf16.msra.mxu0 %v13050_v4 }
 0x201   :  { %v2049_v7 = vrot.slane %v2048_v25, 2  ;;  %v2062_v57 = vmax.f32 %v2060_v47, %v2061_v33  ;;  %v2070_v20 = vrot.slane %v2069_v27, 2  ;;  %v2088_v41 = vsel %vm1590_vm3, %v1237_v37, -inf  ;;  %v13053_v37 = vld [vmem:[#allocation11 + $0x348] ss:$16 sps:$4 sm:$0xff]  }
 0x202   :  { %v2043_v6 = vmax.f32 %v2041_v18, %v2042_v28  ;;  %v2056_v10 = vrot.slane %v2055_v30, 2  ;;  %v2077_v49 = vrot.slane %v2076_v34, 2  ;;  %v2083_v40 = vmax.f32 %v2081_v63, %v2082_v13  ;;  %4022 = vmatpush2.bf16.msra.mxu1 %v13053_v37 }
 0x203   :  { %v2050_v39 = vmax.f32 %v2048_v25, %v2049_v7  ;;  %v2063_v46 = vrot.slane %v2062_v57, 2  ;;  %v2071_v1 = vmax.f32 %v2069_v27, %v2070_v20  ;;  %v2089_v15 = vrot.slane %v2088_v41, 4 }
 0x204   :  { %v2044_v32 = vrot.slane %v2043_v6, 1  ;;  %v2057_v5 = vmax.f32 %v2055_v30, %v2056_v10  ;;  %v2078_v24 = vmax.f32 %v2076_v34, %v2077_v49  ;;  %v2084_v22 = vrot.slane %v2083_v40, 2 }
 0x205   :  { %v2051_v0 = vrot.slane %v2050_v39, 1  ;;  %v2064_v3 = vmax.f32 %v2062_v57, %v2063_v46  ;;  %v2072_v12 = vrot.slane %v2071_v1, 1  ;;  %v2090_v9 = vmax.f32 %v2088_v41, %v2089_v15 }
 0x206   :  { %v2045_v14 = vmax.f32 %v2043_v6, %v2044_v32  ;;  %v2058_v16 = vrot.slane %v2057_v5, 1  ;;  %v2079_v19 = vrot.slane %v2078_v24, 1  ;;  %v2085_v21 = vmax.f32 %v2083_v40, %v2084_v22 }
 0x207   :  { %v2052_v18 = vmax.f32 %v2050_v39, %v2051_v0  ;;  %v2065_v43 = vrot.slane %v2064_v3, 1  ;;  %v2073_v47 = vmax.f32 %v2071_v1, %v2072_v12  ;;  %v2091_v23 = vrot.slane %v2090_v9, 2 }
 0x208   :  { %v2059_v25 = vmax.f32 %v2057_v5, %v2058_v16  ;;  %v2080_v33 = vmax.f32 %v2078_v24, %v2079_v19  ;;  %v2086_v27 = vrot.slane %v2085_v21, 1  ;;  %v832_v63 = vrot.slane %v824_v8, %v14327_v17 }
 0x209   :  { %v2066_v28 = vmax.f32 %v2064_v3, %v2065_v43  ;;  %v2092_v30 = vmax.f32 %v2090_v9, %v2091_v23  ;;  %v12844_v34 = vpack.c.bf16 %v2052_v18, %v2045_v14  ;;  %v839_v13 = vrot.slane %v825_v11, %v14327_v17 }
 0x20a   :  { %v2087_v7 = vmax.f32 %v2085_v21, %v2086_v27  ;;  %v12846_v57 = vpack.c.bf16 %v2080_v33, %v2073_v47  ;;  %v840_v20 = vcombine.high %v832_v63, %v832_v63  ;;  %v1244_v41 = vrot.slane %v832_v63, %v14327_v17 }
 0x20b   :  { %v2093_v6 = vrot.slane %v2092_v30, 1  ;;  %v12845_v10 = vpack.c.bf16 %v2066_v28, %v2059_v25  ;;  %v3059_v49 = vunpack.c.l.b16 %v12844_v34  ;;  %v3060_v40 = vunpack.c.h.b16 %v12844_v34 }
 0x20c   :  { %v3063_v39 = vunpack.c.l.b16 %v12846_v57  ;;  %v3064_v46 = vunpack.c.h.b16 %v12846_v57  ;;  %v841_v8 = vcombine.high %v839_v13, %v839_v13  ;;  %v1245_v1 = vcombine.high %v1244_v41, %v1244_v41 }
 0x20d   :  { %v2094_v15 = vmax.f32 %v2092_v30, %v2093_v6  ;;  %v3061_v32 = vunpack.c.l.b16 %v12845_v10  ;;  %v3062_v5 = vunpack.c.h.b16 %v12845_v10  ;;  %v1252_v24 = vrot.slane %v840_v20, %v14327_v17 }
 0x20e   :  { %v1260_v62 = vrot.slane %v839_v13, %v14327_v17  ;;  %v1268_v48 = vrot.slane %v841_v8, %v14327_v17  ;;  %v2095_v11 = vsel %vm1590_vm3, %v1244_v41, -inf  ;;  %v2102_v22 = vsel %vm1590_vm3, %v1245_v1, -inf }
 0x20f   :  { %v12847_v44 = vpack.c.bf16 %v2094_v15, %v2087_v7  ;;  %v3177_v2 = vsel %vm3123_vm4, %v3061_v32, %v3059_v49  ;;  %v3183_v0 = vsel %vm3123_vm4, %v3062_v5, %v3060_v40  ;;  %v1253_v3 = vcombine.high %v1252_v24, %v1252_v24 }
 0x210   :  { %v3178_v12 = vsel %vm3125_vm6, %v3063_v39, %v3177_v2  ;;  %v3184_v9 = vsel %vm3125_vm6, %v3064_v46, %v3183_v0  ;;  %v1261_v4 = vcombine.high %v1260_v62, %v1260_v62  ;;  %v1269_v37 = vcombine.high %v1268_v48, %v1268_v48  ;;  %v13059_v0 = vld [vmem:[#allocation11 + $0x328] ss:$16 sps:$4 sm:$0xff]  }
 0x211   :  { %v3065_v14 = vunpack.c.l.b16 %v12847_v44  ;;  %v3066_v16 = vunpack.c.h.b16 %v12847_v44  ;;  %v2096_v19 = vrot.slane %v2095_v11, 4  ;;  %v2103_v21 = vrot.slane %v2102_v22, 4 }
 0x212   :  { %v2109_v18 = vsel %vm1590_vm3, %v1252_v24, -inf  ;;  %v2116_v43 = vsel %vm1590_vm3, %v1253_v3, -inf  ;;  %v2123_v47 = vsel %vm1590_vm3, %v1260_v62, -inf  ;;  %v2130_v23 = vsel %vm1590_vm3, %v1261_v4, -inf  ;;  %v13058_v62 = vld [vmem:[#allocation11 + $0x324] ss:$16 sps:$4 sm:$0xff]  }
 0x213   :  { %v14738_v25 = vsel %vm2490_vm1, %v3065_v14, %v3178_v12  ;;  %v14741_v33 = vsel %vm2490_vm1, %v3066_v16, %v3184_v9  ;;  %v2097_v27 = vmax.f32 %v2095_v11, %v2096_v19  ;;  %v2104_v63 = vmax.f32 %v2102_v22, %v2103_v21  ;;  %3950 = vmatprep.subr.bf16.mxu0 %v13058_v62 }
 0x214   :  { %v2110_v28 = vrot.slane %v2109_v18, 4  ;;  %v2117_v30 = vrot.slane %v2116_v43, 4  ;;  %v2124_v34 = vrot.slane %v2123_v47, 4  ;;  %v2131_v13 = vrot.slane %v2130_v23, 4 }
 0x215   :  { %v2098_v7 = vrot.slane %v2097_v27, 2  ;;  %v2105_v57 = vrot.slane %v2104_v63, 2  ;;  %v2137_v20 = vsel %vm1590_vm3, %v1268_v48, -inf  ;;  %v2144_v41 = vsel %vm1590_vm3, %v1269_v37, -inf  ;;  %v13056_v48 = vld [vmem:[#allocation11 + $0x320] ss:$16 sps:$4 sm:$0xff]  }
 0x216   :  { %v2111_v6 = vmax.f32 %v2109_v18, %v2110_v28  ;;  %v2118_v10 = vmax.f32 %v2116_v43, %v2117_v30  ;;  %v2125_v49 = vmax.f32 %v2123_v47, %v2124_v34  ;;  %v2132_v40 = vmax.f32 %v2130_v23, %v2131_v13  ;;  %v13061_v37 = vld [vmem:[#allocation11 + $0x32c] ss:$16 sps:$4 sm:$0xff]   ;;  %3951 = vmatpush2.bf16.msra.mxu0 %v13056_v48  ;;  %v509_v13 = vpop.f32.mrf.mxu1 }
 0x217   :  { %v2099_v39 = vmax.f32 %v2097_v27, %v2098_v7  ;;  %v2106_v46 = vmax.f32 %v2104_v63, %v2105_v57  ;;  %v2138_v8 = vrot.slane %v2137_v20, 4  ;;  %v2145_v1 = vrot.slane %v2144_v41, 4  ;;  %4023 = vmatprep.subr.bf16.mxu1 %v13061_v37  ;;  %v13064_v27 = vld [vmem:[#allocation11 + $0x304] ss:$16 sps:$4 sm:$0xff]   ;;  %v13062_v7 = vld [vmem:[#allocation11 + $0x300] ss:$16 sps:$4 sm:$0xff]  }
 0x218   :  { %v2112_v15 = vrot.slane %v2111_v6, 2  ;;  %v2119_v32 = vrot.slane %v2118_v10, 2  ;;  %v2126_v5 = vrot.slane %v2125_v49, 2  ;;  %v2133_v24 = vrot.slane %v2132_v40, 2  ;;  %4024 = vmatpush2.bf16.msra.mxu1 %v13059_v0  ;;  %v13065_v57 = vld [vmem:[#allocation11 + $0x308] ss:$16 sps:$4 sm:$0xff]   ;;  %3952 = vmatprep.subr.bf16.mxu0 %v13064_v27  ;;  %v511_v62 = vpop.f32.mrf.mxu1 }
 0x219   :  { %v2100_v11 = vrot.slane %v2099_v39, 1  ;;  %v2107_v22 = vrot.slane %v2106_v46, 1  ;;  %v2139_v44 = vmax.f32 %v2137_v20, %v2138_v8  ;;  %v2146_v2 = vmax.f32 %v2144_v41, %v2145_v1  ;;  %v13067_v20 = vld [vmem:[#allocation11 + $0x30c] ss:$16 sps:$4 sm:$0xff]   ;;  %v398_v1 = vpop.f32.mrf.mxu0  ;;  %v3289_v0 = vld [vmem:[#allocation2 + $0x48] sm:$0x11] }
 0x21a   :  { %v2113_v3 = vmax.f32 %v2111_v6, %v2112_v15  ;;  %v2120_v12 = vmax.f32 %v2118_v10, %v2119_v32  ;;  %v2127_v9 = vmax.f32 %v2125_v49, %v2126_v5  ;;  %v2134_v4 = vmax.f32 %v2132_v40, %v2133_v24  ;;  %4025 = vmatprep.subr.bf16.mxu1 %v13067_v20 }
 0x21b   :  { %v2101_v14 = vmax.f32 %v2099_v39, %v2100_v11  ;;  %v2108_v16 = vmax.f32 %v2106_v46, %v2107_v22  ;;  %v2140_v19 = vrot.slane %v2139_v44, 2  ;;  %v2147_v21 = vrot.slane %v2146_v2, 2  ;;  %3953 = vmatpush2.bf16.msra.mxu0 %v13062_v7  ;;  %v2509_v11 = vld [vmem:[#allocation2 + $0x58] sm:$0x11] }
 0x21c   :  { %v2114_v18 = vrot.slane %v2113_v3, 1  ;;  %v2121_v43 = vrot.slane %v2120_v12, 1  ;;  %v2128_v47 = vrot.slane %v2127_v9, 1  ;;  %v2135_v23 = vrot.slane %v2134_v4, 1  ;;  %4026 = vmatpush2.bf16.msra.mxu1 %v13065_v57 }
 0x21d   :  { %v2141_v63 = vmax.f32 %v2139_v44, %v2140_v19  ;;  %v2148_v28 = vmax.f32 %v2146_v2, %v2147_v21  ;;  %v12848_v30 = vpack.c.bf16 %v2108_v16, %v2101_v14  ;;  %v14749_v34 = vmax.f32 %v574_v36, %v576_v58  ;;  %v2538_v14 = vld [vmem:[#allocation2 + $0x68] sm:$0x11] }
 0x21e   :  { %v2115_v41 = vmax.f32 %v2113_v3, %v2114_v18  ;;  %v2122_v6 = vmax.f32 %v2120_v12, %v2121_v43  ;;  %v2129_v10 = vmax.f32 %v2127_v9, %v2128_v47  ;;  %v2136_v49 = vmax.f32 %v2134_v4, %v2135_v23 }
 0x21f   :  { %v2142_v40 = vrot.slane %v2141_v63, 1  ;;  %v2149_v39 = vrot.slane %v2148_v28, 1  ;;  %v3067_v46 = vunpack.c.l.b16 %v12848_v30  ;;  %v3068_v8 = vunpack.c.h.b16 %v12848_v30 }
 0x220   :  { %v12849_v35 = vpack.c.bf16 %v2122_v6, %v2115_v41  ;;  %v12850_v50 = vpack.c.bf16 %v2136_v49, %v2129_v10  ;;  %v577_v36 = vmax.f32 %v14689_v42, 0.0  ;;  %v578_v58 = vmax.f32 %v14692_v45, 0.0 }
 0x221   :  { %v2143_v15 = vmax.f32 %v2141_v63, %v2142_v40  ;;  %v2150_v32 = vmax.f32 %v2148_v28, %v2149_v39  ;;  %v3180_v5 = vsel %vm3129_vm8, %v3067_v46, %v14738_v25  ;;  %v3186_v24 = vsel %vm3129_vm8, %v3068_v8, %v14741_v33  ;;  %v402_v25 = vpop.f32.mrf.mxu0 }
 0x222   :  { %v3069_v22 = vunpack.c.l.b16 %v12849_v35  ;;  %v3070_v44 = vunpack.c.h.b16 %v12849_v35  ;;  %v3071_v2 = vunpack.c.l.b16 %v12850_v50  ;;  %v3072_v48 = vunpack.c.h.b16 %v12850_v50 }
 0x223   :  { %v12851_v3 = vpack.c.bf16 %v2150_v32, %v2143_v15  ;;  %v619_v42 = vmax.f32 %v575_v61, %v577_v36  ;;  %v510_v45 = vadd.f32 %v509_v13, %v14314_v56  ;;  %v399_v12 = vadd.f32 %v398_v1, %v14317_v59  ;;  %v3286_v61 = vld [vmem:[#allocation2 + $0x28] sm:$0xff]  ;;  %v515_v13 = vpop.f32.mrf.mxu1  ;;  %v404_v7 = vpop.f32.mrf.mxu0 }
 0x224   :  { %v3181_v9 = vsel %vm3131_vm9, %v3069_v22, %v3180_v5  ;;  %v3187_v33 = vsel %vm3131_vm9, %v3070_v44, %v3186_v24  ;;  %v512_v4 = vadd.f32 %v511_v62, %v14320_v60  ;;  %v2510_v37 = vsel %vm14286_vm12, 0, %v2509_v11 }
 0x225   :  { %v3182_v16 = vsel %vm16507_vm10, %v3071_v2, %v3181_v9  ;;  %v3188_v38 = vsel %vm16507_vm10, %v3072_v48, %v3187_v33  ;;  %v3290_v19 = vsel %vm14286_vm12, %v12851_v3, %v3289_v0  ;;  %v842_v21 = vcombine.low %v14749_v34, %v619_v42  ;;  %2511 = vst [vmem:[#allocation2 + $0x58] sm:$0x11] %v2510_v37 }
 0x226   :  { %v3233_v18 = vpack.c.b16 %v3188_v38, %v3182_v16  ;;  %3291 = vst [vmem:[#allocation2 + $0x48] sm:$0x11] %v3290_v19  ;;  %v843_v43 = vcombine.high %v14749_v34, %v619_v42  ;;  %v580_v47 = vmax.f32 %v510_v45, 0.0  ;;  %v579_v23 = vmax.f32 %v399_v12, 0.0 }
 0x227   :  { %v850_v27 = vrot.slane %v842_v21, %v14327_v17  ;;  %v581_v63 = vmax.f32 %v512_v4, 0.0  ;;  %v2539_v28 = vsel %vm14278_vm7, 0, %v2538_v14  ;;  %v14776_v30 = vadd.f32 %v402_v25, %v14311_v55 }
 0x228   :  { %v3287_v57 = vsel %vm14294_vm5, %v3233_v18, %v3286_v61  ;;  %v857_v20 = vrot.slane %v843_v43, %v14327_v17  ;;  %v14781_v41 = vmax.f32 %v578_v58, %v580_v47  ;;  %2540 = vst [vmem:[#allocation2 + $0x68] sm:$0x11] %v2539_v28  ;;  %v14784_v34 = vadd.f32 %v515_v13, %v14314_v56 }
 0x229   :  { %3288 = vst [vmem:[#allocation2 + $0x28] sm:$0xff] %v3287_v57  ;;  %v858_v6 = vcombine.high %v850_v27, %v850_v27  ;;  %v1276_v10 = vrot.slane %v850_v27, %v14327_v17  ;;  %v14787_v49 = vmax.f32 %v579_v23, %v581_v63  ;;  %v582_v40 = vmax.f32 %v14776_v30, 0.0 }
 0x22a   :  { %v859_v39 = vcombine.high %v857_v20, %v857_v20  ;;  %v1292_v46 = vrot.slane %v857_v20, %v14327_v17  ;;  %v584_v8 = vmax.f32 %v14784_v34, 0.0  ;;  %v14793_v1 = vadd.f32 %v404_v7, %v14317_v59 }
 0x22b   :  { %v1277_v35 = vcombine.high %v1276_v10, %v1276_v10  ;;  %v1284_v50 = vrot.slane %v858_v6, %v14327_v17  ;;  %v2151_v36 = vsel %vm1590_vm3, %v1276_v10, -inf  ;;  %v860_v58 = vcombine.low %v14781_v41, %v14787_v49 }
 0x22c   :  { %v1293_v15 = vcombine.high %v1292_v46, %v1292_v46  ;;  %v1300_v32 = vrot.slane %v859_v39, %v14327_v17  ;;  %v2152_v5 = vrot.slane %v2151_v36, 4  ;;  %v2179_v24 = vsel %vm1590_vm3, %v1292_v46, -inf }
 0x22d   :  { %v1285_v62 = vcombine.high %v1284_v50, %v1284_v50  ;;  %v2158_v11 = vsel %vm1590_vm3, %v1277_v35, -inf  ;;  %v2165_v22 = vsel %vm1590_vm3, %v1284_v50, -inf  ;;  %v2180_v44 = vrot.slane %v2179_v24, 4 }
 0x22e   :  { %v1301_v2 = vcombine.high %v1300_v32, %v1300_v32  ;;  %v2153_v48 = vmax.f32 %v2151_v36, %v2152_v5  ;;  %v2159_v0 = vrot.slane %v2158_v11, 4  ;;  %v2166_v3 = vrot.slane %v2165_v22, 4 }
 0x22f   :  { %v2172_v42 = vsel %vm1590_vm3, %v1285_v62, -inf  ;;  %v2181_v45 = vmax.f32 %v2179_v24, %v2180_v44  ;;  %v2186_v12 = vsel %vm1590_vm3, %v1293_v15, -inf  ;;  %v2193_v25 = vsel %vm1590_vm3, %v1300_v32, -inf }
 0x230   :  { %v2154_v9 = vrot.slane %v2153_v48, 2  ;;  %v2160_v33 = vmax.f32 %v2158_v11, %v2159_v0  ;;  %v2167_v4 = vmax.f32 %v2165_v22, %v2166_v3  ;;  %v2173_v37 = vrot.slane %v2172_v42, 4 }
 0x231   :  { %v2182_v14 = vrot.slane %v2181_v45, 2  ;;  %v2187_v16 = vrot.slane %v2186_v12, 4  ;;  %v2194_v38 = vrot.slane %v2193_v25, 4  ;;  %v2200_v61 = vsel %vm1590_vm3, %v1301_v2, -inf }
 0x232   :  { %v2155_v19 = vmax.f32 %v2153_v48, %v2154_v9  ;;  %v2161_v21 = vrot.slane %v2160_v33, 2  ;;  %v2168_v18 = vrot.slane %v2167_v4, 2  ;;  %v2174_v43 = vmax.f32 %v2172_v42, %v2173_v37 }
 0x233   :  { %v2183_v47 = vmax.f32 %v2181_v45, %v2182_v14  ;;  %v2188_v23 = vmax.f32 %v2186_v12, %v2187_v16  ;;  %v2195_v27 = vmax.f32 %v2193_v25, %v2194_v38  ;;  %v2201_v63 = vrot.slane %v2200_v61, 4 }
 0x234   :  { %v2156_v28 = vrot.slane %v2155_v19, 1  ;;  %v2162_v13 = vmax.f32 %v2160_v33, %v2161_v21  ;;  %v2169_v7 = vmax.f32 %v2167_v4, %v2168_v18  ;;  %v2175_v57 = vrot.slane %v2174_v43, 2 }
 0x235   :  { %v2184_v20 = vrot.slane %v2183_v47, 1  ;;  %v2189_v6 = vrot.slane %v2188_v23, 2  ;;  %v2196_v10 = vrot.slane %v2195_v27, 2  ;;  %v2202_v39 = vmax.f32 %v2200_v61, %v2201_v63 }
 0x236   :  { %v2157_v46 = vmax.f32 %v2155_v19, %v2156_v28  ;;  %v2163_v35 = vrot.slane %v2162_v13, 1  ;;  %v2170_v50 = vrot.slane %v2169_v7, 1  ;;  %v2176_v36 = vmax.f32 %v2174_v43, %v2175_v57 }
 0x237   :  { %v2185_v15 = vmax.f32 %v2183_v47, %v2184_v20  ;;  %v2190_v32 = vmax.f32 %v2188_v23, %v2189_v6  ;;  %v2197_v5 = vmax.f32 %v2195_v27, %v2196_v10  ;;  %v2203_v24 = vrot.slane %v2202_v39, 2 }
 0x238   :  { %v2164_v62 = vmax.f32 %v2162_v13, %v2163_v35  ;;  %v2171_v11 = vmax.f32 %v2169_v7, %v2170_v50  ;;  %v2177_v22 = vrot.slane %v2176_v36, 1  ;;  %v861_v44 = vcombine.high %v14781_v41, %v14787_v49 }
 0x239   :  { %v2191_v2 = vrot.slane %v2190_v32, 1  ;;  %v2198_v48 = vrot.slane %v2197_v5, 1  ;;  %v2204_v0 = vmax.f32 %v2202_v39, %v2203_v24  ;;  %v868_v3 = vrot.slane %v860_v58, %v14327_v17 }
 0x23a   :  { %v2178_v42 = vmax.f32 %v2176_v36, %v2177_v22  ;;  %v12852_v45 = vpack.c.bf16 %v2164_v62, %v2157_v46  ;;  %v875_v12 = vrot.slane %v861_v44, %v14327_v17  ;;  %v14815_v25 = vmax.f32 %v582_v40, %v584_v8 }
 0x23b   :  { %v2192_v9 = vmax.f32 %v2190_v32, %v2191_v2  ;;  %v2199_v33 = vmax.f32 %v2197_v5, %v2198_v48  ;;  %v2205_v4 = vrot.slane %v2204_v0, 1  ;;  %v876_v37 = vcombine.high %v868_v3, %v868_v3  ;;  %v13070_v48 = vld [vmem:[#allocation11 + $0xe4] ss:$16 sps:$4 sm:$0xff]  }
 0x23c   :  { %v12853_v41 = vpack.c.bf16 %v2178_v42, %v2171_v11  ;;  %v3075_v49 = vunpack.c.l.b16 %v12852_v45  ;;  %v3076_v14 = vunpack.c.h.b16 %v12852_v45  ;;  %v877_v16 = vcombine.high %v875_v12, %v875_v12  ;;  %4428 = vmatprep.subr.bf16.mxu0 %v13070_v48 }
 0x23d   :  { %v2206_v38 = vmax.f32 %v2204_v0, %v2205_v4  ;;  %v12854_v58 = vpack.c.bf16 %v2192_v9, %v2185_v15  ;;  %v1308_v61 = vrot.slane %v868_v3, %v14327_v17  ;;  %v1316_v19 = vrot.slane %v876_v37, %v14327_v17 }
 0x23e   :  { %v3077_v21 = vunpack.c.l.b16 %v12853_v41  ;;  %v3078_v34 = vunpack.c.h.b16 %v12853_v41  ;;  %v1324_v30 = vrot.slane %v875_v12, %v14327_v17  ;;  %v1332_v40 = vrot.slane %v877_v16, %v14327_v17  ;;  %v13073_v12 = vld [vmem:[#allocation11 + $0xec] ss:$16 sps:$4 sm:$0xff]  }
 0x23f   :  { %v12855_v8 = vpack.c.bf16 %v2206_v38, %v2199_v33  ;;  %v3079_v18 = vunpack.c.l.b16 %v12854_v58  ;;  %v3080_v43 = vunpack.c.h.b16 %v12854_v58  ;;  %v1309_v47 = vcombine.high %v1308_v61, %v1308_v61  ;;  %4501 = vmatprep.subr.bf16.mxu1 %v13073_v12 }
 0x240   :  { %v3189_v23 = vsel %vm3123_vm4, %v3077_v21, %v3075_v49  ;;  %v3195_v27 = vsel %vm3123_vm4, %v3078_v34, %v3076_v14  ;;  %v1317_v63 = vcombine.high %v1316_v19, %v1316_v19  ;;  %v1325_v28 = vcombine.high %v1324_v30, %v1324_v30 }
 0x241   :  { %v3081_v13 = vunpack.c.l.b16 %v12855_v8  ;;  %v3082_v7 = vunpack.c.h.b16 %v12855_v8  ;;  %v3190_v57 = vsel %vm3125_vm6, %v3079_v18, %v3189_v23  ;;  %v3196_v20 = vsel %vm3125_vm6, %v3080_v43, %v3195_v27 }
 0x242   :  { %v1333_v6 = vcombine.high %v1332_v40, %v1332_v40  ;;  %v2207_v10 = vsel %vm1590_vm3, %v1308_v61, -inf  ;;  %v2214_v39 = vsel %vm1590_vm3, %v1309_v47, -inf  ;;  %v2221_v46 = vsel %vm1590_vm3, %v1316_v19, -inf }
 0x243   :  { %v14829_v35 = vsel %vm2490_vm1, %v3081_v13, %v3190_v57  ;;  %v14832_v50 = vsel %vm2490_vm1, %v3082_v7, %v3196_v20  ;;  %v2208_v36 = vrot.slane %v2207_v10, 4  ;;  %v2215_v15 = vrot.slane %v2214_v39, 4  ;;  %v406_v13 = vpop.f32.mrf.mxu0 }
 0x244   :  { %v2222_v32 = vrot.slane %v2221_v46, 4  ;;  %v2228_v5 = vsel %vm1590_vm3, %v1317_v63, -inf  ;;  %v2235_v24 = vsel %vm1590_vm3, %v1324_v30, -inf  ;;  %v2242_v62 = vsel %vm1590_vm3, %v1325_v28, -inf }
 0x245   :  { %v2209_v11 = vmax.f32 %v2207_v10, %v2208_v36  ;;  %v2216_v22 = vmax.f32 %v2214_v39, %v2215_v15  ;;  %v2229_v44 = vrot.slane %v2228_v5, 4  ;;  %v2236_v2 = vrot.slane %v2235_v24, 4  ;;  %v517_v10 = vpop.f32.mrf.mxu1  ;;  %v408_v48 = vpop.f32.mrf.mxu0 }
 0x246   :  { %v2223_v0 = vmax.f32 %v2221_v46, %v2222_v32  ;;  %v2243_v3 = vrot.slane %v2242_v62, 4  ;;  %v2249_v42 = vsel %vm1590_vm3, %v1332_v40, -inf  ;;  %v2256_v45 = vsel %vm1590_vm3, %v1333_v6, -inf }
 0x247   :  { %v2210_v9 = vrot.slane %v2209_v11, 2  ;;  %v2217_v33 = vrot.slane %v2216_v22, 2  ;;  %v2230_v4 = vmax.f32 %v2228_v5, %v2229_v44  ;;  %v2237_v37 = vmax.f32 %v2235_v24, %v2236_v2  ;;  %v519_v12 = vpop.f32.mrf.mxu1 }
 0x248   :  { %v2224_v41 = vrot.slane %v2223_v0, 2  ;;  %v2244_v49 = vmax.f32 %v2242_v62, %v2243_v3  ;;  %v2250_v14 = vrot.slane %v2249_v42, 4  ;;  %v2257_v16 = vrot.slane %v2256_v45, 4 }
 0x249   :  { %v2211_v38 = vmax.f32 %v2209_v11, %v2210_v9  ;;  %v2218_v58 = vmax.f32 %v2216_v22, %v2217_v33  ;;  %v2231_v61 = vrot.slane %v2230_v4, 2  ;;  %v2238_v19 = vrot.slane %v2237_v37, 2 }
 0x24a   :  { %v2225_v21 = vmax.f32 %v2223_v0, %v2224_v41  ;;  %v2245_v34 = vrot.slane %v2244_v49, 2  ;;  %v2251_v30 = vmax.f32 %v2249_v42, %v2250_v14  ;;  %v2258_v40 = vmax.f32 %v2256_v45, %v2257_v16  ;;  %v3295_v16 = vld [vmem:[#allocation2 + $0x68] sm:$0x11] }
 0x24b   :  { %v2212_v8 = vrot.slane %v2211_v38, 1  ;;  %v2219_v18 = vrot.slane %v2218_v58, 1  ;;  %v2232_v43 = vmax.f32 %v2230_v4, %v2231_v61  ;;  %v2239_v47 = vmax.f32 %v2237_v37, %v2238_v19 }
 0x24c   :  { %v2226_v23 = vrot.slane %v2225_v21, 1  ;;  %v2246_v27 = vmax.f32 %v2244_v49, %v2245_v34  ;;  %v2252_v63 = vrot.slane %v2251_v30, 2  ;;  %v2259_v28 = vrot.slane %v2258_v40, 2 }
 0x24d   :  { %v2213_v7 = vmax.f32 %v2211_v38, %v2212_v8  ;;  %v2220_v57 = vmax.f32 %v2218_v58, %v2219_v18  ;;  %v2233_v20 = vrot.slane %v2232_v43, 1  ;;  %v2240_v6 = vrot.slane %v2239_v47, 1  ;;  %v521_v18 = vpop.f32.mrf.mxu1 }
 0x24e   :  { %v2227_v39 = vmax.f32 %v2225_v21, %v2226_v23  ;;  %v2247_v46 = vrot.slane %v2246_v27, 1  ;;  %v2253_v36 = vmax.f32 %v2251_v30, %v2252_v63  ;;  %v2260_v15 = vmax.f32 %v2258_v40, %v2259_v28  ;;  %v412_v21 = vpop.f32.mrf.mxu0  ;;  %v3292_v23 = vld [vmem:[#allocation2 + $0x58] sm:$0xff] }
 0x24f   :  { %v2234_v32 = vmax.f32 %v2232_v43, %v2233_v20  ;;  %v2241_v5 = vmax.f32 %v2239_v47, %v2240_v6  ;;  %v12856_v24 = vpack.c.bf16 %v2220_v57, %v2213_v7  ;;  %v583_v62 = vmax.f32 %v14793_v1, 0.0  ;;  %v2512_v43 = vld [vmem:[#allocation2 + $0x10] sm:$0x11]  ;;  %v2541_v47 = vld [vmem:[#allocation2 + $0x78] sm:$0x11] }
 0x250   :  { %v2248_v11 = vmax.f32 %v2246_v27, %v2247_v46  ;;  %v2254_v22 = vrot.slane %v2253_v36, 1  ;;  %v2261_v44 = vrot.slane %v2260_v15, 1  ;;  %v518_v2 = vadd.f32 %v517_v10, %v14320_v60  ;;  %v414_v46 = vpop.f32.mrf.mxu0 }
 0x251   :  { %v12857_v0 = vpack.c.bf16 %v2234_v32, %v2227_v39  ;;  %v3083_v3 = vunpack.c.l.b16 %v12856_v24  ;;  %v3084_v42 = vunpack.c.h.b16 %v12856_v24  ;;  %v407_v45 = vadd.f32 %v406_v13, %v14311_v55 }
 0x252   :  { %v2255_v9 = vmax.f32 %v2253_v36, %v2254_v22  ;;  %v2262_v33 = vmax.f32 %v2260_v15, %v2261_v44  ;;  %v12858_v4 = vpack.c.bf16 %v2248_v11, %v2241_v5  ;;  %v585_v37 = vmax.f32 %v518_v2, 0.0  ;;  %v525_v22 = vpop.f32.mrf.mxu1 }
 0x253   :  { %v3085_v41 = vunpack.c.l.b16 %v12857_v0  ;;  %v3086_v49 = vunpack.c.h.b16 %v12857_v0  ;;  %v3192_v1 = vsel %vm3129_vm8, %v3083_v3, %v14829_v35  ;;  %v3198_v14 = vsel %vm3129_vm8, %v3084_v42, %v14832_v50 }
 0x254   :  { %v12859_v38 = vpack.c.bf16 %v2262_v33, %v2255_v9  ;;  %v3087_v58 = vunpack.c.l.b16 %v12858_v4  ;;  %v3088_v61 = vunpack.c.h.b16 %v12858_v4  ;;  %v623_v19 = vmax.f32 %v583_v62, %v585_v37 }
 0x255   :  { %v3193_v34 = vsel %vm3131_vm9, %v3085_v41, %v3192_v1  ;;  %v3199_v30 = vsel %vm3131_vm9, %v3086_v49, %v3198_v14  ;;  %v586_v40 = vmax.f32 %v407_v45, 0.0  ;;  %v520_v8 = vadd.f32 %v519_v12, %v14314_v56 }
 0x256   :  { %v3194_v35 = vsel %vm16507_vm10, %v3087_v58, %v3193_v34  ;;  %v3200_v50 = vsel %vm16507_vm10, %v3088_v61, %v3199_v30  ;;  %v3296_v27 = vsel %vm14286_vm12, %v12859_v38, %v3295_v16  ;;  %v878_v63 = vcombine.low %v14815_v25, %v623_v19 }
 0x257   :  { %v3235_v28 = vpack.c.b16 %v3200_v50, %v3194_v35  ;;  %3297 = vst [vmem:[#allocation2 + $0x68] sm:$0x11] %v3296_v27  ;;  %v879_v13 = vcombine.high %v14815_v25, %v623_v19  ;;  %v588_v7 = vmax.f32 %v520_v8, 0.0  ;;  %v409_v57 = vadd.f32 %v408_v48, %v14317_v59 }
 0x258   :  { %v886_v20 = vrot.slane %v878_v63, %v14327_v17  ;;  %v522_v6 = vadd.f32 %v521_v18, %v14320_v60  ;;  %v2513_v10 = vsel %vm14286_vm12, 0, %v2512_v43  ;;  %v2542_v39 = vsel %vm14278_vm7, 0, %v2541_v47 }
 0x259   :  { %v3293_v36 = vsel %vm14294_vm5, %v3235_v28, %v3292_v23  ;;  %v893_v15 = vrot.slane %v879_v13, %v14327_v17  ;;  %v14865_v25 = vmax.f32 %v586_v40, %v588_v7  ;;  %v587_v32 = vmax.f32 %v409_v57, 0.0  ;;  %2514 = vst [vmem:[#allocation2 + $0x10] sm:$0x11] %v2513_v10  ;;  %2543 = vst [vmem:[#allocation2 + $0x78] sm:$0x11] %v2542_v39 }
 0x25a   :  { %3294 = vst [vmem:[#allocation2 + $0x58] sm:$0xff] %v3293_v36  ;;  %v894_v5 = vcombine.high %v886_v20, %v886_v20  ;;  %v1340_v24 = vrot.slane %v886_v20, %v14327_v17  ;;  %v589_v62 = vmax.f32 %v522_v6, 0.0  ;;  %v14869_v11 = vadd.f32 %v412_v21, %v14311_v55 }
 0x25b   :  { %v895_v44 = vcombine.high %v893_v15, %v893_v15  ;;  %v1356_v2 = vrot.slane %v893_v15, %v14327_v17  ;;  %v14873_v48 = vadd.f32 %v525_v22, %v14314_v56  ;;  %v14876_v0 = vadd.f32 %v414_v46, %v14317_v59 }
 0x25c   :  { %v1341_v3 = vcombine.high %v1340_v24, %v1340_v24  ;;  %v1348_v42 = vrot.slane %v894_v5, %v14327_v17  ;;  %v2263_v45 = vsel %vm1590_vm3, %v1340_v24, -inf  ;;  %v14880_v12 = vmax.f32 %v587_v32, %v589_v62 }
 0x25d   :  { %v1357_v9 = vcombine.high %v1356_v2, %v1356_v2  ;;  %v1364_v33 = vrot.slane %v895_v44, %v14327_v17  ;;  %v2264_v4 = vrot.slane %v2263_v45, 4  ;;  %v2291_v37 = vsel %vm1590_vm3, %v1356_v2, -inf }
 0x25e   :  { %v1349_v41 = vcombine.high %v1348_v42, %v1348_v42  ;;  %v2270_v49 = vsel %vm1590_vm3, %v1341_v3, -inf  ;;  %v2277_v1 = vsel %vm1590_vm3, %v1348_v42, -inf  ;;  %v2292_v14 = vrot.slane %v2291_v37, 4 }
 0x25f   :  { %v1365_v16 = vcombine.high %v1364_v33, %v1364_v33  ;;  %v2265_v38 = vmax.f32 %v2263_v45, %v2264_v4  ;;  %v2271_v58 = vrot.slane %v2270_v49, 4  ;;  %v2278_v61 = vrot.slane %v2277_v1, 4 }
 0x260   :  { %v2284_v19 = vsel %vm1590_vm3, %v1349_v41, -inf  ;;  %v2293_v21 = vmax.f32 %v2291_v37, %v2292_v14  ;;  %v2298_v34 = vsel %vm1590_vm3, %v1357_v9, -inf  ;;  %v2305_v30 = vsel %vm1590_vm3, %v1364_v33, -inf }
 0x261   :  { %v2266_v40 = vrot.slane %v2265_v38, 2  ;;  %v2272_v8 = vmax.f32 %v2270_v49, %v2271_v58  ;;  %v2279_v18 = vmax.f32 %v2277_v1, %v2278_v61  ;;  %v2285_v43 = vrot.slane %v2284_v19, 4 }
 0x262   :  { %v2294_v47 = vrot.slane %v2293_v21, 2  ;;  %v2299_v35 = vrot.slane %v2298_v34, 4  ;;  %v2306_v50 = vrot.slane %v2305_v30, 4  ;;  %v2312_v23 = vsel %vm1590_vm3, %v1365_v16, -inf }
 0x263   :  { %v2267_v27 = vmax.f32 %v2265_v38, %v2266_v40  ;;  %v2273_v63 = vrot.slane %v2272_v8, 2  ;;  %v2280_v28 = vrot.slane %v2279_v18, 2  ;;  %v2286_v13 = vmax.f32 %v2284_v19, %v2285_v43 }
 0x264   :  { %v2295_v7 = vmax.f32 %v2293_v21, %v2294_v47  ;;  %v2300_v57 = vmax.f32 %v2298_v34, %v2299_v35  ;;  %v2307_v20 = vmax.f32 %v2305_v30, %v2306_v50  ;;  %v2313_v6 = vrot.slane %v2312_v23, 4 }
 0x265   :  { %v2268_v10 = vrot.slane %v2267_v27, 1  ;;  %v2274_v39 = vmax.f32 %v2272_v8, %v2273_v63  ;;  %v2281_v46 = vmax.f32 %v2279_v18, %v2280_v28  ;;  %v2287_v36 = vrot.slane %v2286_v13, 2 }
 0x266   :  { %v2296_v15 = vrot.slane %v2295_v7, 1  ;;  %v2301_v32 = vrot.slane %v2300_v57, 2  ;;  %v2308_v5 = vrot.slane %v2307_v20, 2  ;;  %v2314_v24 = vmax.f32 %v2312_v23, %v2313_v6 }
 0x267   :  { %v2269_v62 = vmax.f32 %v2267_v27, %v2268_v10  ;;  %v2275_v22 = vrot.slane %v2274_v39, 1  ;;  %v2282_v44 = vrot.slane %v2281_v46, 1  ;;  %v2288_v2 = vmax.f32 %v2286_v13, %v2287_v36 }
 0x268   :  { %v2297_v3 = vmax.f32 %v2295_v7, %v2296_v15  ;;  %v2302_v42 = vmax.f32 %v2300_v57, %v2301_v32  ;;  %v2309_v45 = vmax.f32 %v2307_v20, %v2308_v5  ;;  %v2315_v9 = vrot.slane %v2314_v24, 2 }
 0x269   :  { %v2276_v33 = vmax.f32 %v2274_v39, %v2275_v22  ;;  %v2283_v4 = vmax.f32 %v2281_v46, %v2282_v44  ;;  %v2289_v37 = vrot.slane %v2288_v2, 1  ;;  %v896_v41 = vcombine.low %v14865_v25, %v14880_v12 }
 0x26a   :  { %v2303_v49 = vrot.slane %v2302_v42, 1  ;;  %v2310_v1 = vrot.slane %v2309_v45, 1  ;;  %v2316_v14 = vmax.f32 %v2314_v24, %v2315_v9  ;;  %v897_v16 = vcombine.high %v14865_v25, %v14880_v12 }
 0x26b   :  { %v2290_v38 = vmax.f32 %v2288_v2, %v2289_v37  ;;  %v12860_v58 = vpack.c.bf16 %v2276_v33, %v2269_v62  ;;  %v904_v61 = vrot.slane %v896_v41, %v14327_v17  ;;  %v590_v19 = vmax.f32 %v14869_v11, 0.0 }
 0x26c   :  { %v2304_v21 = vmax.f32 %v2302_v42, %v2303_v49  ;;  %v2311_v34 = vmax.f32 %v2309_v45, %v2310_v1  ;;  %v2317_v30 = vrot.slane %v2316_v14, 1  ;;  %v911_v40 = vrot.slane %v897_v16, %v14327_v17 }
 0x26d   :  { %v12861_v8 = vpack.c.bf16 %v2290_v38, %v2283_v4  ;;  %v3091_v18 = vunpack.c.l.b16 %v12860_v58  ;;  %v3092_v43 = vunpack.c.h.b16 %v12860_v58  ;;  %v912_v47 = vcombine.high %v904_v61, %v904_v61 }
 0x26e   :  { %v2318_v35 = vmax.f32 %v2316_v14, %v2317_v30  ;;  %v12862_v50 = vpack.c.bf16 %v2304_v21, %v2297_v3  ;;  %v913_v23 = vcombine.high %v911_v40, %v911_v40  ;;  %v1372_v25 = vrot.slane %v904_v61, %v14327_v17 }
 0x26f   :  { %v3093_v12 = vunpack.c.l.b16 %v12861_v8  ;;  %v3094_v27 = vunpack.c.h.b16 %v12861_v8  ;;  %v1380_v63 = vrot.slane %v912_v47, %v14327_v17  ;;  %v1388_v28 = vrot.slane %v911_v40, %v14327_v17 }
 0x270   :  { %v12863_v13 = vpack.c.bf16 %v2318_v35, %v2311_v34  ;;  %v3095_v7 = vunpack.c.l.b16 %v12862_v50  ;;  %v3096_v57 = vunpack.c.h.b16 %v12862_v50  ;;  %v1373_v20 = vcombine.high %v1372_v25, %v1372_v25 }
 0x271   :  { %v3201_v6 = vsel %vm3123_vm4, %v3093_v12, %v3091_v18  ;;  %v3207_v10 = vsel %vm3123_vm4, %v3094_v27, %v3092_v43  ;;  %v1381_v39 = vcombine.high %v1380_v63, %v1380_v63  ;;  %v1389_v46 = vcombine.high %v1388_v28, %v1388_v28 }
 0x272   :  { %v3097_v36 = vunpack.c.l.b16 %v12863_v13  ;;  %v3098_v15 = vunpack.c.h.b16 %v12863_v13  ;;  %v3202_v32 = vsel %vm3125_vm6, %v3095_v7, %v3201_v6  ;;  %v3208_v5 = vsel %vm3125_vm6, %v3096_v57, %v3207_v10 }
 0x273   :  { %v1396_v24 = vrot.slane %v913_v23, %v14327_v17  ;;  %v2319_v62 = vsel %vm1590_vm3, %v1372_v25, -inf  ;;  %v2326_v22 = vsel %vm1590_vm3, %v1373_v20, -inf  ;;  %v2333_v44 = vsel %vm1590_vm3, %v1380_v63, -inf }
 0x274   :  { %v14909_v2 = vsel %vm2490_vm1, %v3097_v36, %v3202_v32  ;;  %v14912_v3 = vsel %vm2490_vm1, %v3098_v15, %v3208_v5  ;;  %v2320_v42 = vrot.slane %v2319_v62, 4  ;;  %v2327_v45 = vrot.slane %v2326_v22, 4  ;;  %v527_v36 = vpop.f32.mrf.mxu1 }
 0x275   :  { %v1397_v9 = vcombine.high %v1396_v24, %v1396_v24  ;;  %v2334_v33 = vrot.slane %v2333_v44, 4  ;;  %v2340_v4 = vsel %vm1590_vm3, %v1381_v39, -inf  ;;  %v2347_v37 = vsel %vm1590_vm3, %v1388_v28, -inf }
 0x276   :  { %v2321_v41 = vmax.f32 %v2319_v62, %v2320_v42  ;;  %v2328_v49 = vmax.f32 %v2326_v22, %v2327_v45  ;;  %v2341_v1 = vrot.slane %v2340_v4, 4  ;;  %v2348_v14 = vrot.slane %v2347_v37, 4  ;;  %v416_v45 = vpop.f32.mrf.mxu0 }
 0x277   :  { %v2335_v16 = vmax.f32 %v2333_v44, %v2334_v33  ;;  %v2354_v38 = vsel %vm1590_vm3, %v1389_v46, -inf  ;;  %v2361_v58 = vsel %vm1590_vm3, %v1396_v24, -inf  ;;  %v2368_v61 = vsel %vm1590_vm3, %v1397_v9, -inf }
 0x278   :  { %v2322_v21 = vrot.slane %v2321_v41, 2  ;;  %v2329_v34 = vrot.slane %v2328_v49, 2  ;;  %v2342_v30 = vmax.f32 %v2340_v4, %v2341_v1  ;;  %v2349_v40 = vmax.f32 %v2347_v37, %v2348_v14 }
 0x279   :  { %v2336_v8 = vrot.slane %v2335_v16, 2  ;;  %v2355_v18 = vrot.slane %v2354_v38, 4  ;;  %v2362_v43 = vrot.slane %v2361_v58, 4  ;;  %v2369_v47 = vrot.slane %v2368_v61, 4 }
 0x27a   :  { %v2323_v35 = vmax.f32 %v2321_v41, %v2322_v21  ;;  %v2330_v50 = vmax.f32 %v2328_v49, %v2329_v34  ;;  %v2343_v23 = vrot.slane %v2342_v30, 2  ;;  %v2350_v25 = vrot.slane %v2349_v40, 2 }
 0x27b   :  { %v2337_v12 = vmax.f32 %v2335_v16, %v2336_v8  ;;  %v2356_v27 = vmax.f32 %v2354_v38, %v2355_v18  ;;  %v2363_v63 = vmax.f32 %v2361_v58, %v2362_v43  ;;  %v2370_v28 = vmax.f32 %v2368_v61, %v2369_v47  ;;  %v529_v16 = vpop.f32.mrf.mxu1  ;;  %v418_v18 = vpop.f32.mrf.mxu0 }
 0x27c   :  { %v2324_v13 = vrot.slane %v2323_v35, 1  ;;  %v2331_v7 = vrot.slane %v2330_v50, 1  ;;  %v2344_v57 = vmax.f32 %v2342_v30, %v2343_v23  ;;  %v2351_v20 = vmax.f32 %v2349_v40, %v2350_v25 }
 0x27d   :  { %v2338_v6 = vrot.slane %v2337_v12, 1  ;;  %v2357_v10 = vrot.slane %v2356_v27, 2  ;;  %v2364_v39 = vrot.slane %v2363_v63, 2  ;;  %v2371_v46 = vrot.slane %v2370_v28, 2 }
 0x27e   :  { %v2325_v15 = vmax.f32 %v2323_v35, %v2324_v13  ;;  %v2332_v32 = vmax.f32 %v2330_v50, %v2331_v7  ;;  %v2345_v5 = vrot.slane %v2344_v57, 1  ;;  %v2352_v24 = vrot.slane %v2351_v20, 1  ;;  %v3301_v35 = vld [vmem:[#allocation2 + $0x78] sm:$0x11] }
 0x27f   :  { %v2339_v62 = vmax.f32 %v2337_v12, %v2338_v6  ;;  %v2358_v22 = vmax.f32 %v2356_v27, %v2357_v10  ;;  %v2365_v44 = vmax.f32 %v2363_v63, %v2364_v39  ;;  %v2372_v42 = vmax.f32 %v2370_v28, %v2371_v46  ;;  %v2544_v39 = vld [vmem:[#allocation2 + $0x50] sm:$0x11] }
 0x280   :  { %v2346_v9 = vmax.f32 %v2344_v57, %v2345_v5  ;;  %v2353_v33 = vmax.f32 %v2351_v20, %v2352_v24  ;;  %v12864_v4 = vpack.c.bf16 %v2332_v32, %v2325_v15  ;;  %v592_v37 = vmax.f32 %v14873_v48, 0.0  ;;  %v2515_v57 = vld [vmem:[#allocation2 + $0x18] sm:$0x11]  ;;  %v14938_v32 = vld [vmem:[#allocation2 + $0x60] sm:$0xff] }
 0x281   :  { %v2359_v41 = vrot.slane %v2358_v22, 1  ;;  %v2366_v49 = vrot.slane %v2365_v44, 1  ;;  %v2373_v1 = vrot.slane %v2372_v42, 1  ;;  %v591_v14 = vmax.f32 %v14876_v0, 0.0 }
 0x282   :  { %v12865_v38 = vpack.c.bf16 %v2346_v9, %v2339_v62  ;;  %v3099_v58 = vunpack.c.l.b16 %v12864_v4  ;;  %v3100_v61 = vunpack.c.h.b16 %v12864_v4  ;;  %v626_v21 = vmax.f32 %v590_v19, %v592_v37  ;;  %v531_v19 = vpop.f32.mrf.mxu1 }
 0x283   :  { %v2360_v34 = vmax.f32 %v2358_v22, %v2359_v41  ;;  %v2367_v30 = vmax.f32 %v2365_v44, %v2366_v49  ;;  %v2374_v40 = vmax.f32 %v2372_v42, %v2373_v1  ;;  %v528_v8 = vadd.f32 %v527_v36, %v14320_v60  ;;  %v3298_v36 = vld [vmem:[#allocation2 + $0x10] sm:$0xff] }
 0x284   :  { %v3101_v43 = vunpack.c.l.b16 %v12865_v38  ;;  %v3102_v48 = vunpack.c.h.b16 %v12865_v38  ;;  %v3204_v47 = vsel %vm3129_vm8, %v3099_v58, %v14909_v2  ;;  %v3210_v0 = vsel %vm3129_vm8, %v3100_v61, %v14912_v3 }
 0x285   :  { %v12866_v50 = vpack.c.bf16 %v2360_v34, %v2353_v33  ;;  %v12867_v23 = vpack.c.bf16 %v2374_v40, %v2367_v30  ;;  %v593_v25 = vmax.f32 %v528_v8, 0.0  ;;  %v417_v11 = vadd.f32 %v416_v45, %v14311_v55 }
 0x286   :  { %v3205_v12 = vsel %vm3131_vm9, %v3101_v43, %v3204_v47  ;;  %v3211_v27 = vsel %vm3131_vm9, %v3102_v48, %v3210_v0  ;;  %v530_v63 = vadd.f32 %v529_v16, %v14314_v56  ;;  %v419_v28 = vadd.f32 %v418_v18, %v14317_v59 }
 0x287   :  { %v3103_v13 = vunpack.c.l.b16 %v12866_v50  ;;  %v3104_v2 = vunpack.c.h.b16 %v12866_v50  ;;  %v3302_v3 = vsel %vm14286_vm12, %v12867_v23, %v3301_v35  ;;  %v627_v7 = vmax.f32 %v591_v14, %v593_v25 }
 0x288   :  { %3303 = vst [vmem:[#allocation2 + $0x78] sm:$0x11] %v3302_v3  ;;  %v594_v20 = vmax.f32 %v417_v11, 0.0  ;;  %v596_v6 = vmax.f32 %v530_v63, 0.0  ;;  %v595_v55 = vmax.f32 %v419_v28, 0.0  ;;  %v532_v10 = vadd.f32 %v531_v19, %v14320_v60 }
 0x289   :  { %v3206_v46 = vsel %vm16507_vm10, %v3103_v13, %v3205_v12  ;;  %v3212_v56 = vsel %vm16507_vm10, %v3104_v2, %v3211_v27  ;;  %v914_v59 = vcombine.low %v626_v21, %v627_v7  ;;  %v915_v15 = vcombine.high %v626_v21, %v627_v7 }
 0x28a   :  { %v3237_v5 = vpack.c.b16 %v3212_v56, %v3206_v46  ;;  %v628_v24 = vmax.f32 %v594_v20, %v596_v6  ;;  %v597_v62 = vmax.f32 %v532_v10, 0.0  ;;  %v2516_v22 = vsel %vm14286_vm12, 0, %v2515_v57 }
 0x28b   :  { %v922_v44 = vrot.slane %v914_v59, %v14327_v17  ;;  %v929_v60 = vrot.slane %v915_v15, %v14327_v17  ;;  %2517 = vst [vmem:[#allocation2 + $0x18] sm:$0x11] %v2516_v22  ;;  %v2545_v42 = vsel %vm14278_vm7, 0, %v2544_v39  ;;  %v3394_v33 = vshrl.u32 %v14938_v32, 16 }
 0x28c   :  { %v14948_v45 = vsel %vm14294_vm5, %v3237_v5, %v3298_v36  ;;  %v629_v9 = vmax.f32 %v595_v55, %v597_v62  ;;  %2546 = vst [vmem:[#allocation2 + $0x50] sm:$0x11] %v2545_v42  ;;  %v3397_v16 = vshll.u32 %v14938_v32, 16  ;;  %vm3390_vm7 = vsmask.f32 3328 }
 0x28d   :  { %3300 = vst [vmem:[#allocation2 + $0x10] sm:$0xff] %v14948_v45  ;;  %v930_v4 = vcombine.high %v922_v44, %v922_v44  ;;  %v931_v37 = vcombine.high %v929_v60, %v929_v60  ;;  %v1404_v41 = vrot.slane %v922_v44, %v14327_v17  ;;  %v1420_v49 = vrot.slane %v929_v60, %v14327_v17  ;;  %vm15007_vm13 = vmor %vm3390_vm7, %vm3391_vm11 }
 0x28e   :  { %v932_v1 = vcombine.low %v628_v24, %v629_v9  ;;  %v933_v14 = vcombine.high %v628_v24, %v629_v9  ;;  %v14954_v26 = vrot.slane %v3394_v33, 4  ;;  %vm6667_vm11 = vsmask.f32 6418 }
 0x28f   :  { %v1405_v38 = vcombine.high %v1404_v41, %v1404_v41  ;;  %v1412_v58 = vrot.slane %v930_v4, %v14327_v17  ;;  %v1421_v61 = vcombine.high %v1420_v49, %v1420_v49  ;;  %v1428_v21 = vrot.slane %v931_v37, %v14327_v17 }
 0x290   :  { %v2375_v34 = vsel %vm1590_vm3, %v1404_v41, -inf  ;;  %v2403_v30 = vsel %vm1590_vm3, %v1420_v49, -inf  ;;  %v940_v40 = vrot.slane %v932_v1, %v14327_v17  ;;  %v14963_v8 = vrot.slane %v933_v14, %v14327_v17 }
 0x291   :  { %v1413_v18 = vcombine.high %v1412_v58, %v1412_v58  ;;  %v1429_v43 = vcombine.high %v1428_v21, %v1428_v21  ;;  %v2376_v48 = vrot.slane %v2375_v34, 4  ;;  %v2382_v47 = vsel %vm1590_vm3, %v1405_v38, -inf }
 0x292   :  { %v2383_v0 = vrot.slane %v2382_v47, 4  ;;  %v2389_v35 = vsel %vm1590_vm3, %v1412_v58, -inf  ;;  %v2404_v50 = vrot.slane %v2403_v30, 4  ;;  %v2410_v23 = vsel %vm1590_vm3, %v1421_v61, -inf }
 0x293   :  { %v2377_v25 = vmax.f32 %v2375_v34, %v2376_v48  ;;  %v2390_v11 = vrot.slane %v2389_v35, 4  ;;  %v2396_v19 = vsel %vm1590_vm3, %v1413_v18, -inf  ;;  %v2411_v12 = vrot.slane %v2410_v23, 4 }
 0x294   :  { %v2384_v27 = vmax.f32 %v2382_v47, %v2383_v0  ;;  %v2397_v63 = vrot.slane %v2396_v19, 4  ;;  %v2405_v28 = vmax.f32 %v2403_v30, %v2404_v50  ;;  %v2417_v13 = vsel %vm1590_vm3, %v1428_v21, -inf }
 0x295   :  { %v2378_v2 = vrot.slane %v2377_v25, 2  ;;  %v2391_v3 = vmax.f32 %v2389_v35, %v2390_v11  ;;  %v2412_v7 = vmax.f32 %v2410_v23, %v2411_v12  ;;  %v2418_v57 = vrot.slane %v2417_v13, 4 }
 0x296   :  { %v2385_v20 = vrot.slane %v2384_v27, 2  ;;  %v2398_v6 = vmax.f32 %v2396_v19, %v2397_v63  ;;  %v2406_v55 = vrot.slane %v2405_v28, 2  ;;  %v2424_v10 = vsel %vm1590_vm3, %v1429_v43, -inf }
 0x297   :  { %v2379_v39 = vmax.f32 %v2377_v25, %v2378_v2  ;;  %v2392_v46 = vrot.slane %v2391_v3, 2  ;;  %v2413_v56 = vrot.slane %v2412_v7, 2  ;;  %v2419_v36 = vmax.f32 %v2417_v13, %v2418_v57 }
 0x298   :  { %v2386_v59 = vmax.f32 %v2384_v27, %v2385_v20  ;;  %v2399_v15 = vrot.slane %v2398_v6, 2  ;;  %v2407_v5 = vmax.f32 %v2405_v28, %v2406_v55  ;;  %v2425_v24 = vrot.slane %v2424_v10, 4 }
 0x299   :  { %v2380_v62 = vrot.slane %v2379_v39, 1  ;;  %v2393_v22 = vmax.f32 %v2391_v3, %v2392_v46  ;;  %v2414_v44 = vmax.f32 %v2412_v7, %v2413_v56  ;;  %v2420_v60 = vrot.slane %v2419_v36, 2 }
 0x29a   :  { %v2387_v42 = vrot.slane %v2386_v59, 1  ;;  %v2400_v9 = vmax.f32 %v2398_v6, %v2399_v15  ;;  %v2408_v33 = vrot.slane %v2407_v5, 1  ;;  %v2426_v4 = vmax.f32 %v2424_v10, %v2425_v24 }
 0x29b   :  { %v2381_v37 = vmax.f32 %v2379_v39, %v2380_v62  ;;  %v2394_v41 = vrot.slane %v2393_v22, 1  ;;  %v2415_v49 = vrot.slane %v2414_v44, 1  ;;  %v2421_v1 = vmax.f32 %v2419_v36, %v2420_v60 }
 0x29c   :  { %v2388_v14 = vmax.f32 %v2386_v59, %v2387_v42  ;;  %v2401_v38 = vrot.slane %v2400_v9, 1  ;;  %v2409_v58 = vmax.f32 %v2407_v5, %v2408_v33  ;;  %v2427_v61 = vrot.slane %v2426_v4, 2 }
 0x29d   :  { %v2395_v21 = vmax.f32 %v2393_v22, %v2394_v41  ;;  %v2416_v34 = vmax.f32 %v2414_v44, %v2415_v49  ;;  %v2422_v30 = vrot.slane %v2421_v1, 1  ;;  %v948_v18 = vcombine.high %v940_v40, %v940_v40 }
 0x29e   :  { %v2402_v43 = vmax.f32 %v2400_v9, %v2401_v38  ;;  %v2428_v48 = vmax.f32 %v2426_v4, %v2427_v61  ;;  %v12868_v47 = vpack.c.bf16 %v2388_v14, %v2381_v37  ;;  %v949_v0 = vcombine.high %v14963_v8, %v14963_v8 }
 0x29f   :  { %v2423_v35 = vmax.f32 %v2421_v1, %v2422_v30  ;;  %v12870_v50 = vpack.c.bf16 %v2416_v34, %v2409_v58  ;;  %v1436_v23 = vrot.slane %v940_v40, %v14327_v17  ;;  %v1444_v25 = vrot.slane %v948_v18, %v14327_v17 }
 0x2a0   :  { %v2429_v11 = vrot.slane %v2428_v48, 1  ;;  %v12869_v19 = vpack.c.bf16 %v2402_v43, %v2395_v21  ;;  %v3107_v12 = vunpack.c.l.b16 %v12868_v47  ;;  %v3108_v27 = vunpack.c.h.b16 %v12868_v47 }
 0x2a1   :  { %v3111_v63 = vunpack.c.l.b16 %v12870_v50  ;;  %v3112_v28 = vunpack.c.h.b16 %v12870_v50  ;;  %v1437_v13 = vcombine.high %v1436_v23, %v1436_v23  ;;  %v1445_v2 = vcombine.high %v1444_v25, %v1444_v25 }
 0x2a2   :  { %v2430_v3 = vmax.f32 %v2428_v48, %v2429_v11  ;;  %v3109_v7 = vunpack.c.l.b16 %v12869_v19  ;;  %v3110_v57 = vunpack.c.h.b16 %v12869_v19  ;;  %v1452_v20 = vrot.slane %v14963_v8, %v14327_v17 }
 0x2a3   :  { %v1460_v6 = vrot.slane %v949_v0, %v14327_v17  ;;  %v2431_v40 = vsel %vm1590_vm3, %v1436_v23, -inf  ;;  %v2438_v55 = vsel %vm1590_vm3, %v1437_v13, -inf  ;;  %v2445_v10 = vsel %vm1590_vm3, %v1444_v25, -inf }
 0x2a4   :  { %v12871_v39 = vpack.c.bf16 %v2430_v3, %v2423_v35  ;;  %v3213_v46 = vsel %vm3123_vm4, %v3109_v7, %v3107_v12  ;;  %v3219_v56 = vsel %vm3123_vm4, %v3110_v57, %v3108_v27  ;;  %v1453_v36 = vcombine.high %v1452_v20, %v1452_v20 }
 0x2a5   :  { %v3214_v59 = vsel %vm3125_vm6, %v3111_v63, %v3213_v46  ;;  %v3220_v15 = vsel %vm3125_vm6, %v3112_v28, %v3219_v56  ;;  %v1461_v5 = vcombine.high %v1460_v6, %v1460_v6  ;;  %v2432_v8 = vrot.slane %v2431_v40, 4 }
 0x2a6   :  { %v3113_v24 = vunpack.c.l.b16 %v12871_v39  ;;  %v3114_v62 = vunpack.c.h.b16 %v12871_v39  ;;  %v2439_v22 = vrot.slane %v2438_v55, 4  ;;  %v2446_v44 = vrot.slane %v2445_v10, 4 }
 0x2a7   :  { %v2433_v60 = vmax.f32 %v2431_v40, %v2432_v8  ;;  %v2452_v42 = vsel %vm1590_vm3, %v1445_v2, -inf  ;;  %v2459_v9 = vsel %vm1590_vm3, %v1452_v20, -inf  ;;  %v2466_v33 = vsel %vm1590_vm3, %v1453_v36, -inf  ;;  %v14992_v20 = vld [vmem:[#allocation2 + $0x8] sm:$0x11] }
 0x2a8   :  { %v3215_v4 = vsel %vm2490_vm1, %v3113_v24, %v3214_v59  ;;  %v3221_v37 = vsel %vm2490_vm1, %v3114_v62, %v3220_v15  ;;  %v2440_v41 = vmax.f32 %v2438_v55, %v2439_v22  ;;  %v2447_v49 = vmax.f32 %v2445_v10, %v2446_v44 }
 0x2a9   :  { %v2434_v1 = vrot.slane %v2433_v60, 2  ;;  %v2453_v14 = vrot.slane %v2452_v42, 4  ;;  %v2460_v38 = vrot.slane %v2459_v9, 4  ;;  %v2467_v58 = vrot.slane %v2466_v33, 4 }
 0x2aa   :  { %v2441_v61 = vrot.slane %v2440_v41, 2  ;;  %v2448_v21 = vrot.slane %v2447_v49, 2  ;;  %v2473_v34 = vsel %vm1590_vm3, %v1460_v6, -inf  ;;  %v2480_v30 = vsel %vm1590_vm3, %v1461_v5, -inf }
 0x2ab   :  { %v2435_v18 = vmax.f32 %v2433_v60, %v2434_v1  ;;  %v2454_v43 = vmax.f32 %v2452_v42, %v2453_v14  ;;  %v2461_v48 = vmax.f32 %v2459_v9, %v2460_v38  ;;  %v2468_v47 = vmax.f32 %v2466_v33, %v2467_v58  ;;  %v14998_v1 = vld [vmem:[#allocation2] sm:$0xff] }
 0x2ac   :  { %v2442_v0 = vmax.f32 %v2440_v41, %v2441_v61  ;;  %v2449_v35 = vmax.f32 %v2447_v49, %v2448_v21  ;;  %v2474_v50 = vrot.slane %v2473_v34, 4  ;;  %v2481_v23 = vrot.slane %v2480_v30, 4  ;;  %v15002_v21 = vld [vmem:[#allocation2 + $0x40] sm:$0x11] }
 0x2ad   :  { %v2436_v25 = vrot.slane %v2435_v18, 1  ;;  %v2455_v11 = vrot.slane %v2454_v43, 2  ;;  %v2462_v19 = vrot.slane %v2461_v48, 2  ;;  %v2469_v12 = vrot.slane %v2468_v47, 2 }
 0x2ae   :  { %v2443_v27 = vrot.slane %v2442_v0, 1  ;;  %v2450_v63 = vrot.slane %v2449_v35, 1  ;;  %v2475_v28 = vmax.f32 %v2473_v34, %v2474_v50  ;;  %v2482_v13 = vmax.f32 %v2480_v30, %v2481_v23  ;;  %v15004_v34 = vld [vmem:[#allocation2 + $0x38] sm:$0xff] }
 0x2af   :  { %v2437_v2 = vmax.f32 %v2435_v18, %v2436_v25  ;;  %v2456_v3 = vmax.f32 %v2454_v43, %v2455_v11  ;;  %v2463_v7 = vmax.f32 %v2461_v48, %v2462_v19  ;;  %v2470_v57 = vmax.f32 %v2468_v47, %v2469_v12  ;;  %v3307_v48 = vld [vmem:[#allocation2 + $0x50] sm:$0x11]  ;;  %v15018_v19 = vld [vmem:[#allocation2 + $0x20] sm:$0x11] }
 0x2b0   :  { %v2444_v6 = vmax.f32 %v2442_v0, %v2443_v27  ;;  %v2451_v40 = vmax.f32 %v2449_v35, %v2450_v63  ;;  %v2476_v55 = vrot.slane %v2475_v28, 2  ;;  %v2483_v10 = vrot.slane %v2482_v13, 2  ;;  %v15016_v11 = vld [vmem:[#allocation2 + $0x30] sm:$0xff] }
 0x2b1   :  { %v2457_v39 = vrot.slane %v2456_v3, 1  ;;  %v2464_v46 = vrot.slane %v2463_v7, 1  ;;  %v2471_v56 = vrot.slane %v2470_v57, 1  ;;  %v3399_v36 = vrot.slane %v3397_v16, 5 }
 0x2b2   :  { %v2477_v59 = vmax.f32 %v2475_v28, %v2476_v55  ;;  %v2484_v15 = vmax.f32 %v2482_v13, %v2483_v10  ;;  %v12872_v5 = vpack.c.bf16 %v2444_v6, %v2437_v2  ;;  %v3403_v8 = vshll.u32 %v14992_v20, 16  ;;  %v3304_v28 = vld [vmem:[#allocation2 + $0x18] sm:$0xff] }
 0x2b3   :  { %v2458_v24 = vmax.f32 %v2456_v3, %v2457_v39  ;;  %v2465_v62 = vmax.f32 %v2463_v7, %v2464_v46  ;;  %v2472_v22 = vmax.f32 %v2470_v57, %v2471_v56  ;;  %v3400_v44 = vor.u32 %v3399_v36, %v14954_v26  ;;  %v15025_v3 = vld [vmem:[#allocation2 + $0x70] sm:$0x11]  ;;  %v15027_v7 = vld [vmem:[#allocation2 + $0x28] sm:$0xff] }
 0x2b4   :  { %v2478_v60 = vrot.slane %v2477_v59, 1  ;;  %v2485_v42 = vrot.slane %v2484_v15, 1  ;;  %v3115_v9 = vunpack.c.l.b16 %v12872_v5  ;;  %v3116_v33 = vunpack.c.h.b16 %v12872_v5  ;;  %v15040_v5 = vld [vmem:[#allocation2 + $0x58] sm:$0xff] }
 0x2b5   :  { %v12873_v41 = vpack.c.bf16 %v2458_v24, %v2451_v40  ;;  %v12874_v49 = vpack.c.bf16 %v2472_v22, %v2465_v62  ;;  %v3401_v16 = vrot.slane %v3400_v44, 4  ;;  %v3405_v35 = vrot.slane %v3403_v8, 5 }
 0x2b6   :  { %v2479_v14 = vmax.f32 %v2477_v59, %v2478_v60  ;;  %v2486_v38 = vmax.f32 %v2484_v15, %v2485_v42  ;;  %v3216_v58 = vsel %vm3129_vm8, %v3115_v9, %v3215_v4  ;;  %v3222_v61 = vsel %vm3129_vm8, %v3116_v33, %v3221_v37  ;;  %v15044_v60 = vld [vmem:[#allocation2 + $0x48] sm:$0x11] }
 0x2b7   :  { %v3117_v26 = vunpack.c.l.b16 %v12873_v41  ;;  %v3118_v30 = vunpack.c.h.b16 %v12873_v41  ;;  %v3119_v18 = vunpack.c.l.b16 %v12874_v49  ;;  %v3120_v43 = vunpack.c.h.b16 %v12874_v49  ;;  %v13068_v41 = vld [vmem:[#allocation11 + $0xe0] ss:$16 sps:$4 sm:$0xff]  }
 0x2b8   :  { %v12875_v47 = vpack.c.bf16 %v2486_v38, %v2479_v14  ;;  %v3408_v4 = vshrl.u32 %v14998_v1, 16  ;;  %v3411_v37 = vshll.u32 %v14998_v1, 16  ;;  %v3417_v25 = vshll.u32 %v15002_v21, 16  ;;  %v15047_v38 = vld [vmem:[#allocation2 + $0x68] sm:$0x11] }
 0x2b9   :  { %v3217_v50 = vsel %vm3131_vm9, %v3117_v26, %v3216_v58  ;;  %v3223_v23 = vsel %vm3131_vm9, %v3118_v30, %v3222_v61  ;;  %v3422_v12 = vshrl.u32 %v15004_v34, 16  ;;  %v3406_v6 = vsel %vm15007_vm13, %v3401_v16, %v3405_v35  ;;  %v13071_v26 = vld [vmem:[#allocation11 + $0xe8] ss:$16 sps:$4 sm:$0xff]   ;;  %v13076_v35 = vld [vmem:[#allocation11 + $0xc4] ss:$16 sps:$4 sm:$0xff]  }
 0x2ba   :  { %v3218_v27 = vsel %vm16507_vm10, %v3119_v18, %v3217_v50  ;;  %v3224_v63 = vsel %vm16507_vm10, %v3120_v43, %v3223_v23  ;;  %v3308_v13 = vsel %vm14286_vm12, %v12875_v47, %v3307_v48  ;;  %v3410_v2 = vrot.slane %v3408_v4, 4  ;;  %v13079_v4 = vld [vmem:[#allocation11 + $0xcc] ss:$16 sps:$4 sm:$0xff]   ;;  %vm6668_vm10 = vmand %vm4599_vm15, %vm6667_vm11 }
 0x2bb   :  { %v3239_v57 = vpack.c.b16 %v3224_v63, %v3218_v27  ;;  %3309 = vst [vmem:[#allocation2 + $0x50] sm:$0x11] %v3308_v13  ;;  %v3413_v40 = vrot.slane %v3411_v37, 5  ;;  %v3424_v55 = vrot.slane %v3422_v12, 4  ;;  %v3425_v10 = vshll.u32 %v15004_v34, 16 }
 0x2bc   :  { %v3431_v39 = vshll.u32 %v15018_v19, 16  ;;  %v3436_v46 = vshrl.u32 %v15016_v11, 16  ;;  %v3439_v56 = vshll.u32 %v15016_v11, 16  ;;  %v3445_v15 = vshll.u32 %v15025_v3, 16  ;;  %v15055_v63 = vld [vmem:[#allocation2 + $0x78] sm:$0x11] }
 0x2bd   :  { %v15037_v36 = vsel %vm14294_vm5, %v3239_v57, %v3304_v28  ;;  %v3414_v59 = vor.u32 %v3413_v40, %v3410_v2  ;;  %v3450_v8 = vshrl.u32 %v15027_v7, 16  ;;  %v3419_v24 = vrot.slane %v3417_v25, 5  ;;  %v13077_v40 = vld [vmem:[#allocation11 + $0xc8] ss:$16 sps:$4 sm:$0xff]  }
 0x2be   :  { %3306 = vst [vmem:[#allocation2 + $0x18] sm:$0xff] %v15037_v36  ;;  %v3427_v62 = vrot.slane %v3425_v10, 5  ;;  %v3438_v22 = vrot.slane %v3436_v46, 4  ;;  %v3441_v44 = vrot.slane %v3439_v56, 5  ;;  %v3433_v9 = vrot.slane %v3431_v39, 5 }
 0x2bf   :  { %v3415_v42 = vrot.slane %v3414_v59, 4  ;;  %v3452_v31 = vrot.slane %v3450_v8, 4  ;;  %v3453_v33 = vshll.u32 %v15027_v7, 16  ;;  %v3447_v14 = vrot.slane %v3445_v15, 5  ;;  %v13082_v56 = vld [vmem:[#allocation11 + $0xa4] ss:$16 sps:$4 sm:$0xff]  }
 0x2c0   :  { %v3428_v49 = vor.u32 %v3427_v62, %v3424_v55  ;;  %v3442_v16 = vor.u32 %v3441_v44, %v3438_v22  ;;  %v3464_v58 = vshrl.u32 %v15040_v5, 16  ;;  %v3459_v18 = vshll.u32 %v15044_v60, 16  ;;  %v13085_v62 = vld [vmem:[#allocation11 + $0xac] ss:$16 sps:$4 sm:$0xff]  }
 0x2c1   :  { %v3420_v61 = vsel %vm15007_vm13, %v3415_v42, %v3419_v24  ;;  %v3455_v30 = vrot.slane %v3453_v33, 5  ;;  %v3467_v43 = vshll.u32 %v15040_v5, 16  ;;  %v3473_v27 = vshll.u32 %v15047_v38, 16 }
 0x2c2   :  { %v12027_v48 = vcombine.low %v3406_v6, %v3420_v61  ;;  %v12028_v47 = vcombine.high %v3406_v6, %v3420_v61  ;;  %v3429_v37 = vrot.slane %v3428_v49, 4  ;;  %v3443_v50 = vrot.slane %v3442_v16, 4  ;;  %v15061_v2 = vld [vmem:[#allocation2 + $0x50] sm:$0x11]  ;;  %v4574_v49 = vld [vmem:[#allocation2 + $0x60] sm:$0xee] }
 0x2c3   :  { %v3456_v23 = vor.u32 %v3455_v30, %v3452_v31  ;;  %v3466_v25 = vrot.slane %v3464_v58, 4  ;;  %v3469_v12 = vrot.slane %v3467_v43, 5  ;;  %v3478_v57 = vshrl.u32 %v14948_v45, 16  ;;  %v13074_v6 = vld [vmem:[#allocation11 + $0xc0] ss:$16 sps:$4 sm:$0xff]  }
 0x2c4   :  { %3954 = vmatprep.mubr.bf16.mxu0 %v12028_v47  ;;  %4027 = vmatprep.mubr.bf16.mxu1 %v12028_v47  ;;  %v3434_v28 = vsel %vm15007_vm13, %v3429_v37, %v3433_v9  ;;  %v3448_v13 = vsel %vm15007_vm13, %v3443_v50, %v3447_v14  ;;  %v3461_v39 = vrot.slane %v3459_v18, 5  ;;  %v3481_v15 = vshll.u32 %v14948_v45, 16  ;;  %v13080_v16 = vld [vmem:[#allocation11 + $0xa0] ss:$16 sps:$4 sm:$0xff]   ;;  %v13083_v14 = vld [vmem:[#allocation11 + $0xa8] ss:$16 sps:$4 sm:$0xff]  }
 0x2c5   :  { %3955 = vmatmul.mubr.bf16.vlgmr.msra.gmra.mxu0 %v12027_v48  ;;  %4028 = vmatmul.mubr.bf16.vlgmr.msra.gmra.mxu1 %v12027_v48  ;;  %v12030_v55 = vcombine.high %v3434_v28, %v3448_v13  ;;  %v3457_v10 = vrot.slane %v3456_v23, 4  ;;  %v3470_v46 = vor.u32 %v3469_v12, %v3466_v25  ;;  %v3480_v59 = vrot.slane %v3478_v57, 4  ;;  %v4575_v47 = vld [vmem:[#allocation2] sm:$0xee]  ;;  %v13089_v12 = vld [vmem:[#allocation11 + $0x88] ss:$16 sps:$4 sm:$0xff]  }
 0x2c6   :  { %4429 = vmatpush1.bf16.msra.mxu0 %v13068_v41  ;;  %4502 = vmatpush1.bf16.msra.mxu1 %v13071_v26  ;;  %v3487_v8 = vshll.u32 %v15055_v63, 16  ;;  %v3492_v24 = vshrl.u32 %v15037_v36, 16  ;;  %v3475_v44 = vrot.slane %v3473_v27, 5  ;;  %v3495_v42 = vshll.u32 %v15037_v36, 16  ;;  %v13086_v25 = vld [vmem:[#allocation11 + $0x80] ss:$16 sps:$4 sm:$0xff]  }
 0x2c7   :  { %4430 = vmatprep.subr.bf16.mxu0 %v13076_v35  ;;  %4503 = vmatprep.subr.bf16.mxu1 %v13079_v4  ;;  %v3471_v22 = vrot.slane %v3470_v46, 4  ;;  %v3501_v9 = vshll.u32 %v15061_v2, 16  ;;  %v12029_v31 = vcombine.low %v3434_v28, %v3448_v13  ;;  %v3483_v33 = vrot.slane %v3481_v15, 5  ;;  %v13088_v35 = vld [vmem:[#allocation11 + $0x84] ss:$16 sps:$4 sm:$0xff]  }
 0x2c8   :  { %3964 = vmatprep.mubr.bf16.mxu0 %v12030_v55  ;;  %4037 = vmatprep.mubr.bf16.mxu1 %v12030_v55  ;;  %v3494_v41 = vrot.slane %v3492_v24, 4  ;;  %v3462_v58 = vsel %vm15007_vm13, %v3457_v10, %v3461_v39  ;;  %v3497_v26 = vrot.slane %v3495_v42, 5  ;;  %v15075_v30 = vcombine.low %v14938_v32, %v14998_v1  ;;  %v13091_v4 = vld [vmem:[#allocation11 + $0x8c] ss:$16 sps:$4 sm:$0xff]   ;;  %v4578_v46 = vld [vmem:[#allocation2 + $0x28] sm:$0xee] }
 0x2c9   :  { %v3476_v61 = vsel %vm15007_vm13, %v3471_v22, %v3475_v44  ;;  %v3484_v18 = vor.u32 %v3483_v33, %v3480_v59  ;;  %v15077_v43 = vrot.slane %v3487_v8, 5  ;;  %v3503_v48 = vrot.slane %v3501_v9, 5  ;;  %v4579_v24 = vld [vmem:[#allocation2 + $0x58] sm:$0xee]  ;;  %v4580_v44 = vld [vmem:[#allocation2 + $0x10] sm:$0xee] }
 0x2ca   :  { %4431 = vmatpush1.bf16.msra.mxu0 %v13074_v6  ;;  %4504 = vmatpush1.bf16.msra.mxu1 %v13077_v40  ;;  %v3498_v37 = vor.u32 %v3497_v26, %v3494_v41  ;;  %v15081_v50 = vcombine.high %v15004_v34, %v15016_v11  ;;  %v15085_v23 = vcombine.low %v15004_v34, %v15016_v11  ;;  %v4576_v6 = vld [vmem:[#allocation2 + $0x38] sm:$0xee]  ;;  %v4577_v40 = vld [vmem:[#allocation2 + $0x30] sm:$0xee]  ;;  %v12172_v59 = vrot.slane %v4575_v47, 9 }
 0x2cb   :  { %4432 = vmatprep.subr.bf16.mxu0 %v13082_v56  ;;  %4505 = vmatprep.subr.bf16.mxu1 %v13085_v62  ;;  %v12032_v27 = vcombine.high %v3462_v58, %v3476_v61  ;;  %v15089_v28 = vcombine.high %v15027_v7, %v15040_v5  ;;  %v15093_v13 = vcombine.low %v15027_v7, %v15040_v5  ;;  %v13094_v34 = vld [vmem:[#allocation11 + $0x64] ss:$16 sps:$4 sm:$0xff]   ;;  %v13097_v11 = vld [vmem:[#allocation11 + $0x6c] ss:$16 sps:$4 sm:$0xff]   ;;  %v3485_v55 = vrot.slane %v3484_v18, 4 }
 0x2cc   :  { %v15097_v57 = vcombine.high %v14948_v45, %v15037_v36  ;;  %v3499_v10 = vrot.slane %v3498_v37, 4  ;;  %v15101_v39 = vcombine.low %v14948_v45, %v15037_v36  ;;  %v12171_v5 = vrot.slane %v4574_v49, 9  ;;  %v13092_v42 = vld [vmem:[#allocation11 + $0x60] ss:$16 sps:$4 sm:$0xff]   ;;  %v13115_v36 = vld [vmem:[#allocation11 + $0xc] ss:$16 sps:$4 sm:$0xff]  }
 0x2cd   :  { %3965 = vmatmul.mubr.bf16.gmra.mxu0 %v12029_v31  ;;  %4038 = vmatmul.mubr.bf16.gmra.mxu1 %v12029_v31  ;;  %v4603_v56 = vrot.slane %v14992_v20, 5  ;;  %v4607_v15 = vrot.slane %v15002_v21, 5  ;;  %vm6665_vm5 = vsmask.f32 2306  ;;  %v12031_v45 = vcombine.low %v3462_v58, %v3476_v61  ;;  %v13110_v7 = vld [vmem:[#allocation11] ss:$16 sps:$4 sm:$0xff]  }
 0x2ce   :  { %4433 = vmatpush1.bf16.msra.mxu0 %v13080_v16  ;;  %4506 = vmatpush1.bf16.msra.mxu1 %v13083_v14  ;;  %vm15112_vm7 = vmand %vm4598_vm14, %vm6665_vm5  ;;  %v12173_v8 = vrot.slane %v4576_v6, 9  ;;  %v3504_v20 = vsel %vm15007_vm13, %v3499_v10, %v3503_v48  ;;  %v4611_v22 = vrot.slane %v15018_v19, 5  ;;  %v12174_v41 = vrot.slane %v4577_v40, 9  ;;  %v4581_v16 = vld [vmem:[#allocation2 + $0x18] sm:$0xee] }
 0x2cf   :  { %4434 = vmatprep.subr.bf16.mxu0 %v13088_v35  ;;  %4507 = vmatprep.subr.bf16.mxu1 %v13091_v4  ;;  %v4604_v21 = vsel %vm15105_vm0, %v12171_v5, %v4603_v56  ;;  %v4608_v62 = vsel %vm15105_vm0, %v12172_v59, %v4607_v15  ;;  %vm15130_vm14 = vmor %vm6668_vm10, %vm15112_vm7  ;;  %v4615_v49 = vrot.slane %v15025_v3, 5  ;;  %v13095_v14 = vld [vmem:[#allocation11 + $0x68] ss:$16 sps:$4 sm:$0xff]   ;;  %v13100_v19 = vld [vmem:[#allocation11 + $0x44] ss:$16 sps:$4 sm:$0xff]   ;;  %v3490_v58 = vsel %vm15007_vm13, %v3485_v55, %v15077_v43 }
 0x2d0   :  { %3974 = vmatprep.mubr.bf16.mxu0 %v12032_v27  ;;  %4047 = vmatprep.mubr.bf16.mxu1 %v12032_v27  ;;  %v15124_v9 = vcombine.low %v4604_v21, %v4608_v62  ;;  %v15126_v31 = vcombine.high %v4604_v21, %v4608_v62  ;;  %v4612_v61 = vsel %vm15105_vm0, %v12173_v8, %v4611_v22  ;;  %v12175_v26 = vrot.slane %v4578_v46, 9  ;;  %v13103_v48 = vld [vmem:[#allocation11 + $0x4c] ss:$16 sps:$4 sm:$0xff]   ;;  %v13101_v40 = vld [vmem:[#allocation11 + $0x48] ss:$16 sps:$4 sm:$0xff]  }
 0x2d1   :  { %v12176_v18 = vrot.slane %v4579_v24, 9  ;;  %v4616_v3 = vsel %vm15105_vm0, %v12174_v41, %v4615_v49  ;;  %v4619_v47 = vrot.slane %v15044_v60, 5  ;;  %v4623_v35 = vrot.slane %v15047_v38, 5  ;;  %v13098_v38 = vld [vmem:[#allocation11 + $0x40] ss:$16 sps:$4 sm:$0xff]  }
 0x2d2   :  { %4435 = vmatpush1.bf16.msra.mxu0 %v13086_v25  ;;  %4508 = vmatpush1.bf16.msra.mxu1 %v13089_v12  ;;  %v12177_v4 = vrot.slane %v4580_v44, 9  ;;  %v12034_v37 = vcombine.high %v3490_v58, %v3504_v20  ;;  %v15144_v25 = vcombine.high %v4612_v61, %v4616_v3  ;;  %v15146_v0 = vcombine.low %v4612_v61, %v4616_v3  ;;  %v13106_v55 = vld [vmem:[#allocation11 + $0x24] ss:$16 sps:$4 sm:$0xff]   ;;  %v13109_v10 = vld [vmem:[#allocation11 + $0x2c] ss:$16 sps:$4 sm:$0xff]  }
 0x2d3   :  { %4436 = vmatprep.subr.bf16.mxu0 %v13094_v34  ;;  %4509 = vmatprep.subr.bf16.mxu1 %v13097_v11  ;;  %v12178_v43 = vrot.slane %v4581_v16, 9  ;;  %v4620_v12 = vsel %vm15105_vm0, %v12175_v26, %v4619_v47  ;;  %v4624_v27 = vsel %vm15105_vm0, %v12176_v18, %v4623_v35  ;;  %v4627_v6 = vrot.slane %v15055_v63, 5  ;;  %v13104_v59 = vld [vmem:[#allocation11 + $0x20] ss:$16 sps:$4 sm:$0xff]   ;;  %v13107_v15 = vld [vmem:[#allocation11 + $0x28] ss:$16 sps:$4 sm:$0xff]  }
 0x2d4   :  { %v4631_v60 = vrot.slane %v15061_v2, 5  ;;  %v15154_v34 = vcombine.high %v4620_v12, %v4624_v27  ;;  %v15156_v11 = vcombine.low %v4620_v12, %v4624_v27  ;;  %v12033_v56 = vcombine.low %v3490_v58, %v3504_v20  ;;  %v13113_v8 = vld [vmem:[#allocation11 + $0x8] ss:$16 sps:$4 sm:$0xff]   ;;  %v13118_v20 = vld [vmem:[#allocation11 + $0x1e4] ss:$16 sps:$4 sm:$0xff]  }
 0x2d5   :  { %3975 = vmatmul.mubr.bf16.gmra.mxu0 %v12031_v45  ;;  %4048 = vmatmul.mubr.bf16.gmra.mxu1 %v12031_v45  ;;  %v4628_v5 = vsel %vm15105_vm0, %v12177_v4, %v4627_v6  ;;  %v13112_v45 = vld [vmem:[#allocation11 + $0x4] ss:$16 sps:$4 sm:$0xff]   ;;  %v12100_v24 = vcombine.high %v14938_v32, %v14998_v1  ;;  %v13121_v21 = vld [vmem:[#allocation11 + $0x1ec] ss:$16 sps:$4 sm:$0xff]   ;;  %v13116_v62 = vld [vmem:[#allocation11 + $0x1e0] ss:$16 sps:$4 sm:$0xff]  }
 0x2d6   :  { %4437 = vmatpush1.bf16.msra.mxu0 %v13092_v42  ;;  %4510 = vmatpush1.bf16.msra.mxu1 %v13095_v14  ;;  %v4632_v63 = vsel %vm15105_vm0, %v12178_v43, %v4631_v60  ;;  %v13119_v22 = vld [vmem:[#allocation11 + $0x1e8] ss:$16 sps:$4 sm:$0xff]   ;;  %v13124_v44 = vld [vmem:[#allocation11 + $0x1c4] ss:$16 sps:$4 sm:$0xff]   ;;  %v13127_v42 = vld [vmem:[#allocation11 + $0x1cc] ss:$16 sps:$4 sm:$0xff]  }
 0x2d7   :  { %4438 = vmatprep.subr.bf16.mxu0 %v13100_v19  ;;  %4511 = vmatprep.subr.bf16.mxu1 %v13103_v48  ;;  %v15162_v2 = vcombine.high %v4628_v5, %v4632_v63  ;;  %v15164_v46 = vcombine.low %v4628_v5, %v4632_v63  ;;  %v13122_v41 = vld [vmem:[#allocation11 + $0x1c0] ss:$16 sps:$4 sm:$0xff]   ;;  %v13125_v49 = vld [vmem:[#allocation11 + $0x1c8] ss:$16 sps:$4 sm:$0xff]   ;;  %v13130_v32 = vld [vmem:[#allocation11 + $0x1a4] ss:$16 sps:$4 sm:$0xff]  }
 0x2d8   :  { %3984 = vmatprep.mubr.bf16.mxu0 %v12034_v37  ;;  %4057 = vmatprep.mubr.bf16.mxu1 %v12034_v37  ;;  %v13133_v1 = vld [vmem:[#allocation11 + $0x1ac] ss:$16 sps:$4 sm:$0xff]   ;;  %v13128_v16 = vld [vmem:[#allocation11 + $0x1a0] ss:$16 sps:$4 sm:$0xff]   ;;  %v13131_v14 = vld [vmem:[#allocation11 + $0x1a8] ss:$16 sps:$4 sm:$0xff]  }
 0x2d9   :  { %v13136_v19 = vld [vmem:[#allocation11 + $0x184] ss:$16 sps:$4 sm:$0xff]   ;;  %v13139_v58 = vld [vmem:[#allocation11 + $0x18c] ss:$16 sps:$4 sm:$0xff]   ;;  %v13134_v61 = vld [vmem:[#allocation11 + $0x180] ss:$16 sps:$4 sm:$0xff]  }
 0x2da   :  { %4439 = vmatpush1.bf16.msra.mxu0 %v13098_v38  ;;  %4512 = vmatpush1.bf16.msra.mxu1 %v13101_v40  ;;  %v13137_v26 = vld [vmem:[#allocation11 + $0x188] ss:$16 sps:$4 sm:$0xff]   ;;  %v13142_v18 = vld [vmem:[#allocation11 + $0x164] ss:$16 sps:$4 sm:$0xff]   ;;  %v13145_v48 = vld [vmem:[#allocation11 + $0x16c] ss:$16 sps:$4 sm:$0xff]  }
 0x2db   :  { %4440 = vmatprep.subr.bf16.mxu0 %v13106_v55  ;;  %4513 = vmatprep.subr.bf16.mxu1 %v13109_v10  ;;  %v13140_v3 = vld [vmem:[#allocation11 + $0x160] ss:$16 sps:$4 sm:$0xff]   ;;  %v13143_v47 = vld [vmem:[#allocation11 + $0x168] ss:$16 sps:$4 sm:$0xff]   ;;  %v13148_v35 = vld [vmem:[#allocation11 + $0x144] ss:$16 sps:$4 sm:$0xff]  }
 0x2dc   :  { %v13151_v4 = vld [vmem:[#allocation11 + $0x14c] ss:$16 sps:$4 sm:$0xff]   ;;  %v13146_v37 = vld [vmem:[#allocation11 + $0x140] ss:$16 sps:$4 sm:$0xff]   ;;  %v13149_v43 = vld [vmem:[#allocation11 + $0x148] ss:$16 sps:$4 sm:$0xff]  }
 0x2dd   :  { %3985 = vmatmul.mubr.bf16.gmra.mxu0 %v12033_v56  ;;  %4058 = vmatmul.mubr.bf16.gmra.mxu1 %v12033_v56  ;;  %v13154_v12 = vld [vmem:[#allocation11 + $0x124] ss:$16 sps:$4 sm:$0xff]   ;;  %v13157_v27 = vld [vmem:[#allocation11 + $0x12c] ss:$16 sps:$4 sm:$0xff]   ;;  %v13152_v6 = vld [vmem:[#allocation11 + $0x120] ss:$16 sps:$4 sm:$0xff]  }
 0x2de   :  { %4441 = vmatpush1.bf16.msra.mxu0 %v13104_v59  ;;  %4514 = vmatpush1.bf16.msra.mxu1 %v13107_v15  ;;  %v13155_v60 = vld [vmem:[#allocation11 + $0x128] ss:$16 sps:$4 sm:$0xff]   ;;  %v13160_v38 = vld [vmem:[#allocation11 + $0x104] ss:$16 sps:$4 sm:$0xff]   ;;  %v13163_v40 = vld [vmem:[#allocation11 + $0x10c] ss:$16 sps:$4 sm:$0xff]  }
 0x2df   :  { %4442 = vmatprep.subr.bf16.mxu0 %v13112_v45  ;;  %4515 = vmatprep.subr.bf16.mxu1 %v13115_v36  ;;  %v13158_v55 = vld [vmem:[#allocation11 + $0x100] ss:$16 sps:$4 sm:$0xff]   ;;  %v13161_v10 = vld [vmem:[#allocation11 + $0x108] ss:$16 sps:$4 sm:$0xff]   ;;  %v13166_v5 = vld [vmem:[#allocation11 + $0x4e4] ss:$16 sps:$4 sm:$0xff]  }
 0x2e0   :  { %4460 = vmatprep.mubr.bf16.mxu0 %v12100_v24  ;;  %4533 = vmatprep.mubr.bf16.mxu1 %v12100_v24  ;;  %v13169_v63 = vld [vmem:[#allocation11 + $0x4ec] ss:$16 sps:$4 sm:$0xff]   ;;  %v13164_v56 = vld [vmem:[#allocation11 + $0x4e0] ss:$16 sps:$4 sm:$0xff]   ;;  %v13167_v59 = vld [vmem:[#allocation11 + $0x4e8] ss:$16 sps:$4 sm:$0xff]  }
 0x2e1   :  { %v13173_v15 = vld [vmem:[#allocation11 + $0x4c4] ss:$16 sps:$4 sm:$0xff]   ;;  %v13176_v45 = vld [vmem:[#allocation11 + $0x4cc] ss:$16 sps:$4 sm:$0xff]   ;;  %v13171_v36 = vld [vmem:[#allocation11 + $0x4c0] ss:$16 sps:$4 sm:$0xff]  }
 0x2e2   :  { %4443 = vmatpush1.bf16.msra.mxu0 %v13110_v7  ;;  %4516 = vmatpush1.bf16.msra.mxu1 %v13113_v8  ;;  %v13174_v7 = vld [vmem:[#allocation11 + $0x4c8] ss:$16 sps:$4 sm:$0xff]   ;;  %v13180_v8 = vld [vmem:[#allocation11 + $0x4a4] ss:$16 sps:$4 sm:$0xff]   ;;  %v13183_v24 = vld [vmem:[#allocation11 + $0x4ac] ss:$16 sps:$4 sm:$0xff]  }
 0x2e3   :  { %4444 = vmatprep.subr.bf16.mxu0 %v13118_v20  ;;  %4517 = vmatprep.subr.bf16.mxu1 %v13121_v21  ;;  %v13178_v20 = vld [vmem:[#allocation11 + $0x4a0] ss:$16 sps:$4 sm:$0xff]   ;;  %v13181_v21 = vld [vmem:[#allocation11 + $0x4a8] ss:$16 sps:$4 sm:$0xff]   ;;  %vm6283_vm10 = vsmask.f32 7946 }
 0x2e4   :  { %vm6286_vm13 = vsmask.f32 7962  ;;  %vm6284_vm15 = vmand %vm3123_vm4, %vm6283_vm10  ;;  %vm6911_vm7 = vsmask.f32 3336  ;;  %vm6913_vm11 = vsmask.f32 5392 }
 0x2e5   :  { %vm6287_vm0 = vmand %vm3131_vm9, %vm6286_vm13  ;;  %vm6915_vm10 = vsmask.f32 7448 }
 0x2e6   :  { %4445 = vmatpush2.bf16.msra.mxu0 %v13116_v62  ;;  %4518 = vmatpush2.bf16.msra.mxu1 %v13119_v22  ;;  %v13187_v62 = vld [vmem:[#allocation11 + $0x484] ss:$16 sps:$4 sm:$0xff]   ;;  %v13188_v22 = vld [vmem:[#allocation11 + $0x488] ss:$16 sps:$4 sm:$0xff]   ;;  %vm15222_vm5 = vmor %vm6287_vm0, %vm6284_vm15 }
 0x2e7   :  { %4446 = vmatprep.subr.bf16.mxu0 %v13124_v44  ;;  %4519 = vmatprep.subr.bf16.mxu1 %v13127_v42  ;;  %v13194_v44 = vld [vmem:[#allocation11 + $0x464] ss:$16 sps:$4 sm:$0xff]   ;;  %v13197_v42 = vld [vmem:[#allocation11 + $0x46c] ss:$16 sps:$4 sm:$0xff]  }
 0x2ea   :  { %4447 = vmatpush2.bf16.msra.mxu0 %v13122_v41  ;;  %4520 = vmatpush2.bf16.msra.mxu1 %v13125_v49  ;;  %v13192_v41 = vld [vmem:[#allocation11 + $0x460] ss:$16 sps:$4 sm:$0xff]   ;;  %v13195_v49 = vld [vmem:[#allocation11 + $0x468] ss:$16 sps:$4 sm:$0xff]  }
 0x2eb   :  { %4448 = vmatprep.subr.bf16.mxu0 %v13130_v32  ;;  %4521 = vmatprep.subr.bf16.mxu1 %v13133_v1  ;;  %v13200_v32 = vld [vmem:[#allocation11 + $0x444] ss:$16 sps:$4 sm:$0xff]   ;;  %v13201_v1 = vld [vmem:[#allocation11 + $0x448] ss:$16 sps:$4 sm:$0xff]  }
 0x2ee   :  { %4449 = vmatpush2.bf16.msra.mxu0 %v13128_v16  ;;  %4522 = vmatpush2.bf16.msra.mxu1 %v13131_v14  ;;  %v13206_v16 = vld [vmem:[#allocation11 + $0x424] ss:$16 sps:$4 sm:$0xff]   ;;  %v13209_v14 = vld [vmem:[#allocation11 + $0x42c] ss:$16 sps:$4 sm:$0xff]  }
 0x2ef   :  { %4450 = vmatprep.subr.bf16.mxu0 %v13136_v19  ;;  %4523 = vmatprep.subr.bf16.mxu1 %v13139_v58  ;;  %v13204_v19 = vld [vmem:[#allocation11 + $0x420] ss:$16 sps:$4 sm:$0xff]   ;;  %v13207_v58 = vld [vmem:[#allocation11 + $0x428] ss:$16 sps:$4 sm:$0xff]  }
 0x2f2   :  { %4451 = vmatpush2.bf16.msra.mxu0 %v13134_v61  ;;  %4524 = vmatpush2.bf16.msra.mxu1 %v13137_v26  ;;  %v13212_v61 = vld [vmem:[#allocation11 + $0x404] ss:$16 sps:$4 sm:$0xff]   ;;  %v13213_v26 = vld [vmem:[#allocation11 + $0x408] ss:$16 sps:$4 sm:$0xff]  }
 0x2f3   :  { %4452 = vmatprep.subr.bf16.mxu0 %v13142_v18  ;;  %4525 = vmatprep.subr.bf16.mxu1 %v13145_v48  ;;  %v13218_v18 = vld [vmem:[#allocation11 + $0x5e4] ss:$16 sps:$4 sm:$0xff]   ;;  %v13221_v48 = vld [vmem:[#allocation11 + $0x5ec] ss:$16 sps:$4 sm:$0xff]  }
 0x2f6   :  { %4453 = vmatpush2.bf16.msra.mxu0 %v13140_v3  ;;  %4526 = vmatpush2.bf16.msra.mxu1 %v13143_v47  ;;  %v13216_v3 = vld [vmem:[#allocation11 + $0x5e0] ss:$16 sps:$4 sm:$0xff]   ;;  %v13219_v47 = vld [vmem:[#allocation11 + $0x5e8] ss:$16 sps:$4 sm:$0xff]  }
 0x2f7   :  { %4454 = vmatprep.subr.bf16.mxu0 %v13148_v35  ;;  %4527 = vmatprep.subr.bf16.mxu1 %v13151_v4  ;;  %v13224_v35 = vld [vmem:[#allocation11 + $0x5c4] ss:$16 sps:$4 sm:$0xff]   ;;  %v13222_v4 = vld [vmem:[#allocation11 + $0x5c0] ss:$16 sps:$4 sm:$0xff]  }
 0x2fa   :  { %4455 = vmatpush2.bf16.msra.mxu0 %v13146_v37  ;;  %4528 = vmatpush2.bf16.msra.mxu1 %v13149_v43  ;;  %v13230_v37 = vld [vmem:[#allocation11 + $0x5a4] ss:$16 sps:$4 sm:$0xff]   ;;  %v13233_v43 = vld [vmem:[#allocation11 + $0x5ac] ss:$16 sps:$4 sm:$0xff]  }
 0x2fb   :  { %4456 = vmatprep.subr.bf16.mxu0 %v13154_v12  ;;  %4529 = vmatprep.subr.bf16.mxu1 %v13157_v27  ;;  %v13228_v12 = vld [vmem:[#allocation11 + $0x5a0] ss:$16 sps:$4 sm:$0xff]   ;;  %v13231_v27 = vld [vmem:[#allocation11 + $0x5a8] ss:$16 sps:$4 sm:$0xff]  }
 0x2fe   :  { %4457 = vmatpush2.bf16.msra.mxu0 %v13152_v6  ;;  %4530 = vmatpush2.bf16.msra.mxu1 %v13155_v60  ;;  %v13236_v6 = vld [vmem:[#allocation11 + $0x584] ss:$16 sps:$4 sm:$0xff]   ;;  %v13239_v60 = vld [vmem:[#allocation11 + $0x58c] ss:$16 sps:$4 sm:$0xff]  }
 0x2ff   :  { %4458 = vmatprep.subr.bf16.mxu0 %v13160_v38  ;;  %4531 = vmatprep.subr.bf16.mxu1 %v13163_v40  ;;  %v13234_v38 = vld [vmem:[#allocation11 + $0x580] ss:$16 sps:$4 sm:$0xff]   ;;  %v13237_v40 = vld [vmem:[#allocation11 + $0x588] ss:$16 sps:$4 sm:$0xff]  }
 0x302   :  { %4459 = vmatpush2.bf16.msra.mxu0 %v13158_v55  ;;  %4532 = vmatpush2.bf16.msra.mxu1 %v13161_v10  ;;  %v13242_v55 = vld [vmem:[#allocation11 + $0x564] ss:$16 sps:$4 sm:$0xff]   ;;  %v13245_v10 = vld [vmem:[#allocation11 + $0x56c] ss:$16 sps:$4 sm:$0xff]  }
 0x303   :  { %5050 = vmatprep.subr.bf16.mxu0 %v13166_v5  ;;  %5123 = vmatprep.subr.bf16.mxu1 %v13169_v63  ;;  %v13240_v5 = vld [vmem:[#allocation11 + $0x560] ss:$16 sps:$4 sm:$0xff]   ;;  %v13243_v63 = vld [vmem:[#allocation11 + $0x568] ss:$16 sps:$4 sm:$0xff]  }
 0x305   :  { %4461 = vmatmul.mubr.bf16.vlgmr.msra.gmra.mxu0 %v15075_v30  ;;  %4534 = vmatmul.mubr.bf16.vlgmr.msra.gmra.mxu1 %v15075_v30  ;;  %v13190_v30 = vld [vmem:[#allocation11 + $0x48c] ss:$16 sps:$4 sm:$0xff]  }
 0x306   :  { %4470 = vmatprep.mubr.bf16.mxu0 %v15081_v50  ;;  %4543 = vmatprep.mubr.bf16.mxu1 %v15081_v50  ;;  %v13185_v50 = vld [vmem:[#allocation11 + $0x480] ss:$16 sps:$4 sm:$0xff]  }
 0x307   :  { %5051 = vmatpush1.bf16.msra.mxu0 %v13164_v56  ;;  %5124 = vmatpush1.bf16.msra.mxu1 %v13167_v59  ;;  %v13248_v56 = vld [vmem:[#allocation11 + $0x544] ss:$16 sps:$4 sm:$0xff]   ;;  %v13251_v59 = vld [vmem:[#allocation11 + $0x54c] ss:$16 sps:$4 sm:$0xff]  }
 0x308   :  { %5052 = vmatprep.subr.bf16.mxu0 %v13173_v15  ;;  %5125 = vmatprep.subr.bf16.mxu1 %v13176_v45  ;;  %v13246_v15 = vld [vmem:[#allocation11 + $0x540] ss:$16 sps:$4 sm:$0xff]   ;;  %v13249_v45 = vld [vmem:[#allocation11 + $0x548] ss:$16 sps:$4 sm:$0xff]  }
 0x30b   :  { %5053 = vmatpush1.bf16.msra.mxu0 %v13171_v36  ;;  %5126 = vmatpush1.bf16.msra.mxu1 %v13174_v7  ;;  %v13254_v36 = vld [vmem:[#allocation11 + $0x524] ss:$16 sps:$4 sm:$0xff]   ;;  %v13257_v7 = vld [vmem:[#allocation11 + $0x52c] ss:$16 sps:$4 sm:$0xff]  }
 0x30c   :  { %5054 = vmatprep.subr.bf16.mxu0 %v13180_v8  ;;  %5127 = vmatprep.subr.bf16.mxu1 %v13183_v24  ;;  %v13252_v8 = vld [vmem:[#allocation11 + $0x520] ss:$16 sps:$4 sm:$0xff]   ;;  %v13255_v24 = vld [vmem:[#allocation11 + $0x528] ss:$16 sps:$4 sm:$0xff]  }
 0x30d   :  { %4471 = vmatmul.mubr.bf16.gmra.mxu0 %v15085_v23  ;;  %4544 = vmatmul.mubr.bf16.gmra.mxu1 %v15085_v23  ;;  %v13203_v23 = vld [vmem:[#allocation11 + $0x44c] ss:$16 sps:$4 sm:$0xff]  }
 0x30e   :  { %4480 = vmatprep.mubr.bf16.mxu0 %v15089_v28  ;;  %4553 = vmatprep.mubr.bf16.mxu1 %v15089_v28  ;;  %v13198_v28 = vld [vmem:[#allocation11 + $0x440] ss:$16 sps:$4 sm:$0xff]  }
 0x30f   :  { %5055 = vmatpush1.bf16.msra.mxu0 %v13178_v20  ;;  %5128 = vmatpush1.bf16.msra.mxu1 %v13181_v21  ;;  %v13260_v20 = vld [vmem:[#allocation11 + $0x504] ss:$16 sps:$4 sm:$0xff]   ;;  %v13263_v21 = vld [vmem:[#allocation11 + $0x50c] ss:$16 sps:$4 sm:$0xff]  }
 0x310   :  { %5056 = vmatprep.subr.bf16.mxu0 %v13187_v62  ;;  %5129 = vmatprep.subr.bf16.mxu1 %v13190_v30  ;;  %v13258_v62 = vld [vmem:[#allocation11 + $0x500] ss:$16 sps:$4 sm:$0xff]   ;;  %v13261_v30 = vld [vmem:[#allocation11 + $0x508] ss:$16 sps:$4 sm:$0xff]  }
 0x313   :  { %5057 = vmatpush1.bf16.msra.mxu0 %v13185_v50  ;;  %5130 = vmatpush1.bf16.msra.mxu1 %v13188_v22 }
 0x314   :  { %5058 = vmatprep.subr.bf16.mxu0 %v13194_v44  ;;  %5131 = vmatprep.subr.bf16.mxu1 %v13197_v42 }
 0x315   :  { %4481 = vmatmul.mubr.bf16.gmra.mxu0 %v15093_v13  ;;  %4554 = vmatmul.mubr.bf16.gmra.mxu1 %v15093_v13  ;;  %v13215_v13 = vld [vmem:[#allocation11 + $0x40c] ss:$16 sps:$4 sm:$0xff]  }
 0x316   :  { %4490 = vmatprep.mubr.bf16.mxu0 %v15097_v57  ;;  %4563 = vmatprep.mubr.bf16.mxu1 %v15097_v57  ;;  %v13210_v57 = vld [vmem:[#allocation11 + $0x400] ss:$16 sps:$4 sm:$0xff]  }
 0x317   :  { %5059 = vmatpush1.bf16.msra.mxu0 %v13192_v41  ;;  %5132 = vmatpush1.bf16.msra.mxu1 %v13195_v49 }
 0x318   :  { %5060 = vmatprep.subr.bf16.mxu0 %v13200_v32  ;;  %5133 = vmatprep.subr.bf16.mxu1 %v13203_v23 }
 0x31b   :  { %5061 = vmatpush1.bf16.msra.mxu0 %v13198_v28  ;;  %5134 = vmatpush1.bf16.msra.mxu1 %v13201_v1 }
 0x31c   :  { %5062 = vmatprep.subr.bf16.mxu0 %v13206_v16  ;;  %5135 = vmatprep.subr.bf16.mxu1 %v13209_v14  ;;  %v6258_v14 = vld [vmem:[#allocation3] sm:$0x11] }
 0x31d   :  { %4491 = vmatmul.mubr.bf16.gmra.mxu0 %v15101_v39  ;;  %4564 = vmatmul.mubr.bf16.gmra.mxu1 %v15101_v39  ;;  %v13227_v39 = vld [vmem:[#allocation11 + $0x5cc] ss:$16 sps:$4 sm:$0xff]  }
 0x31e   :  { %5082 = vmatprep.mubr.bf16.mxu0 %v15126_v31  ;;  %5155 = vmatprep.mubr.bf16.mxu1 %v15126_v31  ;;  %v13225_v31 = vld [vmem:[#allocation11 + $0x5c8] ss:$16 sps:$4 sm:$0xff]  }
 0x31f   :  { %5063 = vmatpush1.bf16.msra.mxu0 %v13204_v19  ;;  %5136 = vmatpush1.bf16.msra.mxu1 %v13207_v58 }
 0x320   :  { %5064 = vmatprep.subr.bf16.mxu0 %v13212_v61  ;;  %5137 = vmatprep.subr.bf16.mxu1 %v13215_v13  ;;  %v6259_v61 = vsel %vm14286_vm12, 0, %v6258_v14  ;;  %v6289_v13 = vld [vmem:[#allocation3] sm:$0x44] }
 0x321   :  { %6260 = vst [vmem:[#allocation3] sm:$0x11] %v6259_v61 }
 0x323   :  { %5065 = vmatpush1.bf16.msra.mxu0 %v13210_v57  ;;  %5138 = vmatpush1.bf16.msra.mxu1 %v13213_v26  ;;  %v6290_v26 = vsel %vm15222_vm5, 0, %v6289_v13 }
 0x324   :  { %5066 = vmatprep.subr.bf16.mxu0 %v13218_v18  ;;  %5139 = vmatprep.subr.bf16.mxu1 %v13221_v48  ;;  %6291 = vst [vmem:[#allocation3] sm:$0x44] %v6290_v26 }
 0x327   :  { %5067 = vmatpush2.bf16.msra.mxu0 %v13216_v3  ;;  %5140 = vmatpush2.bf16.msra.mxu1 %v13219_v47 }
 0x328   :  { %5068 = vmatprep.subr.bf16.mxu0 %v13224_v35  ;;  %5141 = vmatprep.subr.bf16.mxu1 %v13227_v39 }
 0x32b   :  { %5069 = vmatpush2.bf16.msra.mxu0 %v13222_v4  ;;  %5142 = vmatpush2.bf16.msra.mxu1 %v13225_v31 }
 0x32c   :  { %5070 = vmatprep.subr.bf16.mxu0 %v13230_v37  ;;  %5143 = vmatprep.subr.bf16.mxu1 %v13233_v43 }
 0x32f   :  { %5071 = vmatpush2.bf16.msra.mxu0 %v13228_v12  ;;  %5144 = vmatpush2.bf16.msra.mxu1 %v13231_v27  ;;  %v6261_v12 = vld [vmem:[#allocation3 + $0x8] sm:$0x11]  ;;  %v6292_v27 = vld [vmem:[#allocation3 + $0x8] sm:$0x44] }
 0x330   :  { %5072 = vmatprep.subr.bf16.mxu0 %v13236_v6  ;;  %5145 = vmatprep.subr.bf16.mxu1 %v13239_v60  ;;  %v6262_v6 = vsel %vm14286_vm12, 0, %v6261_v12  ;;  %v6293_v60 = vsel %vm15222_vm5, 0, %v6292_v27 }
 0x331   :  { %6263 = vst [vmem:[#allocation3 + $0x8] sm:$0x11] %v6262_v6  ;;  %6294 = vst [vmem:[#allocation3 + $0x8] sm:$0x44] %v6293_v60 }
 0x333   :  { %5073 = vmatpush2.bf16.msra.mxu0 %v13234_v38  ;;  %5146 = vmatpush2.bf16.msra.mxu1 %v13237_v40 }
 0x334   :  { %5074 = vmatprep.subr.bf16.mxu0 %v13242_v55  ;;  %5147 = vmatprep.subr.bf16.mxu1 %v13245_v10 }
 0x337   :  { %5075 = vmatpush2.bf16.msra.mxu0 %v13240_v5  ;;  %5148 = vmatpush2.bf16.msra.mxu1 %v13243_v63 }
 0x338   :  { %5076 = vmatprep.subr.bf16.mxu0 %v13248_v56  ;;  %5149 = vmatprep.subr.bf16.mxu1 %v13251_v59 }
 0x33b   :  { %5077 = vmatpush2.bf16.msra.mxu0 %v13246_v15  ;;  %5150 = vmatpush2.bf16.msra.mxu1 %v13249_v45 }
 0x33c   :  { %5078 = vmatprep.subr.bf16.mxu0 %v13254_v36  ;;  %5151 = vmatprep.subr.bf16.mxu1 %v13257_v7 }
 0x33f   :  { %5079 = vmatpush2.bf16.msra.mxu0 %v13252_v8  ;;  %5152 = vmatpush2.bf16.msra.mxu1 %v13255_v24 }
 0x340   :  { %5080 = vmatprep.subr.bf16.mxu0 %v13260_v20  ;;  %5153 = vmatprep.subr.bf16.mxu1 %v13263_v21 }
 0x343   :  { %5081 = vmatpush2.bf16.msra.mxu0 %v13258_v62  ;;  %5154 = vmatpush2.bf16.msra.mxu1 %v13261_v30 }
 0x346   :  { %5083 = vmatmul.mubr.bf16.vlgmr.msra.gmra.mxu0 %v15124_v9  ;;  %5156 = vmatmul.mubr.bf16.vlgmr.msra.gmra.mxu1 %v15124_v9 }
 0x347   :  { %5092 = vmatprep.mubr.bf16.mxu0 %v15144_v25  ;;  %5165 = vmatprep.mubr.bf16.mxu1 %v15144_v25 }
 0x34e   :  { %5093 = vmatmul.mubr.bf16.gmra.mxu0 %v15146_v0  ;;  %5166 = vmatmul.mubr.bf16.gmra.mxu1 %v15146_v0 }
 0x34f   :  { %5102 = vmatprep.mubr.bf16.mxu0 %v15154_v34  ;;  %5175 = vmatprep.mubr.bf16.mxu1 %v15154_v34 }
 0x356   :  { %5103 = vmatmul.mubr.bf16.gmra.mxu0 %v15156_v11  ;;  %5176 = vmatmul.mubr.bf16.gmra.mxu1 %v15156_v11 }
 0x357   :  { %5112 = vmatprep.mubr.bf16.mxu0 %v15162_v2  ;;  %5185 = vmatprep.mubr.bf16.mxu1 %v15162_v2 }
 0x35e   :  { %5113 = vmatmul.mubr.bf16.gmra.mxu0 %v15164_v46  ;;  %5186 = vmatmul.mubr.bf16.gmra.mxu1 %v15164_v46 }
 0x385   :  { %v15198_v9 = vpop.f32.mrf.mxu0  ;;  %v15200_v25 = vpop.f32.mrf.mxu1 }
 0x387   :  { %v15202_v0 = vpop.f32.mrf.mxu0  ;;  %v15204_v50 = vpop.f32.mrf.mxu1 }
 0x389   :  { %v15206_v34 = vpop.f32.mrf.mxu0  ;;  %v15208_v22 = vpop.f32.mrf.mxu1 }
 0x38b   :  { %v15210_v11 = vpop.f32.mrf.mxu0  ;;  %v15212_v44 = vpop.f32.mrf.mxu1 }
 0x38d   :  { %v3966_v2 = vpop.f32.mrf.mxu0  ;;  %v4039_v42 = vpop.f32.mrf.mxu1 }
 0x38f   :  { %v3968_v41 = vpop.f32.mrf.mxu0  ;;  %v4041_v46 = vpop.f32.mrf.mxu1 }
 0x391   :  { %v3970_v49 = vpop.f32.mrf.mxu0  ;;  %v4043_v32 = vpop.f32.mrf.mxu1 }
 0x393   :  { %v3972_v23 = vpop.f32.mrf.mxu0  ;;  %v4045_v28 = vpop.f32.mrf.mxu1 }
 0x395   :  { %v3976_v1 = vpop.f32.mrf.mxu0  ;;  %v4049_v16 = vpop.f32.mrf.mxu1 }
 0x397   :  { %v15214_v19 = vpop.f32.mrf.mxu0  ;;  %v15216_v58 = vpop.f32.mrf.mxu1 }
 0x399   :  { %v15228_v18 = vpop.f32.mrf.mxu0  ;;  %v15230_v48 = vpop.f32.mrf.mxu1 }
 0x39b   :  { %v15232_v3 = vpop.f32.mrf.mxu0  ;;  %v15234_v47 = vpop.f32.mrf.mxu1 }
 0x39d   :  { %v15236_v35 = vpop.f32.mrf.mxu0  ;;  %v15238_v39 = vpop.f32.mrf.mxu1 }
 0x39f   :  { %v15240_v4 = vpop.f32.mrf.mxu0  ;;  %v15242_v31 = vpop.f32.mrf.mxu1 }
 0x3a1   :  { %v15244_v37 = vpop.f32.mrf.mxu0  ;;  %v15246_v43 = vpop.f32.mrf.mxu1 }
 0x3a3   :  { %v15252_v38 = vpop.f32.mrf.mxu0  ;;  %v15254_v40 = vpop.f32.mrf.mxu1 }
 0x3c5   :  { %v15256_v55 = vpop.f32.mrf.mxu0  ;;  %v15258_v10 = vpop.f32.mrf.mxu1 }
 0x3c7   :  { %v15260_v5 = vpop.f32.mrf.mxu0  ;;  %v15262_v63 = vpop.f32.mrf.mxu1 }
 0x3c9   :  { %v15264_v56 = vpop.f32.mrf.mxu0  ;;  %v15266_v59 = vpop.f32.mrf.mxu1 }
 0x3cb   :  { %v15268_v15 = vpop.f32.mrf.mxu0  ;;  %v15270_v45 = vpop.f32.mrf.mxu1 }
 0x3cd   :  { %v4472_v36 = vpop.f32.mrf.mxu0  ;;  %v4545_v7 = vpop.f32.mrf.mxu1 }
 0x3ce   :  { %v15272_v8 = vadd.f32 %v4472_v36, %v3966_v2  ;;  %v15274_v24 = vadd.f32 %v4545_v7, %v4039_v42  ;;  %v13266_v36 = vld [vmem:[#allocation13 + $0x2e4] ss:$16 sps:$4 sm:$0xff]   ;;  %v13269_v7 = vld [vmem:[#allocation13 + $0x2ec] ss:$16 sps:$4 sm:$0xff]  }
 0x3cf   :  { %v4474_v20 = vpop.f32.mrf.mxu0  ;;  %v4547_v21 = vpop.f32.mrf.mxu1  ;;  %7454 = vmatprep.subr.bf16.mxu0 %v13266_v36  ;;  %7507 = vmatprep.subr.bf16.mxu1 %v13269_v7 }
 0x3d0   :  { %v15276_v62 = vadd.f32 %v4474_v20, %v3968_v41  ;;  %v15278_v30 = vadd.f32 %v4547_v21, %v4041_v46  ;;  %v13264_v20 = vld [vmem:[#allocation13 + $0x2e0] ss:$16 sps:$4 sm:$0xff]   ;;  %v13267_v21 = vld [vmem:[#allocation13 + $0x2e8] ss:$16 sps:$4 sm:$0xff]  }
 0x3d1   :  { %v4476_v14 = vpop.f32.mrf.mxu0  ;;  %v4549_v61 = vpop.f32.mrf.mxu1  ;;  %7455 = vmatpush1.bf16.msra.mxu0 %v13264_v20  ;;  %7508 = vmatpush1.bf16.msra.mxu1 %v13267_v21 }
 0x3d2   :  { %v15280_v13 = vadd.f32 %v4476_v14, %v3970_v49  ;;  %v15282_v26 = vadd.f32 %v4549_v61, %v4043_v32  ;;  %v6295_v61 = vld [vmem:[#allocation3 + $0x10] sm:$0x44] }
 0x3d3   :  { %v4478_v12 = vpop.f32.mrf.mxu0  ;;  %v4551_v27 = vpop.f32.mrf.mxu1 }
 0x3d4   :  { %v15284_v6 = vadd.f32 %v4478_v12, %v3972_v23  ;;  %v15286_v2 = vadd.f32 %v4551_v27, %v4045_v28  ;;  %v6264_v28 = vld [vmem:[#allocation3 + $0x10] sm:$0x11]  ;;  %v6296_v27 = vsel %vm15222_vm5, 0, %v6295_v61 }
 0x3d5   :  { %v4482_v42 = vpop.f32.mrf.mxu0  ;;  %v4555_v60 = vpop.f32.mrf.mxu1  ;;  %6297 = vst [vmem:[#allocation3 + $0x10] sm:$0x44] %v6296_v27 }
 0x3d6   :  { %v15288_v41 = vadd.f32 %v4482_v42, %v3976_v1  ;;  %v15290_v46 = vadd.f32 %v4555_v60, %v4049_v16  ;;  %v6265_v16 = vsel %vm14286_vm12, 0, %v6264_v28 }
 0x3d7   :  { %v4484_v49 = vpop.f32.mrf.mxu0  ;;  %v4557_v14 = vpop.f32.mrf.mxu1  ;;  %6266 = vst [vmem:[#allocation3 + $0x10] sm:$0x11] %v6265_v16 }
 0x3d8   :  { %v15293_v32 = vadd.f32 %v4484_v49, %v15214_v19  ;;  %v15296_v23 = vadd.f32 %v4557_v14, %v15216_v58 }
 0x3d9   :  { %v4486_v1 = vpop.f32.mrf.mxu0  ;;  %v4559_v12 = vpop.f32.mrf.mxu1 }
 0x3da   :  { %v15303_v42 = vadd.f32 %v4486_v1, %v15228_v18  ;;  %v15306_v19 = vadd.f32 %v4559_v12, %v15230_v48 }
 0x3db   :  { %v4488_v58 = vpop.f32.mrf.mxu0  ;;  %v4561_v60 = vpop.f32.mrf.mxu1 }
 0x3dc   :  { %v15309_v36 = vadd.f32 %v4488_v58, %v15232_v3  ;;  %v15312_v7 = vadd.f32 %v4561_v60, %v15234_v47  ;;  %v13275_v58 = vld [vmem:[#allocation13 + $0x2cc] ss:$16 sps:$4 sm:$0xff]   ;;  %v13273_v60 = vld [vmem:[#allocation13 + $0x2c8] ss:$16 sps:$4 sm:$0xff]  }
 0x3dd   :  { %v4492_v20 = vpop.f32.mrf.mxu0  ;;  %v4565_v21 = vpop.f32.mrf.mxu1  ;;  %7509 = vmatprep.subr.bf16.mxu1 %v13275_v58 }
 0x3de   :  { %v15315_v49 = vadd.f32 %v4492_v20, %v15236_v35  ;;  %v15318_v18 = vadd.f32 %v4565_v21, %v15238_v39  ;;  %7510 = vmatpush1.bf16.msra.mxu1 %v13273_v60  ;;  %v6298_v20 = vld [vmem:[#allocation3 + $0x18] sm:$0x44]  ;;  %v4463_v21 = vadd.f32 %v15256_v55, %v15198_v9  ;;  %v4465_v9 = vadd.f32 %v15260_v5, %v15202_v0 }
 0x3df   :  { %v4494_v48 = vpop.f32.mrf.mxu0  ;;  %v4567_v14 = vpop.f32.mrf.mxu1  ;;  %v4469_v0 = vadd.f32 %v15268_v15, %v15210_v11 }
 0x3e0   :  { %v15321_v28 = vadd.f32 %v4494_v48, %v15240_v4  ;;  %v15324_v61 = vadd.f32 %v4567_v14, %v15242_v31  ;;  %v13272_v4 = vld [vmem:[#allocation13 + $0x2c4] ss:$16 sps:$4 sm:$0xff]   ;;  %v13270_v31 = vld [vmem:[#allocation13 + $0x2c0] ss:$16 sps:$4 sm:$0xff]   ;;  %v4536_v48 = vadd.f32 %v15258_v10, %v15200_v25  ;;  %v4538_v25 = vadd.f32 %v15262_v63, %v15204_v50 }
 0x3e1   :  { %v4496_v3 = vpop.f32.mrf.mxu0  ;;  %v4569_v1 = vpop.f32.mrf.mxu1  ;;  %7456 = vmatprep.subr.bf16.mxu0 %v13272_v4  ;;  %v13278_v63 = vld [vmem:[#allocation13 + $0x2a4] ss:$16 sps:$4 sm:$0xff]  }
 0x3e2   :  { %v15327_v47 = vadd.f32 %v4496_v3, %v15244_v37  ;;  %v15330_v12 = vadd.f32 %v4569_v1, %v15246_v43  ;;  %7457 = vmatpush1.bf16.msra.mxu0 %v13270_v31  ;;  %v6267_v37 = vld [vmem:[#allocation3 + $0x18] sm:$0x11] }
 0x3e3   :  { %v4498_v35 = vpop.f32.mrf.mxu0  ;;  %v4571_v16 = vpop.f32.mrf.mxu1  ;;  %v6268_v43 = vsel %vm14286_vm12, 0, %v6267_v37  ;;  %7458 = vmatprep.subr.bf16.mxu0 %v13278_v63 }
 0x3e4   :  { %v15333_v39 = vadd.f32 %v4498_v35, %v15252_v38  ;;  %v15336_v27 = vadd.f32 %v4571_v16, %v15254_v40  ;;  %v6299_v38 = vsel %vm15222_vm5, 0, %v6298_v20  ;;  %6269 = vst [vmem:[#allocation3 + $0x18] sm:$0x11] %v6268_v43  ;;  %v5228_v40 = vld [vmem:[%s16499_s4] sm:$0xf] }
 0x3e5   :  { %6300 = vst [vmem:[#allocation3 + $0x18] sm:$0x44] %v6299_v38  ;;  %v15350_v14 = vrot.slane %v5228_v40, %v14302_v51  ;;  %v15353_v3 = vrot.slane %v5228_v40, %v14304_v52  ;;  %v15356_v16 = vrot.slane %v5228_v40, %v14306_v53  ;;  %v15359_v4 = vrot.slane %v5228_v40, %v14308_v54 }
 0x3e6   :  { %16540 = vst [vmem:[#allocation27_spill] sm:$0xff] %v15333_v39  ;;  %16541 = vst [vmem:[#allocation28_spill] sm:$0xff] %v15336_v27  ;;  %v4467_v38 = vadd.f32 %v15264_v56, %v15206_v34  ;;  %v4540_v40 = vadd.f32 %v15266_v59, %v15208_v22  ;;  %v4542_v34 = vadd.f32 %v15270_v45, %v15212_v44  ;;  %v13282_v39 = vld [vmem:[#allocation13 + $0x280] ss:$16 sps:$4 sm:$0xff]  }
 0x406   :  { %v5084_v1 = vpop.f32.mrf.mxu0  ;;  %v5157_v35 = vpop.f32.mrf.mxu1 }
 0x407   :  { %v5196_v55 = vadd.f32 %v5084_v1, %v4463_v21  ;;  %v5198_v10 = vadd.f32 %v5157_v35, %v4536_v48  ;;  %v13281_v21 = vld [vmem:[#allocation13 + $0x2ac] ss:$16 sps:$4 sm:$0xff]  }
 0x408   :  { %v5086_v58 = vpop.f32.mrf.mxu0  ;;  %v5159_v31 = vpop.f32.mrf.mxu1  ;;  %7511 = vmatprep.subr.bf16.mxu1 %v13281_v21 }
 0x409   :  { %v5250_v60 = vadd.f32 %v15350_v14, %v5196_v55  ;;  %v5252_v37 = vadd.f32 %v15353_v3, %v5198_v10  ;;  %v5197_v20 = vadd.f32 %v5086_v58, %v4465_v9  ;;  %v5199_v43 = vadd.f32 %v5159_v31, %v4538_v25  ;;  %v13276_v25 = vld [vmem:[#allocation13 + $0x2a0] ss:$16 sps:$4 sm:$0xff]   ;;  %v13279_v55 = vld [vmem:[#allocation13 + $0x2a8] ss:$16 sps:$4 sm:$0xff]  }
 0x40a   :  { %v5088_v50 = vpop.f32.mrf.mxu0  ;;  %v5161_v5 = vpop.f32.mrf.mxu1  ;;  %7459 = vmatpush1.bf16.msra.mxu0 %v13276_v25  ;;  %7512 = vmatpush1.bf16.msra.mxu1 %v13279_v55 }
 0x40b   :  { %v5282_v48 = vmax.f32 %v5250_v60, 0.0  ;;  %v5284_v1 = vmax.f32 %v5252_v37, 0.0  ;;  %v5251_v35 = vadd.f32 %v15356_v16, %v5197_v20  ;;  %v5253_v9 = vadd.f32 %v15359_v4, %v5199_v43  ;;  %v6270_v60 = vld [vmem:[#allocation3 + $0x20] sm:$0x11]  ;;  %v6301_v37 = vld [vmem:[#allocation3 + $0x20] sm:$0x44] }
 0x40c   :  { %v5200_v56 = vadd.f32 %v5088_v50, %v4467_v38  ;;  %v5202_v22 = vadd.f32 %v5161_v5, %v4540_v40  ;;  %v5090_v59 = vpop.f32.mrf.mxu0  ;;  %v5163_v10 = vpop.f32.mrf.mxu1  ;;  %v6271_v38 = vsel %vm14286_vm12, 0, %v6270_v60 }
 0x40d   :  { %v5314_v11 = vmax.f32 %v5282_v48, %v5284_v1  ;;  %v5283_v15 = vmax.f32 %v5251_v35, 0.0  ;;  %v5285_v58 = vmax.f32 %v5253_v9, 0.0  ;;  %v5201_v31 = vadd.f32 %v5090_v59, %v4469_v0  ;;  %6272 = vst [vmem:[#allocation3 + $0x20] sm:$0x11] %v6271_v38 }
 0x40e   :  { %v5254_v20 = vadd.f32 %v15350_v14, %v5200_v56  ;;  %v5256_v43 = vadd.f32 %v15353_v3, %v5202_v22  ;;  %v5203_v54 = vadd.f32 %v5163_v10, %v4542_v34  ;;  %v5094_v44 = vpop.f32.mrf.mxu0  ;;  %v5167_v45 = vpop.f32.mrf.mxu1  ;;  %v6302_v9 = vsel %vm15222_vm5, 0, %v6301_v37 }
 0x40f   :  { %v5315_v40 = vmax.f32 %v5283_v15, %v5285_v58  ;;  %v5255_v50 = vadd.f32 %v15356_v16, %v5201_v31  ;;  %v5204_v5 = vadd.f32 %v5094_v44, %v15272_v8  ;;  %v5206_v0 = vadd.f32 %v5167_v45, %v15274_v24  ;;  %6303 = vst [vmem:[#allocation3 + $0x20] sm:$0x44] %v6302_v9 }
 0x410   :  { %v5286_v63 = vmax.f32 %v5254_v20, 0.0  ;;  %v5288_v21 = vmax.f32 %v5256_v43, 0.0  ;;  %v5257_v48 = vadd.f32 %v15359_v4, %v5203_v54  ;;  %v5096_v1 = vpop.f32.mrf.mxu0  ;;  %v5169_v35 = vpop.f32.mrf.mxu1 }
 0x411   :  { %v5346_v25 = vcombine.low %v5314_v11, %v5315_v40  ;;  %v5347_v55 = vcombine.high %v5314_v11, %v5315_v40  ;;  %v5287_v34 = vmax.f32 %v5255_v50, 0.0  ;;  %v5258_v56 = vadd.f32 %v15350_v14, %v5204_v5 }
 0x412   :  { %v5316_v22 = vmax.f32 %v5286_v63, %v5288_v21  ;;  %v5289_v8 = vmax.f32 %v5257_v48, 0.0  ;;  %v5260_v24 = vadd.f32 %v15353_v3, %v5206_v0  ;;  %v5205_v59 = vadd.f32 %v5096_v1, %v15276_v62  ;;  %v5098_v10 = vpop.f32.mrf.mxu0 }
 0x413   :  { %v5354_v54 = vrot.slane %v5346_v25, %v14327_v17  ;;  %v5361_v15 = vrot.slane %v5347_v55, %v14327_v17  ;;  %v5290_v58 = vmax.f32 %v5258_v56, 0.0  ;;  %v15393_v31 = vadd.f32 %v5169_v35, %v15278_v30 }
 0x414   :  { %v5317_v11 = vmax.f32 %v5287_v34, %v5289_v8  ;;  %v5292_v60 = vmax.f32 %v5260_v24, 0.0  ;;  %v15396_v37 = vadd.f32 %v15356_v16, %v5205_v59  ;;  %v15399_v20 = vadd.f32 %v5098_v10, %v15280_v13 }
 0x415   :  { %v5362_v43 = vcombine.high %v5354_v54, %v5354_v54  ;;  %v5363_v44 = vcombine.high %v5361_v15, %v5361_v15  ;;  %v5496_v62 = vrot.slane %v5354_v54, %v14327_v17  ;;  %v5512_v45 = vrot.slane %v5361_v15, %v14327_v17 }
 0x416   :  { %v5364_v38 = vcombine.low %v5316_v22, %v5317_v11  ;;  %v5365_v40 = vcombine.high %v5316_v22, %v5317_v11  ;;  %v15403_v50 = vmax.f32 %v5290_v58, %v5292_v60 }
 0x417   :  { %v5497_v5 = vcombine.high %v5496_v62, %v5496_v62  ;;  %v5504_v0 = vrot.slane %v5362_v43, %v14327_v17  ;;  %v5513_v63 = vcombine.high %v5512_v45, %v5512_v45  ;;  %v5520_v21 = vrot.slane %v5363_v44, %v14327_v17 }
 0x418   :  { %v5810_v13 = vsel %vm1590_vm3, %v5496_v62, -inf  ;;  %v5838_v48 = vsel %vm1590_vm3, %v5512_v45, -inf  ;;  %v15411_v1 = vrot.slane %v5364_v38, %v14327_v17  ;;  %v15414_v35 = vrot.slane %v5365_v40, %v14327_v17 }
 0x419   :  { %v5505_v9 = vcombine.high %v5504_v0, %v5504_v0  ;;  %v5521_v25 = vcombine.high %v5520_v21, %v5520_v21  ;;  %v5811_v55 = vrot.slane %v5810_v13, 4  ;;  %v5817_v34 = vsel %vm1590_vm3, %v5497_v5, -inf }
 0x41a   :  { %v5818_v56 = vrot.slane %v5817_v34, 4  ;;  %v5824_v22 = vsel %vm1590_vm3, %v5504_v0, -inf  ;;  %v5839_v8 = vrot.slane %v5838_v48, 4  ;;  %v5845_v24 = vsel %vm1590_vm3, %v5513_v63, -inf }
 0x41b   :  { %v5812_v59 = vmax.f32 %v5810_v13, %v5811_v55  ;;  %v5825_v10 = vrot.slane %v5824_v22, 4  ;;  %v5831_v54 = vsel %vm1590_vm3, %v5505_v9, -inf  ;;  %v5846_v15 = vrot.slane %v5845_v24, 4 }
 0x41c   :  { %v5819_v58 = vmax.f32 %v5817_v34, %v5818_v56  ;;  %v5832_v11 = vrot.slane %v5831_v54, 4  ;;  %v5840_v60 = vmax.f32 %v5838_v48, %v5839_v8  ;;  %v5852_v43 = vsel %vm1590_vm3, %v5520_v21, -inf }
 0x41d   :  { %v5813_v44 = vrot.slane %v5812_v59, 2  ;;  %v5826_v62 = vmax.f32 %v5824_v22, %v5825_v10  ;;  %v5847_v45 = vmax.f32 %v5845_v24, %v5846_v15  ;;  %v5853_v38 = vrot.slane %v5852_v43, 4 }
 0x41e   :  { %v5820_v40 = vrot.slane %v5819_v58, 2  ;;  %v5833_v5 = vmax.f32 %v5831_v54, %v5832_v11  ;;  %v5841_v0 = vrot.slane %v5840_v60, 2  ;;  %v5859_v30 = vsel %vm1590_vm3, %v5521_v25, -inf  ;;  %v13284_v54 = vld [vmem:[#allocation13 + $0x284] ss:$16 sps:$4 sm:$0xff]  }
 0x41f   :  { %v5814_v63 = vmax.f32 %v5812_v59, %v5813_v44  ;;  %v5827_v13 = vrot.slane %v5826_v62, 2  ;;  %v5848_v55 = vrot.slane %v5847_v45, 2  ;;  %v5854_v53 = vmax.f32 %v5852_v43, %v5853_v38  ;;  %v13287_v11 = vld [vmem:[#allocation13 + $0x28c] ss:$16 sps:$4 sm:$0xff]   ;;  %v13285_v43 = vld [vmem:[#allocation13 + $0x288] ss:$16 sps:$4 sm:$0xff]   ;;  %7460 = vmatprep.subr.bf16.mxu0 %v13284_v54 }
 0x420   :  { %v5821_v9 = vmax.f32 %v5819_v58, %v5820_v40  ;;  %v5834_v52 = vrot.slane %v5833_v5, 2  ;;  %v5842_v34 = vmax.f32 %v5840_v60, %v5841_v0  ;;  %v5860_v56 = vrot.slane %v5859_v30, 4  ;;  %7513 = vmatprep.subr.bf16.mxu1 %v13287_v11  ;;  %7461 = vmatpush1.bf16.msra.mxu0 %v13282_v39 }
 0x421   :  { %v5815_v48 = vrot.slane %v5814_v63, 1  ;;  %v5828_v8 = vmax.f32 %v5826_v62, %v5827_v13  ;;  %v5849_v21 = vmax.f32 %v5847_v45, %v5848_v55  ;;  %v5855_v51 = vrot.slane %v5854_v53, 2  ;;  %7514 = vmatpush1.bf16.msra.mxu1 %v13285_v43 }
 0x422   :  { %v5822_v22 = vrot.slane %v5821_v9, 1  ;;  %v5835_v24 = vmax.f32 %v5833_v5, %v5834_v52  ;;  %v5843_v10 = vrot.slane %v5842_v34, 1  ;;  %v5861_v15 = vmax.f32 %v5859_v30, %v5860_v56 }
 0x423   :  { %v5816_v27 = vmax.f32 %v5814_v63, %v5815_v48  ;;  %v5829_v25 = vrot.slane %v5828_v8, 1  ;;  %v5850_v59 = vrot.slane %v5849_v21, 1  ;;  %v5856_v44 = vmax.f32 %v5854_v53, %v5855_v51 }
 0x424   :  { %v5823_v58 = vmax.f32 %v5821_v9, %v5822_v22  ;;  %v5836_v38 = vrot.slane %v5835_v24, 1  ;;  %v5844_v60 = vmax.f32 %v5842_v34, %v5843_v10  ;;  %v5862_v40 = vrot.slane %v5861_v15, 2 }
 0x425   :  { %v5830_v62 = vmax.f32 %v5828_v8, %v5829_v25  ;;  %v5851_v45 = vmax.f32 %v5849_v21, %v5850_v59  ;;  %v5857_v0 = vrot.slane %v5856_v44, 1  ;;  %v5380_v52 = vcombine.high %v15411_v1, %v15411_v1 }
 0x426   :  { %v5837_v30 = vmax.f32 %v5835_v24, %v5836_v38  ;;  %v5863_v5 = vmax.f32 %v5861_v15, %v5862_v40  ;;  %v12876_v63 = vpack.c.bf16 %v5823_v58, %v5816_v27  ;;  %v5381_v51 = vcombine.high %v15414_v35, %v15414_v35 }
 0x427   :  { %v5858_v53 = vmax.f32 %v5856_v44, %v5857_v0  ;;  %v12878_v13 = vpack.c.bf16 %v5851_v45, %v5844_v60  ;;  %v5528_v55 = vrot.slane %v15411_v1, %v14327_v17  ;;  %v5536_v9 = vrot.slane %v5380_v52, %v14327_v17 }
 0x428   :  { %v5864_v34 = vrot.slane %v5863_v5, 1  ;;  %v12877_v56 = vpack.c.bf16 %v5837_v30, %v5830_v62  ;;  %v6537_v48 = vunpack.c.l.b16 %v12876_v63  ;;  %v6538_v8 = vunpack.c.h.b16 %v12876_v63 }
 0x429   :  { %v6541_v21 = vunpack.c.l.b16 %v12878_v13  ;;  %v6542_v39 = vunpack.c.h.b16 %v12878_v13  ;;  %v5529_v22 = vcombine.high %v5528_v55, %v5528_v55  ;;  %v5537_v24 = vcombine.high %v5536_v9, %v5536_v9 }
 0x42a   :  { %v5865_v10 = vmax.f32 %v5863_v5, %v5864_v34  ;;  %v6539_v27 = vunpack.c.l.b16 %v12877_v56  ;;  %v6540_v15 = vunpack.c.h.b16 %v12877_v56  ;;  %v5544_v54 = vrot.slane %v15414_v35, %v14327_v17 }
 0x42b   :  { %v5552_v11 = vrot.slane %v5381_v51, %v14327_v17  ;;  %v5866_v1 = vsel %vm1590_vm3, %v5528_v55, -inf  ;;  %v5873_v25 = vsel %vm1590_vm3, %v5529_v22, -inf  ;;  %v5880_v59 = vsel %vm1590_vm3, %v5536_v9, -inf  ;;  %v6670_v9 = vld [vmem:[#allocation3] sm:$0x77] }
 0x42c   :  { %v12879_v44 = vpack.c.bf16 %v5865_v10, %v5858_v53  ;;  %v6601_v43 = vsel %vm3123_vm4, %v6539_v27, %v6537_v48  ;;  %v6604_v58 = vsel %vm3123_vm4, %v6540_v15, %v6538_v8  ;;  %v5545_v38 = vcombine.high %v5544_v54, %v5544_v54 }
 0x42d   :  { %v6602_v60 = vsel %vm3125_vm6, %v6541_v21, %v6601_v43  ;;  %v6605_v40 = vsel %vm3125_vm6, %v6542_v39, %v6604_v58  ;;  %v5553_v62 = vcombine.high %v5552_v11, %v5552_v11  ;;  %v5867_v35 = vrot.slane %v5866_v1, 4 }
 0x42e   :  { %v6543_v45 = vunpack.c.l.b16 %v12879_v44  ;;  %v6544_v0 = vunpack.c.h.b16 %v12879_v44  ;;  %v5874_v52 = vrot.slane %v5873_v25, 4  ;;  %v5881_v30 = vrot.slane %v5880_v59, 4 }
 0x42f   :  { %v5868_v5 = vmax.f32 %v5866_v1, %v5867_v35  ;;  %v5887_v63 = vsel %vm1590_vm3, %v5537_v24, -inf  ;;  %v5894_v51 = vsel %vm1590_vm3, %v5544_v54, -inf  ;;  %v5901_v53 = vsel %vm1590_vm3, %v5545_v38, -inf }
 0x430   :  { %v6603_v13 = vsel %vm2490_vm1, %v6543_v45, %v6602_v60  ;;  %v6606_v55 = vsel %vm2490_vm1, %v6544_v0, %v6605_v40  ;;  %v5875_v34 = vmax.f32 %v5873_v25, %v5874_v52  ;;  %v5882_v56 = vmax.f32 %v5880_v59, %v5881_v30 }
 0x431   :  { %v6649_v48 = vpack.c.b16 %v6606_v55, %v6603_v13  ;;  %v5869_v8 = vrot.slane %v5868_v5, 2  ;;  %v5888_v21 = vrot.slane %v5887_v63, 4  ;;  %v5895_v39 = vrot.slane %v5894_v51, 4 }
 0x432   :  { %v5876_v22 = vrot.slane %v5875_v34, 2  ;;  %v5883_v10 = vrot.slane %v5882_v56, 2  ;;  %v5902_v27 = vrot.slane %v5901_v53, 4  ;;  %v5908_v24 = vsel %vm1590_vm3, %v5552_v11, -inf }
 0x433   :  { %v6671_v15 = vsel %vm15130_vm14, %v6649_v48, %v6670_v9  ;;  %v5870_v54 = vmax.f32 %v5868_v5, %v5869_v8  ;;  %v5889_v1 = vmax.f32 %v5887_v63, %v5888_v21  ;;  %v5896_v44 = vmax.f32 %v5894_v51, %v5895_v39 }
 0x434   :  { %6672 = vst [vmem:[#allocation3] sm:$0x77] %v6671_v15  ;;  %v5877_v43 = vmax.f32 %v5875_v34, %v5876_v22  ;;  %v5884_v58 = vmax.f32 %v5882_v56, %v5883_v10  ;;  %v5903_v25 = vmax.f32 %v5901_v53, %v5902_v27  ;;  %v5909_v59 = vrot.slane %v5908_v24, 4 }
 0x435   :  { %v5871_v38 = vrot.slane %v5870_v54, 1  ;;  %v5890_v60 = vrot.slane %v5889_v1, 2  ;;  %v5897_v40 = vrot.slane %v5896_v44, 2  ;;  %v5915_v35 = vsel %vm1590_vm3, %v5553_v62, -inf }
 0x436   :  { %v5878_v45 = vrot.slane %v5877_v43, 1  ;;  %v5885_v0 = vrot.slane %v5884_v58, 1  ;;  %v5904_v52 = vrot.slane %v5903_v25, 2  ;;  %v5910_v11 = vmax.f32 %v5908_v24, %v5909_v59 }
 0x437   :  { %v5872_v30 = vmax.f32 %v5870_v54, %v5871_v38  ;;  %v5891_v13 = vmax.f32 %v5889_v1, %v5890_v60  ;;  %v5898_v55 = vmax.f32 %v5896_v44, %v5897_v40  ;;  %v5916_v5 = vrot.slane %v5915_v35, 4  ;;  %v5171_v54 = vpop.f32.mrf.mxu1  ;;  %v5100_v1 = vpop.f32.mrf.mxu0 }
 0x438   :  { %v5879_v63 = vmax.f32 %v5877_v43, %v5878_v45  ;;  %v5886_v51 = vmax.f32 %v5884_v58, %v5885_v0  ;;  %v5905_v9 = vmax.f32 %v5903_v25, %v5904_v52  ;;  %v5911_v34 = vrot.slane %v5910_v11, 2 }
 0x439   :  { %v5892_v56 = vrot.slane %v5891_v13, 1  ;;  %v5899_v53 = vrot.slane %v5898_v55, 1  ;;  %v5917_v48 = vmax.f32 %v5915_v35, %v5916_v5  ;;  %v5261_v8 = vadd.f32 %v15359_v4, %v15393_v31 }
 0x43a   :  { %v5906_v21 = vrot.slane %v5905_v9, 1  ;;  %v5912_v62 = vmax.f32 %v5910_v11, %v5911_v34  ;;  %v12880_v39 = vpack.c.bf16 %v5879_v63, %v5872_v30  ;;  %v5262_v22 = vadd.f32 %v15350_v14, %v15399_v20 }
 0x43b   :  { %v5893_v10 = vmax.f32 %v5891_v13, %v5892_v56  ;;  %v5900_v27 = vmax.f32 %v5898_v55, %v5899_v53  ;;  %v5918_v24 = vrot.slane %v5917_v48, 2  ;;  %v5293_v15 = vmax.f32 %v5261_v8, 0.0  ;;  %v5173_v56 = vpop.f32.mrf.mxu1 }
 0x43c   :  { %v5907_v44 = vmax.f32 %v5905_v9, %v5906_v21  ;;  %v5913_v43 = vrot.slane %v5912_v62, 1  ;;  %v6545_v58 = vunpack.c.l.b16 %v12880_v39  ;;  %v6546_v25 = vunpack.c.h.b16 %v12880_v39  ;;  %v13290_v21 = vld [vmem:[#allocation13 + $0x264] ss:$16 sps:$4 sm:$0xff]  }
 0x43d   :  { %v5919_v59 = vmax.f32 %v5917_v48, %v5918_v24  ;;  %v12881_v38 = vpack.c.bf16 %v5893_v10, %v5886_v51  ;;  %v16542_v31 = vmax.f32 %v15396_v37, 0.0  ;;  %v5294_v40 = vmax.f32 %v5262_v22, 0.0  ;;  %v13291_v24 = vld [vmem:[#allocation13 + $0x268] ss:$16 sps:$4 sm:$0xff]   ;;  %7462 = vmatprep.subr.bf16.mxu0 %v13290_v21 }
 0x43e   :  { %v5914_v35 = vmax.f32 %v5912_v62, %v5913_v43  ;;  %v12882_v45 = vpack.c.bf16 %v5907_v44, %v5900_v27  ;;  %v5210_v20 = vadd.f32 %v5171_v54, %v15282_v26  ;;  %v5209_v0 = vadd.f32 %v5100_v1, %v15284_v6  ;;  %v13293_v62 = vld [vmem:[#allocation13 + $0x26c] ss:$16 sps:$4 sm:$0xff]   ;;  %v13288_v27 = vld [vmem:[#allocation13 + $0x260] ss:$16 sps:$4 sm:$0xff]  }
 0x43f   :  { %v5319_v60 = vmax.f32 %v16542_v31, %v5293_v15  ;;  %v5920_v52 = vrot.slane %v5919_v59, 1  ;;  %v6547_v11 = vunpack.c.l.b16 %v12881_v38  ;;  %v6548_v30 = vunpack.c.h.b16 %v12881_v38  ;;  %7515 = vmatprep.subr.bf16.mxu1 %v13293_v62  ;;  %7463 = vmatpush1.bf16.msra.mxu0 %v13288_v27  ;;  %v13303_v27 = vld [vmem:[#allocation13 + $0x228] ss:$16 sps:$4 sm:$0xff]  }
 0x440   :  { %v6549_v55 = vunpack.c.l.b16 %v12882_v45  ;;  %v6550_v5 = vunpack.c.h.b16 %v12882_v45  ;;  %v5264_v51 = vadd.f32 %v15353_v3, %v5210_v20  ;;  %v15467_v10 = vadd.f32 %v15356_v16, %v5209_v0  ;;  %7516 = vmatpush1.bf16.msra.mxu1 %v13291_v24  ;;  %v13296_v45 = vld [vmem:[#allocation13 + $0x244] ss:$16 sps:$4 sm:$0xff]  }
 0x441   :  { %v5382_v13 = vcombine.low %v15403_v50, %v5319_v60  ;;  %v5383_v63 = vcombine.high %v15403_v50, %v5319_v60  ;;  %v5921_v37 = vmax.f32 %v5919_v59, %v5920_v52  ;;  %v6607_v9 = vsel %vm3123_vm4, %v6547_v11, %v6545_v58  ;;  %7464 = vmatprep.subr.bf16.mxu0 %v13296_v45 }
 0x442   :  { %v6610_v34 = vsel %vm3123_vm4, %v6548_v30, %v6546_v25  ;;  %v6608_v6 = vsel %vm3125_vm6, %v6549_v55, %v6607_v9  ;;  %v5296_v8 = vmax.f32 %v5264_v51, 0.0  ;;  %v15473_v44 = vadd.f32 %v5173_v56, %v15286_v2  ;;  %v6673_v25 = vld [vmem:[#allocation3 + $0x8] sm:$0x77]  ;;  %v13299_v2 = vld [vmem:[#allocation13 + $0x24c] ss:$16 sps:$4 sm:$0xff]  }
 0x443   :  { %v5390_v26 = vrot.slane %v5382_v13, %v14327_v17  ;;  %v6611_v53 = vsel %vm3125_vm6, %v6550_v5, %v6610_v34  ;;  %v5397_v48 = vrot.slane %v5383_v63, %v14327_v17  ;;  %v12883_v50 = vpack.c.bf16 %v5921_v37, %v5914_v35  ;;  %v13294_v30 = vld [vmem:[#allocation13 + $0x240] ss:$16 sps:$4 sm:$0xff]   ;;  %v13297_v13 = vld [vmem:[#allocation13 + $0x248] ss:$16 sps:$4 sm:$0xff]   ;;  %7517 = vmatprep.subr.bf16.mxu1 %v13299_v2 }
 0x444   :  { %v15470_v1 = vmax.f32 %v5294_v40, %v5296_v8  ;;  %7465 = vmatpush1.bf16.msra.mxu0 %v13294_v30  ;;  %7518 = vmatpush1.bf16.msra.mxu1 %v13297_v13  ;;  %v13302_v8 = vld [vmem:[#allocation13 + $0x224] ss:$16 sps:$4 sm:$0xff]   ;;  %v13309_v13 = vld [vmem:[#allocation13 + $0x208] ss:$16 sps:$4 sm:$0xff]  }
 0x445   :  { %v5398_v39 = vcombine.high %v5390_v26, %v5390_v26  ;;  %v5560_v22 = vrot.slane %v5390_v26, %v14327_v17  ;;  %v5399_v15 = vcombine.high %v5397_v48, %v5397_v48  ;;  %v5576_v54 = vrot.slane %v5397_v48, %v14327_v17  ;;  %7466 = vmatprep.subr.bf16.mxu0 %v13302_v8 }
 0x446   :  { %v6551_v43 = vunpack.c.l.b16 %v12883_v50  ;;  %v6552_v58 = vunpack.c.h.b16 %v12883_v50 }
 0x447   :  { %v5561_v59 = vcombine.high %v5560_v22, %v5560_v22  ;;  %v5568_v38 = vrot.slane %v5398_v39, %v14327_v17  ;;  %v5577_v31 = vcombine.high %v5576_v54, %v5576_v54  ;;  %v5584_v60 = vrot.slane %v5399_v15, %v14327_v17 }
 0x448   :  { %v5922_v35 = vsel %vm1590_vm3, %v5560_v22, -inf  ;;  %v5950_v40 = vsel %vm1590_vm3, %v5576_v54, -inf  ;;  %v6609_v20 = vsel %vm2490_vm1, %v6551_v43, %v6608_v6  ;;  %v6612_v0 = vsel %vm2490_vm1, %v6552_v58, %v6611_v53  ;;  %v13300_v22 = vld [vmem:[#allocation13 + $0x220] ss:$16 sps:$4 sm:$0xff]   ;;  %v13305_v58 = vld [vmem:[#allocation13 + $0x22c] ss:$16 sps:$4 sm:$0xff]  }
 0x449   :  { %v5569_v52 = vcombine.high %v5568_v38, %v5568_v38  ;;  %v5923_v11 = vrot.slane %v5922_v35, 4  ;;  %v6650_v55 = vpack.c.b16 %v6612_v0, %v6609_v20  ;;  %v5585_v5 = vcombine.high %v5584_v60, %v5584_v60  ;;  %7467 = vmatpush1.bf16.msra.mxu0 %v13300_v22  ;;  %7519 = vmatprep.subr.bf16.mxu1 %v13305_v58  ;;  %v13308_v0 = vld [vmem:[#allocation13 + $0x204] ss:$16 sps:$4 sm:$0xff]  }
 0x44a   :  { %v5929_v63 = vsel %vm1590_vm3, %v5561_v59, -inf  ;;  %v5936_v51 = vsel %vm1590_vm3, %v5568_v38, -inf  ;;  %v5951_v53 = vrot.slane %v5950_v40, 4  ;;  %v5957_v48 = vsel %vm1590_vm3, %v5577_v31, -inf  ;;  %7520 = vmatpush1.bf16.msra.mxu1 %v13303_v27  ;;  %7468 = vmatprep.subr.bf16.mxu0 %v13308_v0 }
 0x44b   :  { %v5924_v37 = vmax.f32 %v5922_v35, %v5923_v11  ;;  %v5930_v9 = vrot.slane %v5929_v63, 4  ;;  %v5937_v34 = vrot.slane %v5936_v51, 4  ;;  %v5943_v26 = vsel %vm1590_vm3, %v5569_v52, -inf }
 0x44c   :  { %v6674_v56 = vsel %vm15130_vm14, %v6650_v55, %v6673_v25  ;;  %v5944_v6 = vrot.slane %v5943_v26, 4  ;;  %v5958_v39 = vrot.slane %v5957_v48, 4  ;;  %v5952_v15 = vmax.f32 %v5950_v40, %v5951_v53 }
 0x44d   :  { %6675 = vst [vmem:[#allocation3 + $0x8] sm:$0x77] %v6674_v56  ;;  %v5925_v21 = vrot.slane %v5924_v37, 2  ;;  %v5931_v62 = vmax.f32 %v5929_v63, %v5930_v9  ;;  %v5938_v50 = vmax.f32 %v5936_v51, %v5937_v34  ;;  %v5964_v54 = vsel %vm1590_vm3, %v5584_v60, -inf  ;;  %v13306_v60 = vld [vmem:[#allocation13 + $0x200] ss:$16 sps:$4 sm:$0xff]  }
 0x44e   :  { %v5945_v24 = vmax.f32 %v5943_v26, %v5944_v6  ;;  %v5971_v43 = vsel %vm1590_vm3, %v5585_v5, -inf  ;;  %v5959_v31 = vmax.f32 %v5957_v48, %v5958_v39  ;;  %v5953_v45 = vrot.slane %v5952_v15, 2  ;;  %7469 = vmatpush1.bf16.msra.mxu0 %v13306_v60 }
 0x44f   :  { %v5926_v25 = vmax.f32 %v5924_v37, %v5925_v21  ;;  %v5932_v59 = vrot.slane %v5931_v62, 2  ;;  %v5939_v38 = vrot.slane %v5938_v50, 2  ;;  %v5965_v2 = vrot.slane %v5964_v54, 4  ;;  %v13311_v37 = vld [vmem:[#allocation13 + $0x20c] ss:$16 sps:$4 sm:$0xff]   ;;  %v5104_v21 = vpop.f32.mrf.mxu0 }
 0x450   :  { %v5946_v35 = vrot.slane %v5945_v24, 2  ;;  %v5972_v20 = vrot.slane %v5971_v43, 4  ;;  %v5960_v30 = vrot.slane %v5959_v31, 2  ;;  %v5954_v5 = vmax.f32 %v5952_v15, %v5953_v45  ;;  %7521 = vmatprep.subr.bf16.mxu1 %v13311_v37  ;;  %v13312_v15 = vld [vmem:[#allocation13 + $0x3e0] ss:$16 sps:$4 sm:$0xff]  }
 0x451   :  { %v5927_v52 = vrot.slane %v5926_v25, 1  ;;  %v5933_v11 = vmax.f32 %v5931_v62, %v5932_v59  ;;  %v5940_v40 = vmax.f32 %v5938_v50, %v5939_v38  ;;  %v5966_v63 = vmax.f32 %v5964_v54, %v5965_v2  ;;  %v13314_v62 = vld [vmem:[#allocation13 + $0x3e4] ss:$16 sps:$4 sm:$0xff]   ;;  %7522 = vmatpush1.bf16.msra.mxu1 %v13309_v13  ;;  %v13315_v54 = vld [vmem:[#allocation13 + $0x3e8] ss:$16 sps:$4 sm:$0xff]  }
 0x452   :  { %v5947_v55 = vmax.f32 %v5945_v24, %v5946_v35  ;;  %v5973_v51 = vmax.f32 %v5971_v43, %v5972_v20  ;;  %v5961_v56 = vmax.f32 %v5959_v31, %v5960_v30  ;;  %v5955_v53 = vrot.slane %v5954_v5, 1  ;;  %v5177_v24 = vpop.f32.mrf.mxu1  ;;  %7470 = vmatprep.subr.bf16.mxu0 %v13314_v62  ;;  %v13317_v38 = vld [vmem:[#allocation13 + $0x3ec] ss:$16 sps:$4 sm:$0xff]   ;;  %v13326_v62 = vld [vmem:[#allocation13 + $0x3a4] ss:$16 sps:$4 sm:$0xff]  }
 0x453   :  { %v5928_v9 = vmax.f32 %v5926_v25, %v5927_v52  ;;  %v5934_v34 = vrot.slane %v5933_v11, 1  ;;  %v5941_v26 = vrot.slane %v5940_v40, 1  ;;  %v5967_v48 = vrot.slane %v5966_v63, 2  ;;  %7471 = vmatpush2.bf16.msra.mxu0 %v13312_v15  ;;  %7523 = vmatprep.subr.bf16.mxu1 %v13317_v38 }
 0x454   :  { %v5948_v6 = vrot.slane %v5947_v55, 1  ;;  %v5974_v8 = vrot.slane %v5973_v51, 2  ;;  %v5962_v22 = vrot.slane %v5961_v56, 1  ;;  %v5295_v27 = vmax.f32 %v15467_v10, 0.0 }
 0x455   :  { %v5935_v50 = vmax.f32 %v5933_v11, %v5934_v34  ;;  %v5942_v39 = vmax.f32 %v5940_v40, %v5941_v26  ;;  %v5956_v58 = vmax.f32 %v5954_v5, %v5955_v53  ;;  %v5968_v25 = vmax.f32 %v5966_v63, %v5967_v48  ;;  %v13320_v11 = vld [vmem:[#allocation13 + $0x3c4] ss:$16 sps:$4 sm:$0xff]   ;;  %v13323_v40 = vld [vmem:[#allocation13 + $0x3cc] ss:$16 sps:$4 sm:$0xff]   ;;  %v5106_v5 = vpop.f32.mrf.mxu0  ;;  %7524 = vmatpush2.bf16.msra.mxu1 %v13315_v54  ;;  %v13318_v63 = vld [vmem:[#allocation13 + $0x3c0] ss:$16 sps:$4 sm:$0xff]  }
 0x456   :  { %v5949_v43 = vmax.f32 %v5947_v55, %v5948_v6  ;;  %v5975_v59 = vmax.f32 %v5973_v51, %v5974_v8  ;;  %v5963_v31 = vmax.f32 %v5961_v56, %v5962_v22  ;;  %v5265_v45 = vadd.f32 %v15359_v4, %v15473_v44  ;;  %v13321_v51 = vld [vmem:[#allocation13 + $0x3c8] ss:$16 sps:$4 sm:$0xff]   ;;  %7472 = vmatprep.subr.bf16.mxu0 %v13320_v11  ;;  %v13324_v54 = vld [vmem:[#allocation13 + $0x3a0] ss:$16 sps:$4 sm:$0xff]   ;;  %v13332_v11 = vld [vmem:[#allocation13 + $0x384] ss:$16 sps:$4 sm:$0xff]  }
 0x457   :  { %v12884_v35 = vpack.c.bf16 %v5935_v50, %v5928_v9  ;;  %v5212_v2 = vadd.f32 %v5104_v21, %v15288_v41  ;;  %v5969_v20 = vrot.slane %v5968_v25, 1  ;;  %v5214_v52 = vadd.f32 %v5177_v24, %v15290_v46  ;;  %7525 = vmatprep.subr.bf16.mxu1 %v13323_v40  ;;  %7473 = vmatpush2.bf16.msra.mxu0 %v13318_v63  ;;  %v5179_v21 = vpop.f32.mrf.mxu1  ;;  %v13329_v50 = vld [vmem:[#allocation13 + $0x3ac] ss:$16 sps:$4 sm:$0xff]   ;;  %v5108_v15 = vpop.f32.mrf.mxu0 }
 0x458   :  { %v5976_v10 = vrot.slane %v5975_v59, 1  ;;  %v12885_v0 = vpack.c.bf16 %v5949_v43, %v5942_v39  ;;  %v12886_v30 = vpack.c.bf16 %v5963_v31, %v5956_v58  ;;  %v5297_v55 = vmax.f32 %v5265_v45, 0.0  ;;  %v13327_v43 = vld [vmem:[#allocation13 + $0x3a8] ss:$16 sps:$4 sm:$0xff]   ;;  %7474 = vmatprep.subr.bf16.mxu0 %v13326_v62  ;;  %v13335_v40 = vld [vmem:[#allocation13 + $0x38c] ss:$16 sps:$4 sm:$0xff]  }
 0x459   :  { %v6553_v60 = vunpack.c.l.b16 %v12884_v35  ;;  %v6554_v13 = vunpack.c.h.b16 %v12884_v35  ;;  %v5970_v44 = vmax.f32 %v5968_v25, %v5969_v20  ;;  %v5266_v56 = vadd.f32 %v15350_v14, %v5212_v2  ;;  %7526 = vmatpush2.bf16.msra.mxu1 %v13321_v51  ;;  %v13336_v62 = vld [vmem:[#allocation13 + $0x360] ss:$16 sps:$4 sm:$0xff]  }
 0x45a   :  { %v5977_v37 = vmax.f32 %v5975_v59, %v5976_v10  ;;  %v6555_v41 = vunpack.c.l.b16 %v12885_v0  ;;  %v6556_v9 = vunpack.c.h.b16 %v12885_v0  ;;  %v6557_v34 = vunpack.c.l.b16 %v12886_v30  ;;  %7527 = vmatprep.subr.bf16.mxu1 %v13329_v50  ;;  %v6676_v10 = vld [vmem:[#allocation3 + $0x10] sm:$0x77]  ;;  %v13339_v50 = vld [vmem:[#allocation13 + $0x368] ss:$16 sps:$4 sm:$0xff]  }
 0x45b   :  { %v6558_v26 = vunpack.c.h.b16 %v12886_v30  ;;  %v5321_v46 = vmax.f32 %v5295_v27, %v5297_v55  ;;  %v5268_v8 = vadd.f32 %v15353_v3, %v5214_v52  ;;  %v5298_v59 = vmax.f32 %v5266_v56, 0.0  ;;  %7475 = vmatpush2.bf16.msra.mxu0 %v13324_v54 }
 0x45c   :  { %v12887_v6 = vpack.c.bf16 %v5977_v37, %v5970_v44  ;;  %v6613_v53 = vsel %vm3123_vm4, %v6555_v41, %v6553_v60  ;;  %v6616_v48 = vsel %vm3123_vm4, %v6556_v9, %v6554_v13  ;;  %v5213_v45 = vadd.f32 %v5106_v5, %v15293_v32  ;;  %v13330_v32 = vld [vmem:[#allocation13 + $0x380] ss:$16 sps:$4 sm:$0xff]   ;;  %7476 = vmatprep.subr.bf16.mxu0 %v13332_v11 }
 0x45d   :  { %v6614_v39 = vsel %vm3125_vm6, %v6557_v34, %v6613_v53  ;;  %v6617_v22 = vsel %vm3125_vm6, %v6558_v26, %v6616_v48  ;;  %v5400_v24 = vcombine.low %v15470_v1, %v5321_v46  ;;  %v5401_v27 = vcombine.high %v15470_v1, %v5321_v46  ;;  %7528 = vmatpush2.bf16.msra.mxu1 %v13327_v43  ;;  %v13342_v11 = vld [vmem:[#allocation13 + $0x340] ss:$16 sps:$4 sm:$0xff]  }
 0x45e   :  { %v6559_v58 = vunpack.c.l.b16 %v12887_v6  ;;  %v6560_v25 = vunpack.c.h.b16 %v12887_v6  ;;  %v5300_v38 = vmax.f32 %v5268_v8, 0.0  ;;  %v5215_v2 = vadd.f32 %v5179_v21, %v15296_v23  ;;  %v13333_v23 = vld [vmem:[#allocation13 + $0x388] ss:$16 sps:$4 sm:$0xff]   ;;  %7529 = vmatprep.subr.bf16.mxu1 %v13335_v40  ;;  %v13338_v6 = vld [vmem:[#allocation13 + $0x364] ss:$16 sps:$4 sm:$0xff]  }
 0x45f   :  { %v5408_v31 = vrot.slane %v5400_v24, %v14327_v17  ;;  %v5415_v35 = vrot.slane %v5401_v27, %v14327_v17  ;;  %v5216_v52 = vadd.f32 %v5108_v15, %v15303_v42  ;;  %v15514_v63 = vadd.f32 %v15356_v16, %v5213_v45  ;;  %7477 = vmatpush2.bf16.msra.mxu0 %v13330_v32  ;;  %v13341_v15 = vld [vmem:[#allocation13 + $0x36c] ss:$16 sps:$4 sm:$0xff]   ;;  %v13344_v45 = vld [vmem:[#allocation13 + $0x344] ss:$16 sps:$4 sm:$0xff]   ;;  %v13345_v40 = vld [vmem:[#allocation13 + $0x348] ss:$16 sps:$4 sm:$0xff]  }
 0x460   :  { %v6615_v1 = vsel %vm2490_vm1, %v6559_v58, %v6614_v39  ;;  %v6618_v20 = vsel %vm2490_vm1, %v6560_v25, %v6617_v22  ;;  %v15508_v0 = vmax.f32 %v5298_v59, %v5300_v38  ;;  %v15517_v51 = vadd.f32 %v15359_v4, %v5215_v2  ;;  %7478 = vmatprep.subr.bf16.mxu0 %v13338_v6  ;;  %v13347_v2 = vld [vmem:[#allocation13 + $0x34c] ss:$16 sps:$4 sm:$0xff]  }
 0x461   :  { %v6651_v30 = vpack.c.b16 %v6618_v20, %v6615_v1  ;;  %v5416_v60 = vcombine.high %v5408_v31, %v5408_v31  ;;  %v5417_v13 = vcombine.high %v5415_v35, %v5415_v35  ;;  %v5592_v55 = vrot.slane %v5408_v31, %v14327_v17  ;;  %7530 = vmatpush2.bf16.msra.mxu1 %v13333_v23 }
 0x462   :  { %v5608_v5 = vrot.slane %v5415_v35, %v14327_v17  ;;  %v15520_v42 = vadd.f32 %v15350_v14, %v5216_v52  ;;  %v5299_v56 = vmax.f32 %v15514_v63, 0.0  ;;  %7531 = vmatprep.subr.bf16.mxu1 %v13341_v15 }
 0x463   :  { %v6677_v44 = vsel %vm15130_vm14, %v6651_v30, %v6676_v10  ;;  %v5593_v37 = vcombine.high %v5592_v55, %v5592_v55  ;;  %v5600_v41 = vrot.slane %v5416_v60, %v14327_v17  ;;  %v5616_v9 = vrot.slane %v5417_v13, %v14327_v17  ;;  %7479 = vmatpush2.bf16.msra.mxu0 %v13336_v62  ;;  %v13348_v62 = vld [vmem:[#allocation13 + $0x320] ss:$16 sps:$4 sm:$0xff]  }
 0x464   :  { %6678 = vst [vmem:[#allocation3 + $0x10] sm:$0x77] %v6677_v44  ;;  %v5609_v34 = vcombine.high %v5608_v5, %v5608_v5  ;;  %v5978_v26 = vsel %vm1590_vm3, %v5592_v55, -inf  ;;  %v6006_v46 = vsel %vm1590_vm3, %v5608_v5, -inf  ;;  %7480 = vmatprep.subr.bf16.mxu0 %v13344_v45  ;;  %v5181_v45 = vpop.f32.mrf.mxu1 }
 0x465   :  { %v5601_v53 = vcombine.high %v5600_v41, %v5600_v41  ;;  %v5617_v48 = vcombine.high %v5616_v9, %v5616_v9  ;;  %v5979_v8 = vrot.slane %v5978_v26, 4  ;;  %v5985_v21 = vsel %vm1590_vm3, %v5593_v37, -inf  ;;  %7532 = vmatpush2.bf16.msra.mxu1 %v13339_v50 }
 0x466   :  { %v5986_v39 = vrot.slane %v5985_v21, 4  ;;  %v5992_v22 = vsel %vm1590_vm3, %v5600_v41, -inf  ;;  %v6007_v24 = vrot.slane %v6006_v46, 4  ;;  %v6013_v27 = vsel %vm1590_vm3, %v5609_v34, -inf  ;;  %7533 = vmatprep.subr.bf16.mxu1 %v13347_v2  ;;  %v13354_v2 = vld [vmem:[#allocation13 + $0x300] ss:$16 sps:$4 sm:$0xff]  }
 0x467   :  { %v5980_v54 = vmax.f32 %v5978_v26, %v5979_v8  ;;  %v5993_v43 = vrot.slane %v5992_v22, 4  ;;  %v5999_v58 = vsel %vm1590_vm3, %v5601_v53, -inf  ;;  %v6014_v25 = vrot.slane %v6013_v27, 4  ;;  %7481 = vmatpush2.bf16.msra.mxu0 %v13342_v11  ;;  %v13350_v26 = vld [vmem:[#allocation13 + $0x324] ss:$16 sps:$4 sm:$0xff]  }
 0x468   :  { %v5987_v59 = vmax.f32 %v5985_v21, %v5986_v39  ;;  %v6000_v38 = vrot.slane %v5999_v58, 4  ;;  %v6008_v31 = vmax.f32 %v6006_v46, %v6007_v24  ;;  %v6020_v35 = vsel %vm1590_vm3, %v5616_v9, -inf  ;;  %v13353_v46 = vld [vmem:[#allocation13 + $0x32c] ss:$16 sps:$4 sm:$0xff]   ;;  %7482 = vmatprep.subr.bf16.mxu0 %v13350_v26  ;;  %v13357_v11 = vld [vmem:[#allocation13 + $0x308] ss:$16 sps:$4 sm:$0xff]   ;;  %v5183_v26 = vpop.f32.mrf.mxu1 }
 0x469   :  { %v5981_v1 = vrot.slane %v5980_v54, 2  ;;  %v5994_v20 = vmax.f32 %v5992_v22, %v5993_v43  ;;  %v6015_v10 = vmax.f32 %v6013_v27, %v6014_v25  ;;  %v6021_v52 = vrot.slane %v6020_v35, 4  ;;  %7534 = vmatpush2.bf16.msra.mxu1 %v13345_v40  ;;  %v13356_v27 = vld [vmem:[#allocation13 + $0x304] ss:$16 sps:$4 sm:$0xff]   ;;  %v13359_v25 = vld [vmem:[#allocation13 + $0x30c] ss:$16 sps:$4 sm:$0xff]  }
 0x46a   :  { %v5988_v30 = vrot.slane %v5987_v59, 2  ;;  %v6001_v60 = vmax.f32 %v5999_v58, %v6000_v38  ;;  %v6009_v13 = vrot.slane %v6008_v31, 2  ;;  %v6027_v55 = vsel %vm1590_vm3, %v5617_v48, -inf  ;;  %v13351_v48 = vld [vmem:[#allocation13 + $0x328] ss:$16 sps:$4 sm:$0xff]   ;;  %7535 = vmatprep.subr.bf16.mxu1 %v13353_v46 }
 0x46b   :  { %v5982_v32 = vmax.f32 %v5980_v54, %v5981_v1  ;;  %v5995_v23 = vrot.slane %v5994_v20, 2  ;;  %v6016_v5 = vrot.slane %v6015_v10, 2  ;;  %v6022_v44 = vmax.f32 %v6020_v35, %v6021_v52  ;;  %7483 = vmatpush2.bf16.msra.mxu0 %v13348_v62  ;;  %v13365_v46 = vld [vmem:[#allocation13 + $0xec] ss:$16 sps:$4 sm:$0xff]  }
 0x46c   :  { %v5989_v37 = vmax.f32 %v5987_v59, %v5988_v30  ;;  %v6002_v41 = vrot.slane %v6001_v60, 2  ;;  %v6010_v9 = vmax.f32 %v6008_v31, %v6009_v13  ;;  %v6028_v34 = vrot.slane %v6027_v55, 4  ;;  %7484 = vmatprep.subr.bf16.mxu0 %v13356_v27  ;;  %v15668_v57 = vld.sshfl [vmem:[#allocation3 + $0x10] sm:$0x5f pattern:$0x76325410] }
 0x46d   :  { %v5983_v6 = vrot.slane %v5982_v32, 1  ;;  %v5996_v53 = vmax.f32 %v5994_v20, %v5995_v23  ;;  %v6017_v8 = vmax.f32 %v6015_v10, %v6016_v5  ;;  %v6023_v21 = vrot.slane %v6022_v44, 2  ;;  %7536 = vmatpush2.bf16.msra.mxu1 %v13351_v48 }
 0x46e   :  { %v5990_v50 = vrot.slane %v5989_v37, 1  ;;  %v6003_v39 = vmax.f32 %v6001_v60, %v6002_v41  ;;  %v6011_v22 = vrot.slane %v6010_v9, 1  ;;  %v6029_v24 = vmax.f32 %v6027_v55, %v6028_v34  ;;  %7537 = vmatprep.subr.bf16.mxu1 %v13359_v25  ;;  %v5110_v34 = vpop.f32.mrf.mxu0 }
 0x46f   :  { %v5984_v15 = vmax.f32 %v5982_v32, %v5983_v6  ;;  %v5997_v54 = vrot.slane %v5996_v53, 1  ;;  %v6018_v43 = vrot.slane %v6017_v8, 1  ;;  %v6024_v58 = vmax.f32 %v6022_v44, %v6023_v21  ;;  %v13362_v44 = vld [vmem:[#allocation13 + $0xe4] ss:$16 sps:$4 sm:$0xff]   ;;  %7485 = vmatpush2.bf16.msra.mxu0 %v13354_v2 }
 0x470   :  { %v5991_v59 = vmax.f32 %v5989_v37, %v5990_v50  ;;  %v6004_v38 = vrot.slane %v6003_v39, 1  ;;  %v6012_v31 = vmax.f32 %v6010_v9, %v6011_v22  ;;  %v6030_v35 = vrot.slane %v6029_v24, 2  ;;  %7920 = vmatprep.subr.bf16.mxu0 %v13362_v44 }
 0x471   :  { %v5998_v1 = vmax.f32 %v5996_v53, %v5997_v54  ;;  %v6019_v20 = vmax.f32 %v6017_v8, %v6018_v43  ;;  %v6025_v10 = vrot.slane %v6024_v58, 1  ;;  %v5301_v52 = vmax.f32 %v15517_v51, 0.0  ;;  %7538 = vmatpush2.bf16.msra.mxu1 %v13357_v11 }
 0x472   :  { %v6005_v40 = vmax.f32 %v6003_v39, %v6004_v38  ;;  %v6031_v30 = vmax.f32 %v6029_v24, %v6030_v35  ;;  %v12888_v60 = vpack.c.bf16 %v5991_v59, %v5984_v15  ;;  %v5302_v13 = vmax.f32 %v15520_v42, 0.0  ;;  %7973 = vmatprep.subr.bf16.mxu1 %v13365_v46 }
 0x473   :  { %v6026_v55 = vmax.f32 %v6024_v58, %v6025_v10  ;;  %v12890_v32 = vpack.c.bf16 %v6019_v20, %v6012_v31  ;;  %v5323_v23 = vmax.f32 %v5299_v56, %v5301_v52  ;;  %v5218_v5 = vadd.f32 %v5181_v45, %v15306_v19  ;;  %v6679_v20 = vld [vmem:[#allocation3 + $0x18] sm:$0x77] }
 0x474   :  { %v6032_v37 = vrot.slane %v6031_v30, 1  ;;  %v12889_v41 = vpack.c.bf16 %v6005_v40, %v5998_v1  ;;  %v6561_v51 = vunpack.c.l.b16 %v12888_v60  ;;  %v6562_v9 = vunpack.c.h.b16 %v12888_v60 }
 0x475   :  { %v6565_v6 = vunpack.c.l.b16 %v12890_v32  ;;  %v6566_v53 = vunpack.c.h.b16 %v12890_v32  ;;  %v5418_v42 = vcombine.low %v15508_v0, %v5323_v23  ;;  %v5419_v8 = vcombine.high %v15508_v0, %v5323_v23 }
 0x476   :  { %v6033_v63 = vmax.f32 %v6031_v30, %v6032_v37  ;;  %v6563_v56 = vunpack.c.l.b16 %v12889_v41  ;;  %v6564_v19 = vunpack.c.h.b16 %v12889_v41  ;;  %v5272_v21 = vadd.f32 %v15353_v3, %v5218_v5 }
 0x477   :  { %v5426_v62 = vrot.slane %v5418_v42, %v14327_v17  ;;  %v5433_v48 = vrot.slane %v5419_v8, %v14327_v17  ;;  %v5217_v50 = vadd.f32 %v5110_v34, %v15309_v36  ;;  %v15547_v39 = vadd.f32 %v5183_v26, %v15312_v7 }
 0x478   :  { %v12891_v22 = vpack.c.bf16 %v6033_v63, %v6026_v55  ;;  %v6619_v0 = vsel %vm3123_vm4, %v6563_v56, %v6561_v51  ;;  %v6622_v24 = vsel %vm3123_vm4, %v6564_v19, %v6562_v9  ;;  %v5304_v27 = vmax.f32 %v5272_v21, 0.0 }
 0x479   :  { %v6620_v15 = vsel %vm3125_vm6, %v6565_v6, %v6619_v0  ;;  %v6623_v54 = vsel %vm3125_vm6, %v6566_v53, %v6622_v24  ;;  %v5434_v43 = vcombine.high %v5426_v62, %v5426_v62  ;;  %v5435_v58 = vcombine.high %v5433_v48, %v5433_v48 }
 0x47a   :  { %v6567_v25 = vunpack.c.l.b16 %v12891_v22  ;;  %v6568_v59 = vunpack.c.h.b16 %v12891_v22  ;;  %v5624_v38 = vrot.slane %v5426_v62, %v14327_v17  ;;  %v5640_v36 = vrot.slane %v5433_v48, %v14327_v17 }
 0x47b   :  { %v5632_v7 = vrot.slane %v5434_v43, %v14327_v17  ;;  %v5648_v31 = vrot.slane %v5435_v58, %v14327_v17  ;;  %v15557_v35 = vmax.f32 %v5302_v13, %v5304_v27  ;;  %v15560_v45 = vadd.f32 %v15356_v16, %v5217_v50 }
 0x47c   :  { %v6621_v2 = vsel %vm2490_vm1, %v6567_v25, %v6620_v15  ;;  %v6624_v1 = vsel %vm2490_vm1, %v6568_v59, %v6623_v54  ;;  %v5625_v10 = vcombine.high %v5624_v38, %v5624_v38  ;;  %v5641_v52 = vcombine.high %v5640_v36, %v5640_v36 }
 0x47d   :  { %v6652_v11 = vpack.c.b16 %v6624_v1, %v6621_v2  ;;  %v5633_v40 = vcombine.high %v5632_v7, %v5632_v7  ;;  %v5649_v30 = vcombine.high %v5648_v31, %v5648_v31  ;;  %v6034_v60 = vsel %vm1590_vm3, %v5624_v38, -inf }
 0x47e   :  { %v6035_v55 = vrot.slane %v6034_v60, 4  ;;  %v6041_v32 = vsel %vm1590_vm3, %v5625_v10, -inf  ;;  %v6048_v13 = vsel %vm1590_vm3, %v5632_v7, -inf  ;;  %v6062_v23 = vsel %vm1590_vm3, %v5640_v36, -inf }
 0x47f   :  { %v6680_v5 = vsel %vm15130_vm14, %v6652_v11, %v6679_v20  ;;  %v6042_v44 = vrot.slane %v6041_v32, 4  ;;  %v6049_v37 = vrot.slane %v6048_v13, 4  ;;  %v6055_v41 = vsel %vm1590_vm3, %v5633_v40, -inf }
 0x480   :  { %6681 = vst [vmem:[#allocation3 + $0x18] sm:$0x77] %v6680_v5  ;;  %v6036_v51 = vmax.f32 %v6034_v60, %v6035_v55  ;;  %v6056_v9 = vrot.slane %v6055_v41, 4  ;;  %v6063_v34 = vrot.slane %v6062_v23, 4  ;;  %v6069_v26 = vsel %vm1590_vm3, %v5641_v52, -inf }
 0x481   :  { %v6043_v46 = vmax.f32 %v6041_v32, %v6042_v44  ;;  %v6050_v6 = vmax.f32 %v6048_v13, %v6049_v37  ;;  %v6070_v53 = vrot.slane %v6069_v26, 4  ;;  %v6076_v42 = vsel %vm1590_vm3, %v5648_v31, -inf  ;;  %v6273_v32 = vld [vmem:[#allocation3 + $0x28] sm:$0x11]  ;;  %v6304_v13 = vld [vmem:[#allocation3 + $0x28] sm:$0x44] }
 0x482   :  { %v6037_v8 = vrot.slane %v6036_v51, 2  ;;  %v6057_v63 = vmax.f32 %v6055_v41, %v6056_v9  ;;  %v6064_v56 = vmax.f32 %v6062_v23, %v6063_v34  ;;  %v6077_v19 = vrot.slane %v6076_v42, 4 }
 0x483   :  { %v6044_v21 = vrot.slane %v6043_v46, 2  ;;  %v6051_v62 = vrot.slane %v6050_v6, 2  ;;  %v6071_v48 = vmax.f32 %v6069_v26, %v6070_v53  ;;  %v6083_v50 = vsel %vm1590_vm3, %v5649_v30, -inf  ;;  %v5114_v26 = vpop.f32.mrf.mxu0 }
 0x484   :  { %v6038_v22 = vmax.f32 %v6036_v51, %v6037_v8  ;;  %v6058_v0 = vrot.slane %v6057_v63, 2  ;;  %v6065_v24 = vrot.slane %v6064_v56, 2  ;;  %v6078_v27 = vmax.f32 %v6076_v42, %v6077_v19  ;;  %v5187_v8 = vpop.f32.mrf.mxu1 }
 0x485   :  { %v6045_v15 = vmax.f32 %v6043_v46, %v6044_v21  ;;  %v6052_v54 = vmax.f32 %v6050_v6, %v6051_v62  ;;  %v6072_v43 = vrot.slane %v6071_v48, 2  ;;  %v6084_v58 = vrot.slane %v6083_v50, 4 }
 0x486   :  { %v6039_v25 = vrot.slane %v6038_v22, 1  ;;  %v6059_v59 = vmax.f32 %v6057_v63, %v6058_v0  ;;  %v6066_v38 = vmax.f32 %v6064_v56, %v6065_v24  ;;  %v6079_v36 = vrot.slane %v6078_v27, 2 }
 0x487   :  { %v6046_v7 = vrot.slane %v6045_v15, 1  ;;  %v6053_v31 = vrot.slane %v6052_v54, 1  ;;  %v6073_v2 = vmax.f32 %v6071_v48, %v6072_v43  ;;  %v6085_v1 = vmax.f32 %v6083_v50, %v6084_v58 }
 0x488   :  { %v6040_v20 = vmax.f32 %v6038_v22, %v6039_v25  ;;  %v6060_v10 = vrot.slane %v6059_v59, 1  ;;  %v6067_v52 = vrot.slane %v6066_v38, 1  ;;  %v6080_v11 = vmax.f32 %v6078_v27, %v6079_v36  ;;  %v5116_v27 = vpop.f32.mrf.mxu0  ;;  %v5189_v25 = vpop.f32.mrf.mxu1 }
 0x489   :  { %v6047_v40 = vmax.f32 %v6045_v15, %v6046_v7  ;;  %v6054_v30 = vmax.f32 %v6052_v54, %v6053_v31  ;;  %v6074_v60 = vrot.slane %v6073_v2, 1  ;;  %v6086_v55 = vrot.slane %v6085_v1, 2  ;;  %v6276_v7 = vld [vmem:[#allocation3 + $0x30] sm:$0x11] }
 0x48a   :  { %v6061_v23 = vmax.f32 %v6059_v59, %v6060_v10  ;;  %v6068_v5 = vmax.f32 %v6066_v38, %v6067_v52  ;;  %v6081_v44 = vrot.slane %v6080_v11, 1  ;;  %v5303_v37 = vmax.f32 %v15560_v45, 0.0 }
 0x48b   :  { %v6075_v41 = vmax.f32 %v6073_v2, %v6074_v60  ;;  %v6087_v51 = vmax.f32 %v6085_v1, %v6086_v55  ;;  %v12892_v9 = vpack.c.bf16 %v6047_v40, %v6040_v20  ;;  %v5273_v34 = vadd.f32 %v15359_v4, %v15547_v39 }
 0x48c   :  { %v6082_v46 = vmax.f32 %v6080_v11, %v6081_v44  ;;  %v12893_v6 = vpack.c.bf16 %v6061_v23, %v6054_v30  ;;  %v6274_v53 = vsel %vm14286_vm12, 0, %v6273_v32  ;;  %v6305_v42 = vsel %vm15222_vm5, 0, %v6304_v13  ;;  %v6307_v32 = vld [vmem:[#allocation3 + $0x30] sm:$0x44] }
 0x48d   :  { %v6088_v63 = vrot.slane %v6087_v51, 1  ;;  %v12894_v56 = vpack.c.bf16 %v6075_v41, %v6068_v5  ;;  %v6569_v19 = vunpack.c.l.b16 %v12892_v9  ;;  %v6570_v45 = vunpack.c.h.b16 %v12892_v9  ;;  %6275 = vst [vmem:[#allocation3 + $0x28] sm:$0x11] %v6274_v53  ;;  %6306 = vst [vmem:[#allocation3 + $0x28] sm:$0x44] %v6305_v42 }
 0x48e   :  { %v6571_v21 = vunpack.c.l.b16 %v12893_v6  ;;  %v6572_v62 = vunpack.c.h.b16 %v12893_v6  ;;  %v5305_v48 = vmax.f32 %v5273_v34, 0.0  ;;  %v5220_v39 = vadd.f32 %v5114_v26, %v15315_v49 }
 0x48f   :  { %v6089_v50 = vmax.f32 %v6087_v51, %v6088_v63  ;;  %v6573_v22 = vunpack.c.l.b16 %v12894_v56  ;;  %v6574_v0 = vunpack.c.h.b16 %v12894_v56  ;;  %v5222_v24 = vadd.f32 %v5187_v8, %v15318_v18 }
 0x490   :  { %v6625_v15 = vsel %vm3123_vm4, %v6571_v21, %v6569_v19  ;;  %v6628_v54 = vsel %vm3123_vm4, %v6572_v62, %v6570_v45  ;;  %v5325_v43 = vmax.f32 %v5303_v37, %v5305_v48  ;;  %v5274_v58 = vadd.f32 %v15350_v14, %v5220_v39 }
 0x491   :  { %v12895_v59 = vpack.c.bf16 %v6089_v50, %v6082_v46  ;;  %v6626_v38 = vsel %vm3125_vm6, %v6573_v22, %v6625_v15  ;;  %v6629_v36 = vsel %vm3125_vm6, %v6574_v0, %v6628_v54  ;;  %v5276_v49 = vadd.f32 %v15353_v3, %v5222_v24 }
 0x492   :  { %v5436_v31 = vcombine.low %v15557_v35, %v5325_v43  ;;  %v5437_v18 = vcombine.high %v15557_v35, %v5325_v43  ;;  %v5306_v2 = vmax.f32 %v5274_v58, 0.0  ;;  %v5221_v1 = vadd.f32 %v5116_v27, %v15321_v28  ;;  %v6682_v28 = vld [vmem:[#allocation3 + $0x20] sm:$0x77] }
 0x493   :  { %v6575_v20 = vunpack.c.l.b16 %v12895_v59  ;;  %v6576_v10 = vunpack.c.h.b16 %v12895_v59  ;;  %v5308_v52 = vmax.f32 %v5276_v49, 0.0  ;;  %v5223_v11 = vadd.f32 %v5189_v25, %v15324_v61 }
 0x494   :  { %v5444_v40 = vrot.slane %v5436_v31, %v14327_v17  ;;  %v5451_v30 = vrot.slane %v5437_v18, %v14327_v17  ;;  %v5275_v60 = vadd.f32 %v15356_v16, %v5221_v1  ;;  %v6277_v55 = vsel %vm14286_vm12, 0, %v6276_v7 }
 0x495   :  { %v6627_v35 = vsel %vm2490_vm1, %v6575_v20, %v6626_v38  ;;  %v6630_v13 = vsel %vm2490_vm1, %v6576_v10, %v6629_v36  ;;  %v15600_v23 = vmax.f32 %v5306_v2, %v5308_v52  ;;  %v5277_v5 = vadd.f32 %v15359_v4, %v5223_v11  ;;  %6278 = vst [vmem:[#allocation3 + $0x30] sm:$0x11] %v6277_v55 }
 0x496   :  { %v6653_v61 = vpack.c.b16 %v6630_v13, %v6627_v35  ;;  %v5452_v44 = vcombine.high %v5444_v40, %v5444_v40  ;;  %v5453_v37 = vcombine.high %v5451_v30, %v5451_v30  ;;  %v5656_v41 = vrot.slane %v5444_v40, %v14327_v17 }
 0x497   :  { %v5672_v51 = vrot.slane %v5451_v30, %v14327_v17  ;;  %v5307_v9 = vmax.f32 %v5275_v60, 0.0  ;;  %v5309_v34 = vmax.f32 %v5277_v5, 0.0  ;;  %v6308_v26 = vsel %vm15222_vm5, 0, %v6307_v32 }
 0x498   :  { %v6683_v46 = vsel %vm15130_vm14, %v6653_v61, %v6682_v28  ;;  %v5657_v6 = vcombine.high %v5656_v41, %v5656_v41  ;;  %v5664_v53 = vrot.slane %v5452_v44, %v14327_v17  ;;  %v5680_v42 = vrot.slane %v5453_v37, %v14327_v17  ;;  %6309 = vst [vmem:[#allocation3 + $0x30] sm:$0x44] %v6308_v26 }
 0x499   :  { %6684 = vst [vmem:[#allocation3 + $0x20] sm:$0x77] %v6683_v46  ;;  %v5673_v8 = vcombine.high %v5672_v51, %v5672_v51  ;;  %v6090_v63 = vsel %vm1590_vm3, %v5656_v41, -inf  ;;  %v6118_v56 = vsel %vm1590_vm3, %v5672_v51, -inf  ;;  %v15613_v19 = vmax.f32 %v5307_v9, %v5309_v34 }
 0x49a   :  { %v5665_v45 = vcombine.high %v5664_v53, %v5664_v53  ;;  %v5681_v21 = vcombine.high %v5680_v42, %v5680_v42  ;;  %v6091_v62 = vrot.slane %v6090_v63, 4  ;;  %v6097_v48 = vsel %vm1590_vm3, %v5657_v6, -inf }
 0x49b   :  { %v6098_v39 = vrot.slane %v6097_v48, 4  ;;  %v6104_v50 = vsel %vm1590_vm3, %v5664_v53, -inf  ;;  %v6119_v22 = vrot.slane %v6118_v56, 4  ;;  %v6125_v0 = vsel %vm1590_vm3, %v5673_v8, -inf }
 0x49c   :  { %v6092_v24 = vmax.f32 %v6090_v63, %v6091_v62  ;;  %v6105_v27 = vrot.slane %v6104_v50, 4  ;;  %v6111_v15 = vsel %vm1590_vm3, %v5665_v45, -inf  ;;  %v6126_v54 = vrot.slane %v6125_v0, 4 }
 0x49d   :  { %v6099_v43 = vmax.f32 %v6097_v48, %v6098_v39  ;;  %v6112_v58 = vrot.slane %v6111_v15, 4  ;;  %v6120_v25 = vmax.f32 %v6118_v56, %v6119_v22  ;;  %v6132_v59 = vsel %vm1590_vm3, %v5680_v42, -inf  ;;  %v5118_v42 = vpop.f32.mrf.mxu0 }
 0x49e   :  { %v6093_v38 = vrot.slane %v6092_v24, 2  ;;  %v6106_v36 = vmax.f32 %v6104_v50, %v6105_v27  ;;  %v6127_v49 = vmax.f32 %v6125_v0, %v6126_v54  ;;  %v6133_v7 = vrot.slane %v6132_v59, 4 }
 0x49f   :  { %v6100_v31 = vrot.slane %v6099_v43, 2  ;;  %v6113_v18 = vmax.f32 %v6111_v15, %v6112_v58  ;;  %v6121_v2 = vrot.slane %v6120_v25, 2  ;;  %v6139_v1 = vsel %vm1590_vm3, %v5681_v21, -inf }
 0x4a0   :  { %v6094_v20 = vmax.f32 %v6092_v24, %v6093_v38  ;;  %v6107_v10 = vrot.slane %v6106_v36, 2  ;;  %v6128_v52 = vrot.slane %v6127_v49, 2  ;;  %v6134_v11 = vmax.f32 %v6132_v59, %v6133_v7 }
 0x4a1   :  { %v6101_v40 = vmax.f32 %v6099_v43, %v6100_v31  ;;  %v6114_v30 = vrot.slane %v6113_v18, 2  ;;  %v6122_v60 = vmax.f32 %v6120_v25, %v6121_v2  ;;  %v6140_v55 = vrot.slane %v6139_v1, 4 }
 0x4a2   :  { %v6095_v32 = vrot.slane %v6094_v20, 1  ;;  %v6108_v35 = vmax.f32 %v6106_v36, %v6107_v10  ;;  %v6129_v13 = vmax.f32 %v6127_v49, %v6128_v52  ;;  %v6135_v28 = vrot.slane %v6134_v11, 2 }
 0x4a3   :  { %v6102_v5 = vrot.slane %v6101_v40, 1  ;;  %v6115_v61 = vmax.f32 %v6113_v18, %v6114_v30  ;;  %v6123_v44 = vrot.slane %v6122_v60, 1  ;;  %v6141_v37 = vmax.f32 %v6139_v1, %v6140_v55 }
 0x4a4   :  { %v6096_v41 = vmax.f32 %v6094_v20, %v6095_v32  ;;  %v6109_v51 = vrot.slane %v6108_v35, 1  ;;  %v6130_v9 = vrot.slane %v6129_v13, 1  ;;  %v6136_v34 = vmax.f32 %v6134_v11, %v6135_v28 }
 0x4a5   :  { %v6103_v26 = vmax.f32 %v6101_v40, %v6102_v5  ;;  %v6116_v46 = vrot.slane %v6115_v61, 1  ;;  %v6124_v6 = vmax.f32 %v6122_v60, %v6123_v44  ;;  %v6142_v53 = vrot.slane %v6141_v37, 2 }
 0x4a6   :  { %v6110_v8 = vmax.f32 %v6108_v35, %v6109_v51  ;;  %v6131_v63 = vmax.f32 %v6129_v13, %v6130_v9  ;;  %v6137_v56 = vrot.slane %v6136_v34, 1  ;;  %v5454_v45 = vcombine.low %v15600_v23, %v15613_v19 }
 0x4a7   :  { %v6117_v21 = vmax.f32 %v6115_v61, %v6116_v46  ;;  %v6143_v62 = vmax.f32 %v6141_v37, %v6142_v53  ;;  %v12896_v48 = vpack.c.bf16 %v6103_v26, %v6096_v41  ;;  %v5455_v39 = vcombine.high %v15600_v23, %v15613_v19  ;;  %v6685_v37 = vld [vmem:[#allocation3 + $0x28] sm:$0x77] }
 0x4a8   :  { %v6138_v50 = vmax.f32 %v6136_v34, %v6137_v56  ;;  %v12898_v22 = vpack.c.bf16 %v6131_v63, %v6124_v6  ;;  %v5462_v0 = vrot.slane %v5454_v45, %v14327_v17  ;;  %v5224_v24 = vadd.f32 %v5118_v42, %v15327_v47 }
 0x4a9   :  { %v6144_v27 = vrot.slane %v6143_v62, 1  ;;  %v12897_v15 = vpack.c.bf16 %v6117_v21, %v6110_v8  ;;  %v6577_v54 = vunpack.c.l.b16 %v12896_v48  ;;  %v6578_v43 = vunpack.c.h.b16 %v12896_v48 }
 0x4aa   :  { %v6581_v58 = vunpack.c.l.b16 %v12898_v22  ;;  %v6582_v25 = vunpack.c.h.b16 %v12898_v22  ;;  %v5469_v59 = vrot.slane %v5455_v39, %v14327_v17  ;;  %v5470_v38 = vcombine.high %v5462_v0, %v5462_v0 }
 0x4ab   :  { %v6145_v36 = vmax.f32 %v6143_v62, %v6144_v27  ;;  %v6579_v49 = vunpack.c.l.b16 %v12897_v15  ;;  %v6580_v7 = vunpack.c.h.b16 %v12897_v15  ;;  %v5688_v23 = vrot.slane %v5462_v0, %v14327_v17 }
 0x4ac   :  { %v5471_v19 = vcombine.high %v5469_v59, %v5469_v59  ;;  %v5696_v31 = vrot.slane %v5470_v38, %v14327_v17  ;;  %v5704_v18 = vrot.slane %v5469_v59, %v14327_v17  ;;  %v15632_v47 = vadd.f32 %v15350_v14, %v5224_v24 }
 0x4ad   :  { %v12899_v2 = vpack.c.bf16 %v6145_v36, %v6138_v50  ;;  %v6631_v1 = vsel %vm3123_vm4, %v6579_v49, %v6577_v54  ;;  %v6634_v20 = vsel %vm3123_vm4, %v6580_v7, %v6578_v43  ;;  %v5689_v10 = vcombine.high %v5688_v23, %v5688_v23 }
 0x4ae   :  { %v6632_v52 = vsel %vm3125_vm6, %v6581_v58, %v6631_v1  ;;  %v6635_v11 = vsel %vm3125_vm6, %v6582_v25, %v6634_v20  ;;  %v5697_v40 = vcombine.high %v5696_v31, %v5696_v31  ;;  %v5705_v30 = vcombine.high %v5704_v18, %v5704_v18  ;;  %v5191_v20 = vpop.f32.mrf.mxu1 }
 0x4af   :  { %v6583_v60 = vunpack.c.l.b16 %v12899_v2  ;;  %v6584_v55 = vunpack.c.h.b16 %v12899_v2  ;;  %v5712_v32 = vrot.slane %v5471_v19, %v14327_v17  ;;  %v6146_v35 = vsel %vm1590_vm3, %v5688_v23, -inf }
 0x4b0   :  { %v6147_v14 = vrot.slane %v6146_v35, 4  ;;  %v6153_v13 = vsel %vm1590_vm3, %v5689_v10, -inf  ;;  %v6160_v28 = vsel %vm1590_vm3, %v5696_v31, -inf  ;;  %v6167_v5 = vsel %vm1590_vm3, %v5697_v40, -inf }
 0x4b1   :  { %v6633_v61 = vsel %vm2490_vm1, %v6583_v60, %v6632_v52  ;;  %v6636_v44 = vsel %vm2490_vm1, %v6584_v55, %v6635_v11  ;;  %v5713_v41 = vcombine.high %v5712_v32, %v5712_v32  ;;  %v6154_v51 = vrot.slane %v6153_v13, 4 }
 0x4b2   :  { %v6654_v9 = vpack.c.b16 %v6636_v44, %v6633_v61  ;;  %v6148_v34 = vmax.f32 %v6146_v35, %v6147_v14  ;;  %v6161_v26 = vrot.slane %v6160_v28, 4  ;;  %v6168_v46 = vrot.slane %v6167_v5, 4 }
 0x4b3   :  { %v6155_v6 = vmax.f32 %v6153_v13, %v6154_v51  ;;  %v6174_v53 = vsel %vm1590_vm3, %v5704_v18, -inf  ;;  %v6181_v42 = vsel %vm1590_vm3, %v5705_v30, -inf  ;;  %v6188_v8 = vsel %vm1590_vm3, %v5712_v32, -inf  ;;  %v5120_v30 = vpop.f32.mrf.mxu0 }
 0x4b4   :  { %v6686_v63 = vsel %vm15130_vm14, %v6654_v9, %v6685_v37  ;;  %v6149_v56 = vrot.slane %v6148_v34, 2  ;;  %v6162_v45 = vmax.f32 %v6160_v28, %v6161_v26  ;;  %v6169_v21 = vmax.f32 %v6167_v5, %v6168_v46  ;;  %v5193_v9 = vpop.f32.mrf.mxu1 }
 0x4b5   :  { %6687 = vst [vmem:[#allocation3 + $0x28] sm:$0x77] %v6686_v63  ;;  %v6156_v62 = vrot.slane %v6155_v6, 2  ;;  %v6175_v48 = vrot.slane %v6174_v53, 4  ;;  %v6182_v39 = vrot.slane %v6181_v42, 4  ;;  %v6189_v50 = vrot.slane %v6188_v8, 4 }
 0x4b6   :  { %v6150_v22 = vmax.f32 %v6148_v34, %v6149_v56  ;;  %v6163_v0 = vrot.slane %v6162_v45, 2  ;;  %v6170_v24 = vrot.slane %v6169_v21, 2  ;;  %v6195_v27 = vsel %vm1590_vm3, %v5713_v41, -inf  ;;  %v16543_v41 = vld [vmem:[#allocation27_spill] sm:$0xff] }
 0x4b7   :  { %v6157_v15 = vmax.f32 %v6155_v6, %v6156_v62  ;;  %v6176_v54 = vmax.f32 %v6174_v53, %v6175_v48  ;;  %v6183_v43 = vmax.f32 %v6181_v42, %v6182_v39  ;;  %v6190_v58 = vmax.f32 %v6188_v8, %v6189_v50  ;;  %v6279_v53 = vld [vmem:[#allocation3 + $0x38] sm:$0x11] }
 0x4b8   :  { %v6151_v25 = vrot.slane %v6150_v22, 1  ;;  %v6164_v59 = vmax.f32 %v6162_v45, %v6163_v0  ;;  %v6171_v38 = vmax.f32 %v6169_v21, %v6170_v24  ;;  %v6196_v36 = vrot.slane %v6195_v27, 4  ;;  %v16544_v62 = vld [vmem:[#allocation28_spill] sm:$0xff] }
 0x4b9   :  { %v6158_v49 = vrot.slane %v6157_v15, 1  ;;  %v6177_v7 = vrot.slane %v6176_v54, 2  ;;  %v6184_v23 = vrot.slane %v6183_v43, 2  ;;  %v6191_v19 = vrot.slane %v6190_v58, 2 }
 0x4ba   :  { %v6152_v31 = vmax.f32 %v6150_v22, %v6151_v25  ;;  %v6165_v18 = vrot.slane %v6164_v59, 1  ;;  %v6172_v2 = vrot.slane %v6171_v38, 1  ;;  %v6197_v1 = vmax.f32 %v6195_v27, %v6196_v36 }
 0x4bb   :  { %v6159_v10 = vmax.f32 %v6157_v15, %v6158_v49  ;;  %v6178_v52 = vmax.f32 %v6176_v54, %v6177_v7  ;;  %v6185_v11 = vmax.f32 %v6183_v43, %v6184_v23  ;;  %v6192_v40 = vmax.f32 %v6190_v58, %v6191_v19  ;;  %v12291_v49 = vld.sshfl [vmem:[#allocation3] sm:$0x5f pattern:$0x76325410] }
 0x4bc   :  { %v6166_v60 = vmax.f32 %v6164_v59, %v6165_v18  ;;  %v6173_v55 = vmax.f32 %v6171_v38, %v6172_v2  ;;  %v6198_v32 = vrot.slane %v6197_v1, 2  ;;  %v5310_v35 = vmax.f32 %v15632_v47, 0.0  ;;  %v12292_v7 = vld.sshfl [vmem:[#allocation3 + $0x8] sm:$0x5f pattern:$0x76325410] }
 0x4bd   :  { %v6179_v14 = vrot.slane %v6178_v52, 1  ;;  %v6186_v13 = vrot.slane %v6185_v11, 1  ;;  %v6193_v28 = vrot.slane %v6192_v40, 1  ;;  %v12900_v5 = vpack.c.bf16 %v6159_v10, %v6152_v31  ;;  %v6688_v31 = vld [vmem:[#allocation3 + $0x30] sm:$0x77] }
 0x4be   :  { %v6199_v61 = vmax.f32 %v6197_v1, %v6198_v32  ;;  %v12901_v44 = vpack.c.bf16 %v6173_v55, %v6166_v60  ;;  %v5226_v37 = vadd.f32 %v5191_v20, %v15330_v12  ;;  %v5225_v51 = vadd.f32 %v5120_v30, %v16543_v41  ;;  %v6310_v12 = vld [vmem:[#allocation3 + $0x38] sm:$0x44] }
 0x4bf   :  { %v6180_v34 = vmax.f32 %v6178_v52, %v6179_v14  ;;  %v6187_v26 = vmax.f32 %v6185_v11, %v6186_v13  ;;  %v6194_v46 = vmax.f32 %v6192_v40, %v6193_v28  ;;  %v6585_v6 = vunpack.c.l.b16 %v12900_v5  ;;  %v15670_v52 = vld.sshfl [vmem:[#allocation3 + $0x18] sm:$0x5f pattern:$0x76325410] }
 0x4c0   :  { %v6200_v42 = vrot.slane %v6199_v61, 1  ;;  %v6586_v8 = vunpack.c.h.b16 %v12900_v5  ;;  %v6587_v63 = vunpack.c.l.b16 %v12901_v44  ;;  %v6588_v47 = vunpack.c.h.b16 %v12901_v44 }
 0x4c1   :  { %v12902_v56 = vpack.c.bf16 %v6187_v26, %v6180_v34  ;;  %v5280_v45 = vadd.f32 %v15353_v3, %v5226_v37  ;;  %v5279_v21 = vadd.f32 %v15356_v16, %v5225_v51  ;;  %v5227_v48 = vadd.f32 %v5193_v9, %v16544_v62 }
 0x4c2   :  { %v6201_v39 = vmax.f32 %v6199_v61, %v6200_v42  ;;  %v6637_v50 = vsel %vm3123_vm4, %v6587_v63, %v6585_v6  ;;  %v6640_v22 = vsel %vm3123_vm4, %v6588_v47, %v6586_v8  ;;  %v6280_v0 = vsel %vm14286_vm12, 0, %v6279_v53 }
 0x4c3   :  { %v6589_v24 = vunpack.c.l.b16 %v12902_v56  ;;  %v6590_v27 = vunpack.c.h.b16 %v12902_v56  ;;  %v5312_v15 = vmax.f32 %v5280_v45, 0.0  ;;  %6281 = vst [vmem:[#allocation3 + $0x38] sm:$0x11] %v6280_v0  ;;  %v5311_v43 = vmax.f32 %v5279_v21, 0.0 }
 0x4c4   :  { %v12903_v54 = vpack.c.bf16 %v6201_v39, %v6194_v46  ;;  %v5281_v3 = vadd.f32 %v15359_v4, %v5227_v48  ;;  %v6311_v16 = vsel %vm15222_vm5, 0, %v6310_v12  ;;  %v6918_v2 = vshrl.u32 %v12291_v49, 16 }
 0x4c5   :  { %v6638_v58 = vsel %vm3125_vm6, %v6589_v24, %v6637_v50  ;;  %v6641_v25 = vsel %vm3125_vm6, %v6590_v27, %v6640_v22  ;;  %v5328_v59 = vmax.f32 %v5310_v35, %v5312_v15  ;;  %6312 = vst [vmem:[#allocation3 + $0x38] sm:$0x44] %v6311_v16  ;;  %v6921_v1 = vshll.u32 %v12291_v49, 16 }
 0x4c6   :  { %v6591_v38 = vunpack.c.l.b16 %v12903_v54  ;;  %v6592_v29 = vunpack.c.h.b16 %v12903_v54  ;;  %v5313_v36 = vmax.f32 %v5281_v3, 0.0  ;;  %v6853_v11 = vcombine.high %v12291_v49, %v12291_v49 }
 0x4c7   :  { %v6932_v40 = vshrl.u32 %v12292_v7, 16  ;;  %v15674_v60 = vrot.slane %v6918_v2, 6  ;;  %v15676_v55 = vrot.slane %v6921_v1, 7  ;;  %v6935_v32 = vshll.u32 %v12292_v7, 16 }
 0x4c8   :  { %v6639_v23 = vsel %vm2490_vm1, %v6591_v38, %v6638_v58  ;;  %v6642_v19 = vsel %vm2490_vm1, %v6592_v29, %v6641_v25  ;;  %v5329_v4 = vmax.f32 %v5311_v43, %v5313_v36  ;;  %v6861_v13 = vcombine.high %v12292_v7, %v12292_v7 }
 0x4c9   :  { %v6655_v18 = vpack.c.b16 %v6642_v19, %v6639_v23  ;;  %v6869_v28 = vcombine.high %v15668_v57, %v15668_v57  ;;  %v6877_v5 = vcombine.high %v15670_v52, %v15670_v52  ;;  %v6924_v51 = vor.u32 %v15676_v55, %v15674_v60 }
 0x4ca   :  { %v5472_v20 = vcombine.low %v5328_v59, %v5329_v4  ;;  %v5473_v10 = vcombine.high %v5328_v59, %v5329_v4  ;;  %v15688_v9 = vshll.u32 %v6853_v11, 16  ;;  %v15690_v34 = vrot.slane %v6932_v40, 6 }
 0x4cb   :  { %v6689_v30 = vsel %vm15130_vm14, %v6655_v18, %v6688_v31  ;;  %v15692_v26 = vrot.slane %v6935_v32, 7  ;;  %v15698_v47 = vshll.u32 %v6861_v13, 16  ;;  %v6946_v56 = vshrl.u32 %v15668_v57, 16 }
 0x4cc   :  { %6690 = vst [vmem:[#allocation3 + $0x30] sm:$0x77] %v6689_v30  ;;  %v5480_v35 = vrot.slane %v5472_v20, %v14327_v17  ;;  %v5487_v14 = vrot.slane %v5473_v10, %v14327_v17  ;;  %vm6910_vm12 = vsmask.f32 1280  ;;  %v6963_v60 = vshll.u32 %v15670_v52, 16 }
 0x4cd   :  { %vm9351_vm5 = vcmask 1041409  }
 0x4ce   :  { %v5488_v61 = vcombine.high %v5480_v35, %v5480_v35  ;;  %v5489_v44 = vcombine.high %v5487_v14, %v5487_v14  ;;  %v5720_v37 = vrot.slane %v5480_v35, %v14327_v17  ;;  %v5736_v41 = vrot.slane %v5487_v14, %v14327_v17 }
 0x4d0   :  { %v5721_v46 = vcombine.high %v5720_v37, %v5720_v37  ;;  %v5728_v6 = vrot.slane %v5488_v61, %v14327_v17  ;;  %v5737_v53 = vcombine.high %v5736_v41, %v5736_v41  ;;  %v5744_v42 = vrot.slane %v5489_v44, %v14327_v17 }
 0x4d1   :  { %v6202_v8 = vsel %vm1590_vm3, %v5720_v37, -inf  ;;  %v6230_v63 = vsel %vm1590_vm3, %v5736_v41, -inf  ;;  %v6949_v41 = vshll.u32 %v15668_v57, 16  ;;  %v6929_v57 = vrot.slane %v15688_v9, 7 }
 0x4d2   :  { %v5729_v45 = vcombine.high %v5728_v6, %v5728_v6  ;;  %v5745_v21 = vcombine.high %v5744_v42, %v5744_v42  ;;  %v6203_v62 = vrot.slane %v6202_v8, 4  ;;  %v6209_v48 = vsel %vm1590_vm3, %v5721_v46, -inf }
 0x4d3   :  { %v6210_v12 = vrot.slane %v6209_v48, 4  ;;  %v6216_v39 = vsel %vm1590_vm3, %v5728_v6, -inf  ;;  %v6231_v50 = vrot.slane %v6230_v63, 4  ;;  %v6237_v22 = vsel %vm1590_vm3, %v5737_v53, -inf }
 0x4d4   :  { %v6204_v0 = vmax.f32 %v6202_v8, %v6203_v62  ;;  %v6217_v24 = vrot.slane %v6216_v39, 4  ;;  %v6223_v27 = vsel %vm1590_vm3, %v5729_v45, -inf  ;;  %v6238_v15 = vrot.slane %v6237_v22, 4 }
 0x4d5   :  { %v6211_v54 = vmax.f32 %v6209_v48, %v6210_v12  ;;  %v6224_v43 = vrot.slane %v6223_v27, 4  ;;  %v6232_v3 = vmax.f32 %v6230_v63, %v6231_v50  ;;  %v6244_v16 = vsel %vm1590_vm3, %v5744_v42, -inf }
 0x4d6   :  { %v6205_v58 = vrot.slane %v6204_v0, 2  ;;  %v6218_v25 = vmax.f32 %v6216_v39, %v6217_v24  ;;  %v6239_v59 = vmax.f32 %v6237_v22, %v6238_v15  ;;  %v6245_v38 = vrot.slane %v6244_v16, 4 }
 0x4d7   :  { %v6212_v29 = vrot.slane %v6211_v54, 2  ;;  %v6225_v36 = vmax.f32 %v6223_v27, %v6224_v43  ;;  %v6233_v49 = vrot.slane %v6232_v3, 2  ;;  %v6251_v7 = vsel %vm1590_vm3, %v5745_v21, -inf  ;;  %vm15712_vm3 = vmor %vm6910_vm12, %vm6911_vm7 }
 0x4d8   :  { %v6206_v23 = vmax.f32 %v6204_v0, %v6205_v58  ;;  %v6219_v19 = vrot.slane %v6218_v25, 2  ;;  %v6240_v31 = vrot.slane %v6239_v59, 2  ;;  %v6246_v4 = vmax.f32 %v6244_v16, %v6245_v38  ;;  %vm6914_vm13 = vmor %vm15712_vm3, %vm6913_vm11 }
 0x4d9   :  { %v6213_v18 = vmax.f32 %v6211_v54, %v6212_v29  ;;  %v6226_v2 = vrot.slane %v6225_v36, 2  ;;  %v6234_v1 = vmax.f32 %v6232_v3, %v6233_v49  ;;  %v6252_v20 = vrot.slane %v6251_v7, 4  ;;  %vm15733_vm15 = vmor %vm6914_vm13, %vm6915_vm10 }
 0x4da   :  { %v6207_v10 = vrot.slane %v6206_v23, 1  ;;  %v6220_v11 = vmax.f32 %v6218_v25, %v6219_v19  ;;  %v6241_v40 = vmax.f32 %v6239_v59, %v6240_v31  ;;  %v6247_v30 = vrot.slane %v6246_v4, 2  ;;  %v13387_v31 = vld [vmem:[#allocation13 + $0x68] ss:$16 sps:$4 sm:$0xff]  }
 0x4db   :  { %v6214_v32 = vrot.slane %v6213_v18, 1  ;;  %v6227_v35 = vmax.f32 %v6225_v36, %v6226_v2  ;;  %v6235_v14 = vrot.slane %v6234_v1, 1  ;;  %v6253_v13 = vmax.f32 %v6251_v7, %v6252_v20  ;;  %v12295_v2 = vld.sshfl [vmem:[#allocation3 + $0x20] sm:$0x5f pattern:$0x76325410] }
 0x4dc   :  { %v6221_v61 = vrot.slane %v6220_v11, 1  ;;  %v6242_v44 = vrot.slane %v6241_v40, 1  ;;  %v6248_v37 = vmax.f32 %v6246_v4, %v6247_v30  ;;  %v6208_v46 = vmax.f32 %v6206_v23, %v6207_v10  ;;  %v6691_v10 = vld [vmem:[#allocation3 + $0x38] sm:$0x77] }
 0x4dd   :  { %v6215_v6 = vmax.f32 %v6213_v18, %v6214_v32  ;;  %v6228_v53 = vrot.slane %v6227_v35, 1  ;;  %v6254_v42 = vrot.slane %v6253_v13, 2  ;;  %v6236_v8 = vmax.f32 %v6234_v1, %v6235_v14  ;;  %v12297_v14 = vld.sshfl [vmem:[#allocation3 + $0x30] sm:$0x5f pattern:$0x76325410] }
 0x4de   :  { %v6243_v63 = vmax.f32 %v6241_v40, %v6242_v44  ;;  %v6249_v45 = vrot.slane %v6248_v37, 1  ;;  %v6938_v21 = vor.u32 %v15692_v26, %v15690_v34  ;;  %v6222_v62 = vmax.f32 %v6220_v11, %v6221_v61 }
 0x4df   :  { %v6229_v48 = vmax.f32 %v6227_v35, %v6228_v53  ;;  %v6255_v12 = vmax.f32 %v6253_v13, %v6254_v42  ;;  %v12904_v39 = vpack.c.bf16 %v6215_v6, %v6208_v46  ;;  %v6948_v0 = vrot.slane %v6946_v56, 6 }
 0x4e0   :  { %v12906_v50 = vpack.c.bf16 %v6243_v63, %v6236_v8  ;;  %v6951_v24 = vrot.slane %v6949_v41, 7  ;;  %v6960_v27 = vshrl.u32 %v15670_v52, 16  ;;  %v6925_v34 = vrot.slane %v6924_v51, 2 }
 0x4e1   :  { %v6256_v15 = vrot.slane %v6255_v12, 1  ;;  %v12905_v54 = vpack.c.bf16 %v6229_v48, %v6222_v62  ;;  %v6943_v26 = vrot.slane %v15698_v47, 7  ;;  %v6250_v43 = vmax.f32 %v6248_v37, %v6249_v45 }
 0x4e2   :  { %v6593_v3 = vunpack.c.l.b16 %v12904_v39  ;;  %v6594_v16 = vunpack.c.h.b16 %v12904_v39  ;;  %v6939_v58 = vrot.slane %v6938_v21, 2  ;;  %v6597_v29 = vunpack.c.l.b16 %v12906_v50 }
 0x4e3   :  { %v6257_v25 = vmax.f32 %v6255_v12, %v6256_v15  ;;  %v6595_v59 = vunpack.c.l.b16 %v12905_v54  ;;  %v6596_v38 = vunpack.c.h.b16 %v12905_v54  ;;  %v6598_v56 = vunpack.c.h.b16 %v12906_v50  ;;  %v13360_v54 = vld [vmem:[#allocation13 + $0xe0] ss:$16 sps:$4 sm:$0xff]  }
 0x4e4   :  { %v6952_v36 = vor.u32 %v6951_v24, %v6948_v0  ;;  %v6962_v49 = vrot.slane %v6960_v27, 6  ;;  %v6955_v7 = vshll.u32 %v6869_v28, 16  ;;  %v6965_v4 = vrot.slane %v6963_v60, 7 }
 0x4e5   :  { %v12907_v55 = vpack.c.bf16 %v6257_v25, %v6250_v43  ;;  %v6643_v51 = vsel %vm3123_vm4, %v6595_v59, %v6593_v3  ;;  %v6646_v47 = vsel %vm3123_vm4, %v6596_v38, %v6594_v16  ;;  %v6969_v18 = vshll.u32 %v6877_v5, 16  ;;  %v12296_v28 = vld.sshfl [vmem:[#allocation3 + $0x28] sm:$0x5f pattern:$0x76325410] }
 0x4e6   :  { %v6644_v23 = vsel %vm3125_vm6, %v6597_v29, %v6643_v51  ;;  %v6647_v19 = vsel %vm3125_vm6, %v6598_v56, %v6646_v47  ;;  %v6944_v11 = vsel %vm15733_vm15, %v6939_v58, %v6943_v26  ;;  %v6953_v40 = vrot.slane %v6952_v36, 2  ;;  %v13368_v3 = vld [vmem:[#allocation13 + $0xc4] ss:$16 sps:$4 sm:$0xff]   ;;  %v13371_v16 = vld [vmem:[#allocation13 + $0xcc] ss:$16 sps:$4 sm:$0xff]  }
 0x4e7   :  { %v6599_v1 = vunpack.c.l.b16 %v12907_v55  ;;  %v6600_v20 = vunpack.c.h.b16 %v12907_v55  ;;  %v6966_v30 = vor.u32 %v6965_v4, %v6962_v49  ;;  %v6930_v52 = vsel %vm15733_vm15, %v6925_v34, %v6929_v57  ;;  %v13363_v34 = vld [vmem:[#allocation13 + $0xe8] ss:$16 sps:$4 sm:$0xff]   ;;  %v13366_v36 = vld [vmem:[#allocation13 + $0xc0] ss:$16 sps:$4 sm:$0xff]  }
 0x4e8   :  { %v6957_v5 = vrot.slane %v6955_v7, 7  ;;  %v6971_v44 = vrot.slane %v6969_v18, 7  ;;  %v6988_v9 = vshrl.u32 %v12296_v28, 16  ;;  %v7094_v37 = vcombine.low %v6930_v52, %v6944_v11  ;;  %v13369_v49 = vld [vmem:[#allocation13 + $0xc8] ss:$16 sps:$4 sm:$0xff]  }
 0x4e9   :  { %v6645_v32 = vsel %vm2490_vm1, %v6599_v1, %v6644_v23  ;;  %v6648_v35 = vsel %vm2490_vm1, %v6600_v20, %v6647_v19  ;;  %v6967_v61 = vrot.slane %v6966_v30, 2  ;;  %v6974_v41 = vshrl.u32 %v12295_v2, 16  ;;  %v13374_v7 = vld [vmem:[#allocation13 + $0xa4] ss:$16 sps:$4 sm:$0xff]   ;;  %v13377_v23 = vld [vmem:[#allocation13 + $0xac] ss:$16 sps:$4 sm:$0xff]  }
 0x4ea   :  { %v6656_v13 = vpack.c.b16 %v6648_v35, %v6645_v32  ;;  %v6977_v46 = vshll.u32 %v12295_v2, 16  ;;  %v6991_v6 = vshll.u32 %v12296_v28, 16  ;;  %v6958_v42 = vsel %vm15733_vm15, %v6953_v40, %v6957_v5  ;;  %v13372_v57 = vld [vmem:[#allocation13 + $0xa0] ss:$16 sps:$4 sm:$0xff]   ;;  %v13383_v35 = vld [vmem:[#allocation13 + $0x8c] ss:$16 sps:$4 sm:$0xff]  }
 0x4eb   :  { %v6972_v8 = vsel %vm15733_vm15, %v6967_v61, %v6971_v44  ;;  %v6990_v63 = vrot.slane %v6988_v9, 6  ;;  %v7002_v62 = vshrl.u32 %v12297_v14, 16  ;;  %v6893_v48 = vcombine.high %v12296_v28, %v12296_v28  ;;  %v13375_v28 = vld [vmem:[#allocation13 + $0xa8] ss:$16 sps:$4 sm:$0xff]  }
 0x4ec   :  { %v6692_v53 = vsel %vm15130_vm14, %v6656_v13, %v6691_v10  ;;  %v7095_v45 = vcombine.low %v6958_v42, %v6972_v8  ;;  %v6993_v21 = vrot.slane %v6991_v6, 7  ;;  %v7005_v12 = vshll.u32 %v12297_v14, 16  ;;  %v13380_v10 = vld [vmem:[#allocation13 + $0x84] ss:$16 sps:$4 sm:$0xff]   ;;  %v13381_v6 = vld [vmem:[#allocation13 + $0x88] ss:$16 sps:$4 sm:$0xff]   ;;  %vm8106_vm14 = vmor %vm2487_vm2, %vm3123_vm4 }
 0x4ed   :  { %6693 = vst [vmem:[#allocation3 + $0x38] sm:$0x77] %v6692_v53  ;;  %v7102_v39 = vrot.slane %v7094_v37, %v14327_v17  ;;  %v6976_v22 = vrot.slane %v6974_v41, 6  ;;  %v6979_v33 = vrot.slane %v6977_v46, 7  ;;  %v6885_v0 = vcombine.high %v12295_v2, %v12295_v2  ;;  %v13378_v46 = vld [vmem:[#allocation13 + $0x80] ss:$16 sps:$4 sm:$0xff]   ;;  %vm15776_vm0 = vmor %vm8106_vm14, %vm2490_vm1 }
 0x4ee   :  { %v7109_v50 = vrot.slane %v7095_v45, %v14327_v17  ;;  %v6994_v24 = vor.u32 %v6993_v21, %v6990_v63  ;;  %v7004_v26 = vrot.slane %v7002_v62, 6  ;;  %v7007_v43 = vrot.slane %v7005_v12, 7  ;;  %v12284_v52 = vld.sshfl [vmem:[#allocation3 + $0x8] sm:$0xf pattern:$0x76325410]  ;;  %vm15784_vm2 = vmor %vm15776_vm0, %vm3131_vm9 }
 0x4ef   :  { %v6901_v58 = vcombine.high %v12297_v14, %v12297_v14  ;;  %v6997_v25 = vshll.u32 %v6893_v48, 16  ;;  %v6980_v59 = vor.u32 %v6979_v33, %v6976_v22  ;;  %v6983_v29 = vshll.u32 %v6885_v0, 16  ;;  %v12286_v5 = vld.sshfl [vmem:[#allocation3 + $0x18] sm:$0xf pattern:$0x76325410] }
 0x4f0   :  { %v7110_v27 = vcombine.low %v7102_v39, %v7109_v50  ;;  %v7111_v15 = vcombine.high %v7102_v39, %v7109_v50  ;;  %v6995_v56 = vrot.slane %v6994_v24, 2  ;;  %v7008_v55 = vor.u32 %v7007_v43, %v7004_v26  ;;  %v12283_v37 = vld.sshfl [vmem:[#allocation3] sm:$0xf pattern:$0x76325410] }
 0x4f1   :  { %v6999_v19 = vrot.slane %v6997_v25, 7  ;;  %v7011_v4 = vshll.u32 %v6901_v58, 16  ;;  %v6981_v18 = vrot.slane %v6980_v59, 2  ;;  %v6985_v11 = vrot.slane %v6983_v29, 7  ;;  %v13386_v45 = vld [vmem:[#allocation13 + $0x64] ss:$16 sps:$4 sm:$0xff]  }
 0x4f2   :  { %7486 = vmatprep.mubr.bf16.mxu0 %v7111_v15  ;;  %7539 = vmatprep.mubr.bf16.mxu1 %v7111_v15  ;;  %v7009_v30 = vrot.slane %v7008_v55, 2  ;;  %v12285_v41 = vld.sshfl [vmem:[#allocation3 + $0x10] sm:$0xf pattern:$0x76325410]  ;;  %v7560_v62 = vcombine.low %v12283_v37, %v12284_v52  ;;  %vm16557_vm12 = vcmask 1047559  }
 0x4f3   :  { %7487 = vmatmul.mubr.bf16.vlgmr.msra.gmra.mxu0 %v7110_v27  ;;  %7540 = vmatmul.mubr.bf16.vlgmr.msra.gmra.mxu1 %v7110_v27  ;;  %v7000_v40 = vsel %vm15733_vm15, %v6995_v56, %v6999_v19  ;;  %v6986_v14 = vsel %vm15733_vm15, %v6981_v18, %v6985_v11  ;;  %v7013_v13 = vrot.slane %v7011_v4, 7  ;;  %v7561_v8 = vcombine.low %v12285_v41, %v12286_v5  ;;  %v13389_v21 = vld [vmem:[#allocation13 + $0x6c] ss:$16 sps:$4 sm:$0xff]   ;;  %v13384_v22 = vld [vmem:[#allocation13 + $0x60] ss:$16 sps:$4 sm:$0xff]   ;;  %vm16558_vm7 = vmmov %vm16557_vm12 }
 0x4f4   :  { %v12298_v38 = vld.sshfl [vmem:[#allocation3 + $0x38] sm:$0x5f pattern:$0x76325410]  ;;  %7921 = vmatpush1.bf16.msra.mxu0 %v13360_v54  ;;  %7974 = vmatpush1.bf16.msra.mxu1 %v13363_v34  ;;  %v7112_v9 = vcombine.low %v6986_v14, %v7000_v40  ;;  %v15769_v0 = vrot.slane %v7560_v62, %v14327_v17  ;;  %v13395_v27 = vld [vmem:[#allocation13 + $0x4c] ss:$16 sps:$4 sm:$0xff]   ;;  %vm16559_vm11 = vmmov %vm16558_vm7 }
 0x4f5   :  { %v6909_v60 = vcombine.high %v12298_v38, %v12298_v38  ;;  %v7016_v51 = vshrl.u32 %v12298_v38, 16  ;;  %v7019_v47 = vshll.u32 %v12298_v38, 16  ;;  %7922 = vmatprep.subr.bf16.mxu0 %v13368_v3  ;;  %7975 = vmatprep.subr.bf16.mxu1 %v13371_v16  ;;  %v7014_v53 = vsel %vm15733_vm15, %v7009_v30, %v7013_v13  ;;  %v13392_v24 = vld [vmem:[#allocation13 + $0x44] ss:$16 sps:$4 sm:$0xff]   ;;  %v13390_v54 = vld [vmem:[#allocation13 + $0x40] ss:$16 sps:$4 sm:$0xff]   ;;  %vm16560_vm10 = vmmov %vm16558_vm7 }
 0x4f6   :  { %v7120_v48 = vrot.slane %v7112_v9, %v14327_v17  ;;  %v15766_v39 = vrot.slane %v7561_v8, %v14327_v17  ;;  %v13393_v34 = vld [vmem:[#allocation13 + $0x48] ss:$16 sps:$4 sm:$0xff]   ;;  %v13398_v26 = vld [vmem:[#allocation13 + $0x24] ss:$16 sps:$4 sm:$0xff]   ;;  %v13401_v43 = vld [vmem:[#allocation13 + $0x2c] ss:$16 sps:$4 sm:$0xff]  }
 0x4f7   :  { %v7018_v2 = vrot.slane %v7016_v51, 6  ;;  %v7021_v1 = vrot.slane %v7019_v47, 7  ;;  %v7025_v20 = vshll.u32 %v6909_v60, 16  ;;  %v13396_v3 = vld [vmem:[#allocation13 + $0x20] ss:$16 sps:$4 sm:$0xff]   ;;  %vm16561_vm3 = vmmov %vm16558_vm7 }
 0x4f8   :  { %7923 = vmatpush1.bf16.msra.mxu0 %v13366_v36  ;;  %7976 = vmatpush1.bf16.msra.mxu1 %v13369_v49  ;;  %v7577_v15 = vcombine.high %v15769_v0, %v15766_v39  ;;  %v13399_v16 = vld [vmem:[#allocation13 + $0x28] ss:$16 sps:$4 sm:$0xff]   ;;  %v13404_v58 = vld [vmem:[#allocation13 + $0x4] ss:$16 sps:$4 sm:$0xff]   ;;  %v13407_v25 = vld [vmem:[#allocation13 + $0xc] ss:$16 sps:$4 sm:$0xff]  }
 0x4f9   :  { %v7022_v32 = vor.u32 %v7021_v1, %v7018_v2  ;;  %7924 = vmatprep.subr.bf16.mxu0 %v13374_v7  ;;  %7977 = vmatprep.subr.bf16.mxu1 %v13377_v23  ;;  %v7027_v44 = vrot.slane %v7025_v20, 7  ;;  %v13402_v59 = vld [vmem:[#allocation13] ss:$16 sps:$4 sm:$0xff]   ;;  %v13405_v38 = vld [vmem:[#allocation13 + $0x8] ss:$16 sps:$4 sm:$0xff]   ;;  %vm16568_vm13 = vmmov %vm16561_vm3 }
 0x4fa   :  { %v13410_v29 = vld [vmem:[#allocation13 + $0x1e4] ss:$16 sps:$4 sm:$0xff]   ;;  %v13413_v56 = vld [vmem:[#allocation13 + $0x1ec] ss:$16 sps:$4 sm:$0xff]   ;;  %v13408_v36 = vld [vmem:[#allocation13 + $0x1e0] ss:$16 sps:$4 sm:$0xff]  }
 0x4fb   :  { %v7023_v61 = vrot.slane %v7022_v32, 2  ;;  %v13411_v49 = vld [vmem:[#allocation13 + $0x1e8] ss:$16 sps:$4 sm:$0xff]   ;;  %v13416_v60 = vld [vmem:[#allocation13 + $0x1c4] ss:$16 sps:$4 sm:$0xff]   ;;  %vm16570_vm14 = vmmov %vm16561_vm3 }
 0x4fc   :  { %7925 = vmatpush1.bf16.msra.mxu0 %v13372_v57  ;;  %7978 = vmatpush1.bf16.msra.mxu1 %v13375_v28  ;;  %v13419_v55 = vld [vmem:[#allocation13 + $0x1cc] ss:$16 sps:$4 sm:$0xff]   ;;  %v13414_v51 = vld [vmem:[#allocation13 + $0x1c0] ss:$16 sps:$4 sm:$0xff]   ;;  %v13417_v47 = vld [vmem:[#allocation13 + $0x1c8] ss:$16 sps:$4 sm:$0xff]  }
 0x4fd   :  { %v7028_v42 = vsel %vm15733_vm15, %v7023_v61, %v7027_v44  ;;  %7926 = vmatprep.subr.bf16.mxu0 %v13380_v10  ;;  %7979 = vmatprep.subr.bf16.mxu1 %v13383_v35  ;;  %v13422_v7 = vld [vmem:[#allocation13 + $0x1a4] ss:$16 sps:$4 sm:$0xff]   ;;  %v13425_v23 = vld [vmem:[#allocation13 + $0x1ac] ss:$16 sps:$4 sm:$0xff]   ;;  %v13420_v19 = vld [vmem:[#allocation13 + $0x1a0] ss:$16 sps:$4 sm:$0xff]  }
 0x4fe   :  { %v7113_v63 = vcombine.low %v7014_v53, %v7028_v42  ;;  %v13423_v4 = vld [vmem:[#allocation13 + $0x1a8] ss:$16 sps:$4 sm:$0xff]   ;;  %v13428_v18 = vld [vmem:[#allocation13 + $0x184] ss:$16 sps:$4 sm:$0xff]   ;;  %v13431_v2 = vld [vmem:[#allocation13 + $0x18c] ss:$16 sps:$4 sm:$0xff]  }
 0x4ff   :  { %v13426_v1 = vld [vmem:[#allocation13 + $0x180] ss:$16 sps:$4 sm:$0xff]   ;;  %v13429_v20 = vld [vmem:[#allocation13 + $0x188] ss:$16 sps:$4 sm:$0xff]   ;;  %v13434_v57 = vld [vmem:[#allocation13 + $0x164] ss:$16 sps:$4 sm:$0xff]  }
 0x500   :  { %v7127_v12 = vrot.slane %v7113_v63, %v14327_v17  ;;  %7927 = vmatpush1.bf16.msra.mxu0 %v13378_v46  ;;  %7980 = vmatpush1.bf16.msra.mxu1 %v13381_v6  ;;  %v13437_v28 = vld [vmem:[#allocation13 + $0x16c] ss:$16 sps:$4 sm:$0xff]   ;;  %v13432_v10 = vld [vmem:[#allocation13 + $0x160] ss:$16 sps:$4 sm:$0xff]   ;;  %v13435_v11 = vld [vmem:[#allocation13 + $0x168] ss:$16 sps:$4 sm:$0xff]  }
 0x501   :  { %7928 = vmatprep.subr.bf16.mxu0 %v13386_v45  ;;  %7981 = vmatprep.subr.bf16.mxu1 %v13389_v21  ;;  %v13440_v40 = vld [vmem:[#allocation13 + $0x144] ss:$16 sps:$4 sm:$0xff]   ;;  %v13443_v30 = vld [vmem:[#allocation13 + $0x14c] ss:$16 sps:$4 sm:$0xff]   ;;  %v13438_v35 = vld [vmem:[#allocation13 + $0x140] ss:$16 sps:$4 sm:$0xff]  }
 0x502   :  { %v7129_v50 = vcombine.high %v7120_v48, %v7127_v12  ;;  %v7128_v33 = vcombine.low %v7120_v48, %v7127_v12  ;;  %v12430_v32 = vld.sshfl [vmem:[#allocation3 + $0x18] sm:$0x5a pattern:$0x76325410]  ;;  %v13449_v13 = vld [vmem:[#allocation13 + $0x12c] ss:$16 sps:$4 sm:$0xff]   ;;  %vm16569_vm15 = vmmov %vm16561_vm3 }
 0x503   :  { %v13441_v52 = vld [vmem:[#allocation13 + $0x148] ss:$16 sps:$4 sm:$0xff]   ;;  %v13446_v14 = vld [vmem:[#allocation13 + $0x124] ss:$16 sps:$4 sm:$0xff]   ;;  %v13444_v61 = vld [vmem:[#allocation13 + $0x120] ss:$16 sps:$4 sm:$0xff]   ;;  %v8073_v46 = vcombine.high %v12430_v32, %v12430_v32 }
 0x504   :  { %7496 = vmatprep.mubr.bf16.mxu0 %v7129_v50  ;;  %7549 = vmatprep.mubr.bf16.mxu1 %v7129_v50  ;;  %v12428_v5 = vld.sshfl [vmem:[#allocation3 + $0x8] sm:$0x5a pattern:$0x76325410]  ;;  %v13455_v42 = vld [vmem:[#allocation13 + $0x10c] ss:$16 sps:$4 sm:$0xff]   ;;  %vm16571_vm0 = vmmov %vm16561_vm3 }
 0x505   :  { %7497 = vmatmul.mubr.bf16.gmra.mxu0 %v7128_v33  ;;  %7550 = vmatmul.mubr.bf16.gmra.mxu1 %v7128_v33  ;;  %v12427_v44 = vld.sshfl [vmem:[#allocation3] sm:$0x5a pattern:$0x76325410]  ;;  %v13447_v37 = vld [vmem:[#allocation13 + $0x128] ss:$16 sps:$4 sm:$0xff]   ;;  %v8057_v63 = vcombine.high %v12428_v5, %v12428_v5 }
 0x506   :  { %7929 = vmatpush1.bf16.msra.mxu0 %v13384_v22  ;;  %7982 = vmatpush1.bf16.msra.mxu1 %v13387_v31  ;;  %v12429_v9 = vld.sshfl [vmem:[#allocation3 + $0x10] sm:$0x5a pattern:$0x76325410]  ;;  %v13452_v6 = vld [vmem:[#allocation13 + $0x104] ss:$16 sps:$4 sm:$0xff]   ;;  %v8049_v48 = vcombine.high %v12427_v44, %v12427_v44 }
 0x507   :  { %7952 = vmatprep.mubr.bf16.mxu0 %v7577_v15  ;;  %8005 = vmatprep.mubr.bf16.mxu1 %v7577_v15  ;;  %v12290_v41 = vld.sshfl [vmem:[#allocation3 + $0x38] sm:$0xf pattern:$0x76325410]  ;;  %v8065_v45 = vcombine.high %v12429_v9, %v12429_v9  ;;  %v8123_v50 = vrot.slane %v8073_v46, 7  ;;  %v8115_v15 = vrot.slane %v8057_v63, 7 }
 0x508   :  { %7930 = vmatprep.subr.bf16.mxu0 %v13392_v24  ;;  %7983 = vmatprep.subr.bf16.mxu1 %v13395_v27  ;;  %v12288_v53 = vld.sshfl [vmem:[#allocation3 + $0x28] sm:$0xf pattern:$0x76325410]  ;;  %v13450_v22 = vld [vmem:[#allocation13 + $0x100] ss:$16 sps:$4 sm:$0xff]  }
 0x509   :  { %v12289_v8 = vld.sshfl [vmem:[#allocation3 + $0x30] sm:$0xf pattern:$0x76325410]  ;;  %v13453_v31 = vld [vmem:[#allocation13 + $0x108] ss:$16 sps:$4 sm:$0xff]  }
 0x50a   :  { %7931 = vmatpush1.bf16.msra.mxu0 %v13390_v54  ;;  %7984 = vmatpush1.bf16.msra.mxu1 %v13393_v34  ;;  %v7579_v21 = vcombine.low %v12289_v8, %v12290_v41  ;;  %v12287_v62 = vld.sshfl [vmem:[#allocation3 + $0x20] sm:$0xf pattern:$0x76325410]  ;;  %v13458_v33 = vld [vmem:[#allocation13 + $0x4e4] ss:$16 sps:$4 sm:$0xff]  }
 0x50b   :  { %7932 = vmatprep.subr.bf16.mxu0 %v13398_v26  ;;  %7985 = vmatprep.subr.bf16.mxu1 %v13401_v43  ;;  %v7578_v24 = vcombine.low %v12287_v62, %v12288_v53  ;;  %v13461_v27 = vld [vmem:[#allocation13 + $0x4ec] ss:$16 sps:$4 sm:$0xff]   ;;  %v8119_v54 = vrot.slane %v8065_v45, 7  ;;  %v12438_v34 = vrot.slane %v12430_v32, 9  ;;  %v13477_v32 = vld [vmem:[#allocation13 + $0x488] ss:$16 sps:$4 sm:$0xff]  }
 0x50c   :  { %v7593_v26 = vrot.slane %v7579_v21, %v14327_v17  ;;  %v13497_v41 = vld [vmem:[#allocation13 + $0x42c] ss:$16 sps:$4 sm:$0xff]   ;;  %v13492_v46 = vld [vmem:[#allocation13 + $0x420] ss:$16 sps:$4 sm:$0xff]   ;;  %v13500_v53 = vld [vmem:[#allocation13 + $0x404] ss:$16 sps:$4 sm:$0xff]  }
 0x50d   :  { %v13498_v8 = vld [vmem:[#allocation13 + $0x400] ss:$16 sps:$4 sm:$0xff]   ;;  %v13501_v63 = vld [vmem:[#allocation13 + $0x408] ss:$16 sps:$4 sm:$0xff]   ;;  %v13506_v45 = vld [vmem:[#allocation13 + $0x5e4] ss:$16 sps:$4 sm:$0xff]  }
 0x50e   :  { %7933 = vmatpush1.bf16.msra.mxu0 %v13396_v3  ;;  %7986 = vmatpush1.bf16.msra.mxu1 %v13399_v16  ;;  %v8111_v3 = vrot.slane %v8049_v48, 7  ;;  %v12436_v16 = vrot.slane %v12428_v5, 9  ;;  %v13480_v5 = vld [vmem:[#allocation13 + $0x460] ss:$16 sps:$4 sm:$0xff]   ;;  %v13509_v21 = vld [vmem:[#allocation13 + $0x5ec] ss:$16 sps:$4 sm:$0xff]  }
 0x50f   :  { %7934 = vmatprep.subr.bf16.mxu0 %v13404_v58  ;;  %7987 = vmatprep.subr.bf16.mxu1 %v13407_v25  ;;  %v12437_v58 = vrot.slane %v12429_v9, 9  ;;  %v8124_v25 = vsel %vm15784_vm2, %v12438_v34, %v8123_v50  ;;  %v13489_v9 = vld [vmem:[#allocation13 + $0x448] ss:$16 sps:$4 sm:$0xff]   ;;  %v13504_v62 = vld [vmem:[#allocation13 + $0x5e0] ss:$16 sps:$4 sm:$0xff]  }
 0x510   :  { %v13507_v48 = vld [vmem:[#allocation13 + $0x5e8] ss:$16 sps:$4 sm:$0xff]   ;;  %v13512_v12 = vld [vmem:[#allocation13 + $0x5c4] ss:$16 sps:$4 sm:$0xff]   ;;  %v13515_v50 = vld [vmem:[#allocation13 + $0x5cc] ss:$16 sps:$4 sm:$0xff]  }
 0x511   :  { %v13527_v34 = vld [vmem:[#allocation13 + $0x58c] ss:$16 sps:$4 sm:$0xff]  }
 0x512   :  { %7935 = vmatpush1.bf16.msra.mxu0 %v13402_v59  ;;  %7988 = vmatpush1.bf16.msra.mxu1 %v13405_v38  ;;  %v7586_v59 = vrot.slane %v7578_v24, %v14327_v17  ;;  %v7576_v38 = vcombine.low %v15769_v0, %v15766_v39  ;;  %v13521_v24 = vld [vmem:[#allocation13 + $0x5ac] ss:$16 sps:$4 sm:$0xff]  }
 0x513   :  { %7936 = vmatprep.subr.bf16.mxu0 %v13410_v29  ;;  %7989 = vmatprep.subr.bf16.mxu1 %v13413_v56  ;;  %v13456_v29 = vld [vmem:[#allocation13 + $0x4e0] ss:$16 sps:$4 sm:$0xff]   ;;  %v13459_v56 = vld [vmem:[#allocation13 + $0x4e8] ss:$16 sps:$4 sm:$0xff]  }
 0x516   :  { %7937 = vmatpush2.bf16.msra.mxu0 %v13408_v36  ;;  %7990 = vmatpush2.bf16.msra.mxu1 %v13411_v49  ;;  %v12435_v36 = vrot.slane %v12427_v44, 9  ;;  %v8116_v49 = vsel %vm15784_vm2, %v12436_v16, %v8115_v15  ;;  %v13486_v44 = vld [vmem:[#allocation13 + $0x440] ss:$16 sps:$4 sm:$0xff]   ;;  %v13519_v15 = vld [vmem:[#allocation13 + $0x5a8] ss:$16 sps:$4 sm:$0xff]  }
 0x517   :  { %7938 = vmatprep.subr.bf16.mxu0 %v13416_v60  ;;  %7991 = vmatprep.subr.bf16.mxu1 %v13419_v55  ;;  %v8120_v60 = vsel %vm15784_vm2, %v12437_v58, %v8119_v54  ;;  %v7595_v55 = vcombine.high %v7586_v59, %v7593_v26  ;;  %v13524_v54 = vld [vmem:[#allocation13 + $0x584] ss:$16 sps:$4 sm:$0xff]  }
 0x518   :  { %v8112_v39 = vsel %vm15784_vm2, %v12435_v36, %v8111_v3  ;;  %v13525_v3 = vld [vmem:[#allocation13 + $0x588] ss:$16 sps:$4 sm:$0xff]   ;;  %v13528_v36 = vld [vmem:[#allocation13 + $0x560] ss:$16 sps:$4 sm:$0xff]  }
 0x519   :  { %v8206_v0 = vcombine.low %v8112_v39, %v8116_v49  ;;  %v12432_v16 = vld.sshfl [vmem:[#allocation3 + $0x28] sm:$0x5a pattern:$0x76325410] }
 0x51a   :  { %7939 = vmatpush2.bf16.msra.mxu0 %v13414_v51  ;;  %7992 = vmatpush2.bf16.msra.mxu1 %v13417_v47  ;;  %v13464_v51 = vld [vmem:[#allocation13 + $0x4c4] ss:$16 sps:$4 sm:$0xff]   ;;  %v13467_v47 = vld [vmem:[#allocation13 + $0x4cc] ss:$16 sps:$4 sm:$0xff]   ;;  %v13531_v49 = vld [vmem:[#allocation13 + $0x568] ss:$16 sps:$4 sm:$0xff]  }
 0x51b   :  { %7940 = vmatprep.subr.bf16.mxu0 %v13422_v7  ;;  %7993 = vmatprep.subr.bf16.mxu1 %v13425_v23  ;;  %v8207_v7 = vcombine.low %v8120_v60, %v8124_v25  ;;  %v13462_v23 = vld [vmem:[#allocation13 + $0x4c0] ss:$16 sps:$4 sm:$0xff]   ;;  %v12434_v58 = vld.sshfl [vmem:[#allocation3 + $0x38] sm:$0x5a pattern:$0x76325410] }
 0x51c   :  { %v13530_v25 = vld [vmem:[#allocation13 + $0x564] ss:$16 sps:$4 sm:$0xff]  }
 0x51d   :  { %v13536_v60 = vld [vmem:[#allocation13 + $0x544] ss:$16 sps:$4 sm:$0xff]  }
 0x51e   :  { %7941 = vmatpush2.bf16.msra.mxu0 %v13420_v19  ;;  %7994 = vmatpush2.bf16.msra.mxu1 %v13423_v4  ;;  %v13465_v19 = vld [vmem:[#allocation13 + $0x4c8] ss:$16 sps:$4 sm:$0xff]   ;;  %v13470_v4 = vld [vmem:[#allocation13 + $0x4a4] ss:$16 sps:$4 sm:$0xff]  }
 0x51f   :  { %7942 = vmatprep.subr.bf16.mxu0 %v13428_v18  ;;  %7995 = vmatprep.subr.bf16.mxu1 %v13431_v2  ;;  %v13473_v18 = vld [vmem:[#allocation13 + $0x4ac] ss:$16 sps:$4 sm:$0xff]   ;;  %v15800_v2 = vrot.slane %v8207_v7, %v14327_v17 }
 0x522   :  { %7943 = vmatpush2.bf16.msra.mxu0 %v13426_v1  ;;  %7996 = vmatpush2.bf16.msra.mxu1 %v13429_v20  ;;  %v15803_v1 = vrot.slane %v8206_v0, %v14327_v17  ;;  %v7594_v20 = vcombine.low %v7586_v59, %v7593_v26  ;;  %v13522_v26 = vld [vmem:[#allocation13 + $0x580] ss:$16 sps:$4 sm:$0xff]   ;;  %v13533_v59 = vld [vmem:[#allocation13 + $0x56c] ss:$16 sps:$4 sm:$0xff]  }
 0x523   :  { %7944 = vmatprep.subr.bf16.mxu0 %v13434_v57  ;;  %7997 = vmatprep.subr.bf16.mxu1 %v13437_v28  ;;  %v13468_v57 = vld [vmem:[#allocation13 + $0x4a0] ss:$16 sps:$4 sm:$0xff]   ;;  %v13471_v28 = vld [vmem:[#allocation13 + $0x4a8] ss:$16 sps:$4 sm:$0xff]  }
 0x524   :  { %v13534_v0 = vld [vmem:[#allocation13 + $0x540] ss:$16 sps:$4 sm:$0xff]  }
 0x526   :  { %7945 = vmatpush2.bf16.msra.mxu0 %v13432_v10  ;;  %7998 = vmatpush2.bf16.msra.mxu1 %v13435_v11  ;;  %v8223_v10 = vcombine.high %v15803_v1, %v15800_v2  ;;  %v13476_v11 = vld [vmem:[#allocation13 + $0x484] ss:$16 sps:$4 sm:$0xff]  }
 0x527   :  { %7946 = vmatprep.subr.bf16.mxu0 %v13440_v40  ;;  %7999 = vmatprep.subr.bf16.mxu1 %v13443_v30  ;;  %v13479_v40 = vld [vmem:[#allocation13 + $0x48c] ss:$16 sps:$4 sm:$0xff]   ;;  %v13474_v30 = vld [vmem:[#allocation13 + $0x480] ss:$16 sps:$4 sm:$0xff]  }
 0x52a   :  { %7947 = vmatpush2.bf16.msra.mxu0 %v13438_v35  ;;  %8000 = vmatpush2.bf16.msra.mxu1 %v13441_v52  ;;  %v13482_v35 = vld [vmem:[#allocation13 + $0x464] ss:$16 sps:$4 sm:$0xff]   ;;  %v13485_v52 = vld [vmem:[#allocation13 + $0x46c] ss:$16 sps:$4 sm:$0xff]  }
 0x52b   :  { %7948 = vmatprep.subr.bf16.mxu0 %v13446_v14  ;;  %8001 = vmatprep.subr.bf16.mxu1 %v13449_v13  ;;  %v13483_v14 = vld [vmem:[#allocation13 + $0x468] ss:$16 sps:$4 sm:$0xff]   ;;  %v13488_v13 = vld [vmem:[#allocation13 + $0x444] ss:$16 sps:$4 sm:$0xff]  }
 0x52e   :  { %7949 = vmatpush2.bf16.msra.mxu0 %v13444_v61  ;;  %8002 = vmatpush2.bf16.msra.mxu1 %v13447_v37  ;;  %v13491_v61 = vld [vmem:[#allocation13 + $0x44c] ss:$16 sps:$4 sm:$0xff]   ;;  %v13494_v37 = vld [vmem:[#allocation13 + $0x424] ss:$16 sps:$4 sm:$0xff]  }
 0x52f   :  { %7950 = vmatprep.subr.bf16.mxu0 %v13452_v6  ;;  %8003 = vmatprep.subr.bf16.mxu1 %v13455_v42  ;;  %v13495_v6 = vld [vmem:[#allocation13 + $0x428] ss:$16 sps:$4 sm:$0xff]   ;;  %v13503_v42 = vld [vmem:[#allocation13 + $0x40c] ss:$16 sps:$4 sm:$0xff]  }
 0x532   :  { %7951 = vmatpush2.bf16.msra.mxu0 %v13450_v22  ;;  %8004 = vmatpush2.bf16.msra.mxu1 %v13453_v31  ;;  %v13510_v22 = vld [vmem:[#allocation13 + $0x5c0] ss:$16 sps:$4 sm:$0xff]   ;;  %v13513_v31 = vld [vmem:[#allocation13 + $0x5c8] ss:$16 sps:$4 sm:$0xff]  }
 0x533   :  { %8566 = vmatprep.subr.bf16.mxu0 %v13458_v33  ;;  %8619 = vmatprep.subr.bf16.mxu1 %v13461_v27  ;;  %v13518_v33 = vld [vmem:[#allocation13 + $0x5a4] ss:$16 sps:$4 sm:$0xff]   ;;  %v13516_v27 = vld [vmem:[#allocation13 + $0x5a0] ss:$16 sps:$4 sm:$0xff]  }
 0x535   :  { %7953 = vmatmul.mubr.bf16.vlgmr.msra.gmra.mxu0 %v7576_v38  ;;  %8006 = vmatmul.mubr.bf16.vlgmr.msra.gmra.mxu1 %v7576_v38  ;;  %v12433_v38 = vld.sshfl [vmem:[#allocation3 + $0x30] sm:$0x5a pattern:$0x76325410] }
 0x536   :  { %7962 = vmatprep.mubr.bf16.mxu0 %v7595_v55  ;;  %8015 = vmatprep.mubr.bf16.mxu1 %v7595_v55  ;;  %v13539_v55 = vld [vmem:[#allocation13 + $0x54c] ss:$16 sps:$4 sm:$0xff]  }
 0x537   :  { %8567 = vmatpush1.bf16.msra.mxu0 %v13456_v29  ;;  %8620 = vmatpush1.bf16.msra.mxu1 %v13459_v56  ;;  %v12431_v29 = vld.sshfl [vmem:[#allocation3 + $0x20] sm:$0x5a pattern:$0x76325410]  ;;  %v8105_v56 = vcombine.high %v12434_v58, %v12434_v58 }
 0x538   :  { %8568 = vmatprep.subr.bf16.mxu0 %v13464_v51  ;;  %8621 = vmatprep.subr.bf16.mxu1 %v13467_v47  ;;  %v8089_v51 = vcombine.high %v12432_v16, %v12432_v16  ;;  %v8097_v47 = vcombine.high %v12433_v38, %v12433_v38  ;;  %v8081_v7 = vcombine.high %v12431_v29, %v12431_v29 }
 0x539   :  { %v8139_v39 = vrot.slane %v8105_v56, 7  ;;  %v13591_v56 = vld [vmem:[#allocation14 + $0x310] ss:$8 sps:$4 sm:$0xff]  }
 0x53b   :  { %8569 = vmatpush1.bf16.msra.mxu0 %v13462_v23  ;;  %8622 = vmatpush1.bf16.msra.mxu1 %v13465_v19  ;;  %v13537_v23 = vld [vmem:[#allocation13 + $0x548] ss:$16 sps:$4 sm:$0xff]   ;;  %v13542_v19 = vld [vmem:[#allocation13 + $0x524] ss:$16 sps:$4 sm:$0xff]  }
 0x53c   :  { %8570 = vmatprep.subr.bf16.mxu0 %v13470_v4  ;;  %8623 = vmatprep.subr.bf16.mxu1 %v13473_v18  ;;  %v13545_v4 = vld [vmem:[#allocation13 + $0x52c] ss:$16 sps:$4 sm:$0xff]   ;;  %v8131_v18 = vrot.slane %v8089_v51, 7  ;;  %v13597_v51 = vld [vmem:[#allocation14 + $0x300] ss:$8 sps:$4 sm:$0xff]  }
 0x53d   :  { %7963 = vmatmul.mubr.bf16.gmra.mxu0 %v7594_v20  ;;  %8016 = vmatmul.mubr.bf16.gmra.mxu1 %v7594_v20  ;;  %v8135_v20 = vrot.slane %v8097_v47, 7  ;;  %v13602_v47 = vld [vmem:[#allocation14 + $0x2f4] ss:$8 sps:$4 sm:$0xff]  }
 0x53e   :  { %8598 = vmatprep.mubr.bf16.mxu0 %v8223_v10  ;;  %8651 = vmatprep.mubr.bf16.mxu1 %v8223_v10  ;;  %v12440_v10 = vrot.slane %v12432_v16, 9  ;;  %v13582_v16 = vld [vmem:[#allocation14 + $0x220] ss:$8 sps:$4 sm:$0xff]  }
 0x53f   :  { %8571 = vmatpush1.bf16.msra.mxu0 %v13468_v57  ;;  %8624 = vmatpush1.bf16.msra.mxu1 %v13471_v28  ;;  %v12442_v57 = vrot.slane %v12434_v58, 9  ;;  %v8127_v28 = vrot.slane %v8081_v7, 7  ;;  %v13584_v58 = vld [vmem:[#allocation14 + $0x224] ss:$8 sps:$4 sm:$0xff]   ;;  %v13600_v7 = vld [vmem:[#allocation14 + $0x2f0] ss:$8 sps:$4 sm:$0xff]  }
 0x540   :  { %8572 = vmatprep.subr.bf16.mxu0 %v13476_v11  ;;  %8625 = vmatprep.subr.bf16.mxu1 %v13479_v40  ;;  %v12441_v11 = vrot.slane %v12433_v38, 9  ;;  %v13588_v38 = vld [vmem:[#allocation14 + $0x210] ss:$8 sps:$4 sm:$0xff]  }
 0x541   :  { %v8140_v40 = vsel %vm15784_vm2, %v12442_v57, %v8139_v39  ;;  %v13603_v39 = vld [vmem:[#allocation14 + $0x3f0] ss:$8 sps:$4 sm:$0xff]   ;;  %v13617_v57 = vld [vmem:[#allocation14 + $0x3d4] ss:$8 sps:$4 sm:$0xff]  }
 0x543   :  { %8573 = vmatpush1.bf16.msra.mxu0 %v13474_v30  ;;  %8626 = vmatpush1.bf16.msra.mxu1 %v13477_v32  ;;  %v13540_v30 = vld [vmem:[#allocation13 + $0x520] ss:$16 sps:$4 sm:$0xff]   ;;  %v13543_v32 = vld [vmem:[#allocation13 + $0x528] ss:$16 sps:$4 sm:$0xff]  }
 0x544   :  { %8574 = vmatprep.subr.bf16.mxu0 %v13482_v35  ;;  %8627 = vmatprep.subr.bf16.mxu1 %v13485_v52  ;;  %v13548_v35 = vld [vmem:[#allocation13 + $0x504] ss:$16 sps:$4 sm:$0xff]   ;;  %v13551_v52 = vld [vmem:[#allocation13 + $0x50c] ss:$16 sps:$4 sm:$0xff]  }
 0x547   :  { %8575 = vmatpush1.bf16.msra.mxu0 %v13480_v5  ;;  %8628 = vmatpush1.bf16.msra.mxu1 %v13483_v14  ;;  %v12439_v5 = vrot.slane %v12431_v29, 9  ;;  %v8132_v14 = vsel %vm15784_vm2, %v12440_v10, %v8131_v18  ;;  %v13590_v29 = vld [vmem:[#allocation14 + $0x214] ss:$8 sps:$4 sm:$0xff]   ;;  %v13620_v10 = vld [vmem:[#allocation14 + $0x2c4] ss:$8 sps:$4 sm:$0xff]  }
 0x548   :  { %8576 = vmatprep.subr.bf16.mxu0 %v13488_v13  ;;  %8629 = vmatprep.subr.bf16.mxu1 %v13491_v61  ;;  %v8136_v13 = vsel %vm15784_vm2, %v12441_v11, %v8135_v20  ;;  %v13614_v18 = vld [vmem:[#allocation14 + $0x2d4] ss:$8 sps:$4 sm:$0xff]   ;;  %v13609_v20 = vld [vmem:[#allocation14 + $0x3e0] ss:$8 sps:$4 sm:$0xff]   ;;  %v13615_v11 = vld [vmem:[#allocation14 + $0x3d0] ss:$8 sps:$4 sm:$0xff]  }
 0x549   :  { %v8225_v61 = vcombine.low %v8136_v13, %v8140_v40  ;;  %v13623_v40 = vld [vmem:[#allocation14 + $0x3c4] ss:$8 sps:$4 sm:$0xff]   ;;  %v13627_v13 = vld [vmem:[#allocation14 + $0x3b0] ss:$8 sps:$4 sm:$0xff]  }
 0x54b   :  { %8577 = vmatpush1.bf16.msra.mxu0 %v13486_v44  ;;  %8630 = vmatpush1.bf16.msra.mxu1 %v13489_v9  ;;  %v8128_v44 = vsel %vm15784_vm2, %v12439_v5, %v8127_v28  ;;  %v13546_v9 = vld [vmem:[#allocation13 + $0x500] ss:$16 sps:$4 sm:$0xff]   ;;  %vm16572_vm2 = vmmov %vm16571_vm0 }
 0x54c   :  { %8578 = vmatprep.subr.bf16.mxu0 %v13494_v37  ;;  %8631 = vmatprep.subr.bf16.mxu1 %v13497_v41  ;;  %v13549_v37 = vld [vmem:[#allocation13 + $0x508] ss:$16 sps:$4 sm:$0xff]   ;;  %v8224_v41 = vcombine.low %v8128_v44, %v8132_v14  ;;  %v13632_v14 = vld [vmem:[#allocation14 + $0x2a4] ss:$8 sps:$4 sm:$0xff]  }
 0x54d   :  { %v13612_v28 = vld [vmem:[#allocation14 + $0x2d0] ss:$8 sps:$4 sm:$0xff]   ;;  %v13630_v44 = vld [vmem:[#allocation14 + $0x2a0] ss:$8 sps:$4 sm:$0xff]  }
 0x54e   :  { %v13624_v5 = vld [vmem:[#allocation14 + $0x2b0] ss:$8 sps:$4 sm:$0xff]  }
 0x54f   :  { %8579 = vmatpush1.bf16.msra.mxu0 %v13492_v46  ;;  %8632 = vmatpush1.bf16.msra.mxu1 %v13495_v6  ;;  %v8239_v46 = vrot.slane %v8225_v61, %v14327_v17  ;;  %v8232_v6 = vrot.slane %v8224_v41, %v14327_v17  ;;  %v13635_v61 = vld [vmem:[#allocation14 + $0x3a4] ss:$8 sps:$4 sm:$0xff]   ;;  %v13641_v41 = vld [vmem:[#allocation14 + $0x394] ss:$8 sps:$4 sm:$0xff]  }
 0x550   :  { %8580 = vmatprep.subr.bf16.mxu0 %v13500_v53  ;;  %8633 = vmatprep.subr.bf16.mxu1 %v13503_v42  ;;  %v8222_v53 = vcombine.low %v15803_v1, %v15800_v2  ;;  %v13561_v2 = vld [vmem:[#allocation14 + $0x360] ss:$8 sps:$4 sm:$0xff]   ;;  %v13566_v1 = vld [vmem:[#allocation14 + $0x254] ss:$8 sps:$4 sm:$0xff]  }
 0x551   :  { %v8241_v42 = vcombine.high %v8232_v6, %v8239_v46  ;;  %v8240_v43 = vcombine.low %v8232_v6, %v8239_v46  ;;  %v13636_v46 = vld [vmem:[#allocation14 + $0x290] ss:$8 sps:$4 sm:$0xff]   ;;  %v13644_v6 = vld [vmem:[#allocation14 + $0x284] ss:$8 sps:$4 sm:$0xff]  }
 0x553   :  { %8581 = vmatpush1.bf16.msra.mxu0 %v13498_v8  ;;  %8634 = vmatpush1.bf16.msra.mxu1 %v13501_v63  ;;  %v13552_v8 = vld [vmem:[#allocation14 + $0x270] ss:$8 sps:$4 sm:$0xff]   ;;  %v13554_v63 = vld [vmem:[#allocation14 + $0x274] ss:$8 sps:$4 sm:$0xff]  }
 0x554   :  { %8582 = vmatprep.subr.bf16.mxu0 %v13506_v45  ;;  %8635 = vmatprep.subr.bf16.mxu1 %v13509_v21  ;;  %v13555_v45 = vld [vmem:[#allocation14 + $0x370] ss:$8 sps:$4 sm:$0xff]   ;;  %v13557_v21 = vld [vmem:[#allocation14 + $0x374] ss:$8 sps:$4 sm:$0xff]  }
 0x557   :  { %8583 = vmatpush2.bf16.msra.mxu0 %v13504_v62  ;;  %8636 = vmatpush2.bf16.msra.mxu1 %v13507_v48  ;;  %v13560_v62 = vld [vmem:[#allocation14 + $0x264] ss:$8 sps:$4 sm:$0xff]  }
 0x558   :  { %8584 = vmatprep.subr.bf16.mxu0 %v13512_v12  ;;  %8637 = vmatprep.subr.bf16.mxu1 %v13515_v50  ;;  %v13563_v48 = vld [vmem:[#allocation14 + $0x364] ss:$8 sps:$4 sm:$0xff]   ;;  %v13558_v12 = vld [vmem:[#allocation14 + $0x260] ss:$8 sps:$4 sm:$0xff]   ;;  %v13569_v50 = vld [vmem:[#allocation14 + $0x354] ss:$8 sps:$4 sm:$0xff]  }
 0x55b   :  { %8585 = vmatpush2.bf16.msra.mxu0 %v13510_v22  ;;  %8638 = vmatpush2.bf16.msra.mxu1 %v13513_v31  ;;  %v13564_v22 = vld [vmem:[#allocation14 + $0x250] ss:$8 sps:$4 sm:$0xff]  }
 0x55c   :  { %8586 = vmatprep.subr.bf16.mxu0 %v13518_v33  ;;  %8639 = vmatprep.subr.bf16.mxu1 %v13521_v24  ;;  %v13567_v31 = vld [vmem:[#allocation14 + $0x350] ss:$8 sps:$4 sm:$0xff]   ;;  %v13572_v33 = vld [vmem:[#allocation14 + $0x244] ss:$8 sps:$4 sm:$0xff]  }
 0x55d   :  { %v13575_v24 = vld [vmem:[#allocation14 + $0x344] ss:$8 sps:$4 sm:$0xff]  }
 0x55f   :  { %8587 = vmatpush2.bf16.msra.mxu0 %v13516_v27  ;;  %8640 = vmatpush2.bf16.msra.mxu1 %v13519_v15  ;;  %v13570_v27 = vld [vmem:[#allocation14 + $0x240] ss:$8 sps:$4 sm:$0xff]  }
 0x560   :  { %8588 = vmatprep.subr.bf16.mxu0 %v13524_v54  ;;  %8641 = vmatprep.subr.bf16.mxu1 %v13527_v34  ;;  %v13573_v15 = vld [vmem:[#allocation14 + $0x340] ss:$8 sps:$4 sm:$0xff]   ;;  %v13576_v54 = vld [vmem:[#allocation14 + $0x230] ss:$8 sps:$4 sm:$0xff]   ;;  %v13578_v34 = vld [vmem:[#allocation14 + $0x234] ss:$8 sps:$4 sm:$0xff]  }
 0x563   :  { %8589 = vmatpush2.bf16.msra.mxu0 %v13522_v26  ;;  %8642 = vmatpush2.bf16.msra.mxu1 %v13525_v3  ;;  %v13579_v26 = vld [vmem:[#allocation14 + $0x330] ss:$8 sps:$4 sm:$0xff]   ;;  %v13581_v3 = vld [vmem:[#allocation14 + $0x334] ss:$8 sps:$4 sm:$0xff]  }
 0x564   :  { %8590 = vmatprep.subr.bf16.mxu0 %v13530_v25  ;;  %8643 = vmatprep.subr.bf16.mxu1 %v13533_v59  ;;  %v13585_v25 = vld [vmem:[#allocation14 + $0x320] ss:$8 sps:$4 sm:$0xff]   ;;  %v13587_v59 = vld [vmem:[#allocation14 + $0x324] ss:$8 sps:$4 sm:$0xff]  }
 0x567   :  { %8591 = vmatpush2.bf16.msra.mxu0 %v13528_v36  ;;  %8644 = vmatpush2.bf16.msra.mxu1 %v13531_v49  ;;  %v13593_v36 = vld [vmem:[#allocation14 + $0x314] ss:$8 sps:$4 sm:$0xff]   ;;  %v13594_v49 = vld [vmem:[#allocation14 + $0x200] ss:$8 sps:$4 sm:$0xff]  }
 0x568   :  { %8592 = vmatprep.subr.bf16.mxu0 %v13536_v60  ;;  %8645 = vmatprep.subr.bf16.mxu1 %v13539_v55  ;;  %v13596_v60 = vld [vmem:[#allocation14 + $0x204] ss:$8 sps:$4 sm:$0xff]  }
 0x569   :  { %v13599_v55 = vld [vmem:[#allocation14 + $0x304] ss:$8 sps:$4 sm:$0xff]  }
 0x56b   :  { %8593 = vmatpush2.bf16.msra.mxu0 %v13534_v0  ;;  %8646 = vmatpush2.bf16.msra.mxu1 %v13537_v23  ;;  %v13605_v0 = vld [vmem:[#allocation14 + $0x3f4] ss:$8 sps:$4 sm:$0xff]   ;;  %v13608_v23 = vld [vmem:[#allocation14 + $0x2e4] ss:$8 sps:$4 sm:$0xff]  }
 0x56c   :  { %8594 = vmatprep.subr.bf16.mxu0 %v13542_v19  ;;  %8647 = vmatprep.subr.bf16.mxu1 %v13545_v4  ;;  %v13606_v19 = vld [vmem:[#allocation14 + $0x2e0] ss:$8 sps:$4 sm:$0xff]   ;;  %v13611_v4 = vld [vmem:[#allocation14 + $0x3e4] ss:$8 sps:$4 sm:$0xff]  }
 0x56f   :  { %8595 = vmatpush2.bf16.msra.mxu0 %v13540_v30  ;;  %8648 = vmatpush2.bf16.msra.mxu1 %v13543_v32  ;;  %v13618_v30 = vld [vmem:[#allocation14 + $0x2c0] ss:$8 sps:$4 sm:$0xff]   ;;  %v13626_v32 = vld [vmem:[#allocation14 + $0x2b4] ss:$8 sps:$4 sm:$0xff]  }
 0x570   :  { %8596 = vmatprep.subr.bf16.mxu0 %v13548_v35  ;;  %8649 = vmatprep.subr.bf16.mxu1 %v13551_v52  ;;  %v13621_v35 = vld [vmem:[#allocation14 + $0x3c0] ss:$8 sps:$4 sm:$0xff]   ;;  %v13629_v52 = vld [vmem:[#allocation14 + $0x3b4] ss:$8 sps:$4 sm:$0xff]  }
 0x573   :  { %8597 = vmatpush2.bf16.msra.mxu0 %v13546_v9  ;;  %8650 = vmatpush2.bf16.msra.mxu1 %v13549_v37  ;;  %v13638_v9 = vld [vmem:[#allocation14 + $0x294] ss:$8 sps:$4 sm:$0xff]   ;;  %v13633_v37 = vld [vmem:[#allocation14 + $0x3a0] ss:$8 sps:$4 sm:$0xff]  }
 0x574   :  { %9735 = vmatprep.subr.bf16.mxu0 %v13554_v63  ;;  %9776 = vmatprep.subr.bf16.mxu1 %v13557_v21  ;;  %v13645_v63 = vld [vmem:[#allocation14 + $0x380] ss:$8 sps:$4 sm:$0xff]  }
 0x576   :  { %8599 = vmatmul.mubr.bf16.vlgmr.msra.gmra.mxu0 %v8222_v53  ;;  %8652 = vmatmul.mubr.bf16.vlgmr.msra.gmra.mxu1 %v8222_v53  ;;  %v13639_v53 = vld [vmem:[#allocation14 + $0x390] ss:$8 sps:$4 sm:$0xff]  }
 0x577   :  { %8608 = vmatprep.mubr.bf16.mxu0 %v8241_v42  ;;  %8661 = vmatprep.mubr.bf16.mxu1 %v8241_v42  ;;  %v13647_v42 = vld [vmem:[#allocation14 + $0x384] ss:$8 sps:$4 sm:$0xff]  }
 0x578   :  { %9736 = vmatpush1.bf16.msra.mxu0 %v13552_v8  ;;  %9777 = vmatpush1.bf16.msra.mxu1 %v13555_v45  ;;  %v13650_v8 = vld [vmem:[#allocation14 + $0x74] ss:$8 sps:$4 sm:$0xff]  }
 0x579   :  { %9737 = vmatprep.subr.bf16.mxu0 %v13560_v62  ;;  %9778 = vmatprep.subr.bf16.mxu1 %v13563_v48  ;;  %v13661_v62 = vld [vmem:[#allocation14 + $0x174] ss:$8 sps:$4 sm:$0xff]  }
 0x57c   :  { %9738 = vmatpush1.bf16.msra.mxu0 %v13558_v12  ;;  %9779 = vmatpush1.bf16.msra.mxu1 %v13561_v2 }
 0x57d   :  { %9739 = vmatprep.subr.bf16.mxu0 %v13566_v1  ;;  %9780 = vmatprep.subr.bf16.mxu1 %v13569_v50 }
 0x57e   :  { %8609 = vmatmul.mubr.bf16.gmra.mxu0 %v8240_v43  ;;  %8662 = vmatmul.mubr.bf16.gmra.mxu1 %v8240_v43  ;;  %v13642_v43 = vld [vmem:[#allocation14 + $0x280] ss:$8 sps:$4 sm:$0xff]  }
 0x580   :  { %9740 = vmatpush1.bf16.msra.mxu0 %v13564_v22  ;;  %9781 = vmatpush1.bf16.msra.mxu1 %v13567_v31 }
 0x581   :  { %9741 = vmatprep.subr.bf16.mxu0 %v13572_v33  ;;  %9782 = vmatprep.subr.bf16.mxu1 %v13575_v24 }
 0x584   :  { %9742 = vmatpush1.bf16.msra.mxu0 %v13570_v27  ;;  %9783 = vmatpush1.bf16.msra.mxu1 %v13573_v15 }
 0x585   :  { %9743 = vmatprep.subr.bf16.mxu0 %v13578_v34  ;;  %9784 = vmatprep.subr.bf16.mxu1 %v13581_v3 }
 0x588   :  { %9744 = vmatpush1.bf16.msra.mxu0 %v13576_v54  ;;  %9785 = vmatpush1.bf16.msra.mxu1 %v13579_v26 }
 0x589   :  { %9745 = vmatprep.subr.bf16.mxu0 %v13584_v58  ;;  %9786 = vmatprep.subr.bf16.mxu1 %v13587_v59 }
 0x58c   :  { %9746 = vmatpush1.bf16.msra.mxu0 %v13582_v16  ;;  %9787 = vmatpush1.bf16.msra.mxu1 %v13585_v25 }
 0x58d   :  { %9747 = vmatprep.subr.bf16.mxu0 %v13590_v29  ;;  %9788 = vmatprep.subr.bf16.mxu1 %v13593_v36 }
 0x590   :  { %9748 = vmatpush1.bf16.msra.mxu0 %v13588_v38  ;;  %9789 = vmatpush1.bf16.msra.mxu1 %v13591_v56 }
 0x591   :  { %9749 = vmatprep.subr.bf16.mxu0 %v13596_v60  ;;  %9790 = vmatprep.subr.bf16.mxu1 %v13599_v55 }
 0x594   :  { %9750 = vmatpush1.bf16.msra.mxu0 %v13594_v49  ;;  %9791 = vmatpush1.bf16.msra.mxu1 %v13597_v51 }
 0x595   :  { %9751 = vmatprep.subr.bf16.mxu0 %v13602_v47  ;;  %9792 = vmatprep.subr.bf16.mxu1 %v13605_v0 }
 0x598   :  { %9752 = vmatpush2.bf16.msra.mxu0 %v13600_v7  ;;  %9793 = vmatpush2.bf16.msra.mxu1 %v13603_v39  ;;  %v8688_v7 = vld [vmem:[%s16501_s6] sm:$0xf] }
 0x599   :  { %9753 = vmatprep.subr.bf16.mxu0 %v13608_v23  ;;  %9794 = vmatprep.subr.bf16.mxu1 %v13611_v4  ;;  %v16553_v4 = vld [vmem:[#allocation23_spill] sm:$0xff] }
 0x59c   :  { %9754 = vmatpush2.bf16.msra.mxu0 %v13606_v19  ;;  %9795 = vmatpush2.bf16.msra.mxu1 %v13609_v20  ;;  %v16554_v20 = vld [vmem:[#allocation24_spill] sm:$0xff] }
 0x59d   :  { %9755 = vmatprep.subr.bf16.mxu0 %v13614_v18  ;;  %9796 = vmatprep.subr.bf16.mxu1 %v13617_v57  ;;  %v15823_v18 = vrot.slane %v8688_v7, %v16553_v4  ;;  %v15826_v57 = vrot.slane %v8688_v7, %v16554_v20 }
 0x5a0   :  { %9756 = vmatpush2.bf16.msra.mxu0 %v13612_v28  ;;  %9797 = vmatpush2.bf16.msra.mxu1 %v13615_v11  ;;  %v16555_v11 = vld [vmem:[#allocation25_spill] sm:$0xff] }
 0x5a1   :  { %9757 = vmatprep.subr.bf16.mxu0 %v13620_v10  ;;  %9798 = vmatprep.subr.bf16.mxu1 %v13623_v40  ;;  %v15829_v40 = vrot.slane %v8688_v7, %v16555_v11 }
 0x5a4   :  { %9758 = vmatpush2.bf16.msra.mxu0 %v13618_v30  ;;  %9799 = vmatpush2.bf16.msra.mxu1 %v13621_v35  ;;  %v16556_v30 = vld [vmem:[#allocation26_spill] sm:$0xff] }
 0x5a5   :  { %9759 = vmatprep.subr.bf16.mxu0 %v13626_v32  ;;  %9800 = vmatprep.subr.bf16.mxu1 %v13629_v52  ;;  %v15832_v32 = vrot.slane %v8688_v7, %v16556_v30 }
 0x5a8   :  { %9760 = vmatpush2.bf16.msra.mxu0 %v13624_v5  ;;  %9801 = vmatpush2.bf16.msra.mxu1 %v13627_v13 }
 0x5a9   :  { %9761 = vmatprep.subr.bf16.mxu0 %v13632_v14  ;;  %9802 = vmatprep.subr.bf16.mxu1 %v13635_v61 }
 0x5ac   :  { %9762 = vmatpush2.bf16.msra.mxu0 %v13630_v44  ;;  %9803 = vmatpush2.bf16.msra.mxu1 %v13633_v37 }
 0x5ad   :  { %9763 = vmatprep.subr.bf16.mxu0 %v13638_v9  ;;  %9804 = vmatprep.subr.bf16.mxu1 %v13641_v41 }
 0x5b0   :  { %9764 = vmatpush2.bf16.msra.mxu0 %v13636_v46  ;;  %9805 = vmatpush2.bf16.msra.mxu1 %v13639_v53 }
 0x5b1   :  { %9765 = vmatprep.subr.bf16.mxu0 %v13644_v6  ;;  %9806 = vmatprep.subr.bf16.mxu1 %v13647_v42 }
 0x5b3   :  { %v7488_v45 = vpop.f32.mrf.mxu0  ;;  %v7541_v21 = vpop.f32.mrf.mxu1 }
 0x5b4   :  { %9766 = vmatpush2.bf16.msra.mxu0 %v13642_v43  ;;  %9807 = vmatpush2.bf16.msra.mxu1 %v13645_v63 }
 0x5b5   :  { %10201 = vmatprep.subr.bf16.mxu0 %v13650_v8  ;;  %v7490_v48 = vpop.f32.mrf.mxu0  ;;  %v7543_v12 = vpop.f32.mrf.mxu1  ;;  %10242 = vmatprep.subr.bf16.mxu1 %v13661_v62 }
 0x5b7   :  { %v7492_v2 = vpop.f32.mrf.mxu0  ;;  %v7545_v1 = vpop.f32.mrf.mxu1 }
 0x5b9   :  { %v7494_v50 = vpop.f32.mrf.mxu0  ;;  %v7547_v22 = vpop.f32.mrf.mxu1 }
 0x5c5   :  { %v7498_v31 = vpop.f32.mrf.mxu0  ;;  %v7551_v33 = vpop.f32.mrf.mxu1 }
 0x5c7   :  { %v7500_v24 = vpop.f32.mrf.mxu0  ;;  %v7553_v27 = vpop.f32.mrf.mxu1 }
 0x5c9   :  { %v7502_v15 = vpop.f32.mrf.mxu0  ;;  %v7555_v54 = vpop.f32.mrf.mxu1 }
 0x5cb   :  { %v7504_v34 = vpop.f32.mrf.mxu0  ;;  %v7557_v26 = vpop.f32.mrf.mxu1 }
 0x5f5   :  { %v7954_v3 = vpop.f32.mrf.mxu0  ;;  %v8007_v16 = vpop.f32.mrf.mxu1 }
 0x5f6   :  { %v7955_v23 = vadd.f32 %v7954_v3, %v7488_v45  ;;  %v8008_v19 = vadd.f32 %v8007_v16, %v7541_v21 }
 0x5f7   :  { %v7956_v58 = vpop.f32.mrf.mxu0  ;;  %v8009_v25 = vpop.f32.mrf.mxu1 }
 0x5f8   :  { %v7957_v35 = vadd.f32 %v7956_v58, %v7490_v48  ;;  %v8010_v52 = vadd.f32 %v8009_v25, %v7543_v12 }
 0x5f9   :  { %v7958_v59 = vpop.f32.mrf.mxu0  ;;  %v8011_v38 = vpop.f32.mrf.mxu1 }
 0x5fa   :  { %v7959_v13 = vadd.f32 %v7958_v59, %v7492_v2  ;;  %v8012_v61 = vadd.f32 %v8011_v38, %v7545_v1 }
 0x5fb   :  { %v7960_v29 = vpop.f32.mrf.mxu0  ;;  %v8013_v56 = vpop.f32.mrf.mxu1 }
 0x5fc   :  { %v7961_v44 = vadd.f32 %v7960_v29, %v7494_v50  ;;  %v8014_v9 = vadd.f32 %v8013_v56, %v7547_v22 }
 0x5fd   :  { %v7964_v36 = vpop.f32.mrf.mxu0  ;;  %v8017_v49 = vpop.f32.mrf.mxu1 }
 0x5fe   :  { %v7965_v43 = vadd.f32 %v7964_v36, %v7498_v31  ;;  %v8018_v8 = vadd.f32 %v8017_v49, %v7551_v33 }
 0x5ff   :  { %v7966_v60 = vpop.f32.mrf.mxu0  ;;  %v8019_v55 = vpop.f32.mrf.mxu1 }
 0x600   :  { %v7967_v63 = vadd.f32 %v7966_v60, %v7500_v24  ;;  %v8020_v45 = vadd.f32 %v8019_v55, %v7553_v27 }
 0x601   :  { %v7968_v51 = vpop.f32.mrf.mxu0  ;;  %v8021_v47 = vpop.f32.mrf.mxu1 }
 0x602   :  { %v15836_v48 = vadd.f32 %v7968_v51, %v7502_v15  ;;  %v15838_v12 = vadd.f32 %v8021_v47, %v7555_v54 }
 0x603   :  { %v7970_v39 = vpop.f32.mrf.mxu0  ;;  %v8023_v0 = vpop.f32.mrf.mxu1 }
 0x604   :  { %v15842_v50 = vadd.f32 %v7970_v39, %v7504_v34  ;;  %v15844_v22 = vadd.f32 %v8023_v0, %v7557_v26 }
 0x636   :  { %v8600_v28 = vpop.f32.mrf.mxu0  ;;  %v8653_v10 = vpop.f32.mrf.mxu1 }
 0x637   :  { %v8672_v5 = vadd.f32 %v8600_v28, %v7955_v23  ;;  %v8674_v14 = vadd.f32 %v8653_v10, %v8008_v19 }
 0x638   :  { %v8602_v37 = vpop.f32.mrf.mxu0  ;;  %v8655_v41 = vpop.f32.mrf.mxu1 }
 0x639   :  { %v8710_v46 = vadd.f32 %v15823_v18, %v8672_v5  ;;  %v8712_v6 = vadd.f32 %v15826_v57, %v8674_v14  ;;  %v8673_v53 = vadd.f32 %v8602_v37, %v7957_v35  ;;  %v8675_v42 = vadd.f32 %v8655_v41, %v8010_v52 }
 0x63a   :  { %v8604_v21 = vpop.f32.mrf.mxu0  ;;  %v8657_v62 = vpop.f32.mrf.mxu1 }
 0x63b   :  { %v8711_v2 = vadd.f32 %v15829_v40, %v8673_v53  ;;  %v8713_v1 = vadd.f32 %v15832_v32, %v8675_v42  ;;  %v8676_v3 = vadd.f32 %v8604_v21, %v7959_v13  ;;  %v8678_v16 = vadd.f32 %v8657_v62, %v8012_v61 }
 0x63c   :  { %v8606_v31 = vpop.f32.mrf.mxu0  ;;  %v8659_v33 = vpop.f32.mrf.mxu1  ;;  %v8726_v24 = vmax.f32 %v8710_v46, 0.0  ;;  %v8728_v27 = vmax.f32 %v8712_v6, 0.0 }
 0x63d   :  { %v8727_v58 = vmax.f32 %v8711_v2, 0.0  ;;  %v8729_v25 = vmax.f32 %v8713_v1, 0.0  ;;  %v8714_v15 = vadd.f32 %v15823_v18, %v8676_v3  ;;  %v8716_v54 = vadd.f32 %v15826_v57, %v8678_v16 }
 0x63e   :  { %v8677_v59 = vadd.f32 %v8606_v31, %v7961_v44  ;;  %v8679_v38 = vadd.f32 %v8659_v33, %v8014_v9  ;;  %v8610_v29 = vpop.f32.mrf.mxu0  ;;  %v8663_v56 = vpop.f32.mrf.mxu1 }
 0x63f   :  { %v8758_v34 = vcombine.low %v8726_v24, %v8727_v58  ;;  %v8759_v36 = vcombine.high %v8726_v24, %v8727_v58  ;;  %v12507_v26 = vcombine.low %v8727_v58, %v8727_v58  ;;  %v12509_v49 = vcombine.high %v8727_v58, %v8727_v58 }
 0x640   :  { %v8760_v60 = vcombine.low %v8728_v27, %v8729_v25  ;;  %v8761_v55 = vcombine.high %v8728_v27, %v8729_v25  ;;  %v12508_v51 = vcombine.low %v8729_v25, %v8729_v25  ;;  %v12510_v47 = vcombine.high %v8729_v25, %v8729_v25  ;;  %v8612_v30 = vpop.f32.mrf.mxu0  ;;  %v8665_v35 = vpop.f32.mrf.mxu1 }
 0x641   :  { %v12523_v7 = vpack.c.bf16 %v12507_v26, %v8758_v34  ;;  %v12525_v39 = vpack.c.bf16 %v12509_v49, %v8759_v36  ;;  %v8730_v0 = vmax.f32 %v8714_v15, 0.0  ;;  %v8732_v23 = vmax.f32 %v8716_v54, 0.0 }
 0x642   :  { %v12524_v19 = vpack.c.bf16 %v12508_v51, %v8760_v60  ;;  %v12526_v20 = vpack.c.bf16 %v12510_v47, %v8761_v55  ;;  %v8715_v28 = vadd.f32 %v15829_v40, %v8677_v59  ;;  %v8717_v10 = vadd.f32 %v15832_v32, %v8679_v38  ;;  %v8614_v16 = vpop.f32.mrf.mxu0  ;;  %v8667_v31 = vpop.f32.mrf.mxu1 }
 0x643   :  { %v8894_v52 = vrot.slane %v12523_v7, %v14327_v17  ;;  %v8911_v5 = vrot.slane %v12525_v39, %v14327_v17  ;;  %v8680_v14 = vadd.f32 %v8610_v29, %v7965_v43  ;;  %v8682_v13 = vadd.f32 %v8663_v56, %v8018_v8 }
 0x644   :  { %v8901_v61 = vrot.slane %v12524_v19, %v14327_v17  ;;  %v8918_v44 = vrot.slane %v12526_v20, %v14327_v17  ;;  %v8731_v9 = vmax.f32 %v8715_v28, 0.0  ;;  %v8733_v37 = vmax.f32 %v8717_v10, 0.0 }
 0x645   :  { %v8718_v41 = vadd.f32 %v15823_v18, %v8680_v14  ;;  %v8720_v46 = vadd.f32 %v15826_v57, %v8682_v13  ;;  %v8681_v6 = vadd.f32 %v8612_v30, %v7967_v63  ;;  %v8683_v53 = vadd.f32 %v8665_v35, %v8020_v45 }
 0x646   :  { %v8902_v42 = vcombine.low %v8894_v52, %v8901_v61  ;;  %v8919_v21 = vcombine.low %v8911_v5, %v8918_v44  ;;  %v8762_v62 = vcombine.low %v8730_v0, %v8731_v9  ;;  %v8763_v2 = vcombine.high %v8730_v0, %v8731_v9  ;;  %v8616_v0 = vpop.f32.mrf.mxu0 }
 0x647   :  { %v12511_v1 = vcombine.low %v8731_v9, %v8731_v9  ;;  %v12513_v3 = vcombine.high %v8731_v9, %v8731_v9  ;;  %v8764_v43 = vcombine.low %v8732_v23, %v8733_v37  ;;  %v8765_v8 = vcombine.high %v8732_v23, %v8733_v37 }
 0x648   :  { %9030 = vst [vmem:[#allocation4 + $0x28] sm:$0xff] %v8902_v42  ;;  %9031 = vst [vmem:[#allocation4] sm:$0xff] %v8919_v21  ;;  %v12512_v33 = vcombine.low %v8733_v37, %v8733_v37  ;;  %v12514_v24 = vcombine.high %v8733_v37, %v8733_v37  ;;  %v8734_v27 = vmax.f32 %v8718_v41, 0.0  ;;  %v8736_v58 = vmax.f32 %v8720_v46, 0.0 }
 0x649   :  { %v12527_v25 = vpack.c.bf16 %v12511_v1, %v8762_v62  ;;  %v12529_v15 = vpack.c.bf16 %v12513_v3, %v8763_v2  ;;  %v8719_v63 = vadd.f32 %v15829_v40, %v8681_v6  ;;  %v8721_v45 = vadd.f32 %v15832_v32, %v8683_v53 }
 0x64a   :  { %v12528_v54 = vpack.c.bf16 %v12512_v33, %v8764_v43  ;;  %v12530_v59 = vpack.c.bf16 %v12514_v24, %v8765_v8  ;;  %v8684_v38 = vadd.f32 %v8614_v16, %v15836_v48  ;;  %v8686_v29 = vadd.f32 %v8667_v31, %v15838_v12  ;;  %v8669_v12 = vpop.f32.mrf.mxu1 }
 0x64b   :  { %v8928_v56 = vrot.slane %v12527_v25, %v14327_v17  ;;  %v8945_v34 = vrot.slane %v12529_v15, %v14327_v17  ;;  %v8735_v36 = vmax.f32 %v8719_v63, 0.0  ;;  %v8737_v26 = vmax.f32 %v8721_v45, 0.0 }
 0x64c   :  { %v8935_v49 = vrot.slane %v12528_v54, %v14327_v17  ;;  %v8952_v60 = vrot.slane %v12530_v59, %v14327_v17  ;;  %v8722_v55 = vadd.f32 %v15823_v18, %v8684_v38  ;;  %v8724_v51 = vadd.f32 %v15826_v57, %v8686_v29 }
 0x64d   :  { %v8766_v47 = vcombine.low %v8734_v27, %v8735_v36  ;;  %v8767_v7 = vcombine.high %v8734_v27, %v8735_v36  ;;  %v12515_v39 = vcombine.low %v8735_v36, %v8735_v36  ;;  %v12517_v48 = vcombine.high %v8735_v36, %v8735_v36 }
 0x64e   :  { %v8936_v23 = vcombine.low %v8928_v56, %v8935_v49  ;;  %v8953_v19 = vcombine.low %v8945_v34, %v8952_v60  ;;  %v8768_v20 = vcombine.low %v8736_v58, %v8737_v26  ;;  %v8769_v28 = vcombine.high %v8736_v58, %v8737_v26 }
 0x64f   :  { %v12531_v10 = vpack.c.bf16 %v12515_v39, %v8766_v47  ;;  %v12533_v30 = vpack.c.bf16 %v12517_v48, %v8767_v7  ;;  %v12516_v35 = vcombine.low %v8737_v26, %v8737_v26  ;;  %v12518_v52 = vcombine.high %v8737_v26, %v8737_v26  ;;  %v15866_v5 = vld [vmem:[#allocation4 + $0x28] sm:$0x55]  ;;  %v15868_v14 = vld [vmem:[#allocation4] sm:$0x55] }
 0x650   :  { %9032 = vst [vmem:[#allocation4 + $0x10] sm:$0xff] %v8936_v23  ;;  %9033 = vst [vmem:[#allocation4 + $0x20] sm:$0xff] %v8953_v19  ;;  %v8738_v18 = vmax.f32 %v8722_v55, 0.0  ;;  %v8740_v57 = vmax.f32 %v8724_v51, 0.0  ;;  %v8685_v13 = vadd.f32 %v8616_v0, %v15842_v50  ;;  %v8687_v61 = vadd.f32 %v8669_v12, %v15844_v22 }
 0x651   :  { %v8962_v44 = vrot.slane %v12531_v10, %v14327_v17  ;;  %v8979_v9 = vrot.slane %v12533_v30, %v14327_v17  ;;  %v12532_v37 = vpack.c.bf16 %v12516_v35, %v8768_v20  ;;  %v12534_v41 = vpack.c.bf16 %v12518_v52, %v8769_v28 }
 0x652   :  { %v8723_v46 = vadd.f32 %v15829_v40, %v8685_v13  ;;  %v8725_v6 = vadd.f32 %v15832_v32, %v8687_v61  ;;  %v15878_v53 = vrot.slane %v15866_v5, %v14327_v17  ;;  %v15882_v42 = vrot.slane %v15868_v14, %v14327_v17 }
 0x653   :  { %v8969_v50 = vrot.slane %v12532_v37, %v14327_v17  ;;  %v8986_v22 = vrot.slane %v12534_v41, %v14327_v17  ;;  %v9182_v21 = vcombine.high %v15866_v5, %v15866_v5  ;;  %v9199_v40 = vcombine.high %v15868_v14, %v15868_v14 }
 0x654   :  { %v8739_v32 = vmax.f32 %v8723_v46, 0.0  ;;  %v8741_v62 = vmax.f32 %v8725_v6, 0.0  ;;  %v9197_v2 = vcombine.high %v15878_v53, %v15878_v53  ;;  %v9214_v1 = vcombine.high %v15882_v42, %v15882_v42 }
 0x655   :  { %v8970_v3 = vcombine.low %v8962_v44, %v8969_v50  ;;  %v8987_v43 = vcombine.low %v8979_v9, %v8986_v22  ;;  %v16517_v8 = vunpack.c.l.b16 %v15878_v53  ;;  %v9322_v16 = vunpack.c.l.b16 %v15882_v42 }
 0x656   :  { %v8770_v31 = vcombine.low %v8738_v18, %v8739_v32  ;;  %v8771_v33 = vcombine.high %v8738_v18, %v8739_v32  ;;  %v12519_v24 = vcombine.low %v8739_v32, %v8739_v32  ;;  %v12521_v27 = vcombine.high %v8739_v32, %v8739_v32 }
 0x657   :  { %9034 = vst [vmem:[#allocation4 + $0x18] sm:$0xff] %v8970_v3  ;;  %9035 = vst [vmem:[#allocation4 + $0x8] sm:$0xff] %v8987_v43  ;;  %v8772_v58 = vcombine.low %v8740_v57, %v8741_v62  ;;  %v8773_v25 = vcombine.high %v8740_v57, %v8741_v62  ;;  %v12520_v15 = vcombine.low %v8741_v62, %v8741_v62  ;;  %v9040_v45 = vld [vmem:[#allocation4 + $0x10] sm:$0x55]  ;;  %v15896_v54 = vld [vmem:[#allocation4 + $0x20] sm:$0x55]  ;;  %v15905_v26 = vunpack.c.l.b16 %v9197_v2 }
 0x658   :  { %v12522_v63 = vcombine.high %v8741_v62, %v8741_v62  ;;  %v12535_v59 = vpack.c.bf16 %v12519_v24, %v8770_v31  ;;  %v12537_v38 = vpack.c.bf16 %v12521_v27, %v8771_v33  ;;  %v15899_v29 = vrot.slane %v9040_v45, %v14327_v17 }
 0x659   :  { %v15903_v56 = vrot.slane %v15896_v54, %v14327_v17  ;;  %v12536_v34 = vpack.c.bf16 %v12520_v15, %v8772_v58  ;;  %v15907_v49 = vunpack.c.l.b16 %v9214_v1  ;;  %v9365_v19 = vrot.slane %v15905_v26, 1 }
 0x65a   :  { %v12538_v36 = vpack.c.bf16 %v12522_v63, %v8773_v25  ;;  %v8996_v60 = vrot.slane %v12535_v59, %v14327_v17  ;;  %v9013_v55 = vrot.slane %v12537_v38, %v14327_v17  ;;  %v9231_v51 = vcombine.high %v15899_v29, %v15899_v29 }
 0x65b   :  { %v9248_v47 = vcombine.high %v15903_v56, %v15903_v56  ;;  %v9003_v7 = vrot.slane %v12536_v34, %v14327_v17  ;;  %v9326_v48 = vunpack.c.l.b16 %v15899_v29  ;;  %v16519_v0 = vunpack.c.l.b16 %v15903_v56 }
 0x65c   :  { %v9020_v39 = vrot.slane %v12538_v36, %v14327_v17  ;;  %v15919_v12 = vunpack.c.l.b16 %v9231_v51  ;;  %v9350_v20 = vrot.slane %v16517_v8, 1  ;;  %v9366_v14 = vsel %vm9351_vm5, %v15907_v49, %v9365_v19 }
 0x65d   :  { %v15921_v23 = vunpack.c.l.b16 %v9248_v47  ;;  %v9004_v28 = vcombine.low %v8996_v60, %v9003_v7  ;;  %v9353_v30 = vrot.slane %v9326_v48, 7  ;;  %v9355_v35 = vrot.slane %v16519_v0, 6 }
 0x65e   :  { %v9021_v10 = vcombine.low %v9013_v55, %v9020_v39  ;;  %v9042_v52 = vld [vmem:[#allocation4 + $0x18] sm:$0x55]  ;;  %v9043_v5 = vld [vmem:[#allocation4 + $0x8] sm:$0x55]  ;;  %v9367_v18 = vrot.slane %v15919_v12, 7  ;;  %v9352_v13 = vsel %vm9351_vm5, %v9322_v16, %v9350_v20  ;;  %v15945_v37 = vrot.slane %v9182_v21, %v14327_v17 }
 0x65f   :  { %v9369_v57 = vrot.slane %v15921_v23, 6  ;;  %9036 = vst [vmem:[#allocation4 + $0x38] sm:$0xff] %v9004_v28  ;;  %v15938_v61 = vrot.slane %v9042_v52, %v14327_v17  ;;  %v15941_v44 = vrot.slane %v9043_v5, %v14327_v17  ;;  %v9354_v9 = vsel %vm3123_vm4, %v9353_v30, %v9352_v13 }
 0x660   :  { %9037 = vst [vmem:[#allocation4 + $0x30] sm:$0xff] %v9021_v10  ;;  %v9368_v41 = vsel %vm3123_vm4, %v9367_v18, %v9366_v14  ;;  %v9356_v46 = vsel %vm3125_vm6, %v9355_v35, %v9354_v9  ;;  %v15950_v6 = vrot.slane %v9199_v40, %v14327_v17  ;;  %v9216_v50 = vcombine.high %v9040_v45, %v9040_v45 }
 0x661   :  { %v9265_v22 = vcombine.high %v15938_v61, %v15938_v61  ;;  %v9282_v32 = vcombine.high %v15941_v44, %v15941_v44  ;;  %v16518_v62 = vunpack.c.l.b16 %v15938_v61  ;;  %v16516_v2 = vunpack.c.l.b16 %v15941_v44 }
 0x662   :  { %v9370_v21 = vsel %vm3125_vm6, %v9369_v57, %v9368_v41  ;;  %v9198_v1 = vcombine.high %v15945_v37, %v15945_v37  ;;  %v9215_v40 = vcombine.high %v15950_v6, %v15950_v6  ;;  %v15964_v3 = vrot.slane %v9216_v50, %v14327_v17 }
 0x663   :  { %v15966_v43 = vunpack.c.l.b16 %v9265_v22  ;;  %v15968_v31 = vunpack.c.l.b16 %v9282_v32  ;;  %v9357_v33 = vrot.slane %v16518_v62, 5  ;;  %v9359_v24 = vrot.slane %v16516_v2, 4 }
 0x664   :  { %v9232_v27 = vcombine.high %v15964_v3, %v15964_v3  ;;  %v9233_v58 = vcombine.high %v15896_v54, %v15896_v54  ;;  %v9250_v25 = vcombine.high %v9042_v52, %v9042_v52  ;;  %v9267_v15 = vcombine.high %v9043_v5, %v9043_v5 }
 0x665   :  { %v9371_v63 = vrot.slane %v15966_v43, 5  ;;  %v9373_v45 = vrot.slane %v15968_v31, 4  ;;  %v9358_v59 = vsel %vm2490_vm1, %v9357_v33, %v9356_v46  ;;  %v9320_v38 = vunpack.c.l.b16 %v15945_v37 }
 0x666   :  { %v9044_v34 = vld [vmem:[#allocation4 + $0x38] sm:$0x55]  ;;  %v9360_v60 = vsel %vm3129_vm8, %v9359_v24, %v9358_v59  ;;  %v15984_v55 = vrot.slane %v9233_v58, %v14327_v17  ;;  %v15987_v51 = vrot.slane %v9250_v25, %v14327_v17  ;;  %v15990_v54 = vrot.slane %v9267_v15, %v14327_v17 }
 0x667   :  { %v9045_v36 = vld [vmem:[#allocation4 + $0x30] sm:$0x55]  ;;  %v15993_v47 = vrot.slane %v9044_v34, %v14327_v17  ;;  %v9372_v39 = vsel %vm2490_vm1, %v9371_v63, %v9370_v21  ;;  %v9284_v19 = vcombine.high %v9044_v34, %v9044_v34  ;;  %v16015_v13 = vunpack.c.l.b16 %v9198_v1 }
 0x668   :  { %v15996_v7 = vrot.slane %v9045_v36, %v14327_v17  ;;  %v9374_v20 = vsel %vm3129_vm8, %v9373_v45, %v9372_v39  ;;  %v9249_v28 = vcombine.high %v15984_v55, %v15984_v55  ;;  %v9266_v10 = vcombine.high %v15987_v51, %v15987_v51 }
 0x669   :  { %v9283_v30 = vcombine.high %v15990_v54, %v15990_v54  ;;  %v9299_v35 = vcombine.high %v15993_v47, %v15993_v47  ;;  %v16515_v5 = vunpack.c.l.b16 %v15993_v47  ;;  %v16013_v18 = vrot.slane %v9284_v19, %v14327_v17 }
 0x66a   :  { %v9316_v52 = vcombine.high %v15996_v7, %v15996_v7  ;;  %v16514_v14 = vunpack.c.l.b16 %v15996_v7  ;;  %v9301_v57 = vcombine.high %v9045_v36, %v9045_v36  ;;  %v9324_v9 = vunpack.c.l.b16 %v15950_v6 }
 0x66b   :  { %v16018_v41 = vunpack.c.l.b16 %v9299_v35  ;;  %v9361_v50 = vrot.slane %v16515_v5, 3  ;;  %v9300_v32 = vcombine.high %v16013_v18, %v16013_v18  ;;  %v16031_v1 = vunpack.c.l.b16 %v9215_v40 }
 0x66c   :  { %v16020_v46 = vunpack.c.l.b16 %v9316_v52  ;;  %v9363_v22 = vrot.slane %v16514_v14, 2  ;;  %v16029_v21 = vrot.slane %v9301_v57, %v14327_v17  ;;  %v9328_v33 = vunpack.c.l.b16 %v15964_v3  ;;  %v13712_v3 = vld [vmem:[#allocation14 + $0xe4] ss:$8 sps:$4 sm:$0xff]  }
 0x66d   :  { %v9375_v24 = vrot.slane %v16018_v41, 3  ;;  %v9362_v25 = vsel %vm3131_vm9, %v9361_v50, %v9360_v60  ;;  %v16037_v15 = vunpack.c.l.b16 %v9232_v27  ;;  %v9332_v59 = vunpack.c.l.b16 %v15984_v55  ;;  %v13648_v50 = vld [vmem:[#allocation14 + $0x70] ss:$8 sps:$4 sm:$0xff]  }
 0x66e   :  { %v9377_v58 = vrot.slane %v16020_v46, 2  ;;  %v9364_v63 = vsel %vm16557_vm12, %v9363_v22, %v9362_v25  ;;  %v9317_v45 = vcombine.high %v16029_v21, %v16029_v21  ;;  %v16043_v34 = vunpack.c.l.b16 %v9249_v28  ;;  %v16192_v55 = vld [vmem:[#allocation4 + $0x38] sm:$0xaa]  ;;  %vm16573_vm12 = vmmov %vm16571_vm0 }
 0x66f   :  { %v9376_v40 = vsel %vm3131_vm9, %v9375_v24, %v9374_v20  ;;  %v9407_v36 = vpack.c.b16 %v9364_v63, %v9364_v63  ;;  %v9336_v39 = vunpack.c.l.b16 %v15987_v51  ;;  %v16047_v19 = vunpack.c.l.b16 %v9266_v10 }
 0x670   :  { %v9378_v60 = vsel %vm16558_vm7, %v9377_v58, %v9376_v40  ;;  %v9340_v27 = vunpack.c.l.b16 %v15990_v54  ;;  %v16051_v35 = vunpack.c.l.b16 %v9283_v30  ;;  %v9344_v52 = vunpack.c.l.b16 %v16013_v18  ;;  %v13664_v30 = vld [vmem:[#allocation14 + $0x64] ss:$8 sps:$4 sm:$0xff]   ;;  %vm16574_vm7 = vmmov %vm16571_vm0 }
 0x671   :  { %v9408_v57 = vpack.c.b16 %v9378_v60, %v9378_v60  ;;  %v16054_v22 = vunpack.c.l.b16 %v9300_v32  ;;  %v9348_v28 = vunpack.c.l.b16 %v16029_v21  ;;  %v16057_v20 = vunpack.c.l.b16 %v9317_v45 }
 0x672   :  { %v9393_v24 = vrot.slane %v16015_v13, 1  ;;  %v9395_v10 = vrot.slane %v16037_v15, 7  ;;  %v9397_v58 = vrot.slane %v16043_v34, 6  ;;  %v9399_v25 = vrot.slane %v16047_v19, 5 }
 0x673   :  { %9767 = vmatprep.mubr.bf16.mxu0 %v9408_v57  ;;  %v9401_v63 = vrot.slane %v16051_v35, 4  ;;  %v9403_v40 = vrot.slane %v16054_v22, 3  ;;  %v9405_v32 = vrot.slane %v16057_v20, 2  ;;  %v9831_v60 = vrot.slane %v15907_v49, 7 }
 0x674   :  { %9768 = vmatmul.mubr.bf16.vlgmr.msra.gmra.mxu0 %v9407_v36  ;;  %v9394_v45 = vsel %vm9351_vm5, %v16031_v1, %v9393_v24  ;;  %v9833_v14 = vrot.slane %v15919_v12, 6  ;;  %v9835_v5 = vrot.slane %v15921_v23, 5  ;;  %v9837_v2 = vrot.slane %v15966_v43, 4  ;;  %v13662_v36 = vld [vmem:[#allocation14 + $0x60] ss:$8 sps:$4 sm:$0xff]  }
 0x675   :  { %10202 = vmatpush1.bf16.msra.mxu0 %v13648_v50  ;;  %v9396_v57 = vsel %vm3123_vm4, %v9395_v10, %v9394_v45  ;;  %v9832_v8 = vsel %vm9351_vm5, %v9831_v60, %v15905_v26  ;;  %v9839_v62 = vrot.slane %v15968_v31, 3  ;;  %v9841_v49 = vrot.slane %v16018_v41, 2  ;;  %v13670_v43 = vld [vmem:[#allocation14 + $0x54] ss:$8 sps:$4 sm:$0xff]  }
 0x676   :  { %v9398_v0 = vsel %vm3125_vm6, %v9397_v58, %v9396_v57  ;;  %v9834_v24 = vsel %vm3123_vm4, %v9833_v14, %v9832_v8  ;;  %v9843_v12 = vrot.slane %v16020_v46, 1  ;;  %v9379_v23 = vrot.slane %v9320_v38, 1  ;;  %10203 = vmatprep.subr.bf16.mxu0 %v13664_v30  ;;  %v13668_v30 = vld [vmem:[#allocation14 + $0x50] ss:$8 sps:$4 sm:$0xff]  }
 0x677   :  { %v9400_v50 = vsel %vm2490_vm1, %v9399_v25, %v9398_v0  ;;  %v9836_v26 = vsel %vm3125_vm6, %v9835_v5, %v9834_v24  ;;  %v9381_v31 = vrot.slane %v9328_v33, 7  ;;  %v9383_v41 = vrot.slane %v9332_v59, 6 }
 0x678   :  { %v9402_v10 = vsel %vm3129_vm8, %v9401_v63, %v9400_v50  ;;  %v9838_v8 = vsel %vm2490_vm1, %v9837_v2, %v9836_v26  ;;  %v9380_v14 = vsel %vm9351_vm5, %v9324_v9, %v9379_v23  ;;  %v9385_v46 = vrot.slane %v9336_v39, 5 }
 0x679   :  { %v9404_v0 = vsel %vm3131_vm9, %v9403_v40, %v9402_v10  ;;  %v9840_v5 = vsel %vm3129_vm8, %v9839_v62, %v9838_v8  ;;  %v9382_v58 = vsel %vm3123_vm4, %v9381_v31, %v9380_v14  ;;  %v9387_v25 = vrot.slane %v9340_v27, 4  ;;  %10204 = vmatpush1.bf16.msra.mxu0 %v13662_v36  ;;  %v13676_v40 = vld [vmem:[#allocation14 + $0x44] ss:$8 sps:$4 sm:$0xff]   ;;  %v13682_v14 = vld [vmem:[#allocation14 + $0x34] ss:$8 sps:$4 sm:$0xff]  }
 0x67a   :  { %v9406_v2 = vsel %vm16559_vm11, %v9405_v32, %v9404_v0  ;;  %v9842_v63 = vsel %vm3131_vm9, %v9841_v49, %v9840_v5  ;;  %v9384_v60 = vsel %vm3125_vm6, %v9383_v41, %v9382_v58  ;;  %v9389_v45 = vrot.slane %v9344_v52, 3  ;;  %10205 = vmatprep.subr.bf16.mxu0 %v13670_v43  ;;  %v13659_v41 = vld [vmem:[#allocation14 + $0x170] ss:$8 sps:$4 sm:$0xff]   ;;  %v13667_v0 = vld [vmem:[#allocation14 + $0x164] ss:$8 sps:$4 sm:$0xff]   ;;  %vm16575_vm11 = vmmov %vm16571_vm0 }
 0x67b   :  { %v9410_v57 = vpack.c.b16 %v9406_v2, %v9406_v2  ;;  %v9844_v62 = vsel %vm16560_vm10, %v9843_v12, %v9842_v63  ;;  %v9386_v24 = vsel %vm2490_vm1, %v9385_v46, %v9384_v60  ;;  %v9391_v36 = vrot.slane %v9348_v28, 2  ;;  %v13674_v12 = vld [vmem:[#allocation14 + $0x40] ss:$8 sps:$4 sm:$0xff]   ;;  %v13680_v63 = vld [vmem:[#allocation14 + $0x30] ss:$8 sps:$4 sm:$0xff]   ;;  %vm16576_vm10 = vmmov %vm16571_vm0 }
 0x67c   :  { %v9874_v23 = vpack.c.b16 %v9844_v62, %v9844_v62  ;;  %v9388_v32 = vsel %vm3129_vm8, %v9387_v25, %v9386_v24  ;;  %v9859_v49 = vrot.slane %v16031_v1, 7  ;;  %v9861_v50 = vrot.slane %v16037_v15, 6  ;;  %v13688_v60 = vld [vmem:[#allocation14 + $0x24] ss:$8 sps:$4 sm:$0xff]  }
 0x67d   :  { %9808 = vmatprep.mubr.bf16.mxu1 %v9410_v57  ;;  %v9390_v26 = vsel %vm3131_vm9, %v9389_v45, %v9388_v32  ;;  %v9863_v43 = vrot.slane %v16043_v34, 5  ;;  %v9865_v31 = vrot.slane %v16047_v19, 4  ;;  %10206 = vmatpush1.bf16.msra.mxu0 %v13668_v30  ;;  %v9867_v1 = vrot.slane %v16051_v35, 3 }
 0x67e   :  { %10233 = vmatprep.mubr.bf16.mxu0 %v9874_v23  ;;  %v9392_v10 = vsel %vm16561_vm3, %v9391_v36, %v9390_v26  ;;  %v9860_v8 = vsel %vm9351_vm5, %v9859_v49, %v16015_v13  ;;  %v9869_v15 = vrot.slane %v16054_v22, 2  ;;  %10207 = vmatprep.subr.bf16.mxu0 %v13676_v40  ;;  %v9817_v19 = vrot.slane %v9322_v16, 7  ;;  %v13686_v49 = vld [vmem:[#allocation14 + $0x20] ss:$8 sps:$4 sm:$0xff]   ;;  %v13694_v26 = vld [vmem:[#allocation14 + $0x14] ss:$8 sps:$4 sm:$0xff]   ;;  %vm16577_vm3 = vmmov %vm16571_vm0 }
 0x67f   :  { %v9409_v46 = vpack.c.b16 %v9392_v10, %v9392_v10  ;;  %v9862_v34 = vsel %vm3123_vm4, %v9861_v50, %v9860_v8  ;;  %v9819_v5 = vrot.slane %v9326_v48, 6  ;;  %v9871_v13 = vrot.slane %v16057_v20, 1  ;;  %v16154_v10 = vld [vmem:[#allocation4] sm:$0xaa] }
 0x680   :  { %v9864_v58 = vsel %vm3125_vm6, %v9863_v43, %v9862_v34  ;;  %v16562_v35 = vunpack.c.l.b16 %v15903_v56  ;;  %v16563_v22 = vunpack.c.l.b16 %v15938_v61  ;;  %v16564_v42 = vunpack.c.l.b16 %v15878_v53  ;;  %v13665_v56 = vld [vmem:[#allocation14 + $0x160] ss:$8 sps:$4 sm:$0xff]   ;;  %v13673_v53 = vld [vmem:[#allocation14 + $0x154] ss:$8 sps:$4 sm:$0xff]  }
 0x681   :  { %9809 = vmatmul.mubr.bf16.vlgmr.msra.gmra.mxu1 %v9409_v46  ;;  %v9866_v2 = vsel %vm2490_vm1, %v9865_v31, %v9864_v58  ;;  %10208 = vmatpush1.bf16.msra.mxu0 %v13674_v12  ;;  %v16565_v29 = vunpack.c.l.b16 %v15941_v44  ;;  %v16566_v45 = vunpack.c.l.b16 %v15993_v47  ;;  %v16567_v44 = vunpack.c.l.b16 %v15996_v7  ;;  %v13671_v47 = vld [vmem:[#allocation14 + $0x150] ss:$8 sps:$4 sm:$0xff]   ;;  %v13679_v31 = vld [vmem:[#allocation14 + $0x144] ss:$8 sps:$4 sm:$0xff]   ;;  %v13677_v8 = vld [vmem:[#allocation14 + $0x140] ss:$8 sps:$4 sm:$0xff]  }
 0x682   :  { %v9821_v25 = vrot.slane %v16562_v35, 5  ;;  %v9823_v30 = vrot.slane %v16563_v22, 4  ;;  %v9818_v16 = vsel %vm9351_vm5, %v9817_v19, %v16564_v42  ;;  %10243 = vmatpush1.bf16.msra.mxu1 %v13659_v41  ;;  %v9868_v20 = vsel %vm3129_vm8, %v9867_v1, %v9866_v2  ;;  %10209 = vmatprep.subr.bf16.mxu0 %v13682_v14  ;;  %v13692_v12 = vld [vmem:[#allocation14 + $0x10] ss:$8 sps:$4 sm:$0xff]   ;;  %v16152_v41 = vld [vmem:[#allocation4 + $0x28] sm:$0xaa] }
 0x683   :  { %v9825_v48 = vrot.slane %v16565_v29, 3  ;;  %v9820_v61 = vsel %vm3123_vm4, %v9819_v5, %v9818_v16  ;;  %v9827_v40 = vrot.slane %v16566_v45, 2  ;;  %v9870_v57 = vsel %vm3131_vm9, %v9869_v15, %v9868_v20  ;;  %10244 = vmatprep.subr.bf16.mxu1 %v13667_v0  ;;  %v13700_v1 = vld [vmem:[#allocation14 + $0x4] ss:$8 sps:$4 sm:$0xff]   ;;  %v13685_v15 = vld [vmem:[#allocation14 + $0x134] ss:$8 sps:$4 sm:$0xff]  }
 0x684   :  { %v9822_v62 = vsel %vm3125_vm6, %v9821_v25, %v9820_v61  ;;  %v9829_v24 = vrot.slane %v16567_v44, 1  ;;  %v9872_v36 = vsel %vm16568_vm13, %v9871_v13, %v9870_v57  ;;  %v16158_v14 = vrot.slane %v16152_v41, %v14327_v17  ;;  %v13698_v34 = vld [vmem:[#allocation14] ss:$8 sps:$4 sm:$0xff]   ;;  %v13683_v19 = vld [vmem:[#allocation14 + $0x130] ss:$8 sps:$4 sm:$0xff]  }
 0x685   :  { %v9824_v23 = vsel %vm2490_vm1, %v9823_v30, %v9822_v62  ;;  %v9876_v32 = vpack.c.b16 %v9872_v36, %v9872_v36  ;;  %10210 = vmatpush1.bf16.msra.mxu0 %v13680_v63  ;;  %v16162_v46 = vrot.slane %v16154_v10, %v14327_v17  ;;  %v9845_v0 = vrot.slane %v9324_v9, 7  ;;  %v13706_v5 = vld [vmem:[#allocation14 + $0xf4] ss:$8 sps:$4 sm:$0xff]   ;;  %v13691_v58 = vld [vmem:[#allocation14 + $0x124] ss:$8 sps:$4 sm:$0xff]  }
 0x686   :  { %v9826_v50 = vsel %vm3129_vm8, %v9825_v48, %v9824_v23  ;;  %10245 = vmatpush1.bf16.msra.mxu1 %v13665_v56  ;;  %10211 = vmatprep.subr.bf16.mxu0 %v13688_v60  ;;  %v13704_v13 = vld [vmem:[#allocation14 + $0xf0] ss:$8 sps:$4 sm:$0xff]   ;;  %v13689_v35 = vld [vmem:[#allocation14 + $0x120] ss:$8 sps:$4 sm:$0xff]   ;;  %v10378_v30 = vcombine.high %v16158_v14, %v16158_v14  ;;  %v9847_v6 = vrot.slane %v9328_v33, 6  ;;  %v9849_v42 = vrot.slane %v9332_v59, 5 }
 0x687   :  { %v9828_v43 = vsel %vm3131_vm9, %v9827_v40, %v9826_v50  ;;  %10274 = vmatprep.mubr.bf16.mxu1 %v9876_v32  ;;  %10246 = vmatprep.subr.bf16.mxu1 %v13673_v53  ;;  %v16166_v25 = vld [vmem:[#allocation4 + $0x10] sm:$0xaa]  ;;  %v16168_v22 = vld [vmem:[#allocation4 + $0x20] sm:$0xaa]  ;;  %v10395_v2 = vcombine.high %v16162_v46, %v16162_v46  ;;  %v16176_v9 = vld [vmem:[#allocation4 + $0x18] sm:$0xaa]  ;;  %v9846_v63 = vsel %vm9351_vm5, %v9845_v0, %v9320_v38  ;;  %v10503_v0 = vunpack.c.l.b16 %v16162_v46 }
 0x688   :  { %v16150_v7 = vsel %vm16569_vm15, %v9829_v24, %v9828_v43  ;;  %v9851_v16 = vrot.slane %v9336_v39, 4  ;;  %v9853_v29 = vrot.slane %v9340_v27, 3  ;;  %v16187_v33 = vld [vmem:[#allocation4 + $0x8] sm:$0xaa]  ;;  %v9848_v48 = vsel %vm3123_vm4, %v9847_v6, %v9846_v63  ;;  %v13697_v38 = vld [vmem:[#allocation14 + $0x114] ss:$8 sps:$4 sm:$0xff]  }
 0x689   :  { %10212 = vmatpush1.bf16.msra.mxu0 %v13686_v49  ;;  %v9855_v37 = vrot.slane %v9344_v52, 2  ;;  %v16196_v51 = vrot.slane %v16168_v22, %v14327_v17  ;;  %v9850_v54 = vsel %vm3125_vm6, %v9849_v42, %v9848_v48  ;;  %v9857_v59 = vrot.slane %v9348_v28, 1  ;;  %v16201_v39 = vld [vmem:[#allocation4 + $0x30] sm:$0xaa]  ;;  %v13710_v20 = vld [vmem:[#allocation14 + $0xe0] ss:$8 sps:$4 sm:$0xff]  }
 0x68a   :  { %10247 = vmatpush1.bf16.msra.mxu1 %v13671_v47  ;;  %10213 = vmatprep.subr.bf16.mxu0 %v13694_v26  ;;  %v16205_v27 = vrot.slane %v16166_v25, %v14327_v17  ;;  %v16209_v18 = vrot.slane %v16176_v9, %v14327_v17  ;;  %v9852_v52 = vsel %vm2490_vm1, %v9851_v16, %v9850_v54  ;;  %v10500_v21 = vunpack.c.l.b16 %v10378_v30  ;;  %v13695_v61 = vld [vmem:[#allocation14 + $0x110] ss:$8 sps:$4 sm:$0xff]   ;;  %v13718_v45 = vld [vmem:[#allocation14 + $0xd4] ss:$8 sps:$4 sm:$0xff]   ;;  %v13703_v53 = vld [vmem:[#allocation14 + $0x104] ss:$8 sps:$4 sm:$0xff]  }
 0x68b   :  { %10248 = vmatprep.subr.bf16.mxu1 %v13679_v31  ;;  %v16214_v56 = vrot.slane %v16187_v33, %v14327_v17  ;;  %v10504_v28 = vunpack.c.l.b16 %v10395_v2  ;;  %v9854_v60 = vsel %vm3129_vm8, %v9853_v29, %v9852_v52  ;;  %v16219_v40 = vrot.slane %v16192_v55, %v14327_v17  ;;  %v13716_v32 = vld [vmem:[#allocation14 + $0xd0] ss:$8 sps:$4 sm:$0xff]   ;;  %v13701_v26 = vld [vmem:[#allocation14 + $0x100] ss:$8 sps:$4 sm:$0xff]   ;;  %v13724_v43 = vld [vmem:[#allocation14 + $0xc4] ss:$8 sps:$4 sm:$0xff]  }
 0x68c   :  { %v9856_v57 = vsel %vm3131_vm9, %v9855_v37, %v9854_v60  ;;  %v10429_v62 = vcombine.high %v16196_v51, %v16196_v51  ;;  %v10489_v44 = vrot.slane %v16201_v39, %v14327_v17  ;;  %v10412_v36 = vcombine.high %v16205_v27, %v16205_v27  ;;  %v13722_v30 = vld [vmem:[#allocation14 + $0xc0] ss:$8 sps:$4 sm:$0xff]   ;;  %v13707_v46 = vld [vmem:[#allocation14 + $0x1f0] ss:$8 sps:$4 sm:$0xff]   ;;  %v13730_v63 = vld [vmem:[#allocation14 + $0xb4] ss:$8 sps:$4 sm:$0xff]  }
 0x68d   :  { %10214 = vmatpush1.bf16.msra.mxu0 %v13692_v12  ;;  %v16227_v24 = vsel %vm16570_vm14, %v9857_v59, %v9856_v57  ;;  %v10446_v23 = vcombine.high %v16209_v18, %v16209_v18  ;;  %v10463_v49 = vcombine.high %v16214_v56, %v16214_v56  ;;  %v10545_v50 = vrot.slane %v10500_v21, 2  ;;  %v13715_v48 = vld [vmem:[#allocation14 + $0x1e4] ss:$8 sps:$4 sm:$0xff]  }
 0x68e   :  { %10249 = vmatpush1.bf16.msra.mxu1 %v13677_v8  ;;  %10215 = vmatprep.subr.bf16.mxu0 %v13700_v1  ;;  %v10546_v47 = vrot.slane %v10504_v28, 1  ;;  %v10480_v31 = vcombine.high %v16219_v40, %v16219_v40  ;;  %v10499_v12 = vunpack.c.l.b16 %v16158_v14  ;;  %v10363_v8 = vcombine.high %v16152_v41, %v16152_v41 }
 0x68f   :  { %10250 = vmatprep.subr.bf16.mxu1 %v13685_v15  ;;  %v10380_v1 = vcombine.high %v16154_v10, %v16154_v10  ;;  %v13709_v15 = vld [vmem:[#allocation14 + $0x1f4] ss:$8 sps:$4 sm:$0xff]   ;;  %v10516_v14 = vunpack.c.l.b16 %v10446_v23  ;;  %v10519_v41 = vunpack.c.l.b16 %v16214_v56  ;;  %v16247_v2 = vunpack.c.l.b16 %v10463_v49 }
 0x690   :  { %v10523_v10 = vunpack.c.l.b16 %v16219_v40  ;;  %v10547_v6 = vsel %vm9351_vm5, %v10546_v47, %v10545_v50  ;;  %v10524_v42 = vunpack.c.l.b16 %v10480_v31  ;;  %v10527_v16 = vunpack.c.l.b16 %v10489_v44  ;;  %v13734_v47 = vld [vmem:[#allocation14 + $0xa0] ss:$8 sps:$4 sm:$0xff]  }
 0x691   :  { %10216 = vmatpush1.bf16.msra.mxu0 %v13698_v34  ;;  %v10497_v34 = vcombine.high %v10489_v44, %v10489_v44  ;;  %v16252_v29 = vrot.slane %v10363_v8, %v14327_v17  ;;  %v10414_v52 = vcombine.high %v16168_v22, %v16168_v22  ;;  %v10539_v21 = vrot.slane %v10519_v41, 5  ;;  %v13719_v8 = vld [vmem:[#allocation14 + $0x1d0] ss:$8 sps:$4 sm:$0xff]  }
 0x692   :  { %10251 = vmatpush1.bf16.msra.mxu1 %v13683_v19  ;;  %10217 = vmatprep.subr.bf16.mxu0 %v13706_v5  ;;  %v10507_v19 = vunpack.c.l.b16 %v16205_v27  ;;  %v10512_v5 = vunpack.c.l.b16 %v10429_v62  ;;  %v10397_v28 = vcombine.high %v16166_v25, %v16166_v25  ;;  %v10431_v60 = vcombine.high %v16176_v9, %v16176_v9  ;;  %v13721_v62 = vld [vmem:[#allocation14 + $0x1d4] ss:$8 sps:$4 sm:$0xff]  }
 0x693   :  { %10252 = vmatprep.subr.bf16.mxu1 %v13691_v58  ;;  %v10508_v58 = vunpack.c.l.b16 %v10412_v36  ;;  %v16257_v37 = vunpack.c.l.b16 %v10497_v34  ;;  %v10541_v40 = vrot.slane %v10523_v10, 4  ;;  %v10543_v57 = vrot.slane %v10527_v16, 3 }
 0x694   :  { %v10549_v54 = vrot.slane %v10512_v5, 7  ;;  %v10553_v25 = vrot.slane %v16247_v2, 5  ;;  %v10555_v36 = vrot.slane %v10524_v42, 4  ;;  %v10448_v49 = vcombine.high %v16187_v33, %v16187_v33 }
 0x695   :  { %10218 = vmatpush2.bf16.msra.mxu0 %v13704_v13  ;;  %v10511_v13 = vunpack.c.l.b16 %v16196_v51  ;;  %v10532_v51 = vrot.slane %v10503_v0, 1  ;;  %v10548_v27 = vsel %vm3123_vm4, %v10508_v58, %v10547_v6  ;;  %v10465_v31 = vcombine.high %v16192_v55, %v16192_v55 }
 0x696   :  { %10253 = vmatpush1.bf16.msra.mxu1 %v13689_v35  ;;  %10219 = vmatprep.subr.bf16.mxu0 %v13712_v3  ;;  %v10515_v35 = vunpack.c.l.b16 %v16209_v18  ;;  %v16255_v3 = vrot.slane %v10380_v1, %v14327_v17  ;;  %v10551_v18 = vrot.slane %v10516_v14, 6  ;;  %v10550_v44 = vsel %vm3125_vm6, %v10549_v54, %v10548_v27  ;;  %v13742_v1 = vld [vmem:[#allocation14 + $0x94] ss:$8 sps:$4 sm:$0xff]  }
 0x697   :  { %10254 = vmatprep.subr.bf16.mxu1 %v13697_v38  ;;  %v10531_v38 = vrot.slane %v10499_v12, 2  ;;  %v10535_v59 = vrot.slane %v10511_v13, 7  ;;  %v10482_v33 = vcombine.high %v16201_v39, %v16201_v39  ;;  %v10557_v58 = vrot.slane %v16257_v37, 3  ;;  %v13733_v37 = vld [vmem:[#allocation14 + $0x1b4] ss:$8 sps:$4 sm:$0xff]  }
 0x698   :  { %v10537_v56 = vrot.slane %v10515_v35, 6  ;;  %v10396_v22 = vcombine.high %v16255_v3, %v16255_v3  ;;  %v10552_v23 = vsel %vm2490_vm1, %v10551_v18, %v10550_v44  ;;  %v16299_v14 = vrot.slane %v10448_v49, %v14327_v17  ;;  %v13746_v18 = vld [vmem:[#allocation14 + $0x80] ss:$8 sps:$4 sm:$0xff]  }
 0x699   :  { %10220 = vmatpush2.bf16.msra.mxu0 %v13710_v20  ;;  %v13728_v20 = vld [vmem:[#allocation14 + $0xb0] ss:$8 sps:$4 sm:$0xff]   ;;  %v10533_v9 = vsel %vm9351_vm5, %v10532_v51, %v10531_v38  ;;  %v10554_v5 = vsel %vm3129_vm8, %v10553_v25, %v10552_v23  ;;  %v10479_v10 = vrot.slane %v10465_v31, %v14327_v17  ;;  %v10496_v42 = vrot.slane %v10482_v33, %v14327_v17  ;;  %v13737_v44 = vld [vmem:[#allocation14 + $0x1a0] ss:$8 sps:$4 sm:$0xff]   ;;  %v13745_v23 = vld [vmem:[#allocation14 + $0x194] ss:$8 sps:$4 sm:$0xff]  }
 0x69a   :  { %10255 = vmatpush1.bf16.msra.mxu1 %v13695_v61  ;;  %10221 = vmatprep.subr.bf16.mxu0 %v13718_v45  ;;  %v13713_v61 = vld [vmem:[#allocation14 + $0x1e0] ss:$8 sps:$4 sm:$0xff]   ;;  %v13736_v45 = vld [vmem:[#allocation14 + $0xa4] ss:$8 sps:$4 sm:$0xff]   ;;  %v10534_v50 = vsel %vm3123_vm4, %v10507_v19, %v10533_v9  ;;  %v10506_v34 = vunpack.c.l.b16 %v10396_v22  ;;  %v10556_v13 = vsel %vm3131_vm9, %v10555_v36, %v10554_v5  ;;  %v10501_v38 = vunpack.c.l.b16 %v16252_v29 }
 0x69b   :  { %10256 = vmatprep.subr.bf16.mxu1 %v13703_v53  ;;  %v10379_v53 = vcombine.high %v16252_v29, %v16252_v29  ;;  %v10536_v12 = vsel %vm3125_vm6, %v10535_v59, %v10534_v50  ;;  %v13727_v19 = vld [vmem:[#allocation14 + $0x1c4] ss:$8 sps:$4 sm:$0xff]   ;;  %v10505_v51 = vunpack.c.l.b16 %v16255_v3  ;;  %v10558_v54 = vsel %vm16572_vm2, %v10557_v58, %v10556_v13 }
 0x69c   :  { %v10538_v0 = vsel %vm2490_vm1, %v10537_v56, %v10536_v12  ;;  %v10464_v59 = vcombine.high %v16299_v14, %v16299_v14  ;;  %v10498_v29 = vcombine.high %v10496_v42, %v10496_v42  ;;  %v10559_v22 = vrot.slane %v10501_v38, 2  ;;  %v10999_v31 = vld [vmem:[#allocation4 + $0x28] sm:$0xaa]  ;;  %v11001_v5 = vld [vmem:[#allocation4 + $0x10] sm:$0xaa] }
 0x69d   :  { %10222 = vmatpush2.bf16.msra.mxu0 %v13716_v32  ;;  %v16275_v32 = vrot.slane %v10414_v52, %v14327_v17  ;;  %v10540_v55 = vsel %vm3129_vm8, %v10539_v21, %v10538_v0  ;;  %v10481_v52 = vcombine.high %v10479_v10, %v10479_v10  ;;  %v9873_v12 = vpack.c.b16 %v16150_v7, %v16150_v7  ;;  %v13768_v33 = vld [vmem:[#allocation14 + $0x464] ss:$8 sps:$4 sm:$0xff]  }
 0x69e   :  { %10257 = vmatpush1.bf16.msra.mxu1 %v13701_v26  ;;  %10223 = vmatprep.subr.bf16.mxu0 %v13724_v43  ;;  %v16281_v26 = vrot.slane %v10397_v28, %v14327_v17  ;;  %v16284_v43 = vrot.slane %v10431_v60, %v14327_v17  ;;  %v10542_v39 = vsel %vm3131_vm9, %v10541_v40, %v10540_v55  ;;  %v13731_v28 = vld [vmem:[#allocation14 + $0x1b0] ss:$8 sps:$4 sm:$0xff]   ;;  %v13754_v60 = vld [vmem:[#allocation14 + $0x474] ss:$8 sps:$4 sm:$0xff]   ;;  %v13739_v40 = vld [vmem:[#allocation14 + $0x1a4] ss:$8 sps:$4 sm:$0xff]   ;;  %v10522_v36 = vunpack.c.l.b16 %v10464_v59 }
 0x69f   :  { %10258 = vmatprep.subr.bf16.mxu1 %v13709_v15  ;;  %v10502_v15 = vunpack.c.l.b16 %v10379_v53  ;;  %v10430_v35 = vcombine.high %v16275_v32, %v16275_v32  ;;  %v16308_v6 = vsel %vm16571_vm0, %v10543_v57, %v10542_v39  ;;  %v10513_v56 = vunpack.c.l.b16 %v16275_v32  ;;  %v13752_v32 = vld [vmem:[#allocation14 + $0x470] ss:$8 sps:$4 sm:$0xff]  }
 0x6a0   :  { %v10413_v41 = vcombine.high %v16281_v26, %v16281_v26  ;;  %v10447_v2 = vcombine.high %v16284_v43, %v16284_v43  ;;  %v10517_v3 = vunpack.c.l.b16 %v16284_v43  ;;  %v10525_v57 = vunpack.c.l.b16 %v10479_v10  ;;  %v13743_v10 = vld [vmem:[#allocation14 + $0x190] ss:$8 sps:$4 sm:$0xff]  }
 0x6a1   :  { %10224 = vmatpush2.bf16.msra.mxu0 %v13722_v30  ;;  %v13740_v30 = vld [vmem:[#allocation14 + $0x90] ss:$8 sps:$4 sm:$0xff]   ;;  %v10573_v16 = vrot.slane %v10502_v15, 2  ;;  %v10514_v27 = vunpack.c.l.b16 %v10430_v35  ;;  %v10529_v53 = vunpack.c.l.b16 %v10496_v42  ;;  %v10509_v25 = vunpack.c.l.b16 %v16281_v26  ;;  %v11000_v15 = vld [vmem:[#allocation4] sm:$0xaa] }
 0x6a2   :  { %10259 = vmatpush2.bf16.msra.mxu1 %v13707_v46  ;;  %10225 = vmatprep.subr.bf16.mxu0 %v13730_v63  ;;  %v13725_v46 = vld [vmem:[#allocation14 + $0x1c0] ss:$8 sps:$4 sm:$0xff]   ;;  %v13748_v63 = vld [vmem:[#allocation14 + $0x84] ss:$8 sps:$4 sm:$0xff]   ;;  %v10518_v21 = vunpack.c.l.b16 %v10447_v2  ;;  %v10526_v49 = vunpack.c.l.b16 %v10481_v52  ;;  %v10563_v50 = vrot.slane %v10513_v56, 7  ;;  %v10565_v26 = vrot.slane %v10517_v3, 6 }
 0x6a3   :  { %10260 = vmatprep.subr.bf16.mxu1 %v13715_v48  ;;  %v10574_v48 = vrot.slane %v10506_v34, 1  ;;  %v10577_v9 = vrot.slane %v10514_v27, 7  ;;  %v10569_v0 = vrot.slane %v10525_v57, 4  ;;  %v10581_v13 = vrot.slane %v10522_v36, 5  ;;  %v11005_v52 = vld [vmem:[#allocation4 + $0x38] sm:$0xaa] }
 0x6a4   :  { %v10579_v43 = vrot.slane %v10518_v21, 6  ;;  %v16329_v7 = vrot.slane %v10999_v31, %v14327_v17  ;;  %v10583_v39 = vrot.slane %v10526_v49, 4  ;;  %v11079_v2 = vcombine.high %v10999_v31, %v10999_v31 }
 0x6a5   :  { %10226 = vmatpush2.bf16.msra.mxu0 %v13728_v20  ;;  %v10510_v20 = vunpack.c.l.b16 %v10413_v41  ;;  %v9875_v38 = vpack.c.b16 %v16227_v24, %v16227_v24  ;;  %v16343_v56 = vrot.slane %v11000_v15, %v14327_v17  ;;  %v16346_v21 = vrot.slane %v11001_v5, %v14327_v17 }
 0x6a6   :  { %10261 = vmatpush2.bf16.msra.mxu1 %v13713_v61  ;;  %10227 = vmatprep.subr.bf16.mxu0 %v13736_v45  ;;  %v10521_v61 = vunpack.c.l.b16 %v16299_v14  ;;  %v10575_v45 = vsel %vm9351_vm5, %v10574_v48, %v10573_v16  ;;  %v11096_v16 = vcombine.high %v11000_v15, %v11000_v15  ;;  %v11113_v48 = vcombine.high %v11001_v5, %v11001_v5  ;;  %v13771_v5 = vld [vmem:[#allocation14 + $0x564] ss:$8 sps:$4 sm:$0xff]  }
 0x6a7   :  { %10262 = vmatprep.subr.bf16.mxu1 %v13721_v62  ;;  %v10560_v62 = vrot.slane %v10505_v51, 1  ;;  %v16354_v3 = vrot.slane %v11079_v2, %v14327_v17  ;;  %v11219_v31 = vunpack.c.l.b16 %v16343_v56  ;;  %v13769_v2 = vld [vmem:[#allocation14 + $0x560] ss:$8 sps:$4 sm:$0xff]  }
 0x6a8   :  { %v10567_v34 = vrot.slane %v10521_v61, 5 }
 0x6a9   :  { %10228 = vmatpush2.bf16.msra.mxu0 %v13734_v47  ;;  %v10576_v47 = vsel %vm3123_vm4, %v10510_v20, %v10575_v45  ;;  %v10561_v58 = vsel %vm9351_vm5, %v10560_v62, %v10559_v22  ;;  %v11006_v20 = vld [vmem:[#allocation4 + $0x30] sm:$0xaa]  ;;  %v13749_v45 = vld [vmem:[#allocation14 + $0x180] ss:$8 sps:$4 sm:$0xff]   ;;  %v16362_v22 = vrot.slane %v11096_v16, %v14327_v17  ;;  %v16365_v62 = vrot.slane %v11113_v48, %v14327_v17 }
 0x6aa   :  { %10263 = vmatpush2.bf16.msra.mxu1 %v13719_v8  ;;  %10229 = vmatprep.subr.bf16.mxu0 %v13742_v1  ;;  %v10588_v8 = vpack.c.b16 %v10558_v54, %v10558_v54  ;;  %v16324_v1 = vunpack.c.l.b16 %v10498_v29  ;;  %v10578_v55 = vsel %vm3125_vm6, %v10577_v9, %v10576_v47  ;;  %v10562_v35 = vsel %vm3123_vm4, %v10509_v25, %v10561_v58  ;;  %v16338_v54 = vld [vmem:[#allocation4 + $0x20] sm:$0xaa]  ;;  %v13792_v48 = vld [vmem:[#allocation14 + $0x424] ss:$8 sps:$4 sm:$0xff]  }
 0x6ab   :  { %10264 = vmatprep.subr.bf16.mxu1 %v13727_v19  ;;  %v10571_v19 = vrot.slane %v10529_v53, 3  ;;  %v10580_v14 = vsel %vm2490_vm1, %v10579_v43, %v10578_v55  ;;  %v10564_v41 = vsel %vm3125_vm6, %v10563_v50, %v10562_v35  ;;  %v16358_v57 = vrot.slane %v16338_v54, %v14327_v17  ;;  %v13778_v43 = vld [vmem:[#allocation14 + $0x440] ss:$8 sps:$4 sm:$0xff]   ;;  %v13786_v58 = vld [vmem:[#allocation14 + $0x434] ss:$8 sps:$4 sm:$0xff]  }
 0x6ac   :  { %v10566_v42 = vsel %vm2490_vm1, %v10565_v26, %v10564_v41  ;;  %v10585_v51 = vrot.slane %v16324_v1, 3  ;;  %v10582_v27 = vsel %vm3129_vm8, %v10581_v13, %v10580_v14  ;;  %v11215_v53 = vunpack.c.l.b16 %v16329_v7  ;;  %v13755_v26 = vld [vmem:[#allocation14 + $0x570] ss:$8 sps:$4 sm:$0xff]  }
 0x6ad   :  { %10230 = vmatpush2.bf16.msra.mxu0 %v13740_v30  ;;  %v13766_v30 = vld [vmem:[#allocation14 + $0x460] ss:$8 sps:$4 sm:$0xff]   ;;  %v10568_v59 = vsel %vm3129_vm8, %v10567_v34, %v10566_v42  ;;  %v10584_v24 = vsel %vm3131_vm9, %v10583_v39, %v10582_v27  ;;  %v11181_v9 = vcombine.high %v11005_v52, %v11005_v52  ;;  %v16375_v50 = vrot.slane %v11005_v52, %v14327_v17 }
 0x6ae   :  { %10265 = vmatpush2.bf16.msra.mxu1 %v13725_v46  ;;  %10231 = vmatprep.subr.bf16.mxu0 %v13748_v63  ;;  %v13774_v46 = vld [vmem:[#allocation14 + $0x454] ss:$8 sps:$4 sm:$0xff]   ;;  %v11217_v1 = vunpack.c.l.b16 %v16354_v3  ;;  %v11221_v34 = vunpack.c.l.b16 %v16362_v22  ;;  %v16394_v55 = vrot.slane %v11006_v20, %v14327_v17 }
 0x6af   :  { %10266 = vmatprep.subr.bf16.mxu1 %v13733_v37  ;;  %v11003_v63 = vld [vmem:[#allocation4 + $0x18] sm:$0xaa]  ;;  %v13751_v37 = vld [vmem:[#allocation14 + $0x184] ss:$8 sps:$4 sm:$0xff]   ;;  %v16389_v15 = vrot.slane %v11181_v9, %v14327_v17  ;;  %v11239_v39 = vunpack.c.l.b16 %v16375_v50 }
 0x6b0   :  { %v11147_v61 = vcombine.high %v11003_v63, %v11003_v63  ;;  %v16368_v25 = vrot.slane %v11003_v63, %v14327_v17  ;;  %v11275_v16 = vrot.slane %v11217_v1, 3  ;;  %v11243_v27 = vunpack.c.l.b16 %v16394_v55 }
 0x6b1   :  { %10232 = vmatpush2.bf16.msra.mxu0 %v13746_v18  ;;  %v11004_v18 = vld [vmem:[#allocation4 + $0x8] sm:$0xaa] }
 0x6b2   :  { %10267 = vmatpush2.bf16.msra.mxu1 %v13731_v28  ;;  %10915 = vmatprep.subr.bf16.mxu0 %v13754_v60  ;;  %v10570_v28 = vsel %vm3131_vm9, %v10569_v0, %v10568_v59  ;;  %v13772_v60 = vld [vmem:[#allocation14 + $0x450] ss:$8 sps:$4 sm:$0xff]   ;;  %v11164_v36 = vcombine.high %v11004_v18, %v11004_v18  ;;  %v16372_v49 = vrot.slane %v11004_v18, %v14327_v17  ;;  %v11225_v0 = vunpack.c.l.b16 %v16365_v62 }
 0x6b3   :  { %10268 = vmatprep.subr.bf16.mxu1 %v13739_v40  ;;  %v16351_v29 = vsel %vm16573_vm12, %v10571_v19, %v10570_v28  ;;  %v13780_v40 = vld [vmem:[#allocation14 + $0x444] ss:$8 sps:$4 sm:$0xff]   ;;  %v16378_v47 = vrot.slane %v11147_v61, %v14327_v17  ;;  %v11231_v13 = vunpack.c.l.b16 %v16368_v25 }
 0x6b4   :  { %10234 = vmatmul.mubr.bf16.vlgmr.msra.gmra.mxu0 %v9873_v12  ;;  %v11130_v12 = vcombine.high %v16338_v54, %v16338_v54  ;;  %v11235_v14 = vunpack.c.l.b16 %v16372_v49  ;;  %v11276_v54 = vrot.slane %v11221_v34, 2  ;;  %v11278_v59 = vrot.slane %v11225_v0, 1  ;;  %v13796_v0 = vld [vmem:[#allocation14 + $0x410] ss:$8 sps:$4 sm:$0xff]  }
 0x6b5   :  { %10916 = vmatpush1.bf16.msra.mxu0 %v13752_v32  ;;  %10947 = vmatprep.mubr.bf16.mxu0 %v10588_v8  ;;  %v10586_v32 = vsel %vm16574_vm7, %v10585_v51, %v10584_v24  ;;  %v16384_v8 = vrot.slane %v11164_v36, %v14327_v17  ;;  %v11233_v41 = vunpack.c.l.b16 %v16378_v47  ;;  %v11241_v51 = vunpack.c.l.b16 %v16389_v15  ;;  %v13790_v24 = vld [vmem:[#allocation14 + $0x420] ss:$8 sps:$4 sm:$0xff]  }
 0x6b6   :  { %10269 = vmatpush2.bf16.msra.mxu1 %v13737_v44  ;;  %10917 = vmatprep.subr.bf16.mxu0 %v13768_v33  ;;  %v13757_v44 = vld [vmem:[#allocation14 + $0x574] ss:$8 sps:$4 sm:$0xff]   ;;  %v11223_v33 = vunpack.c.l.b16 %v16346_v21  ;;  %v10590_v19 = vpack.c.b16 %v10586_v32, %v10586_v32  ;;  %v16404_v63 = vrot.slane %v11130_v12, %v14327_v17  ;;  %v11253_v52 = vrot.slane %v11231_v13, 7  ;;  %v13804_v13 = vld [vmem:[#allocation14 + $0x404] ss:$8 sps:$4 sm:$0xff]  }
 0x6b7   :  { %10270 = vmatprep.subr.bf16.mxu1 %v13745_v23  ;;  %v11198_v23 = vcombine.high %v11006_v20, %v11006_v20  ;;  %v11237_v42 = vunpack.c.l.b16 %v16384_v8  ;;  %v11255_v20 = vrot.slane %v11235_v14, 6  ;;  %v11281_v28 = vrot.slane %v11233_v41, 7 }
 0x6b8   :  { %v11257_v36 = vrot.slane %v11239_v39, 5  ;;  %v11285_v9 = vrot.slane %v11241_v51, 5  ;;  %v13816_v51 = vld [vmem:[#allocation14 + $0x4e4] ss:$8 sps:$4 sm:$0xff]  }
 0x6b9   :  { %10918 = vmatpush1.bf16.msra.mxu0 %v13766_v30  ;;  %v16398_v35 = vrot.slane %v11198_v23, %v14327_v17  ;;  %v11247_v30 = vrot.slane %v11215_v53, 3  ;;  %v11227_v17 = vunpack.c.l.b16 %v16358_v57  ;;  %v11283_v61 = vrot.slane %v11237_v42, 6  ;;  %v13775_v53 = vld [vmem:[#allocation14 + $0x550] ss:$8 sps:$4 sm:$0xff]   ;;  %v13810_v42 = vld [vmem:[#allocation14 + $0x4f4] ss:$8 sps:$4 sm:$0xff]  }
 0x6ba   :  { %10271 = vmatpush2.bf16.msra.mxu1 %v13743_v10  ;;  %10919 = vmatprep.subr.bf16.mxu0 %v13774_v46  ;;  %v13784_v10 = vld [vmem:[#allocation14 + $0x430] ss:$8 sps:$4 sm:$0xff]   ;;  %v11248_v46 = vrot.slane %v11219_v31, 2  ;;  %v11259_v31 = vrot.slane %v11243_v27, 4  ;;  %v13822_v27 = vld [vmem:[#allocation14 + $0x4d4] ss:$8 sps:$4 sm:$0xff]  }
 0x6bb   :  { %10272 = vmatprep.subr.bf16.mxu1 %v13751_v37  ;;  %v11250_v37 = vrot.slane %v11223_v33, 1  ;;  %v11245_v18 = vunpack.c.l.b16 %v16398_v35 }
 0x6bd   :  { %10920 = vmatpush1.bf16.msra.mxu0 %v13772_v60  ;;  %v11229_v60 = vunpack.c.l.b16 %v16404_v63  ;;  %v11287_v12 = vrot.slane %v11245_v18, 4  ;;  %v13807_v18 = vld [vmem:[#allocation14 + $0x504] ss:$8 sps:$4 sm:$0xff]  }
 0x6be   :  { %10273 = vmatpush2.bf16.msra.mxu1 %v13749_v45  ;;  %10921 = vmatprep.subr.bf16.mxu0 %v13780_v40  ;;  %v11249_v45 = vsel %vm9351_vm5, %v11248_v46, %v11247_v30  ;;  %v11277_v40 = vsel %vm9351_vm5, %v11276_v54, %v11275_v16  ;;  %v13789_v30 = vld [vmem:[#allocation14 + $0x534] ss:$8 sps:$4 sm:$0xff]   ;;  %v13787_v46 = vld [vmem:[#allocation14 + $0x530] ss:$8 sps:$4 sm:$0xff]   ;;  %v13795_v16 = vld [vmem:[#allocation14 + $0x524] ss:$8 sps:$4 sm:$0xff]  }
 0x6bf   :  { %10956 = vmatprep.subr.bf16.mxu1 %v13757_v44  ;;  %v13798_v44 = vld [vmem:[#allocation14 + $0x414] ss:$8 sps:$4 sm:$0xff]   ;;  %v11251_v23 = vsel %vm3123_vm4, %v11250_v37, %v11249_v45  ;;  %v11279_v32 = vsel %vm3123_vm4, %v11278_v59, %v11277_v40  ;;  %v13793_v37 = vld [vmem:[#allocation14 + $0x520] ss:$8 sps:$4 sm:$0xff]  }
 0x6c0   :  { %v11252_v1 = vsel %vm3125_vm6, %v11227_v17, %v11251_v23  ;;  %v13801_v54 = vld [vmem:[#allocation14 + $0x514] ss:$8 sps:$4 sm:$0xff]   ;;  %v13814_v59 = vld [vmem:[#allocation14 + $0x4e0] ss:$8 sps:$4 sm:$0xff]   ;;  %v11094_v17 = vcombine.high %v16329_v7, %v16329_v7  ;;  %v11162_v7 = vcombine.high %v16368_v25, %v16368_v25  ;;  %v11196_v23 = vcombine.high %v16375_v50, %v16375_v50 }
 0x6c1   :  { %10275 = vmatmul.mubr.bf16.vlgmr.msra.gmra.mxu1 %v9875_v38  ;;  %10922 = vmatpush1.bf16.msra.mxu0 %v13778_v43  ;;  %v13777_v38 = vld [vmem:[#allocation14 + $0x554] ss:$8 sps:$4 sm:$0xff]   ;;  %v13783_v43 = vld [vmem:[#allocation14 + $0x544] ss:$8 sps:$4 sm:$0xff]   ;;  %v11254_v33 = vsel %vm2490_vm1, %v11253_v52, %v11252_v1  ;;  %v11111_v52 = vcombine.high %v16343_v56, %v16343_v56  ;;  %v13811_v56 = vld [vmem:[#allocation14 + $0x5f0] ss:$8 sps:$4 sm:$0xff]  }
 0x6c2   :  { %10957 = vmatpush1.bf16.msra.mxu1 %v13755_v26  ;;  %10988 = vmatprep.mubr.bf16.mxu1 %v10590_v19  ;;  %v11280_v26 = vsel %vm3125_vm6, %v11229_v60, %v11279_v32  ;;  %v11256_v19 = vsel %vm3129_vm8, %v11255_v20, %v11254_v33  ;;  %v13820_v20 = vld [vmem:[#allocation14 + $0x4d0] ss:$8 sps:$4 sm:$0xff]   ;;  %v13828_v60 = vld [vmem:[#allocation14 + $0x4c4] ss:$8 sps:$4 sm:$0xff]   ;;  %v11216_v45 = vunpack.c.l.b16 %v11094_v17  ;;  %v13817_v25 = vld [vmem:[#allocation14 + $0x5e0] ss:$8 sps:$4 sm:$0xff]   ;;  %v11145_v33 = vcombine.high %v16358_v57, %v16358_v57 }
 0x6c3   :  { %10958 = vmatprep.subr.bf16.mxu1 %v13771_v5  ;;  %10923 = vmatprep.subr.bf16.mxu0 %v13786_v58  ;;  %v11282_v34 = vsel %vm2490_vm1, %v11281_v28, %v11280_v26  ;;  %v13781_v58 = vld [vmem:[#allocation14 + $0x540] ss:$8 sps:$4 sm:$0xff]   ;;  %v11258_v14 = vsel %vm3131_vm9, %v11257_v36, %v11256_v19  ;;  %v11128_v28 = vcombine.high %v16346_v21, %v16346_v21  ;;  %v11220_v40 = vunpack.c.l.b16 %v11111_v52  ;;  %v13834_v36 = vld [vmem:[#allocation14 + $0x4b4] ss:$8 sps:$4 sm:$0xff]   ;;  %v13819_v21 = vld [vmem:[#allocation14 + $0x5e4] ss:$8 sps:$4 sm:$0xff]  }
 0x6c4   :  { %v11284_v5 = vsel %vm3129_vm8, %v11283_v61, %v11282_v34  ;;  %v16425_v41 = vsel %vm16575_vm11, %v11259_v31, %v11258_v14  ;;  %v13813_v61 = vld [vmem:[#allocation14 + $0x5f4] ss:$8 sps:$4 sm:$0xff]   ;;  %v11261_v32 = vrot.slane %v11216_v45, 3  ;;  %v13832_v31 = vld [vmem:[#allocation14 + $0x4b0] ss:$8 sps:$4 sm:$0xff]   ;;  %v11240_v50 = vunpack.c.l.b16 %v11196_v23 }
 0x6c5   :  { %10924 = vmatpush1.bf16.msra.mxu0 %v13784_v10  ;;  %v11286_v39 = vsel %vm3131_vm9, %v11285_v9, %v11284_v5  ;;  %v13802_v10 = vld [vmem:[#allocation14 + $0x400] ss:$8 sps:$4 sm:$0xff]   ;;  %v11179_v9 = vcombine.high %v16372_v49, %v16372_v49  ;;  %v13840_v26 = vld [vmem:[#allocation14 + $0x4a4] ss:$8 sps:$4 sm:$0xff]   ;;  %v13825_v34 = vld [vmem:[#allocation14 + $0x5d4] ss:$8 sps:$4 sm:$0xff]   ;;  %v11213_v49 = vcombine.high %v16394_v55, %v16394_v55  ;;  %v11095_v14 = vcombine.high %v16354_v3, %v16354_v3 }
 0x6c6   :  { %10959 = vmatpush1.bf16.msra.mxu1 %v13769_v2  ;;  %10925 = vmatprep.subr.bf16.mxu0 %v13792_v48  ;;  %v16428_v2 = vsel %vm16576_vm10, %v11287_v12, %v11286_v39  ;;  %v13808_v48 = vld [vmem:[#allocation14 + $0x4f0] ss:$8 sps:$4 sm:$0xff]   ;;  %v11232_v12 = vunpack.c.l.b16 %v11162_v7  ;;  %v13838_v5 = vld [vmem:[#allocation14 + $0x4a0] ss:$8 sps:$4 sm:$0xff]   ;;  %v11112_v57 = vcombine.high %v16362_v22, %v16362_v22  ;;  %v11228_v55 = vunpack.c.l.b16 %v11145_v33 }
 0x6c7   :  { %10960 = vmatprep.subr.bf16.mxu1 %v13777_v38  ;;  %v13799_v38 = vld [vmem:[#allocation14 + $0x510] ss:$8 sps:$4 sm:$0xff]   ;;  %v11218_v22 = vunpack.c.l.b16 %v11095_v14 }
 0x6c8   :  { %v13823_v39 = vld [vmem:[#allocation14 + $0x5d0] ss:$8 sps:$4 sm:$0xff]  }
 0x6c9   :  { %10926 = vmatpush1.bf16.msra.mxu0 %v13790_v24  ;;  %v13805_v24 = vld [vmem:[#allocation14 + $0x500] ss:$8 sps:$4 sm:$0xff]   ;;  %v13835_v45 = vld [vmem:[#allocation14 + $0x5b0] ss:$8 sps:$4 sm:$0xff]  }
 0x6ca   :  { %10961 = vmatpush1.bf16.msra.mxu1 %v13775_v53  ;;  %10927 = vmatprep.subr.bf16.mxu0 %v13798_v44  ;;  %v13826_v53 = vld [vmem:[#allocation14 + $0x4c0] ss:$8 sps:$4 sm:$0xff]   ;;  %v11224_v44 = vunpack.c.l.b16 %v11128_v28  ;;  %v13876_v14 = vld [vmem:[#allocation14 + $0x650] ss:$8 sps:$4 sm:$0xff]  }
 0x6cb   :  { %10962 = vmatprep.subr.bf16.mxu1 %v13783_v43  ;;  %v11262_v43 = vrot.slane %v11220_v40, 2  ;;  %v13858_v40 = vld [vmem:[#allocation14 + $0x674] ss:$8 sps:$4 sm:$0xff]  }
 0x6cc   :  { %v11264_v1 = vrot.slane %v11224_v44, 1  ;;  %v13843_v44 = vld [vmem:[#allocation14 + $0x5a4] ss:$8 sps:$4 sm:$0xff]  }
 0x6cd   :  { %10928 = vmatpush1.bf16.msra.mxu0 %v13796_v0  ;;  %v11236_v0 = vunpack.c.l.b16 %v11179_v9  ;;  %v11263_v19 = vsel %vm9351_vm5, %v11262_v43, %v11261_v32  ;;  %v13841_v32 = vld [vmem:[#allocation14 + $0x5a0] ss:$8 sps:$4 sm:$0xff]  }
 0x6ce   :  { %10963 = vmatpush1.bf16.msra.mxu1 %v13781_v58  ;;  %10929 = vmatprep.subr.bf16.mxu0 %v13804_v13  ;;  %v11265_v58 = vsel %vm3123_vm4, %v11264_v1, %v11263_v19  ;;  %v11267_v13 = vrot.slane %v11232_v12, 7  ;;  %v13872_v12 = vld [vmem:[#allocation14 + $0x664] ss:$8 sps:$4 sm:$0xff]   ;;  %v13849_v1 = vld [vmem:[#allocation14 + $0x594] ss:$8 sps:$4 sm:$0xff]  }
 0x6cf   :  { %10964 = vmatprep.subr.bf16.mxu1 %v13789_v30  ;;  %v13846_v30 = vld [vmem:[#allocation14 + $0x494] ss:$8 sps:$4 sm:$0xff]  }
 0x6d0   :  { %v13878_v19 = vld [vmem:[#allocation14 + $0x654] ss:$8 sps:$4 sm:$0xff]  }
 0x6d1   :  { %10930 = vmatpush1.bf16.msra.mxu0 %v13802_v10  ;;  %v11129_v10 = vcombine.high %v16365_v62, %v16365_v62  ;;  %v11163_v62 = vcombine.high %v16378_v47, %v16378_v47  ;;  %v11197_v47 = vcombine.high %v16389_v15, %v16389_v15  ;;  %v10587_v15 = vpack.c.b16 %v16308_v6, %v16308_v6  ;;  %v13847_v6 = vld [vmem:[#allocation14 + $0x590] ss:$8 sps:$4 sm:$0xff]  }
 0x6d2   :  { %10965 = vmatpush1.bf16.msra.mxu1 %v13787_v46  ;;  %10931 = vmatprep.subr.bf16.mxu0 %v13810_v42  ;;  %v13831_v46 = vld [vmem:[#allocation14 + $0x5c4] ss:$8 sps:$4 sm:$0xff]   ;;  %v11244_v42 = vunpack.c.l.b16 %v11213_v49  ;;  %v13870_v49 = vld [vmem:[#allocation14 + $0x660] ss:$8 sps:$4 sm:$0xff]  }
 0x6d3   :  { %10966 = vmatprep.subr.bf16.mxu1 %v13795_v16  ;;  %v11266_v16 = vsel %vm3125_vm6, %v11228_v55, %v11265_v58  ;;  %v11242_v43 = vunpack.c.l.b16 %v11197_v47  ;;  %v13861_v55 = vld [vmem:[#allocation14 + $0x774] ss:$8 sps:$4 sm:$0xff]   ;;  %v13920_v47 = vld [vmem:[#allocation14 + $0x6e4] ss:$8 sps:$4 sm:$0xff]  }
 0x6d4   :  { %v11268_v3 = vsel %vm2490_vm1, %v11267_v13, %v11266_v16  ;;  %v11273_v52 = vrot.slane %v11244_v42, 4  ;;  %v13859_v42 = vld [vmem:[#allocation14 + $0x770] ss:$8 sps:$4 sm:$0xff]   ;;  %v10589_v16 = vpack.c.b16 %v16351_v29, %v16351_v29  ;;  %v13902_v29 = vld [vmem:[#allocation14 + $0x614] ss:$8 sps:$4 sm:$0xff]  }
 0x6d5   :  { %10932 = vmatpush2.bf16.msra.mxu0 %v13808_v48  ;;  %v11269_v48 = vrot.slane %v11236_v0, 6 }
 0x6d6   :  { %10967 = vmatpush1.bf16.msra.mxu1 %v13793_v37  ;;  %10933 = vmatprep.subr.bf16.mxu0 %v13816_v51  ;;  %v13844_v37 = vld [vmem:[#allocation14 + $0x490] ss:$8 sps:$4 sm:$0xff]   ;;  %v11271_v51 = vrot.slane %v11240_v50, 5  ;;  %v11299_v50 = vrot.slane %v11242_v43, 5  ;;  %v13938_v43 = vld [vmem:[#allocation14 + $0x6b4] ss:$8 sps:$4 sm:$0xff]  }
 0x6d7   :  { %10968 = vmatprep.subr.bf16.mxu1 %v13801_v54  ;;  %v11222_v54 = vunpack.c.l.b16 %v11112_v57  ;;  %v11270_v17 = vsel %vm3129_vm8, %v11269_v48, %v11268_v3  ;;  %v13853_v57 = vld [vmem:[#allocation14 + $0x580] ss:$8 sps:$4 sm:$0xff]   ;;  %v13875_v48 = vld [vmem:[#allocation14 + $0x764] ss:$8 sps:$4 sm:$0xff]  }
 0x6d8   :  { %v11272_v28 = vsel %vm3131_vm9, %v11271_v51, %v11270_v17  ;;  %v13888_v51 = vld [vmem:[#allocation14 + $0x630] ss:$8 sps:$4 sm:$0xff]   ;;  %v13885_v17 = vld [vmem:[#allocation14 + $0x740] ss:$8 sps:$4 sm:$0xff]  }
 0x6d9   :  { %10934 = vmatpush2.bf16.msra.mxu0 %v13814_v59  ;;  %v13829_v59 = vld [vmem:[#allocation14 + $0x5c0] ss:$8 sps:$4 sm:$0xff]  }
 0x6da   :  { %10969 = vmatpush1.bf16.msra.mxu1 %v13799_v38  ;;  %10935 = vmatprep.subr.bf16.mxu0 %v13822_v27  ;;  %v13852_v38 = vld [vmem:[#allocation14 + $0x484] ss:$8 sps:$4 sm:$0xff]   ;;  %v11226_v27 = vunpack.c.l.b16 %v11129_v10 }
 0x6db   :  { %10970 = vmatprep.subr.bf16.mxu1 %v13807_v18  ;;  %v13837_v18 = vld [vmem:[#allocation14 + $0x5b4] ss:$8 sps:$4 sm:$0xff]  }
 0x6dc   :  { %v11292_v7 = vrot.slane %v11226_v27, 1  ;;  %v13887_v27 = vld [vmem:[#allocation14 + $0x744] ss:$8 sps:$4 sm:$0xff]  }
 0x6dd   :  { %10936 = vmatpush2.bf16.msra.mxu0 %v13820_v20  ;;  %v13850_v20 = vld [vmem:[#allocation14 + $0x480] ss:$8 sps:$4 sm:$0xff]  }
 0x6de   :  { %10971 = vmatpush1.bf16.msra.mxu1 %v13805_v24  ;;  %10937 = vmatprep.subr.bf16.mxu0 %v13828_v60  ;;  %v11180_v24 = vcombine.high %v16384_v8, %v16384_v8  ;;  %v11289_v60 = vrot.slane %v11218_v22, 3  ;;  %v13856_v8 = vld [vmem:[#allocation14 + $0x670] ss:$8 sps:$4 sm:$0xff]   ;;  %v13873_v22 = vld [vmem:[#allocation14 + $0x760] ss:$8 sps:$4 sm:$0xff]  }
 0x6df   :  { %10972 = vmatprep.subr.bf16.mxu1 %v13813_v61  ;;  %v11290_v61 = vrot.slane %v11222_v54, 2  ;;  %v13896_v54 = vld [vmem:[#allocation14 + $0x624] ss:$8 sps:$4 sm:$0xff]  }
 0x6e0   :  { %v11238_v9 = vunpack.c.l.b16 %v11180_v24  ;;  %v13891_v24 = vld [vmem:[#allocation14 + $0x730] ss:$8 sps:$4 sm:$0xff]  }
 0x6e1   :  { %10938 = vmatpush2.bf16.msra.mxu0 %v13826_v53  ;;  %v11234_v53 = vunpack.c.l.b16 %v11163_v62  ;;  %v11291_v23 = vsel %vm9351_vm5, %v11290_v61, %v11289_v60  ;;  %v13879_v62 = vld [vmem:[#allocation14 + $0x750] ss:$8 sps:$4 sm:$0xff]   ;;  %v13914_v60 = vld [vmem:[#allocation14 + $0x6f4] ss:$8 sps:$4 sm:$0xff]   ;;  %v13899_v61 = vld [vmem:[#allocation14 + $0x724] ss:$8 sps:$4 sm:$0xff]  }
 0x6e2   :  { %10973 = vmatpush2.bf16.msra.mxu1 %v13811_v56  ;;  %10939 = vmatprep.subr.bf16.mxu0 %v13834_v36  ;;  %v11146_v56 = vcombine.high %v16404_v63, %v16404_v63  ;;  %v11274_v36 = vsel %vm16577_vm3, %v11273_v52, %v11272_v28  ;;  %v13908_v52 = vld [vmem:[#allocation14 + $0x604] ss:$8 sps:$4 sm:$0xff]   ;;  %v13906_v28 = vld [vmem:[#allocation14 + $0x600] ss:$8 sps:$4 sm:$0xff]  }
 0x6e3   :  { %10974 = vmatprep.subr.bf16.mxu1 %v13819_v21  ;;  %v11214_v21 = vcombine.high %v16398_v35, %v16398_v35  ;;  %v11295_v63 = vrot.slane %v11234_v53, 7  ;;  %v13905_v53 = vld [vmem:[#allocation14 + $0x714] ss:$8 sps:$4 sm:$0xff]  }
 0x6e5   :  { %10940 = vmatpush2.bf16.msra.mxu0 %v13832_v31  ;;  %v11293_v31 = vsel %vm3123_vm4, %v11292_v7, %v11291_v23  ;;  %v11246_v35 = vunpack.c.l.b16 %v11214_v21  ;;  %vm16578_vm4 = vmmov %vm16571_vm0  ;;  %v13918_v7 = vld [vmem:[#allocation14 + $0x6e0] ss:$8 sps:$4 sm:$0xff]   ;;  %v13917_v23 = vld [vmem:[#allocation14 + $0x7f4] ss:$8 sps:$4 sm:$0xff]  }
 0x6e6   :  { %10975 = vmatpush2.bf16.msra.mxu1 %v13817_v25  ;;  %10941 = vmatprep.subr.bf16.mxu0 %v13840_v26  ;;  %v11304_v25 = vpack.c.b16 %v11274_v36, %v11274_v36  ;;  %v11230_v26 = vunpack.c.l.b16 %v11146_v56  ;;  %v13926_v56 = vld [vmem:[#allocation14 + $0x6d4] ss:$8 sps:$4 sm:$0xff]   ;;  %v13911_v36 = vld [vmem:[#allocation14 + $0x704] ss:$8 sps:$4 sm:$0xff]   ;;  %v13909_v21 = vld [vmem:[#allocation14 + $0x700] ss:$8 sps:$4 sm:$0xff]  }
 0x6e7   :  { %10976 = vmatprep.subr.bf16.mxu1 %v13825_v34  ;;  %v11297_v34 = vrot.slane %v11238_v9, 6  ;;  %v11301_v13 = vrot.slane %v11246_v35, 4  ;;  %v13932_v9 = vld [vmem:[#allocation14 + $0x6c4] ss:$8 sps:$4 sm:$0xff]   ;;  %v13927_v35 = vld [vmem:[#allocation14 + $0x7d0] ss:$8 sps:$4 sm:$0xff]  }
 0x6e8   :  { %v11294_v33 = vsel %vm3125_vm6, %v11230_v26, %v11293_v31  ;;  %v13923_v31 = vld [vmem:[#allocation14 + $0x7e4] ss:$8 sps:$4 sm:$0xff]   ;;  %v13942_v26 = vld [vmem:[#allocation14 + $0x6a0] ss:$8 sps:$4 sm:$0xff]  }
 0x6e9   :  { %10942 = vmatpush2.bf16.msra.mxu0 %v13838_v5  ;;  %v11296_v0 = vsel %vm2490_vm1, %v11295_v63, %v11294_v33  ;;  %v13855_v5 = vld [vmem:[#allocation14 + $0x584] ss:$8 sps:$4 sm:$0xff]   ;;  %v13936_v63 = vld [vmem:[#allocation14 + $0x6b0] ss:$8 sps:$4 sm:$0xff]   ;;  %v13950_v33 = vld [vmem:[#allocation14 + $0x694] ss:$8 sps:$4 sm:$0xff]  }
 0x6ea   :  { %10977 = vmatpush2.bf16.msra.mxu1 %v13823_v39  ;;  %10943 = vmatprep.subr.bf16.mxu0 %v13846_v30  ;;  %v11298_v58 = vsel %vm3129_vm8, %v11297_v34, %v11296_v0  ;;  %v13884_v30 = vld [vmem:[#allocation14 + $0x644] ss:$8 sps:$4 sm:$0xff]  }
 0x6eb   :  { %10978 = vmatprep.subr.bf16.mxu1 %v13831_v46  ;;  %v11300_v39 = vsel %vm3131_vm9, %v11299_v50, %v11298_v58  ;;  %v13882_v46 = vld [vmem:[#allocation14 + $0x640] ss:$8 sps:$4 sm:$0xff]   ;;  %v13935_v34 = vld [vmem:[#allocation14 + $0x7c4] ss:$8 sps:$4 sm:$0xff]   ;;  %v13941_v50 = vld [vmem:[#allocation14 + $0x7b4] ss:$8 sps:$4 sm:$0xff]  }
 0x6ec   :  { %v11302_v10 = vsel %vm16578_vm4, %v11301_v13, %v11300_v39  ;;  %v13956_v0 = vld [vmem:[#allocation14 + $0x684] ss:$8 sps:$4 sm:$0xff]   ;;  %v13945_v13 = vld [vmem:[#allocation14 + $0x7a0] ss:$8 sps:$4 sm:$0xff]  }
 0x6ed   :  { %10944 = vmatpush2.bf16.msra.mxu0 %v13844_v37  ;;  %v13890_v37 = vld [vmem:[#allocation14 + $0x634] ss:$8 sps:$4 sm:$0xff]   ;;  %v11306_v3 = vpack.c.b16 %v11302_v10, %v11302_v10  ;;  %v13947_v58 = vld [vmem:[#allocation14 + $0x7a4] ss:$8 sps:$4 sm:$0xff]  }
 0x6ee   :  { %10979 = vmatpush2.bf16.msra.mxu1 %v13829_v59  ;;  %10945 = vmatprep.subr.bf16.mxu0 %v13852_v38  ;;  %v13881_v59 = vld [vmem:[#allocation14 + $0x754] ss:$8 sps:$4 sm:$0xff]   ;;  %v13894_v38 = vld [vmem:[#allocation14 + $0x620] ss:$8 sps:$4 sm:$0xff]   ;;  %v13959_v10 = vld [vmem:[#allocation14 + $0x784] ss:$8 sps:$4 sm:$0xff]  }
 0x6ef   :  { %10980 = vmatprep.subr.bf16.mxu1 %v13837_v18  ;;  %v13900_v18 = vld [vmem:[#allocation14 + $0x610] ss:$8 sps:$4 sm:$0xff]  }
 0x6f1   :  { %10946 = vmatpush2.bf16.msra.mxu0 %v13850_v20  ;;  %v13893_v20 = vld [vmem:[#allocation14 + $0x734] ss:$8 sps:$4 sm:$0xff]  }
 0x6f2   :  { %10981 = vmatpush2.bf16.msra.mxu1 %v13835_v45  ;;  %11631 = vmatprep.subr.bf16.mxu0 %v13858_v40  ;;  %v13912_v45 = vld [vmem:[#allocation14 + $0x6f0] ss:$8 sps:$4 sm:$0xff]   ;;  %v13897_v40 = vld [vmem:[#allocation14 + $0x720] ss:$8 sps:$4 sm:$0xff]  }
 0x6f3   :  { %10982 = vmatprep.subr.bf16.mxu1 %v13843_v44  ;;  %v13903_v44 = vld [vmem:[#allocation14 + $0x710] ss:$8 sps:$4 sm:$0xff]  }
 0x6f4   :  { %10948 = vmatmul.mubr.bf16.vlgmr.msra.gmra.mxu0 %v10587_v15  ;;  %v13915_v15 = vld [vmem:[#allocation14 + $0x7f0] ss:$8 sps:$4 sm:$0xff]  }
 0x6f5   :  { %11632 = vmatpush1.bf16.msra.mxu0 %v13856_v8  ;;  %11663 = vmatprep.mubr.bf16.mxu0 %v11304_v25  ;;  %v13924_v8 = vld [vmem:[#allocation14 + $0x6d0] ss:$8 sps:$4 sm:$0xff]   ;;  %v13929_v25 = vld [vmem:[#allocation14 + $0x7d4] ss:$8 sps:$4 sm:$0xff]  }
 0x6f6   :  { %10983 = vmatpush2.bf16.msra.mxu1 %v13841_v32  ;;  %11633 = vmatprep.subr.bf16.mxu0 %v13872_v12  ;;  %v13930_v32 = vld [vmem:[#allocation14 + $0x6c0] ss:$8 sps:$4 sm:$0xff]  }
 0x6f7   :  { %10984 = vmatprep.subr.bf16.mxu1 %v13849_v1  ;;  %v13921_v12 = vld [vmem:[#allocation14 + $0x7e0] ss:$8 sps:$4 sm:$0xff]   ;;  %v13944_v1 = vld [vmem:[#allocation14 + $0x6a4] ss:$8 sps:$4 sm:$0xff]  }
 0x6f9   :  { %11634 = vmatpush1.bf16.msra.mxu0 %v13870_v49  ;;  %v13948_v49 = vld [vmem:[#allocation14 + $0x690] ss:$8 sps:$4 sm:$0xff]  }
 0x6fa   :  { %10985 = vmatpush2.bf16.msra.mxu1 %v13847_v6  ;;  %11635 = vmatprep.subr.bf16.mxu0 %v13878_v19  ;;  %v13933_v6 = vld [vmem:[#allocation14 + $0x7c0] ss:$8 sps:$4 sm:$0xff]  }
 0x6fb   :  { %10986 = vmatprep.subr.bf16.mxu1 %v13855_v5  ;;  %v13954_v19 = vld [vmem:[#allocation14 + $0x680] ss:$8 sps:$4 sm:$0xff]   ;;  %v13939_v5 = vld [vmem:[#allocation14 + $0x7b0] ss:$8 sps:$4 sm:$0xff]  }
 0x6fd   :  { %11636 = vmatpush1.bf16.msra.mxu0 %v13876_v14  ;;  %v11303_v14 = vpack.c.b16 %v16425_v41, %v16425_v41 }
 0x6fe   :  { %10987 = vmatpush2.bf16.msra.mxu1 %v13853_v57  ;;  %11637 = vmatprep.subr.bf16.mxu0 %v13884_v30  ;;  %v13953_v57 = vld [vmem:[#allocation14 + $0x794] ss:$8 sps:$4 sm:$0xff]   ;;  %v13951_v30 = vld [vmem:[#allocation14 + $0x790] ss:$8 sps:$4 sm:$0xff]  }
 0x6ff   :  { %11672 = vmatprep.subr.bf16.mxu1 %v13861_v55 }
 0x701   :  { %10989 = vmatmul.mubr.bf16.vlgmr.msra.gmra.mxu1 %v10589_v16  ;;  %11638 = vmatpush1.bf16.msra.mxu0 %v13882_v46 }
 0x702   :  { %11673 = vmatpush1.bf16.msra.mxu1 %v13859_v42  ;;  %11704 = vmatprep.mubr.bf16.mxu1 %v11306_v3  ;;  %v13957_v42 = vld [vmem:[#allocation14 + $0x780] ss:$8 sps:$4 sm:$0xff]  }
 0x703   :  { %11674 = vmatprep.subr.bf16.mxu1 %v13875_v48  ;;  %11639 = vmatprep.subr.bf16.mxu0 %v13890_v37  ;;  %v11305_v48 = vpack.c.b16 %v16428_v2, %v16428_v2  ;;  %v13967_v2 = vld [vmem:[#allocation16 + $0x20] sm:$0xff]  }
 0x705   :  { %11640 = vmatpush1.bf16.msra.mxu0 %v13888_v51 }
 0x706   :  { %11675 = vmatpush1.bf16.msra.mxu1 %v13873_v22  ;;  %11641 = vmatprep.subr.bf16.mxu0 %v13896_v54 }
 0x707   :  { %11676 = vmatprep.subr.bf16.mxu1 %v13881_v59  ;;  %v13960_v59 = vld [vmem:[#allocation16 + $0x78] sm:$0xff]  }
 0x709   :  { %11642 = vmatpush1.bf16.msra.mxu0 %v13894_v38  ;;  %v13961_v38 = vld [vmem:[#allocation16 + $0x38] sm:$0xff]  }
 0x70a   :  { %11677 = vmatpush1.bf16.msra.mxu1 %v13879_v62  ;;  %11643 = vmatprep.subr.bf16.mxu0 %v13902_v29  ;;  %v13962_v62 = vld [vmem:[#allocation16 + $0x70] sm:$0xff]  }
 0x70b   :  { %11678 = vmatprep.subr.bf16.mxu1 %v13887_v27  ;;  %v13963_v29 = vld [vmem:[#allocation16 + $0x30] sm:$0xff]   ;;  %v13964_v27 = vld [vmem:[#allocation16 + $0x68] sm:$0xff]  }
 0x70d   :  { %11644 = vmatpush1.bf16.msra.mxu0 %v13900_v18  ;;  %v13965_v18 = vld [vmem:[#allocation16 + $0x28] sm:$0xff]  }
 0x70e   :  { %11679 = vmatpush1.bf16.msra.mxu1 %v13885_v17  ;;  %11645 = vmatprep.subr.bf16.mxu0 %v13908_v52  ;;  %v13966_v17 = vld [vmem:[#allocation16 + $0x60] sm:$0xff]  }
 0x70f   :  { %11680 = vmatprep.subr.bf16.mxu1 %v13893_v20  ;;  %v13968_v20 = vld [vmem:[#allocation16 + $0x58] sm:$0xff]  }
 0x711   :  { %11646 = vmatpush1.bf16.msra.mxu0 %v13906_v28  ;;  %v13969_v28 = vld [vmem:[#allocation16 + $0x18] sm:$0xff]  }
 0x712   :  { %11681 = vmatpush1.bf16.msra.mxu1 %v13891_v24  ;;  %11647 = vmatprep.subr.bf16.mxu0 %v13914_v60 }
 0x713   :  { %11682 = vmatprep.subr.bf16.mxu1 %v13899_v61 }
 0x715   :  { %11648 = vmatpush2.bf16.msra.mxu0 %v13912_v45 }
 0x716   :  { %11683 = vmatpush1.bf16.msra.mxu1 %v13897_v40  ;;  %11649 = vmatprep.subr.bf16.mxu0 %v13920_v47 }
 0x717   :  { %11684 = vmatprep.subr.bf16.mxu1 %v13905_v53 }
 0x719   :  { %11650 = vmatpush2.bf16.msra.mxu0 %v13918_v7 }
 0x71a   :  { %11685 = vmatpush1.bf16.msra.mxu1 %v13903_v44  ;;  %11651 = vmatprep.subr.bf16.mxu0 %v13926_v56 }
 0x71b   :  { %11686 = vmatprep.subr.bf16.mxu1 %v13911_v36 }
 0x71d   :  { %11652 = vmatpush2.bf16.msra.mxu0 %v13924_v8  ;;  %v13970_v8 = vld [vmem:[#allocation16 + $0x50] sm:$0xff]  }
 0x71e   :  { %11687 = vmatpush1.bf16.msra.mxu1 %v13909_v21  ;;  %11653 = vmatprep.subr.bf16.mxu0 %v13932_v9  ;;  %v13971_v21 = vld [vmem:[#allocation16 + $0x10] sm:$0xff]   ;;  %v13972_v9 = vld [vmem:[#allocation16 + $0x48] sm:$0xff]  }
 0x71f   :  { %11688 = vmatprep.subr.bf16.mxu1 %v13917_v23  ;;  %v13973_v23 = vld [vmem:[#allocation16 + $0x8] sm:$0xff]  }
 0x721   :  { %11654 = vmatpush2.bf16.msra.mxu0 %v13930_v32  ;;  %v13974_v32 = vld [vmem:[#allocation16 + $0x40] sm:$0xff]  }
 0x722   :  { %11689 = vmatpush2.bf16.msra.mxu1 %v13915_v15  ;;  %11655 = vmatprep.subr.bf16.mxu0 %v13938_v43  ;;  %v13975_v15 = vld [vmem:[#allocation16] sm:$0xff]  }
 0x723   :  { %11690 = vmatprep.subr.bf16.mxu1 %v13923_v31 }
 0x725   :  { %11656 = vmatpush2.bf16.msra.mxu0 %v13936_v63 }
 0x726   :  { %11691 = vmatpush2.bf16.msra.mxu1 %v13921_v12  ;;  %11657 = vmatprep.subr.bf16.mxu0 %v13944_v1 }
 0x727   :  { %11692 = vmatprep.subr.bf16.mxu1 %v13929_v25 }
 0x729   :  { %11658 = vmatpush2.bf16.msra.mxu0 %v13942_v26 }
 0x72a   :  { %11693 = vmatpush2.bf16.msra.mxu1 %v13927_v35  ;;  %11659 = vmatprep.subr.bf16.mxu0 %v13950_v33 }
 0x72b   :  { %11694 = vmatprep.subr.bf16.mxu1 %v13935_v34 }
 0x72d   :  { %11660 = vmatpush2.bf16.msra.mxu0 %v13948_v49 }
 0x72e   :  { %11695 = vmatpush2.bf16.msra.mxu1 %v13933_v6  ;;  %11661 = vmatprep.subr.bf16.mxu0 %v13956_v0 }
 0x72f   :  { %11696 = vmatprep.subr.bf16.mxu1 %v13941_v50 }
 0x731   :  { %11662 = vmatpush2.bf16.msra.mxu0 %v13954_v19 }
 0x732   :  { %11697 = vmatpush2.bf16.msra.mxu1 %v13939_v5  ;;  %12908 = vmatprep.subr.bf16.mxu0 %v13960_v59 }
 0x733   :  { %11698 = vmatprep.subr.bf16.mxu1 %v13947_v58  ;;  %v11715_v58 = vld [vmem:[%s16503_s8] sm:$0x3] }
 0x734   :  { %11664 = vmatmul.mubr.bf16.vlgmr.msra.gmra.mxu0 %v11303_v14  ;;  %v9769_v39 = vpop.f32.mrf.mxu0 }
 0x735   :  { %12909 = vmatpush3.bf16.msra.mxu0 %v13961_v38 }
 0x736   :  { %11699 = vmatpush2.bf16.msra.mxu1 %v13945_v13  ;;  %v9771_v55 = vpop.f32.mrf.mxu0  ;;  %12910 = vmatprep.subr.bf16.mxu0 %v13962_v62 }
 0x737   :  { %11700 = vmatprep.subr.bf16.mxu1 %v13953_v57  ;;  %v11720_v57 = vrot.slane %v11715_v58, %v16553_v4  ;;  %v12795_v4 = vld [vmem:[%s16505_s10] ss:$0 sm:$0xff] }
 0x738   :  { %v9773_v46 = vpop.f32.mrf.mxu0 }
 0x739   :  { %12911 = vmatpush3.bf16.msra.mxu0 %v13963_v29 }
 0x73a   :  { %11701 = vmatpush2.bf16.msra.mxu1 %v13951_v30  ;;  %v9774_v16 = vpop.f32.mrf.mxu0  ;;  %12912 = vmatprep.subr.bf16.mxu0 %v13964_v27 }
 0x73b   :  { %11702 = vmatprep.subr.bf16.mxu1 %v13959_v10  ;;  %v11724_v10 = vrot.slane %v11715_v58, %v16555_v11 }
 0x73d   :  { %12913 = vmatpush3.bf16.msra.mxu0 %v13965_v18 }
 0x73e   :  { %11703 = vmatpush2.bf16.msra.mxu1 %v13957_v42  ;;  %12914 = vmatprep.subr.bf16.mxu0 %v13966_v17 }
 0x741   :  { %11705 = vmatmul.mubr.bf16.vlgmr.msra.gmra.mxu1 %v11305_v48  ;;  %v9810_v41 = vpop.f32.mrf.mxu1  ;;  %12915 = vmatpush3.bf16.msra.mxu0 %v13967_v2 }
 0x742   :  { %v9811_v37 = vadd.f32 %v9810_v41, %v9769_v39  ;;  %12916 = vmatprep.subr.bf16.mxu0 %v13968_v20 }
 0x743   :  { %v9812_v3 = vpop.f32.mrf.mxu1 }
 0x744   :  { %v9813_v51 = vadd.f32 %v9812_v3, %v9771_v55 }
 0x745   :  { %v9814_v22 = vpop.f32.mrf.mxu1  ;;  %12917 = vmatpush3.bf16.msra.mxu0 %v13969_v28 }
 0x746   :  { %12918 = vmatprep.subr.bf16.mxu0 %v13970_v8 }
 0x747   :  { %v9815_v54 = vpop.f32.mrf.mxu1 }
 0x749   :  { %12919 = vmatpush3.bf16.msra.mxu0 %v13971_v21 }
 0x74a   :  { %12920 = vmatprep.subr.bf16.mxu0 %v13972_v9 }
 0x74d   :  { %12921 = vmatpush3.bf16.msra.mxu0 %v13973_v23 }
 0x74e   :  { %12922 = vmatprep.subr.bf16.mxu0 %v13974_v32 }
 0x751   :  { %12923 = vmatpush3.bf16.msra.mxu0 %v13975_v15 }
 0x774   :  { %v10235_v52 = vpop.f32.mrf.mxu0 }
 0x775   :  { %v10236_v24 = vadd.f32 %v10235_v52, %v9811_v37 }
 0x776   :  { %v10237_v60 = vpop.f32.mrf.mxu0 }
 0x777   :  { %v10238_v61 = vadd.f32 %v10237_v60, %v9813_v51 }
 0x778   :  { %v10239_v45 = vpop.f32.mrf.mxu0 }
 0x77a   :  { %v10240_v40 = vpop.f32.mrf.mxu0 }
 0x781   :  { %v10276_v47 = vpop.f32.mrf.mxu1 }
 0x782   :  { %v10277_v53 = vadd.f32 %v10276_v47, %v10236_v24 }
 0x783   :  { %v10278_v7 = vpop.f32.mrf.mxu1 }
 0x784   :  { %v10279_v44 = vadd.f32 %v10278_v7, %v10238_v61 }
 0x785   :  { %v10280_v56 = vpop.f32.mrf.mxu1 }
 0x787   :  { %v10281_v36 = vpop.f32.mrf.mxu1 }
 0x7b4   :  { %v10949_v43 = vpop.f32.mrf.mxu0 }
 0x7b6   :  { %v10951_v31 = vpop.f32.mrf.mxu0 }
 0x7b8   :  { %v10953_v63 = vpop.f32.mrf.mxu0 }
 0x7ba   :  { %v10954_v12 = vpop.f32.mrf.mxu0 }
 0x7c1   :  { %v10990_v1 = vpop.f32.mrf.mxu1 }
 0x7c2   :  { %v10991_v25 = vadd.f32 %v10990_v1, %v10949_v43 }
 0x7c3   :  { %v10992_v26 = vpop.f32.mrf.mxu1 }
 0x7c4   :  { %v10997_v35 = vadd.f32 %v10991_v25, %v10277_v53  ;;  %v10993_v33 = vadd.f32 %v10992_v26, %v10951_v31 }
 0x7c5   :  { %v10994_v34 = vpop.f32.mrf.mxu1 }
 0x7c6   :  { %v10998_v49 = vadd.f32 %v10993_v33, %v10279_v44 }
 0x7c7   :  { %v10995_v6 = vpop.f32.mrf.mxu1 }
 0x7f4   :  { %v11665_v0 = vpop.f32.mrf.mxu0 }
 0x7f6   :  { %v11667_v50 = vpop.f32.mrf.mxu0 }
 0x7f8   :  { %v11669_v19 = vpop.f32.mrf.mxu0 }
 0x7fa   :  { %v11670_v5 = vpop.f32.mrf.mxu0 }
 0x801   :  { %v11706_v13 = vpop.f32.mrf.mxu1 }
 0x802   :  { %v11707_v14 = vadd.f32 %v11706_v13, %v11665_v0 }
 0x803   :  { %v11708_v39 = vpop.f32.mrf.mxu1 }
 0x804   :  { %v11713_v30 = vadd.f32 %v11707_v14, %v10997_v35  ;;  %v11709_v55 = vadd.f32 %v11708_v39, %v11667_v50 }
 0x805   :  { %v11710_v46 = vpop.f32.mrf.mxu1 }
 0x806   :  { %v11727_v42 = vadd.f32 %v11720_v57, %v11713_v30  ;;  %v11714_v16 = vadd.f32 %v11709_v55, %v10998_v49 }
 0x807   :  { %v11711_v48 = vpop.f32.mrf.mxu1 }
 0x808   :  { %v11728_v41 = vadd.f32 %v11724_v10, %v11714_v16  ;;  %v11729_v37 = vmax.f32 %v11727_v42, 0.0 }
 0x80a   :  { %v11730_v3 = vmax.f32 %v11728_v41, 0.0  ;;  %v11731_v22 = vpack.c.bf16 %v11729_v37, %v11729_v37 }
 0x80c   :  { %v11732_v51 = vpack.c.bf16 %v11730_v3, %v11730_v3 }
 0x80e   :  { %11900 = vmatprep.mubr.bf16.mxu0 %v11732_v51 }
 0x80f   :  { %11901 = vmatmul.mubr.bf16.vlgmr.msra.gmra.mxu0 %v11731_v22 }
 0x8cf   :  { %v12924_v54 = vpop.f32.mrf.mxu0 }
 0x8d1   :  { %v12925_v59 = vpop.f32.mrf.mxu0 }
 0x8d2   :  { %v12926_v11 = vadd.f32 %v12925_v59, %v12924_v54 }
 0x8d3   :  { %v12927_v38 = vpop.f32.mrf.mxu0 }
 0x8d4   :  { %v11903_v62 = vadd.f32 %v12926_v11, %v12795_v4 }
 0x8d5   :  { %v12928_v29 = vpop.f32.mrf.mxu0 }
 0x8d6   :  { %11908 = vst [vmem:[#allocation17] sm:$0xff] %v11903_v62 }
 0x8d7   :  { %14127 = shalt.err (!%p14124_p11)
}
 0x8d8   :  { %11918 = dma.vmem_to_hbm [thread:$0]  %s11916_s18, 128, %s16506_s11, [#allocation7]  }
 0x8d9   :  { %14144 = dma.done.wait [#allocation7], 128  }
 0x8da   :  { %14145 = vsyncadd [#allocation7], 4294967168 }
 0x8db   :  { %11922 = vsyncpa [#allocation6], 1 }
 0x8dc   :  { %11923 = vsyncpa [#allocation9], 1 }
 0x8dd   :  { %11924 = vsyncpa [#allocation12], 1 }
 0x8de   :  { %11925 = vsyncpa [#allocation15], 1 }
 0x8df   :  { %11926 = vsyncpa [#allocation7], 1 }

</bundles_post_ra>
